<compile_context>
chip_gen: v6e
topology: v6e:2x2x1
jax: 0.10.0
libtpu: 0.0.40
codegen_flags: <defaults>
</compile_context>

<pallas_src>
import jax
import jax.numpy as jnp
from jax import lax
from jax.experimental import pallas as pl
from jax.experimental.pallas import tpu as pltpu

K = 7          # kernel size
P = K - 1      # padding = 6
C_LAT = 32     # latent channels
MXU_ROWS = 8   # pad the 7 kw-rows of the pconv LHS to one sublane tile
LANE = 128


def _rup(x, m):
    return ((x + m - 1) // m) * m


def _axis_count(out_len, in_len):
    """AvgPool(7, stride=1) overlap count along one axis of pad(ones, 6)."""
    i = jnp.arange(out_len)
    lo = jnp.maximum(i, P)
    hi = jnp.minimum(i + K - 1, P + in_len - 1)
    return jnp.maximum(hi - lo + 1, 0).astype(jnp.float32)


def czp_forward(x_nchw, w_dec, w_pconv_v):
    """x_nchw: (N,1,H,W) f32. Returns (out (N,1,H,W), {'latent': (N,32,H-6,W-6)})."""
    n, cin, H, W = x_nchw.shape
    assert cin == 1 and H > P and W > P
    Hout, Wout = H - P, W - P
    Hp, Wp = Hout + 2 * P, Wout + 2 * P          # = H + 6, W + 6
    HW = H * W
    HWx = _rup(HW, LANE)                         # decoder roll length (x128)
    NDEC = Hout * W                              # decoder matmul N (garbage cols j>=Wout)
    HWp = H * Wp                                 # pconv flattened output length
    HWp128 = _rup(HWp, LANE)                     # pconv roll / store length (x128)

    def kernel(x_ref, wd_ref, wp_ref, invm_ref, latent_ref, out_ref, lp_ref):
        # x_ref     : (1, 1, HWx)   f32   flattened (stride-W) input row, zero-padded
        # wd_ref    : (32, 49)      bf16  decoder weight [c, kh*7+kw]
        # wp_ref    : (8, 224)      bf16  pconv weight   [kw, kh*32+c] (rows >=7 zero)
        # invm_ref  : (1, HWp128)   f32   49 / (row_count * col_count), flattened/padded
        # latent_ref: (1, 32, NDEC) f32   decoder output, lane-dense (stride-W columns)
        # out_ref   : (1, 1, HWp128) f32  pconv/mask, flattened with row stride Wp
        # lp_ref    : VMEM scratch (32, Hp, Wp) f32  zero-padded latent

        # ---- decoder conv: 49 lane-rolls of the flattened row + ONE MXU matmul ----
        x_row = x_ref[0]                                           # (1, HWx)
        rows = []
        for kh in range(K):
            for kw in range(K):
                s = kh * W + kw
                r = x_row if s == 0 else pltpu.roll(x_row, shift=HWx - s, axis=1)
                rows.append(r[:, :NDEC])
        rhs1 = jnp.concatenate(rows, axis=0).astype(jnp.bfloat16)  # (49, NDEC)
        lat = jnp.dot(wd_ref[...], rhs1,
                      preferred_element_type=jnp.float32)          # (32, NDEC) f32
        latent_ref[0] = lat                                        # lane-dense store

        # ---- zero-pad latent into scratch: write only the 6-wide border + interior ----
        zrow = jnp.zeros((C_LAT, P, Wp), jnp.float32)
        zcol = jnp.zeros((C_LAT, Hout, P), jnp.float32)
        lp_ref[:, :P, :] = zrow
        lp_ref[:, P + Hout:Hp, :] = zrow
        lp_ref[:, P:P + Hout, :P] = zcol
        lp_ref[:, P:P + Hout, P + Wout:Wp] = zcol
        lat3 = lat.reshape(C_LAT, Hout, W)                         # drop garbage cols
        lp_ref[:, P:P + Hout, P:P + Wout] = lat3[:, :, :Wout]

        # ---- pconv: ONE matmul, contraction = (kh, c) = 224, N = H*Wp (+pad) ----
        slabs = []
        for kh in range(K):                                        # sublane-offset slices
            slabs.append(lp_ref[:, kh:kh + H, :].reshape(C_LAT, HWp))
        rhs2 = jnp.concatenate(slabs, axis=0)                      # (224, HWp) f32
        if HWp128 > HWp:
            rhs2 = jnp.concatenate(
                [rhs2, jnp.zeros((K * C_LAT, HWp128 - HWp), jnp.float32)], axis=1)
        rhs2 = rhs2.astype(jnp.bfloat16)                           # (224, HWp128)
        a = jnp.dot(wp_ref[...], rhs2,
                    preferred_element_type=jnp.float32)            # (8, HWp128) f32
        # combine the 7 kw partials with lane rolls (wraparound only hits garbage cols)
        acc = a[0:1, :]
        for kw in range(1, K):
            acc = acc + pltpu.roll(a[kw:kw + 1, :], shift=HWp128 - kw, axis=1)
        out_ref[0] = acc * invm_ref[...]                           # divide -> multiply

    # ---------------- wrapper-side (XLA) preprocessing ----------------
    x_flat = x_nchw[:, 0, :, :].astype(jnp.float32).reshape(n, 1, HW)
    if HWx > HW:
        x_flat = jnp.pad(x_flat, ((0, 0), (0, 0), (0, HWx - HW)))

    wd_mat = w_dec[:, 0, :, :].astype(jnp.float32).reshape(C_LAT, K * K)
    wd_mat = wd_mat.astype(jnp.bfloat16)

    # weight_norm with g fixed to ones: w = v / ||v||_F  (single output channel)
    v = w_pconv_v.astype(jnp.float32)
    wn = v / jnp.sqrt(jnp.sum(v * v))                              # (1, 32, 7, 7)
    wp_kw = jnp.transpose(wn[0], (2, 1, 0)).reshape(K, K * C_LAT)  # [kw, kh*32+c]
    wp_mat = jnp.zeros((MXU_ROWS, K * C_LAT), jnp.float32).at[:K].set(wp_kw)
    wp_mat = wp_mat.astype(jnp.bfloat16)

    # closed-form reciprocal of the avg-pool mask, flattened with row stride Wp
    rc = _axis_count(H, Hout)
    cc = _axis_count(W, Wout)
    inv = (K * K) / (rc[:, None] * cc[None, :])                    # (H, W)
    inv = jnp.pad(inv, ((0, 0), (0, Wp - W)), constant_values=1.0) # (H, Wp)
    inv_flat = inv.reshape(1, HWp)
    if HWp128 > HWp:
        inv_flat = jnp.pad(inv_flat, ((0, 0), (0, HWp128 - HWp)), constant_values=1.0)

    latent_w, out_flat = pl.pallas_call(
        kernel,
        out_shape=(jax.ShapeDtypeStruct((n, C_LAT, NDEC), jnp.float32),
                   jax.ShapeDtypeStruct((n, 1, HWp128), jnp.float32)),
        grid=(n,),
        in_specs=(pl.BlockSpec((1, 1, HWx), lambda b: (b, 0, 0)),
                  pl.BlockSpec((C_LAT, K * K), lambda b: (0, 0)),
                  pl.BlockSpec((MXU_ROWS, K * C_LAT), lambda b: (0, 0)),
                  pl.BlockSpec((1, HWp128), lambda b: (0, 0))),
        out_specs=(pl.BlockSpec((1, C_LAT, NDEC), lambda b: (b, 0, 0)),
                   pl.BlockSpec((1, 1, HWp128), lambda b: (b, 0, 0))),
        scratch_shapes=[pltpu.VMEM((C_LAT, Hp, Wp), jnp.float32)],
        compiler_params=pltpu.CompilerParams(
            dimension_semantics=("parallel",),
            vmem_limit_bytes=48 * 1024 * 1024),
    )(x_flat, wd_mat, wp_mat, inv_flat)

    # free contiguous reshapes + slices (drop the garbage columns / lane padding)
    latent = latent_w.reshape(n, C_LAT, Hout, W)[:, :, :, :Wout]   # (N,32,Hout,Wout)
    out = out_flat[:, 0, :HWp].reshape(n, H, Wp)[:, :, :W]         # (N,H,W)
    return out[:, None, :, :], {"latent": latent}


def czp_reference(x_nchw, w_dec, w_pconv_v):
    """Pure-JAX reference using lax.conv (mirrors the PyTorch forward)."""
    dn = ("NCHW", "OIHW", "NCHW")
    latent = lax.conv_general_dilated(
        x_nchw, w_dec, (1, 1), "VALID",
        dimension_numbers=lax.conv_dimension_numbers(x_nchw.shape, w_dec.shape, dn),
        precision=lax.Precision.HIGHEST)
    wn = w_pconv_v / jnp.sqrt(jnp.sum(w_pconv_v ** 2))
    xconv = lax.conv_general_dilated(
        latent, wn, (1, 1), [(P, P), (P, P)],
        dimension_numbers=lax.conv_dimension_numbers(latent.shape, wn.shape, dn),
        precision=lax.Precision.HIGHEST)
    n, _, h, w = latent.shape
    ones_pad = jnp.pad(jnp.ones((n, 1, h, w), jnp.float32),
                       ((0, 0), (0, 0), (P, P), (P, P)))
    kern = jnp.ones((1, 1, K, K), jnp.float32) / (K * K)
    mask = lax.conv_general_dilated(
        ones_pad, kern, (1, 1), "VALID",
        dimension_numbers=lax.conv_dimension_numbers(ones_pad.shape, kern.shape, dn),
        precision=lax.Precision.HIGHEST)
    return xconv / mask, latent


if __name__ == "__main__":
    key = jax.random.PRNGKey(0)
    kx, kd, kp = jax.random.split(key, 3)

    N, H, W = 2, 16, 16
    x = jax.random.normal(kx, (N, 1, H, W), jnp.float32)
    w_dec = 0.1 * jax.random.normal(kd, (C_LAT, 1, K, K), jnp.float32)      # decoder.weight
    w_pconv_v = 0.1 * jax.random.normal(kp, (1, C_LAT, K, K), jnp.float32)  # pconv.weight_v

    out, feats = czp_forward(x, w_dec, w_pconv_v)
    out = jax.block_until_ready(out)
    latent = jax.block_until_ready(feats["latent"])

    ref_out, ref_latent = czp_reference(x, w_dec, w_pconv_v)
    assert out.shape == (N, 1, H, W)
    assert latent.shape == (N, C_LAT, H - P, W - P)
    # tolerance allows bf16 MXU inputs (f32 accumulate) vs the f32 HIGHEST reference
    assert jnp.allclose(out, ref_out, atol=2e-2, rtol=2e-2)
    assert jnp.allclose(latent, ref_latent, atol=2e-2, rtol=2e-2)

    print("KERNEL_OK")
</pallas_src>

<mosaic_0001>
module attributes {stable_mosaic.version = 11 : i64} {
  func.func @kernel(%arg0: i32, %arg1: memref<1x1x256xf32, #tpu.memory_space<vmem>>, %arg2: memref<32x49xbf16, #tpu.memory_space<vmem>>, %arg3: memref<8x224xbf16, #tpu.memory_space<vmem>>, %arg4: memref<1x384xf32, #tpu.memory_space<vmem>>, %arg5: memref<1x32x160xf32, #tpu.memory_space<vmem>>, %arg6: memref<1x1x384xf32, #tpu.memory_space<vmem>>, %arg7: memref<32x22x22xf32, #tpu.memory_space<vmem>>) attributes {dimension_semantics = [#tpu.dimension_semantics<parallel>], iteration_bounds = array<i64: 2>, scalar_prefetch = 0 : i64, scratch_operands = 1 : i64, tpu.core_type = #tpu.core_type<tc>, window_params = [{transform_indices = @transform_0, window_bounds = array<i64: 1, 1, 256>}, {pipeline_mode = #tpu.pipeline_mode<synchronous>, transform_indices = @transform_1, window_bounds = array<i64: 32, 49>}, {pipeline_mode = #tpu.pipeline_mode<synchronous>, transform_indices = @transform_2, window_bounds = array<i64: 8, 224>}, {pipeline_mode = #tpu.pipeline_mode<synchronous>, transform_indices = @transform_3, window_bounds = array<i64: 1, 384>}, {transform_indices = @transform_4, window_bounds = array<i64: 1, 32, 160>}, {transform_indices = @transform_5, window_bounds = array<i64: 1, 1, 384>}]} {
    %c0 = arith.constant 0 : index
    %c0_0 = arith.constant 0 : index
    %c0_1 = arith.constant 0 : index
    %0 = vector.load %arg1[%c0, %c0_0, %c0_1] : memref<1x1x256xf32, #tpu.memory_space<vmem>>, vector<1x1x256xf32>
    %1 = vector.shape_cast %0 : vector<1x1x256xf32> to vector<1x256xf32>
    %2 = vector.extract_strided_slice %1 {offsets = [0, 0], sizes = [1, 160], strides = [1, 1]} : vector<1x256xf32> to vector<1x160xf32>
    %c255_i32 = arith.constant 255 : i32
    %3 = tpu.dynamic_rotate %1 by %c255_i32 dim 1 : vector<1x256xf32>, i32 -> vector<1x256xf32>
    %4 = vector.extract_strided_slice %3 {offsets = [0, 0], sizes = [1, 160], strides = [1, 1]} : vector<1x256xf32> to vector<1x160xf32>
    %c254_i32 = arith.constant 254 : i32
    %5 = tpu.dynamic_rotate %1 by %c254_i32 dim 1 : vector<1x256xf32>, i32 -> vector<1x256xf32>
    %6 = vector.extract_strided_slice %5 {offsets = [0, 0], sizes = [1, 160], strides = [1, 1]} : vector<1x256xf32> to vector<1x160xf32>
    %c253_i32 = arith.constant 253 : i32
    %7 = tpu.dynamic_rotate %1 by %c253_i32 dim 1 : vector<1x256xf32>, i32 -> vector<1x256xf32>
    %8 = vector.extract_strided_slice %7 {offsets = [0, 0], sizes = [1, 160], strides = [1, 1]} : vector<1x256xf32> to vector<1x160xf32>
    %c252_i32 = arith.constant 252 : i32
    %9 = tpu.dynamic_rotate %1 by %c252_i32 dim 1 : vector<1x256xf32>, i32 -> vector<1x256xf32>
    %10 = vector.extract_strided_slice %9 {offsets = [0, 0], sizes = [1, 160], strides = [1, 1]} : vector<1x256xf32> to vector<1x160xf32>
    %c251_i32 = arith.constant 251 : i32
    %11 = tpu.dynamic_rotate %1 by %c251_i32 dim 1 : vector<1x256xf32>, i32 -> vector<1x256xf32>
    %12 = vector.extract_strided_slice %11 {offsets = [0, 0], sizes = [1, 160], strides = [1, 1]} : vector<1x256xf32> to vector<1x160xf32>
    %c250_i32 = arith.constant 250 : i32
    %13 = tpu.dynamic_rotate %1 by %c250_i32 dim 1 : vector<1x256xf32>, i32 -> vector<1x256xf32>
    %14 = vector.extract_strided_slice %13 {offsets = [0, 0], sizes = [1, 160], strides = [1, 1]} : vector<1x256xf32> to vector<1x160xf32>
    %c240_i32 = arith.constant 240 : i32
    %15 = tpu.dynamic_rotate %1 by %c240_i32 dim 1 : vector<1x256xf32>, i32 -> vector<1x256xf32>
    %16 = vector.extract_strided_slice %15 {offsets = [0, 0], sizes = [1, 160], strides = [1, 1]} : vector<1x256xf32> to vector<1x160xf32>
    %c239_i32 = arith.constant 239 : i32
    %17 = tpu.dynamic_rotate %1 by %c239_i32 dim 1 : vector<1x256xf32>, i32 -> vector<1x256xf32>
    %18 = vector.extract_strided_slice %17 {offsets = [0, 0], sizes = [1, 160], strides = [1, 1]} : vector<1x256xf32> to vector<1x160xf32>
    %c238_i32 = arith.constant 238 : i32
    %19 = tpu.dynamic_rotate %1 by %c238_i32 dim 1 : vector<1x256xf32>, i32 -> vector<1x256xf32>
    %20 = vector.extract_strided_slice %19 {offsets = [0, 0], sizes = [1, 160], strides = [1, 1]} : vector<1x256xf32> to vector<1x160xf32>
    %c237_i32 = arith.constant 237 : i32
    %21 = tpu.dynamic_rotate %1 by %c237_i32 dim 1 : vector<1x256xf32>, i32 -> vector<1x256xf32>
    %22 = vector.extract_strided_slice %21 {offsets = [0, 0], sizes = [1, 160], strides = [1, 1]} : vector<1x256xf32> to vector<1x160xf32>
    %c236_i32 = arith.constant 236 : i32
    %23 = tpu.dynamic_rotate %1 by %c236_i32 dim 1 : vector<1x256xf32>, i32 -> vector<1x256xf32>
    %24 = vector.extract_strided_slice %23 {offsets = [0, 0], sizes = [1, 160], strides = [1, 1]} : vector<1x256xf32> to vector<1x160xf32>
    %c235_i32 = arith.constant 235 : i32
    %25 = tpu.dynamic_rotate %1 by %c235_i32 dim 1 : vector<1x256xf32>, i32 -> vector<1x256xf32>
    %26 = vector.extract_strided_slice %25 {offsets = [0, 0], sizes = [1, 160], strides = [1, 1]} : vector<1x256xf32> to vector<1x160xf32>
    %c234_i32 = arith.constant 234 : i32
    %27 = tpu.dynamic_rotate %1 by %c234_i32 dim 1 : vector<1x256xf32>, i32 -> vector<1x256xf32>
    %28 = vector.extract_strided_slice %27 {offsets = [0, 0], sizes = [1, 160], strides = [1, 1]} : vector<1x256xf32> to vector<1x160xf32>
    %c224_i32 = arith.constant 224 : i32
    %29 = tpu.dynamic_rotate %1 by %c224_i32 dim 1 : vector<1x256xf32>, i32 -> vector<1x256xf32>
    %30 = vector.extract_strided_slice %29 {offsets = [0, 0], sizes = [1, 160], strides = [1, 1]} : vector<1x256xf32> to vector<1x160xf32>
    %c223_i32 = arith.constant 223 : i32
    %31 = tpu.dynamic_rotate %1 by %c223_i32 dim 1 : vector<1x256xf32>, i32 -> vector<1x256xf32>
    %32 = vector.extract_strided_slice %31 {offsets = [0, 0], sizes = [1, 160], strides = [1, 1]} : vector<1x256xf32> to vector<1x160xf32>
    %c222_i32 = arith.constant 222 : i32
    %33 = tpu.dynamic_rotate %1 by %c222_i32 dim 1 : vector<1x256xf32>, i32 -> vector<1x256xf32>
    %34 = vector.extract_strided_slice %33 {offsets = [0, 0], sizes = [1, 160], strides = [1, 1]} : vector<1x256xf32> to vector<1x160xf32>
    %c221_i32 = arith.constant 221 : i32
    %35 = tpu.dynamic_rotate %1 by %c221_i32 dim 1 : vector<1x256xf32>, i32 -> vector<1x256xf32>
    %36 = vector.extract_strided_slice %35 {offsets = [0, 0], sizes = [1, 160], strides = [1, 1]} : vector<1x256xf32> to vector<1x160xf32>
    %c220_i32 = arith.constant 220 : i32
    %37 = tpu.dynamic_rotate %1 by %c220_i32 dim 1 : vector<1x256xf32>, i32 -> vector<1x256xf32>
    %38 = vector.extract_strided_slice %37 {offsets = [0, 0], sizes = [1, 160], strides = [1, 1]} : vector<1x256xf32> to vector<1x160xf32>
    %c219_i32 = arith.constant 219 : i32
    %39 = tpu.dynamic_rotate %1 by %c219_i32 dim 1 : vector<1x256xf32>, i32 -> vector<1x256xf32>
    %40 = vector.extract_strided_slice %39 {offsets = [0, 0], sizes = [1, 160], strides = [1, 1]} : vector<1x256xf32> to vector<1x160xf32>
    %c218_i32 = arith.constant 218 : i32
    %41 = tpu.dynamic_rotate %1 by %c218_i32 dim 1 : vector<1x256xf32>, i32 -> vector<1x256xf32>
    %42 = vector.extract_strided_slice %41 {offsets = [0, 0], sizes = [1, 160], strides = [1, 1]} : vector<1x256xf32> to vector<1x160xf32>
    %c208_i32 = arith.constant 208 : i32
    %43 = tpu.dynamic_rotate %1 by %c208_i32 dim 1 : vector<1x256xf32>, i32 -> vector<1x256xf32>
    %44 = vector.extract_strided_slice %43 {offsets = [0, 0], sizes = [1, 160], strides = [1, 1]} : vector<1x256xf32> to vector<1x160xf32>
    %c207_i32 = arith.constant 207 : i32
    %45 = tpu.dynamic_rotate %1 by %c207_i32 dim 1 : vector<1x256xf32>, i32 -> vector<1x256xf32>
    %46 = vector.extract_strided_slice %45 {offsets = [0, 0], sizes = [1, 160], strides = [1, 1]} : vector<1x256xf32> to vector<1x160xf32>
    %c206_i32 = arith.constant 206 : i32
    %47 = tpu.dynamic_rotate %1 by %c206_i32 dim 1 : vector<1x256xf32>, i32 -> vector<1x256xf32>
    %48 = vector.extract_strided_slice %47 {offsets = [0, 0], sizes = [1, 160], strides = [1, 1]} : vector<1x256xf32> to vector<1x160xf32>
    %c205_i32 = arith.constant 205 : i32
    %49 = tpu.dynamic_rotate %1 by %c205_i32 dim 1 : vector<1x256xf32>, i32 -> vector<1x256xf32>
    %50 = vector.extract_strided_slice %49 {offsets = [0, 0], sizes = [1, 160], strides = [1, 1]} : vector<1x256xf32> to vector<1x160xf32>
    %c204_i32 = arith.constant 204 : i32
    %51 = tpu.dynamic_rotate %1 by %c204_i32 dim 1 : vector<1x256xf32>, i32 -> vector<1x256xf32>
    %52 = vector.extract_strided_slice %51 {offsets = [0, 0], sizes = [1, 160], strides = [1, 1]} : vector<1x256xf32> to vector<1x160xf32>
    %c203_i32 = arith.constant 203 : i32
    %53 = tpu.dynamic_rotate %1 by %c203_i32 dim 1 : vector<1x256xf32>, i32 -> vector<1x256xf32>
    %54 = vector.extract_strided_slice %53 {offsets = [0, 0], sizes = [1, 160], strides = [1, 1]} : vector<1x256xf32> to vector<1x160xf32>
    %c202_i32 = arith.constant 202 : i32
    %55 = tpu.dynamic_rotate %1 by %c202_i32 dim 1 : vector<1x256xf32>, i32 -> vector<1x256xf32>
    %56 = vector.extract_strided_slice %55 {offsets = [0, 0], sizes = [1, 160], strides = [1, 1]} : vector<1x256xf32> to vector<1x160xf32>
    %c192_i32 = arith.constant 192 : i32
    %57 = tpu.dynamic_rotate %1 by %c192_i32 dim 1 : vector<1x256xf32>, i32 -> vector<1x256xf32>
    %58 = vector.extract_strided_slice %57 {offsets = [0, 0], sizes = [1, 160], strides = [1, 1]} : vector<1x256xf32> to vector<1x160xf32>
    %c191_i32 = arith.constant 191 : i32
    %59 = tpu.dynamic_rotate %1 by %c191_i32 dim 1 : vector<1x256xf32>, i32 -> vector<1x256xf32>
    %60 = vector.extract_strided_slice %59 {offsets = [0, 0], sizes = [1, 160], strides = [1, 1]} : vector<1x256xf32> to vector<1x160xf32>
    %c190_i32 = arith.constant 190 : i32
    %61 = tpu.dynamic_rotate %1 by %c190_i32 dim 1 : vector<1x256xf32>, i32 -> vector<1x256xf32>
    %62 = vector.extract_strided_slice %61 {offsets = [0, 0], sizes = [1, 160], strides = [1, 1]} : vector<1x256xf32> to vector<1x160xf32>
    %c189_i32 = arith.constant 189 : i32
    %63 = tpu.dynamic_rotate %1 by %c189_i32 dim 1 : vector<1x256xf32>, i32 -> vector<1x256xf32>
    %64 = vector.extract_strided_slice %63 {offsets = [0, 0], sizes = [1, 160], strides = [1, 1]} : vector<1x256xf32> to vector<1x160xf32>
    %c188_i32 = arith.constant 188 : i32
    %65 = tpu.dynamic_rotate %1 by %c188_i32 dim 1 : vector<1x256xf32>, i32 -> vector<1x256xf32>
    %66 = vector.extract_strided_slice %65 {offsets = [0, 0], sizes = [1, 160], strides = [1, 1]} : vector<1x256xf32> to vector<1x160xf32>
    %c187_i32 = arith.constant 187 : i32
    %67 = tpu.dynamic_rotate %1 by %c187_i32 dim 1 : vector<1x256xf32>, i32 -> vector<1x256xf32>
    %68 = vector.extract_strided_slice %67 {offsets = [0, 0], sizes = [1, 160], strides = [1, 1]} : vector<1x256xf32> to vector<1x160xf32>
    %c186_i32 = arith.constant 186 : i32
    %69 = tpu.dynamic_rotate %1 by %c186_i32 dim 1 : vector<1x256xf32>, i32 -> vector<1x256xf32>
    %70 = vector.extract_strided_slice %69 {offsets = [0, 0], sizes = [1, 160], strides = [1, 1]} : vector<1x256xf32> to vector<1x160xf32>
    %c176_i32 = arith.constant 176 : i32
    %71 = tpu.dynamic_rotate %1 by %c176_i32 dim 1 : vector<1x256xf32>, i32 -> vector<1x256xf32>
    %72 = vector.extract_strided_slice %71 {offsets = [0, 0], sizes = [1, 160], strides = [1, 1]} : vector<1x256xf32> to vector<1x160xf32>
    %c175_i32 = arith.constant 175 : i32
    %73 = tpu.dynamic_rotate %1 by %c175_i32 dim 1 : vector<1x256xf32>, i32 -> vector<1x256xf32>
    %74 = vector.extract_strided_slice %73 {offsets = [0, 0], sizes = [1, 160], strides = [1, 1]} : vector<1x256xf32> to vector<1x160xf32>
    %c174_i32 = arith.constant 174 : i32
    %75 = tpu.dynamic_rotate %1 by %c174_i32 dim 1 : vector<1x256xf32>, i32 -> vector<1x256xf32>
    %76 = vector.extract_strided_slice %75 {offsets = [0, 0], sizes = [1, 160], strides = [1, 1]} : vector<1x256xf32> to vector<1x160xf32>
    %c173_i32 = arith.constant 173 : i32
    %77 = tpu.dynamic_rotate %1 by %c173_i32 dim 1 : vector<1x256xf32>, i32 -> vector<1x256xf32>
    %78 = vector.extract_strided_slice %77 {offsets = [0, 0], sizes = [1, 160], strides = [1, 1]} : vector<1x256xf32> to vector<1x160xf32>
    %c172_i32 = arith.constant 172 : i32
    %79 = tpu.dynamic_rotate %1 by %c172_i32 dim 1 : vector<1x256xf32>, i32 -> vector<1x256xf32>
    %80 = vector.extract_strided_slice %79 {offsets = [0, 0], sizes = [1, 160], strides = [1, 1]} : vector<1x256xf32> to vector<1x160xf32>
    %c171_i32 = arith.constant 171 : i32
    %81 = tpu.dynamic_rotate %1 by %c171_i32 dim 1 : vector<1x256xf32>, i32 -> vector<1x256xf32>
    %82 = vector.extract_strided_slice %81 {offsets = [0, 0], sizes = [1, 160], strides = [1, 1]} : vector<1x256xf32> to vector<1x160xf32>
    %c170_i32 = arith.constant 170 : i32
    %83 = tpu.dynamic_rotate %1 by %c170_i32 dim 1 : vector<1x256xf32>, i32 -> vector<1x256xf32>
    %84 = vector.extract_strided_slice %83 {offsets = [0, 0], sizes = [1, 160], strides = [1, 1]} : vector<1x256xf32> to vector<1x160xf32>
    %c160_i32 = arith.constant 160 : i32
    %85 = tpu.dynamic_rotate %1 by %c160_i32 dim 1 : vector<1x256xf32>, i32 -> vector<1x256xf32>
    %86 = vector.extract_strided_slice %85 {offsets = [0, 0], sizes = [1, 160], strides = [1, 1]} : vector<1x256xf32> to vector<1x160xf32>
    %c159_i32 = arith.constant 159 : i32
    %87 = tpu.dynamic_rotate %1 by %c159_i32 dim 1 : vector<1x256xf32>, i32 -> vector<1x256xf32>
    %88 = vector.extract_strided_slice %87 {offsets = [0, 0], sizes = [1, 160], strides = [1, 1]} : vector<1x256xf32> to vector<1x160xf32>
    %c158_i32 = arith.constant 158 : i32
    %89 = tpu.dynamic_rotate %1 by %c158_i32 dim 1 : vector<1x256xf32>, i32 -> vector<1x256xf32>
    %90 = vector.extract_strided_slice %89 {offsets = [0, 0], sizes = [1, 160], strides = [1, 1]} : vector<1x256xf32> to vector<1x160xf32>
    %c157_i32 = arith.constant 157 : i32
    %91 = tpu.dynamic_rotate %1 by %c157_i32 dim 1 : vector<1x256xf32>, i32 -> vector<1x256xf32>
    %92 = vector.extract_strided_slice %91 {offsets = [0, 0], sizes = [1, 160], strides = [1, 1]} : vector<1x256xf32> to vector<1x160xf32>
    %c156_i32 = arith.constant 156 : i32
    %93 = tpu.dynamic_rotate %1 by %c156_i32 dim 1 : vector<1x256xf32>, i32 -> vector<1x256xf32>
    %94 = vector.extract_strided_slice %93 {offsets = [0, 0], sizes = [1, 160], strides = [1, 1]} : vector<1x256xf32> to vector<1x160xf32>
    %c155_i32 = arith.constant 155 : i32
    %95 = tpu.dynamic_rotate %1 by %c155_i32 dim 1 : vector<1x256xf32>, i32 -> vector<1x256xf32>
    %96 = vector.extract_strided_slice %95 {offsets = [0, 0], sizes = [1, 160], strides = [1, 1]} : vector<1x256xf32> to vector<1x160xf32>
    %c154_i32 = arith.constant 154 : i32
    %97 = tpu.dynamic_rotate %1 by %c154_i32 dim 1 : vector<1x256xf32>, i32 -> vector<1x256xf32>
    %98 = vector.extract_strided_slice %97 {offsets = [0, 0], sizes = [1, 160], strides = [1, 1]} : vector<1x256xf32> to vector<1x160xf32>
    %99 = tpu.concatenate %2, %4, %6, %8, %10, %12, %14, %16, %18, %20, %22, %24, %26, %28, %30, %32 in 0 : vector<1x160xf32>, vector<1x160xf32>, vector<1x160xf32>, vector<1x160xf32>, vector<1x160xf32>, vector<1x160xf32>, vector<1x160xf32>, vector<1x160xf32>, vector<1x160xf32>, vector<1x160xf32>, vector<1x160xf32>, vector<1x160xf32>, vector<1x160xf32>, vector<1x160xf32>, vector<1x160xf32>, vector<1x160xf32> -> vector<16x160xf32>
    %100 = tpu.concatenate %34, %36, %38, %40, %42, %44, %46, %48, %50, %52, %54, %56, %58, %60, %62, %64 in 0 : vector<1x160xf32>, vector<1x160xf32>, vector<1x160xf32>, vector<1x160xf32>, vector<1x160xf32>, vector<1x160xf32>, vector<1x160xf32>, vector<1x160xf32>, vector<1x160xf32>, vector<1x160xf32>, vector<1x160xf32>, vector<1x160xf32>, vector<1x160xf32>, vector<1x160xf32>, vector<1x160xf32>, vector<1x160xf32> -> vector<16x160xf32>
    %101 = tpu.concatenate %66, %68, %70, %72, %74, %76, %78, %80, %82, %84, %86, %88, %90, %92, %94, %96 in 0 : vector<1x160xf32>, vector<1x160xf32>, vector<1x160xf32>, vector<1x160xf32>, vector<1x160xf32>, vector<1x160xf32>, vector<1x160xf32>, vector<1x160xf32>, vector<1x160xf32>, vector<1x160xf32>, vector<1x160xf32>, vector<1x160xf32>, vector<1x160xf32>, vector<1x160xf32>, vector<1x160xf32>, vector<1x160xf32> -> vector<16x160xf32>
    %102 = tpu.concatenate %99, %100, %101, %98 in 0 : vector<16x160xf32>, vector<16x160xf32>, vector<16x160xf32>, vector<1x160xf32> -> vector<49x160xf32>
    %103 = arith.truncf %102 : vector<49x160xf32> to vector<49x160xbf16>
    %c0_2 = arith.constant 0 : index
    %c0_3 = arith.constant 0 : index
    %104 = vector.load %arg2[%c0_2, %c0_3] : memref<32x49xbf16, #tpu.memory_space<vmem>>, vector<32x49xbf16>
    %cst = arith.constant dense<0.000000e+00> : vector<32x160xf32>
    %105 = tpu.matmul %104, %103, %cst {dimension_numbers = #tpu.dot_dimension_numbers<[1], [0], [0], [1], [0, 0, 1, 1], [], []>} : vector<32x49xbf16>, vector<49x160xbf16>, vector<32x160xf32> -> vector<32x160xf32>
    %c0_4 = arith.constant 0 : index
    %c0_5 = arith.constant 0 : index
    %c0_6 = arith.constant 0 : index
    %106 = vector.load %arg5[%c0_4, %c0_5, %c0_6] : memref<1x32x160xf32, #tpu.memory_space<vmem>>, vector<1x32x160xf32>
    %107 = vector.shape_cast %106 : vector<1x32x160xf32> to vector<32x160xf32>
    %108 = vector.shape_cast %105 : vector<32x160xf32> to vector<1x32x160xf32>
    tpu.vector_store %arg5[%c0_4, %c0_5, %c0_6], %108 {strides = array<i32>} : memref<1x32x160xf32, #tpu.memory_space<vmem>>, vector<1x32x160xf32>,
    %cst_7 = arith.constant 0.000000e+00 : f32
    %109 = vector.broadcast %cst_7 : f32 to vector<32x6x22xf32>
    %cst_8 = arith.constant 0.000000e+00 : f32
    %110 = vector.broadcast %cst_8 : f32 to vector<32x10x6xf32>
    %c0_9 = arith.constant 0 : index
    %c0_10 = arith.constant 0 : index
    %c0_11 = arith.constant 0 : index
    %111 = vector.load %arg7[%c0_9, %c0_10, %c0_11] : memref<32x22x22xf32, #tpu.memory_space<vmem>>, vector<32x6x22xf32>
    tpu.vector_store %arg7[%c0_9, %c0_10, %c0_11], %109 {strides = array<i32>} : memref<32x22x22xf32, #tpu.memory_space<vmem>>, vector<32x6x22xf32>,
    %c0_12 = arith.constant 0 : index
    %c16 = arith.constant 16 : index
    %c0_13 = arith.constant 0 : index
    %112 = vector.load %arg7[%c0_12, %c16, %c0_13] : memref<32x22x22xf32, #tpu.memory_space<vmem>>, vector<32x6x22xf32>
    tpu.vector_store %arg7[%c0_12, %c16, %c0_13], %109 {strides = array<i32>} : memref<32x22x22xf32, #tpu.memory_space<vmem>>, vector<32x6x22xf32>,
    %c0_14 = arith.constant 0 : index
    %c6 = arith.constant 6 : index
    %c0_15 = arith.constant 0 : index
    %113 = vector.load %arg7[%c0_14, %c6, %c0_15] : memref<32x22x22xf32, #tpu.memory_space<vmem>>, vector<32x10x6xf32>
    tpu.vector_store %arg7[%c0_14, %c6, %c0_15], %110 {strides = array<i32>} : memref<32x22x22xf32, #tpu.memory_space<vmem>>, vector<32x10x6xf32>,
    %c0_16 = arith.constant 0 : index
    %c6_17 = arith.constant 6 : index
    %c16_18 = arith.constant 16 : index
    %114 = vector.load %arg7[%c0_16, %c6_17, %c16_18] : memref<32x22x22xf32, #tpu.memory_space<vmem>>, vector<32x10x6xf32>
    tpu.vector_store %arg7[%c0_16, %c6_17, %c16_18], %110 {strides = array<i32>} : memref<32x22x22xf32, #tpu.memory_space<vmem>>, vector<32x10x6xf32>,
    %115 = vector.shape_cast %105 : vector<32x160xf32> to vector<32x10x16xf32>
    %116 = vector.extract_strided_slice %115 {offsets = [0, 0, 0], sizes = [32, 10, 10], strides = [1, 1, 1]} : vector<32x10x16xf32> to vector<32x10x10xf32>
    %c0_19 = arith.constant 0 : index
    %c6_20 = arith.constant 6 : index
    %c6_21 = arith.constant 6 : index
    %117 = vector.load %arg7[%c0_19, %c6_20, %c6_21] : memref<32x22x22xf32, #tpu.memory_space<vmem>>, vector<32x10x10xf32>
    tpu.vector_store %arg7[%c0_19, %c6_20, %c6_21], %116 {strides = array<i32>} : memref<32x22x22xf32, #tpu.memory_space<vmem>>, vector<32x10x10xf32>,
    %c0_22 = arith.constant 0 : index
    %c0_23 = arith.constant 0 : index
    %c0_24 = arith.constant 0 : index
    %118 = vector.load %arg7[%c0_22, %c0_23, %c0_24] : memref<32x22x22xf32, #tpu.memory_space<vmem>>, vector<32x16x22xf32>
    %119 = vector.shape_cast %118 : vector<32x16x22xf32> to vector<32x352xf32>
    %c0_25 = arith.constant 0 : index
    %c1 = arith.constant 1 : index
    %c0_26 = arith.constant 0 : index
    %120 = vector.load %arg7[%c0_25, %c1, %c0_26] : memref<32x22x22xf32, #tpu.memory_space<vmem>>, vector<32x16x22xf32>
    %121 = vector.shape_cast %120 : vector<32x16x22xf32> to vector<32x352xf32>
    %c0_27 = arith.constant 0 : index
    %c2 = arith.constant 2 : index
    %c0_28 = arith.constant 0 : index
    %122 = vector.load %arg7[%c0_27, %c2, %c0_28] : memref<32x22x22xf32, #tpu.memory_space<vmem>>, vector<32x16x22xf32>
    %123 = vector.shape_cast %122 : vector<32x16x22xf32> to vector<32x352xf32>
    %c0_29 = arith.constant 0 : index
    %c3 = arith.constant 3 : index
    %c0_30 = arith.constant 0 : index
    %124 = vector.load %arg7[%c0_29, %c3, %c0_30] : memref<32x22x22xf32, #tpu.memory_space<vmem>>, vector<32x16x22xf32>
    %125 = vector.shape_cast %124 : vector<32x16x22xf32> to vector<32x352xf32>
    %c0_31 = arith.constant 0 : index
    %c4 = arith.constant 4 : index
    %c0_32 = arith.constant 0 : index
    %126 = vector.load %arg7[%c0_31, %c4, %c0_32] : memref<32x22x22xf32, #tpu.memory_space<vmem>>, vector<32x16x22xf32>
    %127 = vector.shape_cast %126 : vector<32x16x22xf32> to vector<32x352xf32>
    %c0_33 = arith.constant 0 : index
    %c5 = arith.constant 5 : index
    %c0_34 = arith.constant 0 : index
    %128 = vector.load %arg7[%c0_33, %c5, %c0_34] : memref<32x22x22xf32, #tpu.memory_space<vmem>>, vector<32x16x22xf32>
    %129 = vector.shape_cast %128 : vector<32x16x22xf32> to vector<32x352xf32>
    %c0_35 = arith.constant 0 : index
    %c6_36 = arith.constant 6 : index
    %c0_37 = arith.constant 0 : index
    %130 = vector.load %arg7[%c0_35, %c6_36, %c0_37] : memref<32x22x22xf32, #tpu.memory_space<vmem>>, vector<32x16x22xf32>
    %131 = vector.shape_cast %130 : vector<32x16x22xf32> to vector<32x352xf32>
    %132 = tpu.concatenate %119, %121, %123, %125, %127, %129, %131 in 0 : vector<32x352xf32>, vector<32x352xf32>, vector<32x352xf32>, vector<32x352xf32>, vector<32x352xf32>, vector<32x352xf32>, vector<32x352xf32> -> vector<224x352xf32>
    %cst_38 = arith.constant 0.000000e+00 : f32
    %133 = vector.broadcast %cst_38 : f32 to vector<224x32xf32>
    %134 = tpu.concatenate %132, %133 in 1 : vector<224x352xf32>, vector<224x32xf32> -> vector<224x384xf32>
    %135 = arith.truncf %134 : vector<224x384xf32> to vector<224x384xbf16>
    %c0_39 = arith.constant 0 : index
    %c0_40 = arith.constant 0 : index
    %136 = vector.load %arg3[%c0_39, %c0_40] : memref<8x224xbf16, #tpu.memory_space<vmem>>, vector<8x224xbf16>
    %cst_41 = arith.constant dense<0.000000e+00> : vector<8x384xf32>
    %137 = tpu.matmul %136, %135, %cst_41 {dimension_numbers = #tpu.dot_dimension_numbers<[1], [0], [0], [1], [0, 0, 1, 1], [], []>} : vector<8x224xbf16>, vector<224x384xbf16>, vector<8x384xf32> -> vector<8x384xf32>
    %138 = vector.extract_strided_slice %137 {offsets = [0, 0], sizes = [1, 384], strides = [1, 1]} : vector<8x384xf32> to vector<1x384xf32>
    %139 = vector.extract_strided_slice %137 {offsets = [1, 0], sizes = [1, 384], strides = [1, 1]} : vector<8x384xf32> to vector<1x384xf32>
    %c383_i32 = arith.constant 383 : i32
    %140 = tpu.dynamic_rotate %139 by %c383_i32 dim 1 : vector<1x384xf32>, i32 -> vector<1x384xf32>
    %141 = arith.addf %138, %140 : vector<1x384xf32>
    %142 = vector.extract_strided_slice %137 {offsets = [2, 0], sizes = [1, 384], strides = [1, 1]} : vector<8x384xf32> to vector<1x384xf32>
    %c382_i32 = arith.constant 382 : i32
    %143 = tpu.dynamic_rotate %142 by %c382_i32 dim 1 : vector<1x384xf32>, i32 -> vector<1x384xf32>
    %144 = arith.addf %141, %143 : vector<1x384xf32>
    %145 = vector.extract_strided_slice %137 {offsets = [3, 0], sizes = [1, 384], strides = [1, 1]} : vector<8x384xf32> to vector<1x384xf32>
    %c381_i32 = arith.constant 381 : i32
    %146 = tpu.dynamic_rotate %145 by %c381_i32 dim 1 : vector<1x384xf32>, i32 -> vector<1x384xf32>
    %147 = arith.addf %144, %146 : vector<1x384xf32>
    %148 = vector.extract_strided_slice %137 {offsets = [4, 0], sizes = [1, 384], strides = [1, 1]} : vector<8x384xf32> to vector<1x384xf32>
    %c380_i32 = arith.constant 380 : i32
    %149 = tpu.dynamic_rotate %148 by %c380_i32 dim 1 : vector<1x384xf32>, i32 -> vector<1x384xf32>
    %150 = arith.addf %147, %149 : vector<1x384xf32>
    %151 = vector.extract_strided_slice %137 {offsets = [5, 0], sizes = [1, 384], strides = [1, 1]} : vector<8x384xf32> to vector<1x384xf32>
    %c379_i32 = arith.constant 379 : i32
    %152 = tpu.dynamic_rotate %151 by %c379_i32 dim 1 : vector<1x384xf32>, i32 -> vector<1x384xf32>
    %153 = arith.addf %150, %152 : vector<1x384xf32>
    %154 = vector.extract_strided_slice %137 {offsets = [6, 0], sizes = [1, 384], strides = [1, 1]} : vector<8x384xf32> to vector<1x384xf32>
    %c378_i32 = arith.constant 378 : i32
    %155 = tpu.dynamic_rotate %154 by %c378_i32 dim 1 : vector<1x384xf32>, i32 -> vector<1x384xf32>
    %156 = arith.addf %153, %155 : vector<1x384xf32>
    %c0_42 = arith.constant 0 : index
    %c0_43 = arith.constant 0 : index
    %157 = vector.load %arg4[%c0_42, %c0_43] : memref<1x384xf32, #tpu.memory_space<vmem>>, vector<1x384xf32>
    %158 = arith.mulf %156, %157 : vector<1x384xf32>
    %c0_44 = arith.constant 0 : index
    %c0_45 = arith.constant 0 : index
    %c0_46 = arith.constant 0 : index
    %159 = vector.load %arg6[%c0_44, %c0_45, %c0_46] : memref<1x1x384xf32, #tpu.memory_space<vmem>>, vector<1x1x384xf32>
    %160 = vector.shape_cast %159 : vector<1x1x384xf32> to vector<1x384xf32>
    %161 = vector.shape_cast %158 : vector<1x384xf32> to vector<1x1x384xf32>
    tpu.vector_store %arg6[%c0_44, %c0_45, %c0_46], %161 {strides = array<i32>} : memref<1x1x384xf32, #tpu.memory_space<vmem>>, vector<1x1x384xf32>,
    return
  }
  func.func @transform_0(%arg0: i32) -> (i32, i32, i32) {
    %c0_i32 = arith.constant 0 : i32
    %c0_i32_0 = arith.constant 0 : i32
    %c0_i32_1 = arith.constant 0 : i32
    return %arg0, %c0_i32, %c0_i32_0 : i32, i32, i32
  }
  func.func @transform_1(%arg0: i32) -> (i32, i32) {
    %c0_i32 = arith.constant 0 : i32
    %c0_i32_0 = arith.constant 0 : i32
    %c0_i32_1 = arith.constant 0 : i32
    return %c0_i32, %c0_i32_0 : i32, i32
  }
  func.func @transform_2(%arg0: i32) -> (i32, i32) {
    %c0_i32 = arith.constant 0 : i32
    %c0_i32_0 = arith.constant 0 : i32
    %c0_i32_1 = arith.constant 0 : i32
    return %c0_i32, %c0_i32_0 : i32, i32
  }
  func.func @transform_3(%arg0: i32) -> (i32, i32) {
    %c0_i32 = arith.constant 0 : i32
    %c0_i32_0 = arith.constant 0 : i32
    %c0_i32_1 = arith.constant 0 : i32
    return %c0_i32, %c0_i32_0 : i32, i32
  }
  func.func @transform_4(%arg0: i32) -> (i32, i32, i32) {
    %c0_i32 = arith.constant 0 : i32
    %c0_i32_0 = arith.constant 0 : i32
    %c0_i32_1 = arith.constant 0 : i32
    return %arg0, %c0_i32, %c0_i32_0 : i32, i32, i32
  }
  func.func @transform_5(%arg0: i32) -> (i32, i32, i32) {
    %c0_i32 = arith.constant 0 : i32
    %c0_i32_0 = arith.constant 0 : i32
    %c0_i32_1 = arith.constant 0 : i32
    return %arg0, %c0_i32, %c0_i32_0 : i32, i32, i32
  }
}

</mosaic_0001>

<bundles_post_ra>
// kernel: tpu_custom_call.1
= control target key start
LH: loop header
LB: loop body
LE: loop exit
PB: predicated region body
PF: predicated region fallthrough
CT: control target
= control target key end

     0   :  { %11 = vsyncpa [#allocation4], 0  ;;  %s22809_s0 = inlined_call_operand.hbm [shape: f32[2,1,256], index: 0, kind: input, shape index: {}]   ;;  %s22810_s1 = inlined_call_operand.hbm [shape: bf16[32,49], index: 1, kind: input, shape index: {}]   ;;  %s22811_s2 = inlined_call_operand.hbm [shape: bf16[8,224], index: 2, kind: input, shape index: {}]   ;;  %s22812_s3 = inlined_call_operand.vmem [shape: f32[1,384], index: 3, kind: input, shape index: {}]   ;;  %s22813_s4 = inlined_call_operand.hbm [shape: f32[2,32,160], index: 4, kind: output, shape index: {0}]   ;;  %s22814_s5 = inlined_call_operand.hbm [shape: f32[2,1,384], index: 5, kind: output, shape index: {1}]  }
   0x1   :  { %13 = vsyncpa [#allocation4 + $0x1], 0 }
   0x2   :  { %14 = vsyncpa [#allocation7], 0 }
   0x3   :  { %15 = vsyncpa [#allocation5], 0 }
   0x4   :  { %17 = vsyncpa [#allocation5 + $0x1], 0 }
   0x5   :  { %18 = vsyncpa [#allocation11], 0 }
   0x6   :  { %20 = vsyncpa [#allocation11 + $0x1], 0  ;;  %s15591_s18 = smov 0   ;;  %s15593_s19 = smov 0  }
   0x7   :  { %s15595_s20 = smov 0   ;;  %s15597_s21 = smov 0  }
   0x8 LB: > { %s15612_s22 = sadd.s32 4294967295, %s15488_s21   ;;  %s13164_s23 = sadd.s32 4294967294, %s15488_s21   ;;  %s15488_s21 = sphi %s15597_s21, %s24051_s21   ;;  %s15484_s20 = sphi %s15595_s20, %s24050_s20   ;;  %s15480_s19 = sphi %s15593_s19, %s24049_s19   ;;  %s15476_s18 = sphi %s15591_s18, %s24048_s18  }
   0x9   : > { %p46_p0 = scmp.ne.s32.totalorder %s15480_s19, %s15476_s18  ;;  %p22815_p1 = scmp.eq.s32.totalorder %s15612_s22, 0 }
   0xa   : > { %p139_p3 = scmp.eq.s32.totalorder %s13164_s23, 1  ;;  %p13165_p5 = scmp.ge.s32.totalorder %s15488_s21, 1 }
   0xb   : > { %p15621_p4 = por %p22815_p1, %p46_p0  ;;  %p172_p7 = scmp.lt.s32.totalorder %s15488_s21, 3 }
   0xc   : > { %p15626_p6 = por %p139_p3, %p46_p0  ;;  %s15490_s27 = smov [#allocation6]  }
   0xd   : > { %s23176_s24 = scalar_select %p15621_p4, 1, 0 }
   0xe   : > { %s23177_s25 = scalar_select %p15626_p6, 1, 0 }
   0xf   : > { %p15631_p8 = pnand %p13165_p5, %p172_p7  ;;  %s184_s28 = sshll.u32 %s15490_s27, 4  ;;  %s185_s28 = int_to_ptr.vmem [resolvable:$true] %s184_s28 }
  0x10   : > { %s15491_s30 = smov [#allocation8]   ;;  %s15321_s7 = scalar_lea.vmem %s185_s28, 256 }
  0x11   : > { %s23178_s26 = scalar_select %p15631_p8, 1, 0 }
  0x12   : > { %p13251_p9 = pneg %p15631_p8  ;;  %s198_s6 = sshll.u32 %s15491_s30, 4  ;;  %s199_s6 = int_to_ptr.vmem [resolvable:$true] %s198_s6 }
  0x13   : > { %p15322_p13 = scmp.ne.s32.totalorder %s185_s28, %s15321_s7  ;;  %p15329_p5 = scmp.lt.s32.totalorder %s185_s28, %s185_s28 }
  0x14   : > { %p15640_p11 = pnand %p13251_p9, %p22815_p1  ;;  %p15330_p7 = scmp.lt.s32.totalorder %s15321_s7, %s15321_s7 }
  0x16   : > { %p15312_p12 = pneg %p15640_p11  ;;  %p15331_p10 = por %p15330_p7, %p15329_p5 }
  0x18   : > { %p15324_p0 = pnand %p15322_p13, %p15312_p12 }
  0x1a   : > { %p15325_p3 = pneg %p15324_p0 }
  0x1c   : > { %p15332_p9 = pnand %p15331_p10, %p15325_p3 }
  0x1e   : > { %15335 = shalt.err (!%p15332_p9)
}
  0x1f   : > { %s15492_s8 = smov 64   ;;  %s15493_s9 = smov 4  }
  0x20   : > { %13254 = dma.hbm_to_vmem [thread:$0]  (!%p15640_p11), %s22810_s1, 256, %s185_s28, [#allocation7], %s15492_s8, %s15492_s8, %s15493_s9  }
  0x21   : > { %s15347_s12 = scalar_lea.vmem %s199_s6, 128  ;;  %p15355_p2 = scmp.lt.s32.totalorder %s199_s6, %s199_s6 }
  0x22   : > { %p15348_p1 = scmp.ne.s32.totalorder %s199_s6, %s15347_s12  ;;  %p15356_p6 = scmp.lt.s32.totalorder %s15347_s12, %s15347_s12 }
  0x24   : > { %p15350_p13 = pnand %p15348_p1, %p15312_p12  ;;  %p15357_p5 = por %p15356_p6, %p15355_p2 }
  0x26   : > { %p15351_p0 = pneg %p15350_p13 }
  0x28   : > { %p15358_p10 = pnand %p15357_p5, %p15351_p0 }
  0x2a   : > { %15361 = shalt.err (!%p15358_p10)
}
  0x2b   : > { %13257 = dma.hbm_to_vmem [thread:$0]  (!%p15640_p11), %s22811_s2, 128, %s199_s6, [#allocation7]  }
  0x2c   : > { %s15663_s15 = sadd.s32 1, %s15488_s21   ;;  %s33_s16 = sadd.s32 1, %s15484_s20 }
  0x2d   : > { %s30_s17 = ssub.s32 %s15488_s21, %s15663_s15  ;;  %p40_p1 = scmp.ne.s32.totalorder %s15484_s20, %s15480_s19 }
  0x2e   : > { %p31_p2 = scmp.eq.s32.totalorder %s30_s17, 0  ;;  %p41_p6 = scmp.eq.s32.totalorder %s15488_s21, 0 }
  0x2f   : > { %p23180_p12 = scmp.eq.s32.totalorder %s15612_s22, 1  ;;  %p13271_p7 = scmp.lt.s32.totalorder %s15488_s21, 2 }
  0x30   : > { %s15679_s27 = scalar_select %p31_p2, %s15484_s20, %s33_s16  }
  0x31   : > { %p15673_p3 = por %p23180_p12, %p40_p1  ;;  %p42_p9 = por %p41_p6, %p40_p1 }
  0x32   : > { %s212_s28 = sand.u32 1, %s15484_s20   ;;  %s13233_s30 = sshll.u32 %s15488_s21, 5 }
  0x33   : > { %s23181_s23 = scalar_select %p15673_p3, 1, 0 }
  0x34   : > { %s13169_s29 = sshll.u32 %s212_s28, 1  ;;  %s15686_s8 = scalar_lea.hbm %s22809_s0, %s13233_s30 }
  0x35   : > { %s216_s9 = scalar_lea.vmem [#allocation3], %s13169_s29  ;;  %p15688_p11 = pnand %p13271_p7, %p42_p9 }
  0x36   : > { %s224_s10 = sshll.u32 %s216_s9, 4  ;;  %s213_s12 = scalar_lea.sflag [#allocation4], %s212_s28  ;;  %s225_s10 = int_to_ptr.vmem [resolvable:$true] %s224_s10 }
  0x37   : > { %s15362_s13 = scalar_lea.hbm %s15686_s8, 32  ;;  %p15364_p0 = pneg %p15688_p11 }
  0x38   : > { %p15363_p13 = scmp.ne.s32.totalorder %s15686_s8, %s15362_s13  ;;  %s15367_s17 = scalar_lea.hbm %s22809_s0, 64 }
  0x39   : > { %p15368_p1 = scmp.lt.s32.totalorder %s15686_s8, %s22809_s0  ;;  %p15369_p2 = scmp.lt.s32.totalorder %s15367_s17, %s15362_s13 }
  0x3a   : > { %p15365_p5 = pnand %p15364_p0, %p15363_p13 }
  0x3b   : > { %p15370_p6 = por %p15369_p2, %p15368_p1 }
  0x3c   : > { %p15366_p10 = pneg %p15365_p5 }
  0x3e   : > { %p15371_p12 = pnand %p15370_p6, %p15366_p10 }
  0x40   : > { %15374 = shalt.err (!%p15371_p12)
}
  0x41   : > { %s15375_s6 = scalar_lea.vmem %s225_s10, 32  ;;  %s15494_s28 = smov [#allocation3]  }
  0x42   : > { %p15376_p7 = scmp.ne.s32.totalorder %s225_s10, %s15375_s6  ;;  %s15380_s7 = sshll.u32 %s15494_s28, 4  ;;  %s15381_s7 = int_to_ptr.vmem [resolvable:$false] %s15380_s7 }
  0x43   : > { %s15382_s9 = scalar_lea.vmem %s15381_s7, 64  ;;  %p15383_p13 = scmp.lt.s32.totalorder %s225_s10, %s15381_s7 }
  0x44   : > { %p15378_p9 = pnand %p15376_p7, %p15364_p0  ;;  %p15384_p5 = scmp.lt.s32.totalorder %s15382_s9, %s15375_s6 }
  0x46   : > { %p15379_p3 = pneg %p15378_p9  ;;  %p15385_p4 = por %p15384_p5, %p15383_p13 }
  0x48   : > { %p15386_p8 = pnand %p15385_p4, %p15379_p3 }
  0x4a   : > { %15389 = shalt.err (!%p15386_p8)
}
  0x4b   : > { %13261 = dma.hbm_to_vmem [thread:$0]  (!%p15688_p11), %s15686_s8, 32, %s225_s10, %s213_s12  }
  0x4c   : > { %p23183_p10 = scmp.ne.s32.totalorder %s23178_s26, 0 }
  0x4e   : > { %233 = sbr.rel (%p23183_p10) target bundleno = 1967 (0x7af), region = 36 }
  0x53   : > { %s15709_s13 = sand.u32 1, %s15480_s19   ;;  %p23184_p0 = scmp.ne.s32.totalorder %s23176_s24, 0 }
  0x54   : > { %s13173_s14 = sshll.u32 %s15709_s13, 1  ;;  %s236_s16 = scalar_lea.sflag [#allocation4], %s15709_s13 }
  0x55   : > { %s239_s17 = scalar_lea.vmem [#allocation3], %s13173_s14 }
  0x56   : > { %15459 = dma.done.wait (%p23184_p0), %s236_s16, 32  }
  0x57   : > { %15461 = vsyncadd (%p23184_p0), %s236_s16, 4294967264  ;;  %p23185_p4 = scmp.eq.s32.totalorder %s15612_s22, 0 }
  0x59   : > { %15463 = dma.done.wait (%p23185_p4), [#allocation7], 384   ;;  %p23186_p8 = pmov %p23185_p4 }
  0x5a   : > { %v22838_v0 = vlaneseq  ;;  %v280_v4 = vld [vmem:[%s239_s17] sm:$0x3]  ;;  %s22823_s24 = smov 125   ;;  %s22827_s26 = smov 127   ;;  %v22841_v8 = vmov 0   ;;  %vm714_vm2 = vcmask 1040384  }
  0x5b   : > { %15465 = vsyncadd (%p23186_p8), [#allocation7], 4294966912  ;;  %s22825_s8 = smov 124   ;;  %s22829_s10 = smov 126   ;;  %1042 = vmatprep.mubr.bf16.mxu0 %v22841_v8  ;;  %vm717_vm5 = vcmask 1041408   ;;  %vm720_vm11 = vcmask 1042432  }
  0x5c   : > { %v15722_v1 = vshrl.u32 %v22838_v0, 7  ;;  %s22819_s11 = smov 122   ;;  %s22821_s12 = smov 123   ;;  %v15810_v15 = vand.u32 127, %v22838_v0  ;;  %v15843_v37 = vsel %vm714_vm2, 65535, %v22841_v8  ;;  %vm723_vm15 = vcmask 1043456  }
  0x5d   : > { %s15501_s30 = smov 111   ;;  %s15502_s29 = smov 112  }
  0x5e   : > { %23187 = vst [vmem:[#allocation16_spill] sm:$0xff] %v15722_v1  ;;  %v22840_v2 = vsub.s32 0, %v15722_v1  ;;  %v22839_v3 = vsub.s32 1, %v15722_v1  ;;  %s15503_s6 = smov 109   ;;  %s15504_s28 = smov 110   ;;  %23188 = vst [vmem:[#allocation17_spill] sm:$0xff] %v15810_v15 }
  0x5f   : > { %s15505_s7 = smov 107   ;;  %s15506_s9 = smov 108   ;;  %vm23173_vm0 = vcmp.lt.s32.totalorder %v15810_v15, 127  ;;  %vm22835_vm1 = vcmp.lt.s32.totalorder %v15810_v15, 125  ;;  %vm22837_vm3 = vcmp.lt.s32.totalorder %v15810_v15, 126  ;;  %vm22833_vm4 = vcmp.lt.s32.totalorder %v15810_v15, 124 }
  0x60   : > { %v15728_v5 = vrot.slane %v280_v4, %v22840_v2  ;;  %v15732_v6 = vrot.slane %v280_v4, %v22839_v3  ;;  %s15507_s14 = smov 96   ;;  %s15508_s16 = smov 106   ;;  %vm22834_vm6 = vcmp.lt.s32.totalorder %v15810_v15, 122  ;;  %vm22836_vm7 = vcmp.lt.s32.totalorder %v15810_v15, 123 }
  0x61   : > { %s15509_s17 = smov 94   ;;  %vm361_vm8 = vcmp.lt.s32.totalorder %v15810_v15, 109  ;;  %vm354_vm9 = vcmp.lt.s32.totalorder %v15810_v15, 110  ;;  %vm368_vm10 = vcmp.lt.s32.totalorder %v15810_v15, 108  ;;  %vm347_vm12 = vcmp.lt.s32.totalorder %v15810_v15, 111  ;;  %p24021_p11 = scmp.ne.s32.totalorder %s23181_s23, 0 }
  0x62   : > { %v15736_v7 = vpack.i.bf16 %v15732_v6, %v15728_v5  ;;  %vm375_vm13 = vcmp.lt.s32.totalorder %v15810_v15, 107  ;;  %vm340_vm14 = vcmp.lt.s32.totalorder %v15810_v15, 112 }
  0x64   : > { %13386 = vrot.lane.b32.xlu1 %v15736_v7, %s22823_s24  ;;  %13376 = vrot.lane.b32.xlu0 %v15736_v7, %s22827_s26  ;;  %s15523_s24 = smov 62   ;;  %s15529_s26 = smov 47  }
  0x68   : > { %13391 = vrot.lane.b32.xlu1 %v15736_v7, %s22825_s8  ;;  %13381 = vrot.lane.b32.xlu0 %v15736_v7, %s22829_s10  ;;  %s15528_s8 = smov 59   ;;  %s15530_s10 = smov 48  }
  0x6c   : > { %13401 = vrot.lane.b32.xlu1 %v15736_v7, %s22819_s11  ;;  %13396 = vrot.lane.b32.xlu0 %v15736_v7, %s22821_s12  ;;  %s15514_s11 = smov 91   ;;  %s15518_s12 = smov 78  }
  0x70   : > { %13411 = vrot.lane.b32.xlu1 %v15736_v7, %s15501_s30  ;;  %13406 = vrot.lane.b32.xlu0 %v15736_v7, %s15502_s29  ;;  %s15510_s30 = smov 95  }
  0x74   : > { %13421 = vrot.lane.b32.xlu1 %v15736_v7, %s15503_s6  ;;  %13416 = vrot.lane.b32.xlu0 %v15736_v7, %s15504_s28  ;;  %s15511_s6 = smov 92  }
  0x78   : > { %13431 = vrot.lane.b32.xlu1 %v15736_v7, %s15505_s7  ;;  %13426 = vrot.lane.b32.xlu0 %v15736_v7, %s15506_s9  ;;  %s15512_s7 = smov 93   ;;  %s15513_s9 = smov 90  }
  0x7c   : > { %13441 = vrot.lane.b32.xlu1 %v15736_v7, %s15507_s14  ;;  %13436 = vrot.lane.b32.xlu0 %v15736_v7, %s15508_s16  ;;  %s15515_s16 = smov 79  }
  0x80   : > { %13451 = vrot.lane.b32.xlu1 %v15736_v7, %s15509_s17  ;;  %13446 = vrot.lane.b32.xlu0 %v15736_v7, %s15510_s30  ;;  %s15516_s17 = smov 80   ;;  %s15517_s30 = smov 77  }
  0x84   : > { %13461 = vrot.lane.b32.xlu1 %v15736_v7, %s15511_s6  ;;  %13456 = vrot.lane.b32.xlu0 %v15736_v7, %s15512_s7  ;;  %s15519_s7 = smov 75  }
  0x88   : > { %13471 = vrot.lane.b32.xlu1 %v15736_v7, %s15513_s9  ;;  %13466 = vrot.lane.b32.xlu0 %v15736_v7, %s15514_s11  ;;  %s15520_s9 = smov 76   ;;  %s15521_s11 = smov 64  }
  0x8c   : > { %13481 = vrot.lane.b32.xlu1 %v15736_v7, %s15515_s16  ;;  %13476 = vrot.lane.b32.xlu0 %v15736_v7, %s15516_s17  ;;  %s22831_s16 = smov 74  }
  0x90   : > { %13491 = vrot.lane.b32.xlu1 %v15736_v7, %s15517_s30  ;;  %13486 = vrot.lane.b32.xlu0 %v15736_v7, %s15518_s12  ;;  %s15524_s30 = smov 63   ;;  %s15525_s12 = smov 60  }
  0x94   : > { %13501 = vrot.lane.b32.xlu1 %v15736_v7, %s15519_s7  ;;  %13496 = vrot.lane.b32.xlu0 %v15736_v7, %s15520_s9  ;;  %s15526_s7 = smov 61   ;;  %s15527_s9 = smov 58  }
  0x98   : > { %13511 = vrot.lane.b32.xlu1 %v15736_v7, %s15521_s11  ;;  %13506 = vrot.lane.b32.xlu0 %v15736_v7, %s22831_s16  ;;  %s23052_s16 = smov 26  }
  0x9c   : > { %13521 = vrot.lane.b32.xlu1 %v15736_v7, %s15523_s24  ;;  %13516 = vrot.lane.b32.xlu0 %v15736_v7, %s15524_s30  ;;  %s15531_s24 = smov 45   ;;  %s15532_s30 = smov 46  }
  0xa0   : > { %13531 = vrot.lane.b32.xlu1 %v15736_v7, %s15525_s12  ;;  %13526 = vrot.lane.b32.xlu0 %v15736_v7, %s15526_s7  ;;  %s15533_s12 = smov 43   ;;  %s15534_s7 = smov 44  }
  0xa4   : > { %13541 = vrot.lane.b32.xlu1 %v15736_v7, %s15527_s9  ;;  %13536 = vrot.lane.b32.xlu0 %v15736_v7, %s15528_s8  ;;  %s15535_s8 = smov 32   ;;  %s15537_s9 = smov 30  }
  0xa8   : > { %13551 = vrot.lane.b32.xlu1 %v15736_v7, %s15529_s26  ;;  %13546 = vrot.lane.b32.xlu0 %v15736_v7, %s15530_s10  ;;  %s15536_s26 = smov 42  }
  0xac   : > { %13561 = vrot.lane.b32.xlu1 %v15736_v7, %s15531_s24  ;;  %13556 = vrot.lane.b32.xlu0 %v15736_v7, %s15532_s30  ;;  %s15538_s24 = smov 31   ;;  %s15540_s30 = smov 28  }
  0xb0   : > { %13571 = vrot.lane.b32.xlu1 %v15736_v7, %s15533_s12  ;;  %13566 = vrot.lane.b32.xlu0 %v15736_v7, %s15534_s7  ;;  %s15541_s12 = smov 29  }
  0xb4   : > { %13581 = vrot.lane.b32.xlu1 %v15736_v7, %s15535_s8  ;;  %13576 = vrot.lane.b32.xlu0 %v15736_v7, %s15536_s26  ;;  %s15543_s26 = smov 27  }
  0xb8   : > { %13591 = vrot.lane.b32.xlu1 %v15736_v7, %s15537_s9  ;;  %13586 = vrot.lane.b32.xlu0 %v15736_v7, %s15538_s24  ;;  %s13176_s24 = sshll.u32 %s15709_s13, 6 }
  0xbc   : > { %13601 = vrot.lane.b32.xlu1 %v15736_v7, %s15540_s30  ;;  %13596 = vrot.lane.b32.xlu0 %v15736_v7, %s15541_s12  ;;  %s16385_s30 = scalar_lea.vmem [#allocation9], %s13176_s24  ;;  %s22947_s12 = smov 16  }
  0xbd   : > { %s15554_s24 = smov 70  }
  0xc0   : > { %13611 = vrot.lane.b32.xlu1 %v15736_v7, %s23052_s16  ;;  %13606 = vrot.lane.b32.xlu0 %v15736_v7, %s15543_s26  ;;  %s15553_s26 = smov 114  }
  0xd6   : > { %v13387_v9 = vpop.permute.xlu1 %13386  ;;  %v13377_v10 = vpop.permute.xlu0 %13376 }
  0xd7   : > { %v13379_v16 = vunpack.i.h.bf16 %v13377_v10  ;;  %v13378_v17 = vunpack.i.l.bf16 %v13377_v10  ;;  %v13389_v22 = vunpack.i.h.bf16 %v13387_v9  ;;  %v13388_v23 = vunpack.i.l.bf16 %v13387_v9 }
  0xd9   : > { %v299_v24 = vsel %vm23173_vm0, %v13378_v17, %v13379_v16  ;;  %v300_v27 = vsel %vm23173_vm0, %v13379_v16, %v13378_v17  ;;  %v15835_v32 = vsel %vm22835_vm1, %v13388_v23, %v13389_v22  ;;  %v314_v38 = vsel %vm22835_vm1, %v13389_v22, %v13388_v23 }
  0xda   : > { %v13392_v11 = vpop.permute.xlu1 %13391  ;;  %v13382_v12 = vpop.permute.xlu0 %13381  ;;  %v632_v30 = vrot.slane %v299_v24, 7  ;;  %v633_v33 = vrot.slane %v300_v27, 7  ;;  %v644_v50 = vrot.slane %v15835_v32, 5  ;;  %v645_v51 = vrot.slane %v314_v38, 5 }
  0xdb   : > { %v13384_v20 = vunpack.i.h.bf16 %v13382_v12  ;;  %v13383_v21 = vunpack.i.l.bf16 %v13382_v12  ;;  %v13394_v28 = vunpack.i.h.bf16 %v13392_v11  ;;  %v13393_v29 = vunpack.i.l.bf16 %v13392_v11 }
  0xdc   : > { %v715_v46 = vsel %vm714_vm2, %v15728_v5, %v632_v30  ;;  %v716_v52 = vsel %vm714_vm2, %v15732_v6, %v633_v33  ;;  %vm726_vm1 = vcmask 1044480   ;;  %vm12682_vm0 = vcmask 785408  }
  0xdd   : > { %v306_v31 = vsel %vm22837_vm3, %v13383_v21, %v13384_v20  ;;  %v307_v34 = vsel %vm22837_vm3, %v13384_v20, %v13383_v21  ;;  %v15849_v39 = vsel %vm22833_vm4, %v13393_v29, %v13394_v28  ;;  %v15856_v42 = vsel %vm22833_vm4, %v13394_v28, %v13393_v29 }
  0xde   : > { %v15805_v13 = vpop.permute.xlu1 %13401  ;;  %v15807_v14 = vpop.permute.xlu0 %13396  ;;  %v638_v43 = vrot.slane %v306_v31, 6  ;;  %v639_v47 = vrot.slane %v307_v34, 6  ;;  %v650_v53 = vrot.slane %v15849_v39, 4  ;;  %v651_v56 = vrot.slane %v15856_v42, 4 }
  0xdf   : > { %v13404_v40 = vunpack.i.h.bf16 %v15805_v13  ;;  %v13403_v41 = vunpack.i.l.bf16 %v15805_v13  ;;  %v13399_v48 = vunpack.i.h.bf16 %v15807_v14  ;;  %v13398_v49 = vunpack.i.l.bf16 %v15807_v14 }
  0xe0   : > { %v718_v60 = vsel %vm717_vm5, %v715_v46, %v638_v43  ;;  %v719_v4 = vsel %vm717_vm5, %v716_v52, %v639_v47  ;;  %vm382_vm4 = vcmp.lt.s32.totalorder %v15810_v15, 106  ;;  %vm431_vm3 = vcmp.lt.s32.totalorder %v15810_v15, 90 }
  0xe1   : > { %v15875_v57 = vsel %vm22834_vm6, %v13404_v40, %v13403_v41  ;;  %v15885_v5 = vsel %vm22834_vm6, %v13403_v41, %v13404_v40  ;;  %v15889_v6 = vsel %vm22836_vm7, %v13398_v49, %v13399_v48  ;;  %v15893_v7 = vsel %vm22836_vm7, %v13399_v48, %v13398_v49 }
  0xe2   : > { %v15812_v18 = vpop.permute.xlu1 %13411  ;;  %v15814_v19 = vpop.permute.xlu0 %13406  ;;  %vm389_vm6 = vcmp.lt.s32.totalorder %v15810_v15, 96  ;;  %v722_v28 = vsel %vm720_vm11, %v719_v4, %v645_v51  ;;  %v721_v33 = vsel %vm720_vm11, %v718_v60, %v644_v50  ;;  %vm396_vm7 = vcmp.lt.s32.totalorder %v15810_v15, 95 }
  0xe3   : > { %v13414_v10 = vunpack.i.h.bf16 %v15812_v18  ;;  %v13413_v11 = vunpack.i.l.bf16 %v15812_v18  ;;  %v13409_v22 = vunpack.i.h.bf16 %v15814_v19  ;;  %v13408_v23 = vunpack.i.l.bf16 %v15814_v19 }
  0xe4   : > { %v15964_v42 = vsel %vm723_vm15, %v721_v33, %v650_v53 }
  0xe5   : > { %v349_v29 = vsel %vm347_vm12, %v13414_v10, %v13413_v11  ;;  %v348_v34 = vsel %vm347_vm12, %v13413_v11, %v13414_v10  ;;  %v15935_v40 = vsel %vm340_vm14, %v13409_v22, %v13408_v23  ;;  %vm424_vm12 = vcmp.lt.s32.totalorder %v15810_v15, 91 }
  0xe6   : > { %v15821_v25 = vpop.permute.xlu1 %13421  ;;  %v13417_v26 = vpop.permute.xlu0 %13416 }
  0xe7   : > { %v13419_v44 = vunpack.i.h.bf16 %v13417_v26  ;;  %v13418_v45 = vunpack.i.l.bf16 %v13417_v26  ;;  %v13424_v58 = vunpack.i.h.bf16 %v15821_v25  ;;  %v13423_v59 = vunpack.i.l.bf16 %v15821_v25 }
  0xe8   : > { %v657_v25 = vrot.slane %v15893_v7, 3 }
  0xe9   : > { %v356_v61 = vsel %vm354_vm9, %v13419_v44, %v13418_v45  ;;  %v355_v12 = vsel %vm354_vm9, %v13418_v45, %v13419_v44  ;;  %v363_v16 = vsel %vm361_vm8, %v13424_v58, %v13423_v59  ;;  %vm410_vm9 = vcmp.lt.s32.totalorder %v15810_v15, 93 }
  0xea   : > { %v15839_v35 = vpop.permute.xlu1 %13431  ;;  %v13427_v36 = vpop.permute.xlu0 %13426  ;;  %v675_v17 = vrot.slane %v356_v61, 7  ;;  %v362_v26 = vsel %vm361_vm8, %v13423_v59, %v13424_v58  ;;  %v674_v27 = vrot.slane %v355_v12, 7  ;;  %v681_v30 = vrot.slane %v363_v16, 6 }
  0xeb   : > { %v13429_v62 = vunpack.i.h.bf16 %v13427_v36  ;;  %v13428_v63 = vunpack.i.l.bf16 %v13427_v36  ;;  %v13434_v20 = vunpack.i.h.bf16 %v15839_v35  ;;  %v13433_v21 = vunpack.i.l.bf16 %v15839_v35 }
  0xec   : > { %v736_v35 = vsel %vm714_vm2, %v349_v29, %v675_v17  ;;  %vm417_vm8 = vcmp.lt.s32.totalorder %v15810_v15, 92  ;;  %v680_v41 = vrot.slane %v362_v26, 6  ;;  %v735_v45 = vsel %vm714_vm2, %v348_v34, %v674_v27 }
  0xed   : > { %v370_v24 = vsel %vm368_vm10, %v13429_v62, %v13428_v63  ;;  %v369_v19 = vsel %vm368_vm10, %v13428_v63, %v13429_v62  ;;  %v377_v36 = vsel %vm375_vm13, %v13434_v20, %v13433_v21  ;;  %vm403_vm10 = vcmp.lt.s32.totalorder %v15810_v15, 94 }
  0xee   : > { %v15868_v54 = vpop.permute.xlu1 %13441  ;;  %v15870_v55 = vpop.permute.xlu0 %13436  ;;  %v687_v38 = vrot.slane %v370_v24, 5  ;;  %v686_v46 = vrot.slane %v369_v19, 5  ;;  %v376_v49 = vsel %vm375_vm13, %v13433_v21, %v13434_v20  ;;  %v693_v50 = vrot.slane %v377_v36, 4 }
  0xef   : > { %v13439_v43 = vunpack.i.h.bf16 %v15870_v55  ;;  %v13438_v44 = vunpack.i.l.bf16 %v15870_v55  ;;  %v13444_v47 = vunpack.i.h.bf16 %v15868_v54  ;;  %v13443_v48 = vunpack.i.l.bf16 %v15868_v54 }
  0xf0   : > { %v738_v51 = vsel %vm717_vm5, %v736_v35, %v681_v30  ;;  %v725_v54 = vsel %vm723_vm15, %v722_v28, %v651_v56  ;;  %v15954_v58 = vsel %vm340_vm14, %v13408_v23, %v13409_v22  ;;  %v737_v63 = vsel %vm717_vm5, %v735_v45, %v680_v41 }
  0xf1   : > { %v740_v59 = vsel %vm720_vm11, %v738_v51, %v687_v38  ;;  %v384_v4 = vsel %vm382_vm4, %v13439_v43, %v13438_v44  ;;  %v692_v56 = vrot.slane %v376_v49, 4  ;;  %v739_v7 = vsel %vm720_vm11, %v737_v63, %v686_v46 }
  0xf2   : > { %v15902_v13 = vpop.permute.xlu1 %13451  ;;  %v15904_v14 = vpop.permute.xlu0 %13446  ;;  %v15969_v10 = vsel %vm389_vm6, %v13443_v48, %v13444_v47  ;;  %v15972_v11 = vsel %vm726_vm1, %v725_v54, %v657_v25  ;;  %v15976_v12 = vsel %vm389_vm6, %v13444_v47, %v13443_v48  ;;  %v742_v20 = vsel %vm723_vm15, %v740_v59, %v693_v50 }
  0xf3   : > { %v15987_v21 = vsel %vm382_vm4, %v13438_v44, %v13439_v43  ;;  %v699_v22 = vrot.slane %v384_v4, 3  ;;  %v13454_v23 = vunpack.i.h.bf16 %v15902_v13  ;;  %vm466_vm6 = vcmp.lt.s32.totalorder %v15810_v15, 76 }
  0xf4   : > { %v13453_v25 = vunpack.i.l.bf16 %v15902_v13  ;;  %vm438_vm13 = vcmp.lt.s32.totalorder %v15810_v15, 80  ;;  %v13449_v29 = vunpack.i.h.bf16 %v15904_v14  ;;  %v13448_v30 = vunpack.i.l.bf16 %v15904_v14 }
  0xf5   : > { %vm473_vm4 = vcmp.lt.s32.totalorder %v15810_v15, 75  ;;  %v16012_v43 = vsel %vm723_vm15, %v739_v7, %v692_v56  ;;  %vm445_vm14 = vcmp.lt.s32.totalorder %v15810_v15, 79  ;;  %v16022_v47 = vsel %vm726_vm1, %v742_v20, %v699_v22 }
  0xf6   : > { %v15924_v31 = vpop.permute.xlu1 %13461  ;;  %v13457_v32 = vpop.permute.xlu0 %13456  ;;  %v404_v44 = vsel %vm403_vm10, %v13453_v25, %v13454_v23  ;;  %v405_v45 = vsel %vm403_vm10, %v13454_v23, %v13453_v25  ;;  %v16026_v48 = vsel %vm396_vm7, %v13448_v30, %v13449_v29  ;;  %v16030_v49 = vsel %vm396_vm7, %v13449_v29, %v13448_v30 }
  0xf7   : > { %v13459_v60 = vunpack.i.h.bf16 %v13457_v32  ;;  %v13458_v61 = vunpack.i.l.bf16 %v13457_v32  ;;  %v13464_v16 = vunpack.i.h.bf16 %v15924_v31  ;;  %v13463_v39 = vunpack.i.l.bf16 %v15924_v31 }
  0xf8   : > { %vm487_vm7 = vcmp.lt.s32.totalorder %v15810_v15, 64  ;;  %vm480_vm10 = vcmp.lt.s32.totalorder %v15810_v15, 74 }
  0xf9   : > { %v411_v24 = vsel %vm410_vm9, %v13458_v61, %v13459_v60  ;;  %v412_v26 = vsel %vm410_vm9, %v13459_v60, %v13458_v61  ;;  %v418_v13 = vsel %vm417_vm8, %v13463_v39, %v13464_v16  ;;  %v419_v14 = vsel %vm417_vm8, %v13464_v16, %v13463_v39 }
  0xfa   : > { %v13472_v52 = vpop.permute.xlu1 %13471  ;;  %v13467_v55 = vpop.permute.xlu0 %13466  ;;  %v751_v34 = vrot.slane %v411_v24, 7  ;;  %v752_v41 = vrot.slane %v412_v26, 7  ;;  %v757_v50 = vrot.slane %v418_v13, 6  ;;  %vm459_vm9 = vcmp.lt.s32.totalorder %v15810_v15, 77 }
  0xfb   : > { %v13469_v27 = vunpack.i.h.bf16 %v13467_v55  ;;  %v13468_v28 = vunpack.i.l.bf16 %v13467_v55  ;;  %v13474_v19 = vunpack.i.h.bf16 %v13472_v52  ;;  %v13473_v31 = vunpack.i.l.bf16 %v13472_v52 }
  0xfc   : > { %vm452_vm8 = vcmp.lt.s32.totalorder %v15810_v15, 78  ;;  %v758_v52 = vrot.slane %v419_v14, 6  ;;  %v833_v55 = vsel %vm714_vm2, %v404_v44, %v751_v34  ;;  %v834_v63 = vsel %vm714_vm2, %v405_v45, %v752_v41 }
  0xfd   : > { %v425_v46 = vsel %vm424_vm12, %v13468_v28, %v13469_v27  ;;  %v16034_v51 = vsel %vm431_vm3, %v13473_v31, %v13474_v19  ;;  %v16041_v54 = vsel %vm431_vm3, %v13474_v19, %v13473_v31  ;;  %v426_v59 = vsel %vm424_vm12, %v13469_v27, %v13468_v28 }
  0xfe   : > { %v15980_v53 = vpop.permute.xlu1 %13481  ;;  %v15982_v17 = vpop.permute.xlu0 %13476  ;;  %v763_v4 = vrot.slane %v425_v46, 5  ;;  %v770_v23 = vrot.slane %v16041_v54, 4  ;;  %v764_v24 = vrot.slane %v426_v59, 5  ;;  %v835_v27 = vsel %vm717_vm5, %v833_v55, %v757_v50 }
  0xff   : > { %v13479_v56 = vunpack.i.h.bf16 %v15982_v17  ;;  %v13478_v7 = vunpack.i.l.bf16 %v15982_v17  ;;  %v836_v28 = vsel %vm717_vm5, %v834_v63, %v758_v52  ;;  %v13484_v13 = vunpack.i.h.bf16 %v15980_v53 }
 0x100   : > { %v16060_v31 = vsel %vm720_vm11, %v835_v27, %v763_v4  ;;  %v13483_v34 = vunpack.i.l.bf16 %v15980_v53  ;;  %vm501_vm3 = vcmp.lt.s32.totalorder %v15810_v15, 62  ;;  %vm494_vm12 = vcmp.lt.s32.totalorder %v15810_v15, 63 }
 0x101   : > { %v440_v14 = vsel %vm438_vm13, %v13479_v56, %v13478_v7 }
 0x102   : > { %v16003_v35 = vpop.permute.xlu1 %13491  ;;  %v16005_v36 = vpop.permute.xlu0 %13486  ;;  %v16079_v4 = vsel %vm445_vm14, %v13483_v34, %v13484_v13 }
 0x103   : > { %v13494_v41 = vunpack.i.h.bf16 %v16003_v35  ;;  %v13493_v44 = vunpack.i.l.bf16 %v16003_v35  ;;  %v13489_v45 = vunpack.i.h.bf16 %v16005_v36  ;;  %v13488_v46 = vunpack.i.l.bf16 %v16005_v36 }
 0x104   : > { %v838_v36 = vsel %vm720_vm11, %v836_v28, %v764_v24 }
 0x105   : > { %v461_v24 = vsel %vm459_vm9, %v13494_v41, %v13493_v44  ;;  %v16096_v27 = vsel %vm452_vm8, %v13489_v45, %v13488_v46 }
 0x106   : > { %v13502_v60 = vpop.permute.xlu1 %13501  ;;  %v13497_v61 = vpop.permute.xlu0 %13496 }
 0x107   : > { %v13499_v20 = vunpack.i.h.bf16 %v13497_v61  ;;  %v13498_v22 = vunpack.i.l.bf16 %v13497_v61  ;;  %v13504_v25 = vunpack.i.h.bf16 %v13502_v60  ;;  %v13503_v26 = vunpack.i.l.bf16 %v13502_v60 }
 0x109   : > { %v467_v17 = vsel %vm466_vm6, %v13498_v22, %v13499_v20  ;;  %v468_v29 = vsel %vm466_vm6, %v13499_v20, %v13498_v22  ;;  %v474_v50 = vsel %vm473_vm4, %v13503_v26, %v13504_v25  ;;  %v475_v53 = vsel %vm473_vm4, %v13504_v25, %v13503_v26 }
 0x10a   : > { %v13512_v30 = vpop.permute.xlu1 %13511  ;;  %v13507_v19 = vpop.permute.xlu0 %13506  ;;  %v793_v52 = vrot.slane %v467_v17, 7  ;;  %v794_v55 = vrot.slane %v468_v29, 7  ;;  %v16083_v20 = vsel %vm445_vm14, %v13484_v13, %v13483_v34  ;;  %v16087_v22 = vsel %vm438_vm13, %v13478_v7, %v13479_v56 }
 0x10b   : > { %v13514_v54 = vunpack.i.h.bf16 %v13512_v30  ;;  %v13513_v59 = vunpack.i.l.bf16 %v13512_v30  ;;  %v13509_v60 = vunpack.i.h.bf16 %v13507_v19  ;;  %v13508_v35 = vunpack.i.l.bf16 %v13507_v19 }
 0x10c   : > { %vm522_vm6 = vcmp.lt.s32.totalorder %v15810_v15, 59  ;;  %v776_v25 = vrot.slane %v440_v14, 3  ;;  %v460_v26 = vsel %vm459_vm9, %v13493_v44, %v13494_v41  ;;  %v799_v28 = vrot.slane %v474_v50, 6 }
 0x10d   : > { %v800_v17 = vrot.slane %v475_v53, 6  ;;  %v847_v29 = vsel %vm714_vm2, %v460_v26, %v793_v52  ;;  %v848_v56 = vsel %vm714_vm2, %v461_v24, %v794_v55  ;;  %vm529_vm13 = vcmp.lt.s32.totalorder %v15810_v15, 58 }
 0x10e   : > { %v13522_v61 = vpop.permute.xlu1 %13521  ;;  %v13517_v63 = vpop.permute.xlu0 %13516  ;;  %v16103_v7 = vsel %vm487_vm7, %v13513_v59, %v13514_v54  ;;  %v489_v30 = vsel %vm487_vm7, %v13514_v54, %v13513_v59  ;;  %v481_v19 = vsel %vm480_vm10, %v13508_v35, %v13509_v60  ;;  %v482_v13 = vsel %vm480_vm10, %v13509_v60, %v13508_v35 }
 0x10f   : > { %vm515_vm4 = vcmp.lt.s32.totalorder %v15810_v15, 60  ;;  %v13524_v41 = vunpack.i.h.bf16 %v13522_v61  ;;  %v13523_v44 = vunpack.i.l.bf16 %v13522_v61  ;;  %v13519_v50 = vunpack.i.h.bf16 %v13517_v63 }
 0x110   : > { %v13518_v53 = vunpack.i.l.bf16 %v13517_v63  ;;  %vm536_vm14 = vcmp.lt.s32.totalorder %v15810_v15, 48  ;;  %v16121_v54 = vsel %vm452_vm8, %v13488_v46, %v13489_v45  ;;  %vm508_vm9 = vcmp.lt.s32.totalorder %v15810_v15, 61 }
 0x111   : > { %v840_v59 = vsel %vm723_vm15, %v838_v36, %v770_v23  ;;  %v805_v35 = vrot.slane %v481_v19, 5  ;;  %v806_v61 = vrot.slane %v482_v13, 5  ;;  %v811_v26 = vrot.slane %v16103_v7, 4 }
 0x112   : > { %v16112_v34 = vpop.permute.xlu1 %13531  ;;  %v16114_v14 = vpop.permute.xlu0 %13526  ;;  %v16127_v63 = vsel %vm726_vm1, %v840_v59, %v776_v25  ;;  %v812_v24 = vrot.slane %v489_v30, 4  ;;  %v849_v0 = vsel %vm717_vm5, %v847_v29, %v799_v28  ;;  %v850_v3 = vsel %vm717_vm5, %v848_v56, %v800_v17 }
 0x113   : > { %v16134_v2 = vsel %vm501_vm3, %v13523_v44, %v13524_v41  ;;  %v16138_v23 = vsel %vm501_vm3, %v13524_v41, %v13523_v44  ;;  %v16142_v36 = vsel %vm494_vm12, %v13518_v53, %v13519_v50  ;;  %v16146_v25 = vsel %vm494_vm12, %v13519_v50, %v13518_v53 }
 0x114   : > { %vm543_vm8 = vcmp.lt.s32.totalorder %v15810_v15, 47  ;;  %vm557_vm7 = vcmp.lt.s32.totalorder %v15810_v15, 45  ;;  %vm550_vm10 = vcmp.lt.s32.totalorder %v15810_v15, 46  ;;  %v851_v30 = vsel %vm720_vm11, %v849_v0, %v805_v35 }
 0x115   : > { %v852_v19 = vsel %vm720_vm11, %v850_v3, %v806_v61  ;;  %v13534_v13 = vunpack.i.h.bf16 %v16112_v34  ;;  %v13533_v41 = vunpack.i.l.bf16 %v16112_v34  ;;  %v818_v3 = vrot.slane %v16146_v25, 3 }
 0x116   : > { %v13542_v45 = vpop.permute.xlu1 %13541  ;;  %v13537_v46 = vpop.permute.xlu0 %13536  ;;  %v13529_v35 = vunpack.i.h.bf16 %v16114_v14  ;;  %v13528_v34 = vunpack.i.l.bf16 %v16114_v14  ;;  %v854_v9 = vsel %vm723_vm15, %v852_v19, %v812_v24  ;;  %vm585_vm3 = vcmp.lt.s32.totalorder %v15810_v15, 32 }
 0x117   : > { %v13544_v28 = vunpack.i.h.bf16 %v13542_v45  ;;  %v13543_v17 = vunpack.i.l.bf16 %v13542_v45  ;;  %v13539_v29 = vunpack.i.h.bf16 %v13537_v46  ;;  %v13538_v56 = vunpack.i.l.bf16 %v13537_v46 }
 0x118   : > { %vm578_vm12 = vcmp.lt.s32.totalorder %v15810_v15, 42 }
 0x119   : > { %v523_v53 = vsel %vm522_vm6, %v13538_v56, %v13539_v29  ;;  %v524_v59 = vsel %vm522_vm6, %v13539_v29, %v13538_v56  ;;  %v530_v61 = vsel %vm529_vm13, %v13543_v17, %v13544_v28  ;;  %v531_v8 = vsel %vm529_vm13, %v13544_v28, %v13543_v17 }
 0x11a   : > { %v13552_v45 = vpop.permute.xlu1 %13551  ;;  %v13547_v46 = vpop.permute.xlu0 %13546  ;;  %v516_v29 = vsel %vm515_vm4, %v13533_v41, %v13534_v13  ;;  %v863_v56 = vrot.slane %v523_v53, 7  ;;  %v864_v18 = vrot.slane %v524_v59, 7  ;;  %v517_v28 = vsel %vm515_vm4, %v13534_v13, %v13533_v41 }
 0x11b   : > { %v13549_v32 = vunpack.i.h.bf16 %v13547_v46  ;;  %v13548_v62 = vunpack.i.l.bf16 %v13547_v46  ;;  %v13554_v25 = vunpack.i.h.bf16 %v13552_v45  ;;  %v13553_v16 = vunpack.i.l.bf16 %v13552_v45 }
 0x11c   : > { %v16181_v17 = vsel %vm508_vm9, %v13529_v35, %v13528_v34  ;;  %v869_v24 = vrot.slane %v530_v61, 6  ;;  %v870_v19 = vrot.slane %v531_v8, 6  ;;  %vm571_vm6 = vcmp.lt.s32.totalorder %v15810_v15, 43 }
 0x11d   : > { %v537_v14 = vsel %vm536_vm14, %v13548_v62, %v13549_v32  ;;  %v538_v33 = vsel %vm536_vm14, %v13549_v32, %v13548_v62  ;;  %v945_v62 = vsel %vm714_vm2, %v516_v29, %v863_v56  ;;  %v946_v32 = vsel %vm714_vm2, %v517_v28, %v864_v18 }
 0x11e   : > { %v13562_v38 = vpop.permute.xlu1 %13561  ;;  %v13557_v44 = vpop.permute.xlu0 %13556  ;;  %v875_v60 = vrot.slane %v537_v14, 5  ;;  %v876_v55 = vrot.slane %v538_v33, 5  ;;  %v16189_v13 = vsel %vm508_vm9, %v13528_v34, %v13529_v35  ;;  %v544_v8 = vsel %vm543_vm8, %v13553_v16, %v13554_v25 }
 0x11f   : > { %v13564_v53 = vunpack.i.h.bf16 %v13562_v38  ;;  %v13563_v59 = vunpack.i.l.bf16 %v13562_v38  ;;  %v13559_v45 = vunpack.i.h.bf16 %v13557_v44  ;;  %v13558_v46 = vunpack.i.l.bf16 %v13557_v44 }
 0x120   : > { %v545_v38 = vsel %vm543_vm8, %v13554_v25, %v13553_v16  ;;  %vm564_vm13 = vcmp.lt.s32.totalorder %v15810_v15, 44  ;;  %v16199_v18 = vsel %vm723_vm15, %v851_v30, %v811_v26  ;;  %vm599_vm4 = vcmp.lt.s32.totalorder %v15810_v15, 30 }
 0x121   : > { %v16203_v33 = vsel %vm557_vm7, %v13563_v59, %v13564_v53  ;;  %v16207_v35 = vsel %vm557_vm7, %v13564_v53, %v13563_v59  ;;  %v16211_v16 = vsel %vm550_vm10, %v13558_v46, %v13559_v45  ;;  %v16215_v34 = vsel %vm550_vm10, %v13559_v45, %v13558_v46 }
 0x122   : > { %v13572_v41 = vpop.permute.xlu1 %13571  ;;  %v13567_v44 = vpop.permute.xlu0 %13566  ;;  %vm592_vm14 = vcmp.lt.s32.totalorder %v15810_v15, 31  ;;  %v947_v26 = vsel %vm717_vm5, %v945_v62, %v869_v24  ;;  %v948_v30 = vsel %vm717_vm5, %v946_v32, %v870_v19  ;;  %v16223_v61 = vsel %vm726_vm1, %v854_v9, %v818_v3 }
 0x123   : > { %v881_v29 = vrot.slane %v544_v8, 4  ;;  %v882_v56 = vrot.slane %v545_v38, 4  ;;  %v949_v25 = vsel %vm720_vm11, %v947_v26, %v875_v60  ;;  %v950_v14 = vsel %vm720_vm11, %v948_v30, %v876_v55 }
 0x124   : > { %v13574_v19 = vunpack.i.h.bf16 %v13572_v41  ;;  %v13573_v62 = vunpack.i.l.bf16 %v13572_v41  ;;  %vm613_vm9 = vcmp.lt.s32.totalorder %v15810_v15, 28  ;;  %vm606_vm8 = vcmp.lt.s32.totalorder %v15810_v15, 29 }
 0x125   : > { %v13569_v60 = vunpack.i.h.bf16 %v13567_v44  ;;  %v13568_v55 = vunpack.i.l.bf16 %v13567_v44  ;;  %v952_v30 = vsel %vm723_vm15, %v950_v14, %v882_v56  ;;  %v16239_v41 = vsel %vm723_vm15, %v949_v25, %v881_v29 }
 0x126   : > { %v13582_v24 = vpop.permute.xlu1 %13581  ;;  %v13577_v46 = vpop.permute.xlu0 %13576  ;;  %vm620_vm7 = vcmp.lt.s32.totalorder %v15810_v15, 27  ;;  %vm627_vm10 = vcmp.lt.s32.totalorder %v15810_v15, 26  ;;  %v572_v29 = vsel %vm571_vm6, %v13573_v62, %v13574_v19  ;;  %v573_v56 = vsel %vm571_vm6, %v13574_v19, %v13573_v62 }
 0x127   : > { %v13584_v9 = vunpack.i.h.bf16 %v13582_v24  ;;  %v13583_v3 = vunpack.i.l.bf16 %v13582_v24  ;;  %v13579_v32 = vunpack.i.h.bf16 %v13577_v46  ;;  %v13578_v8 = vunpack.i.l.bf16 %v13577_v46 }
 0x128   : > { %vm1205_vm6 = vcmask 173184  }
 0x129   : > { %v586_v38 = vsel %vm585_vm3, %v13583_v3, %v13584_v9  ;;  %v587_v26 = vsel %vm585_vm3, %v13584_v9, %v13583_v3  ;;  %v579_v39 = vsel %vm578_vm12, %v13578_v8, %v13579_v32  ;;  %v580_v44 = vsel %vm578_vm12, %v13579_v32, %v13578_v8 }
 0x12a   : > { %v911_v24 = vrot.slane %v586_v38, 6  ;;  %v912_v52 = vrot.slane %v587_v26, 6  ;;  %v13592_v46 = vpop.permute.xlu1 %13591  ;;  %v13587_v7 = vpop.permute.xlu0 %13586  ;;  %v905_v28 = vrot.slane %v579_v39, 7  ;;  %v906_v0 = vrot.slane %v580_v44, 7 }
 0x12b   : > { %v13594_v50 = vunpack.i.h.bf16 %v13592_v46  ;;  %v13593_v53 = vunpack.i.l.bf16 %v13592_v46  ;;  %v13589_v25 = vunpack.i.h.bf16 %v13587_v7  ;;  %v13588_v14 = vunpack.i.l.bf16 %v13587_v7 }
 0x12c   : > { %v16253_v9 = vsel %vm564_vm13, %v13568_v55, %v13569_v60  ;;  %v566_v39 = vsel %vm564_vm13, %v13569_v60, %v13568_v55  ;;  %v959_v3 = vsel %vm714_vm2, %v572_v29, %v905_v28  ;;  %v960_v32 = vsel %vm714_vm2, %v573_v56, %v906_v0 }
 0x12d   : > { %v600_v8 = vsel %vm599_vm4, %v13593_v53, %v13594_v50  ;;  %v601_v38 = vsel %vm599_vm4, %v13594_v50, %v13593_v53  ;;  %v593_v7 = vsel %vm592_vm14, %v13588_v14, %v13589_v25  ;;  %v594_v19 = vsel %vm592_vm14, %v13589_v25, %v13588_v14 }
 0x12e   : > { %v13602_v62 = vpop.permute.xlu1 %13601  ;;  %v13597_v26 = vpop.permute.xlu0 %13596  ;;  %v917_v44 = vrot.slane %v593_v7, 5  ;;  %v918_v60 = vrot.slane %v594_v19, 5  ;;  %v961_v28 = vsel %vm717_vm5, %v959_v3, %v911_v24  ;;  %v962_v0 = vsel %vm717_vm5, %v960_v32, %v912_v52 }
 0x12f   : > { %v13604_v55 = vunpack.i.h.bf16 %v13602_v62  ;;  %v13603_v46 = vunpack.i.l.bf16 %v13602_v62  ;;  %v13599_v29 = vunpack.i.h.bf16 %v13597_v26  ;;  %v13598_v56 = vunpack.i.l.bf16 %v13597_v26 }
 0x130   : > { %vm729_vm2 = vcmask 1045504   ;;  %v923_v50 = vrot.slane %v600_v8, 4  ;;  %v924_v53 = vrot.slane %v601_v38, 4  ;;  %v963_v59 = vsel %vm720_vm11, %v961_v28, %v917_v44 }
 0x131   : > { %v964_v45 = vsel %vm720_vm11, %v962_v0, %v918_v60  ;;  %vm732_vm3 = vcmask 1046528   ;;  %v614_v25 = vsel %vm613_vm9, %v13603_v46, %v13604_v55  ;;  %v615_v24 = vsel %vm613_vm9, %v13604_v55, %v13603_v46 }
 0x132   : > { %v607_v52 = vsel %vm606_vm8, %v13598_v56, %v13599_v29  ;;  %v608_v14 = vsel %vm606_vm8, %v13599_v29, %v13598_v56  ;;  %v13612_v3 = vpop.permute.xlu1 %13611  ;;  %v13607_v32 = vpop.permute.xlu0 %13606  ;;  %v900_v8 = vrot.slane %v566_v39, 1  ;;  %v23189_v19 = vrot.slane %v16215_v34, 3 }
 0x133   : > { %v929_v38 = vrot.slane %v607_v52, 3  ;;  %v930_v7 = vrot.slane %v608_v14, 3  ;;  %v13614_v26 = vunpack.i.h.bf16 %v13612_v3  ;;  %v13613_v44 = vunpack.i.l.bf16 %v13612_v3 }
 0x134   : > { %v954_v62 = vsel %vm726_vm1, %v952_v30, %v23189_v19  ;;  %v13609_v60 = vunpack.i.h.bf16 %v13607_v32  ;;  %v13608_v28 = vunpack.i.l.bf16 %v13607_v32  ;;  %v935_v0 = vrot.slane %v614_v25, 2 }
 0x135   : > { %v936_v55 = vrot.slane %v615_v24, 2  ;;  %v966_v46 = vsel %vm723_vm15, %v964_v45, %v924_v53  ;;  %v965_v1 = vsel %vm723_vm15, %v963_v59, %v923_v50  ;;  %v629_v34 = vsel %vm627_vm10, %v13614_v26, %v13613_v44 }
 0x136   : > { %v621_v29 = vsel %vm620_vm7, %v13608_v28, %v13609_v60  ;;  %v622_v39 = vsel %vm620_vm7, %v13609_v60, %v13608_v28  ;;  %v628_v30 = vsel %vm627_vm10, %v13613_v44, %v13614_v26  ;;  %v980_v25 = vpack.c.bf16 %v629_v34, %v629_v34 }
 0x137   : > { %v941_v56 = vrot.slane %v621_v29, 1  ;;  %v942_v52 = vrot.slane %v622_v39, 1  ;;  %v979_v24 = vpack.c.bf16 %v628_v30, %v628_v30  ;;  %v899_v45 = vrot.slane %v16253_v9, 1 }
 0x138   : > { %v968_v59 = vsel %vm726_vm1, %v966_v46, %v930_v7  ;;  %v23190_v50 = vrot.slane %v16211_v16, 3  ;;  %v967_v14 = vsel %vm726_vm1, %v965_v1, %v929_v38  ;;  %v1008_v3 = vand.u32 %v15843_v37, %v980_v25 }
 0x139   : > { %v1005_v32 = vand.u32 %v15843_v37, %v979_v24  ;;  %v23191_v19 = vrot.slane %v16207_v35, 2  ;;  %v970_v44 = vsel %vm729_vm2, %v968_v59, %v936_v55  ;;  %v829_v9 = vrot.slane %v16189_v13, 1 }
 0x13a   : > { %v953_v53 = vsel %vm726_vm1, %v16239_v41, %v23190_v50  ;;  %v972_v16 = vsel %vm732_vm3, %v970_v44, %v942_v52  ;;  %v969_v41 = vsel %vm729_vm2, %v967_v14, %v935_v0  ;;  %1018 = vmatprep.subr.bf16.mxu0 %v1008_v3  ;;  %v23192_v37 = vrot.slane %v16138_v23, 2  ;;  %v14665_v14 = vld [vmem:[#allocation6] sm:$0xff]  }
 0x13b   : > { %v956_v26 = vsel %vm729_vm2, %v954_v62, %v23191_v19  ;;  %v971_v38 = vsel %vm732_vm3, %v969_v41, %v941_v56  ;;  %v23193_v62 = vrot.slane %v16142_v36, 3  ;;  %1019 = vmatpush1.bf16.msra.mxu0 %v1005_v32  ;;  %v23194_v60 = vrot.slane %v16203_v33, 2 }
 0x13c   : > { %v958_v7 = vsel %vm732_vm3, %v956_v26, %v900_v8  ;;  %v858_v35 = vsel %vm729_vm2, %v16223_v61, %v23192_v37  ;;  %v781_v8 = vrot.slane %v16079_v4, 2  ;;  %v23195_v0 = vrot.slane %v16181_v17, 1 }
 0x13d   : > { %v978_v1 = vpack.c.bf16 %v972_v16, %v958_v7  ;;  %v855_v13 = vsel %vm726_vm1, %v16199_v18, %v23193_v62  ;;  %v955_v28 = vsel %vm729_vm2, %v953_v53, %v23194_v60  ;;  %v23196_v23 = vrot.slane %v16034_v51, 4 }
 0x13e   : > { %v860_v55 = vsel %vm732_vm3, %v858_v35, %v23195_v0  ;;  %v787_v36 = vrot.slane %v16121_v54, 1  ;;  %v957_v18 = vsel %vm732_vm3, %v955_v28, %v899_v45  ;;  %v23197_v4 = vrot.slane %v16083_v20, 2 }
 0x13f   : > { %v839_v61 = vsel %vm723_vm15, %v16060_v31, %v23196_v23  ;;  %1020 = vmatprep.subr.bf16.mxu0 %v978_v1  ;;  %v23198_v46 = vrot.slane %v16087_v22, 3  ;;  %v977_v29 = vpack.c.bf16 %v971_v38, %v957_v18  ;;  %v23199_v51 = vrot.slane %v16096_v27, 1 }
 0x140   : > { %v844_v33 = vsel %vm729_vm2, %v16127_v63, %v23197_v4  ;;  %v23200_v31 = vrot.slane %v16134_v2, 2  ;;  %v23201_v34 = vrot.slane %v15987_v21, 3  ;;  %v710_v63 = vrot.slane %v16026_v48, 1 }
 0x141   : > { %v841_v17 = vsel %vm726_vm1, %v839_v61, %v23198_v46  ;;  %v846_v39 = vsel %vm732_vm3, %v844_v33, %v23199_v51  ;;  %v23202_v56 = vrot.slane %v15976_v12, 2  ;;  %v662_v52 = vrot.slane %v15885_v5, 2  ;;  %1021 = vmatpush1.bf16.msra.mxu0 %v977_v29  ;;  %v23209_v61 = vld [vmem:[#allocation16_spill] sm:$0xff] }
 0x142   : > { %v857_v54 = vsel %vm729_vm2, %v855_v13, %v23200_v31  ;;  %v743_v20 = vsel %vm726_vm1, %v16012_v43, %v23201_v34  ;;  %v976_v30 = vpack.c.bf16 %v860_v55, %v846_v39  ;;  %v843_v2 = vsel %vm729_vm2, %v841_v17, %v781_v8 }
 0x143   : > { %v859_v22 = vsel %vm732_vm3, %v857_v54, %v829_v9  ;;  %v746_v27 = vsel %vm729_vm2, %v16022_v47, %v23202_v56  ;;  %v23203_v21 = vrot.slane %v16030_v49, 1  ;;  %v668_v43 = vrot.slane %v15954_v58, 1 }
 0x144   : > { %1022 = vmatprep.subr.bf16.mxu0 %v976_v30  ;;  %v845_v48 = vsel %vm732_vm3, %v843_v2, %v787_v36  ;;  %v23204_v24 = vrot.slane %v15875_v57, 2  ;;  %v23205_v47 = vrot.slane %v15889_v6, 3  ;;  %v23206_v49 = vrot.slane %v15935_v40, 1 }
 0x145   : > { %v748_v25 = vsel %vm732_vm3, %v746_v27, %v23203_v21  ;;  %v975_v45 = vpack.c.bf16 %v859_v22, %v845_v48  ;;  %v23207_v58 = vrot.slane %v15969_v10, 2  ;;  %v23208_v40 = vmov 0   ;;  %v14666_v10 = vld [vmem:[#allocation6 + $0x8] sm:$0xff]  }
 0x146   : > { %v731_v12 = vsel %vm729_vm2, %v15972_v11, %v23204_v24  ;;  %v727_v5 = vsel %vm726_vm1, %v15964_v42, %v23205_v47  ;;  %vm995_vm1 = vcmask 400384   ;;  %vm1064_vm5 = vcmask 261120  }
 0x147   : > { %v734_v59 = vsel %vm732_vm3, %v731_v12, %v23206_v49  ;;  %v745_v50 = vsel %vm729_vm2, %v743_v20, %v23207_v58  ;;  %1023 = vmatpush1.bf16.msra.mxu0 %v975_v45  ;;  %v730_v11 = vsel %vm729_vm2, %v727_v5, %v662_v52  ;;  %v15545_v35 = vmov 1983009808  }
 0x148   : > { %v974_v53 = vpack.c.bf16 %v748_v25, %v734_v59  ;;  %v747_v57 = vsel %vm732_vm3, %v745_v50, %v710_v63  ;;  %v733_v6 = vsel %vm732_vm3, %v730_v11, %v668_v43  ;;  %v1376_v62 = vunpack.c.l.s4 %v15545_v35 }
 0x149   : > { %v973_v42 = vpack.c.bf16 %v747_v57, %v733_v6  ;;  %v15546_v0 = vmov 1934713408   ;;  %vm1137_vm11 = vcmask 48128   ;;  %vm1203_vm15 = vcmask 179328  }
 0x14a   : > { %1024 = vmatprep.subr.bf16.mxu0 %v974_v53  ;;  %v1377_v8 = vunpack.c.0.s8 %v1376_v62  ;;  %v16497_v55 = vunpack.c.l.s4 %v15546_v0  ;;  %v15547_v46 = vmov 0.0   ;;  %vm1139_vm12 = vcmask 41984  }
 0x14b   : > { %1025 = vmatpush1.bf16.msra.mxu0 %v973_v42  ;;  %1138 = vst.msk [vmem:[#allocation2 + $0x6] sm:$0xff] %vm1137_vm11, %v15547_v46  ;;  %1141 = vst.msk [vmem:[#allocation2 + $0x1e] sm:$0xff] %vm1137_vm11, %v15547_v46  ;;  %vm1072_vm13 = vcmask 177152   ;;  %vm2437_vm4 = vcmask 130096   ;;  %vm2439_vm14 = vcmask 123952   ;;  %vm23175_vm9 = vcmask 179200  }
 0x14c   : > { %12804 = vmatprep.subr.bf16.mxu0 %v23208_v40  ;;  %v16502_v36 = vsub.s32 %v1377_v8, %v23209_v61  ;;  %1143 = vst.msk [vmem:[#allocation2 + $0x36] sm:$0xff] %vm1137_vm11, %v15547_v46  ;;  %1145 = vst.msk [vmem:[#allocation2 + $0x4e] sm:$0xff] %vm1137_vm11, %v15547_v46  ;;  %v1441_v17 = vunpack.c.0.s8 %v16497_v55  ;;  %vm3900_vm8 = vcmask 359424   ;;  %vm3905_vm7 = vcmask 539648  }
 0x14d   : > { %1147 = vst.msk [vmem:[#allocation2 + $0x66] sm:$0xff] %vm1137_vm11, %v15547_v46  ;;  %1149 = vst.msk [vmem:[#allocation2 + $0x7e] sm:$0xff] %vm1137_vm11, %v15547_v46  ;;  %vm23174_vm10 = vcmask 31744   ;;  %vm3925_vm2 = vcmask 211968   ;;  %vm3930_vm3 = vcmask 392192  }
 0x14e   : > { %13179 = vmatmul.mubr.msk.bf16.vlgmr.msra.gmra.mxu0 %vm995_vm1, %v14665_v14  ;;  %1151 = vst.msk [vmem:[#allocation2 + $0x96] sm:$0xff] %vm1137_vm11, %v15547_v46  ;;  %1153 = vst.msk [vmem:[#allocation2 + $0xae] sm:$0xff] %vm1137_vm11, %v15547_v46  ;;  %v16780_v34 = vsub.s32 %v1441_v17, %v23209_v61 }
 0x14f   : > { %1052 = vmatprep.mubr.bf16.mxu0 %v23208_v40  ;;  %1155 = vst.msk [vmem:[#allocation2 + $0xc6] sm:$0xff] %vm1137_vm11, %v15547_v46  ;;  %1157 = vst.msk [vmem:[#allocation2 + $0xde] sm:$0xff] %vm1137_vm11, %v15547_v46 }
 0x150   : > { %1159 = vst.msk [vmem:[#allocation2 + $0xf6] sm:$0xff] %vm1137_vm11, %v15547_v46  ;;  %1161 = vst.msk [vmem:[#allocation2 + $0x10e] sm:$0xff] %vm1137_vm11, %v15547_v46 }
 0x151   : > { %1163 = vst.msk [vmem:[#allocation2 + $0x126] sm:$0xff] %vm1137_vm11, %v15547_v46  ;;  %1165 = vst.msk [vmem:[#allocation2 + $0x13e] sm:$0xff] %vm1137_vm11, %v15547_v46 }
 0x152   : > { %1167 = vst.msk [vmem:[#allocation2 + $0x156] sm:$0xff] %vm1137_vm11, %v15547_v46  ;;  %1169 = vst.msk [vmem:[#allocation2 + $0x16e] sm:$0xff] %vm1137_vm11, %v15547_v46 }
 0x153   : > { %1171 = vst.msk [vmem:[#allocation2 + $0x186] sm:$0xff] %vm1137_vm11, %v15547_v46  ;;  %1173 = vst.msk [vmem:[#allocation2 + $0x19e] sm:$0xff] %vm1137_vm11, %v15547_v46 }
 0x154   : > { %1175 = vst.msk [vmem:[#allocation2 + $0x1b6] sm:$0xff] %vm1137_vm11, %v15547_v46  ;;  %1177 = vst.msk [vmem:[#allocation2 + $0x1ce] sm:$0xff] %vm1137_vm11, %v15547_v46 }
 0x155   : > { %1179 = vst.msk [vmem:[#allocation2 + $0x1e6] sm:$0xff] %vm1137_vm11, %v15547_v46  ;;  %1181 = vst.msk [vmem:[#allocation2 + $0x1fe] sm:$0xff] %vm1137_vm11, %v15547_v46 }
 0x156   : > { %13180 = vmatmul.mubr.msk.bf16.gmra.mxu0 %vm995_vm1, %v14666_v10  ;;  %1183 = vst.msk [vmem:[#allocation2 + $0x216] sm:$0xff] %vm1137_vm11, %v15547_v46  ;;  %1185 = vst.msk [vmem:[#allocation2 + $0x22e] sm:$0xff] %vm1137_vm11, %v15547_v46  ;;  %vm3935_vm1 = vcmask 572416  }
 0x157   : > { %1187 = vst.msk [vmem:[#allocation2 + $0x246] sm:$0xff] %vm1137_vm11, %v15547_v46  ;;  %1189 = vst.msk [vmem:[#allocation2 + $0x25e] sm:$0xff] %vm1137_vm11, %v15547_v46 }
 0x158   : > { %1191 = vst.msk [vmem:[#allocation2 + $0x276] sm:$0xff] %vm1137_vm11, %v15547_v46  ;;  %1193 = vst.msk [vmem:[#allocation2 + $0x28e] sm:$0xff] %vm1137_vm11, %v15547_v46 }
 0x159   : > { %1195 = vst.msk [vmem:[#allocation2 + $0x2a6] sm:$0xff] %vm1137_vm11, %v15547_v46  ;;  %1197 = vst.msk [vmem:[#allocation2 + $0x2be] sm:$0xff] %vm1137_vm11, %v15547_v46 }
 0x15a   : > { %1199 = vst.msk [vmem:[#allocation2 + $0x2d6] sm:$0xff] %vm1137_vm11, %v15547_v46  ;;  %1201 = vst.msk [vmem:[#allocation2 + $0x2ee] sm:$0xff] %vm1137_vm11, %v15547_v46  ;;  %vm3955_vm11 = vcmask 244736  }
 0x15b   : > { %1204 = vst.msk [vmem:[#allocation2 + $0x6] sm:$0xff] %vm1203_vm15, %v15547_v46  ;;  %1207 = vst.msk [vmem:[#allocation2 + $0x1e] sm:$0xff] %vm1203_vm15, %v15547_v46 }
 0x15c   : > { %1140 = vst.msk [vmem:[#allocation2 + $0xe] sm:$0x3] %vm1139_vm12, %v15547_v46  ;;  %1142 = vst.msk [vmem:[#allocation2 + $0x26] sm:$0x3] %vm1139_vm12, %v15547_v46 }
 0x15d   : > { %1144 = vst.msk [vmem:[#allocation2 + $0x3e] sm:$0x3] %vm1139_vm12, %v15547_v46  ;;  %1146 = vst.msk [vmem:[#allocation2 + $0x56] sm:$0x3] %vm1139_vm12, %v15547_v46 }
 0x15e   : > { %1148 = vst.msk [vmem:[#allocation2 + $0x6e] sm:$0x3] %vm1139_vm12, %v15547_v46  ;;  %1150 = vst.msk [vmem:[#allocation2 + $0x86] sm:$0x3] %vm1139_vm12, %v15547_v46 }
 0x15f   : > { %1152 = vst.msk [vmem:[#allocation2 + $0x9e] sm:$0x3] %vm1139_vm12, %v15547_v46  ;;  %1154 = vst.msk [vmem:[#allocation2 + $0xb6] sm:$0x3] %vm1139_vm12, %v15547_v46 }
 0x160   : > { %1156 = vst.msk [vmem:[#allocation2 + $0xce] sm:$0x3] %vm1139_vm12, %v15547_v46  ;;  %1158 = vst.msk [vmem:[#allocation2 + $0xe6] sm:$0x3] %vm1139_vm12, %v15547_v46 }
 0x161   : > { %1160 = vst.msk [vmem:[#allocation2 + $0xfe] sm:$0x3] %vm1139_vm12, %v15547_v46  ;;  %1162 = vst.msk [vmem:[#allocation2 + $0x116] sm:$0x3] %vm1139_vm12, %v15547_v46 }
 0x162   : > { %1164 = vst.msk [vmem:[#allocation2 + $0x12e] sm:$0x3] %vm1139_vm12, %v15547_v46  ;;  %1166 = vst.msk [vmem:[#allocation2 + $0x146] sm:$0x3] %vm1139_vm12, %v15547_v46 }
 0x163   : > { %1168 = vst.msk [vmem:[#allocation2 + $0x15e] sm:$0x3] %vm1139_vm12, %v15547_v46  ;;  %1170 = vst.msk [vmem:[#allocation2 + $0x176] sm:$0x3] %vm1139_vm12, %v15547_v46 }
 0x164   : > { %1172 = vst.msk [vmem:[#allocation2 + $0x18e] sm:$0x3] %vm1139_vm12, %v15547_v46  ;;  %1174 = vst.msk [vmem:[#allocation2 + $0x1a6] sm:$0x3] %vm1139_vm12, %v15547_v46 }
 0x165   : > { %1176 = vst.msk [vmem:[#allocation2 + $0x1be] sm:$0x3] %vm1139_vm12, %v15547_v46  ;;  %1178 = vst.msk [vmem:[#allocation2 + $0x1d6] sm:$0x3] %vm1139_vm12, %v15547_v46 }
 0x166   : > { %1180 = vst.msk [vmem:[#allocation2 + $0x1ee] sm:$0x3] %vm1139_vm12, %v15547_v46  ;;  %1182 = vst.msk [vmem:[#allocation2 + $0x206] sm:$0x3] %vm1139_vm12, %v15547_v46 }
 0x167   : > { %1184 = vst.msk [vmem:[#allocation2 + $0x21e] sm:$0x3] %vm1139_vm12, %v15547_v46  ;;  %1186 = vst.msk [vmem:[#allocation2 + $0x236] sm:$0x3] %vm1139_vm12, %v15547_v46 }
 0x168   : > { %1188 = vst.msk [vmem:[#allocation2 + $0x24e] sm:$0x3] %vm1139_vm12, %v15547_v46  ;;  %1190 = vst.msk [vmem:[#allocation2 + $0x266] sm:$0x3] %vm1139_vm12, %v15547_v46 }
 0x169   : > { %1192 = vst.msk [vmem:[#allocation2 + $0x27e] sm:$0x3] %vm1139_vm12, %v15547_v46  ;;  %1194 = vst.msk [vmem:[#allocation2 + $0x296] sm:$0x3] %vm1139_vm12, %v15547_v46 }
 0x16a   : > { %1196 = vst.msk [vmem:[#allocation2 + $0x2ae] sm:$0x3] %vm1139_vm12, %v15547_v46  ;;  %1198 = vst.msk [vmem:[#allocation2 + $0x2c6] sm:$0x3] %vm1139_vm12, %v15547_v46 }
 0x16b   : > { %1200 = vst.msk [vmem:[#allocation2 + $0x2de] sm:$0x3] %vm1139_vm12, %v15547_v46  ;;  %1202 = vst.msk [vmem:[#allocation2 + $0x2f6] sm:$0x3] %vm1139_vm12, %v15547_v46  ;;  %vm3965_vm12 = vcmask 605184  }
 0x16c   : > { %1209 = vst.msk [vmem:[#allocation2 + $0x36] sm:$0xff] %vm1203_vm15, %v15547_v46  ;;  %1211 = vst.msk [vmem:[#allocation2 + $0x4e] sm:$0xff] %vm1203_vm15, %v15547_v46 }
 0x16d   : > { %1213 = vst.msk [vmem:[#allocation2 + $0x66] sm:$0xff] %vm1203_vm15, %v15547_v46  ;;  %1215 = vst.msk [vmem:[#allocation2 + $0x7e] sm:$0xff] %vm1203_vm15, %v15547_v46 }
 0x16e   : > { %1217 = vst.msk [vmem:[#allocation2 + $0x96] sm:$0xff] %vm1203_vm15, %v15547_v46  ;;  %1219 = vst.msk [vmem:[#allocation2 + $0xae] sm:$0xff] %vm1203_vm15, %v15547_v46 }
 0x16f   : > { %1221 = vst.msk [vmem:[#allocation2 + $0xc6] sm:$0xff] %vm1203_vm15, %v15547_v46  ;;  %1223 = vst.msk [vmem:[#allocation2 + $0xde] sm:$0xff] %vm1203_vm15, %v15547_v46 }
 0x170   : > { %1225 = vst.msk [vmem:[#allocation2 + $0xf6] sm:$0xff] %vm1203_vm15, %v15547_v46  ;;  %1227 = vst.msk [vmem:[#allocation2 + $0x10e] sm:$0xff] %vm1203_vm15, %v15547_v46 }
 0x171   : > { %1229 = vst.msk [vmem:[#allocation2 + $0x126] sm:$0xff] %vm1203_vm15, %v15547_v46  ;;  %1231 = vst.msk [vmem:[#allocation2 + $0x13e] sm:$0xff] %vm1203_vm15, %v15547_v46 }
 0x172   : > { %1233 = vst.msk [vmem:[#allocation2 + $0x156] sm:$0xff] %vm1203_vm15, %v15547_v46  ;;  %1235 = vst.msk [vmem:[#allocation2 + $0x16e] sm:$0xff] %vm1203_vm15, %v15547_v46 }
 0x173   : > { %1237 = vst.msk [vmem:[#allocation2 + $0x186] sm:$0xff] %vm1203_vm15, %v15547_v46  ;;  %1239 = vst.msk [vmem:[#allocation2 + $0x19e] sm:$0xff] %vm1203_vm15, %v15547_v46 }
 0x174   : > { %1241 = vst.msk [vmem:[#allocation2 + $0x1b6] sm:$0xff] %vm1203_vm15, %v15547_v46  ;;  %1243 = vst.msk [vmem:[#allocation2 + $0x1ce] sm:$0xff] %vm1203_vm15, %v15547_v46 }
 0x175   : > { %1245 = vst.msk [vmem:[#allocation2 + $0x1e6] sm:$0xff] %vm1203_vm15, %v15547_v46  ;;  %1247 = vst.msk [vmem:[#allocation2 + $0x1fe] sm:$0xff] %vm1203_vm15, %v15547_v46 }
 0x176   : > { %1249 = vst.msk [vmem:[#allocation2 + $0x216] sm:$0xff] %vm1203_vm15, %v15547_v46  ;;  %1251 = vst.msk [vmem:[#allocation2 + $0x22e] sm:$0xff] %vm1203_vm15, %v15547_v46 }
 0x177   : > { %1253 = vst.msk [vmem:[#allocation2 + $0x246] sm:$0xff] %vm1203_vm15, %v15547_v46  ;;  %1255 = vst.msk [vmem:[#allocation2 + $0x25e] sm:$0xff] %vm1203_vm15, %v15547_v46 }
 0x178   : > { %1257 = vst.msk [vmem:[#allocation2 + $0x276] sm:$0xff] %vm1203_vm15, %v15547_v46  ;;  %1259 = vst.msk [vmem:[#allocation2 + $0x28e] sm:$0xff] %vm1203_vm15, %v15547_v46 }
 0x179   : > { %1261 = vst.msk [vmem:[#allocation2 + $0x2a6] sm:$0xff] %vm1203_vm15, %v15547_v46  ;;  %1263 = vst.msk [vmem:[#allocation2 + $0x2be] sm:$0xff] %vm1203_vm15, %v15547_v46 }
 0x17a   : > { %1265 = vst.msk [vmem:[#allocation2 + $0x2d6] sm:$0xff] %vm1203_vm15, %v15547_v46  ;;  %1267 = vst.msk [vmem:[#allocation2 + $0x2ee] sm:$0xff] %vm1203_vm15, %v15547_v46  ;;  %vm3960_vm15 = vcmask 424960  }
 0x17b   : > { %1206 = vst.msk [vmem:[#allocation2 + $0xe] sm:$0x3] %vm1205_vm6, %v15547_v46  ;;  %1208 = vst.msk [vmem:[#allocation2 + $0x26] sm:$0x3] %vm1205_vm6, %v15547_v46 }
 0x17c   : > { %1210 = vst.msk [vmem:[#allocation2 + $0x3e] sm:$0x3] %vm1205_vm6, %v15547_v46  ;;  %1212 = vst.msk [vmem:[#allocation2 + $0x56] sm:$0x3] %vm1205_vm6, %v15547_v46 }
 0x17d   : > { %1214 = vst.msk [vmem:[#allocation2 + $0x6e] sm:$0x3] %vm1205_vm6, %v15547_v46  ;;  %1216 = vst.msk [vmem:[#allocation2 + $0x86] sm:$0x3] %vm1205_vm6, %v15547_v46 }
 0x17e   : > { %1218 = vst.msk [vmem:[#allocation2 + $0x9e] sm:$0x3] %vm1205_vm6, %v15547_v46  ;;  %1220 = vst.msk [vmem:[#allocation2 + $0xb6] sm:$0x3] %vm1205_vm6, %v15547_v46 }
 0x17f   : > { %1222 = vst.msk [vmem:[#allocation2 + $0xce] sm:$0x3] %vm1205_vm6, %v15547_v46  ;;  %1224 = vst.msk [vmem:[#allocation2 + $0xe6] sm:$0x3] %vm1205_vm6, %v15547_v46 }
 0x180   : > { %1226 = vst.msk [vmem:[#allocation2 + $0xfe] sm:$0x3] %vm1205_vm6, %v15547_v46  ;;  %1228 = vst.msk [vmem:[#allocation2 + $0x116] sm:$0x3] %vm1205_vm6, %v15547_v46 }
 0x181   : > { %1230 = vst.msk [vmem:[#allocation2 + $0x12e] sm:$0x3] %vm1205_vm6, %v15547_v46  ;;  %1232 = vst.msk [vmem:[#allocation2 + $0x146] sm:$0x3] %vm1205_vm6, %v15547_v46 }
 0x182   : > { %1234 = vst.msk [vmem:[#allocation2 + $0x15e] sm:$0x3] %vm1205_vm6, %v15547_v46  ;;  %1236 = vst.msk [vmem:[#allocation2 + $0x176] sm:$0x3] %vm1205_vm6, %v15547_v46 }
 0x183   : > { %1238 = vst.msk [vmem:[#allocation2 + $0x18e] sm:$0x3] %vm1205_vm6, %v15547_v46  ;;  %1240 = vst.msk [vmem:[#allocation2 + $0x1a6] sm:$0x3] %vm1205_vm6, %v15547_v46 }
 0x184   : > { %1242 = vst.msk [vmem:[#allocation2 + $0x1be] sm:$0x3] %vm1205_vm6, %v15547_v46  ;;  %1244 = vst.msk [vmem:[#allocation2 + $0x1d6] sm:$0x3] %vm1205_vm6, %v15547_v46 }
 0x185   : > { %1246 = vst.msk [vmem:[#allocation2 + $0x1ee] sm:$0x3] %vm1205_vm6, %v15547_v46  ;;  %1248 = vst.msk [vmem:[#allocation2 + $0x206] sm:$0x3] %vm1205_vm6, %v15547_v46 }
 0x186   : > { %1250 = vst.msk [vmem:[#allocation2 + $0x21e] sm:$0x3] %vm1205_vm6, %v15547_v46  ;;  %1252 = vst.msk [vmem:[#allocation2 + $0x236] sm:$0x3] %vm1205_vm6, %v15547_v46 }
 0x187   : > { %1254 = vst.msk [vmem:[#allocation2 + $0x24e] sm:$0x3] %vm1205_vm6, %v15547_v46  ;;  %1256 = vst.msk [vmem:[#allocation2 + $0x266] sm:$0x3] %vm1205_vm6, %v15547_v46 }
 0x188   : > { %1258 = vst.msk [vmem:[#allocation2 + $0x27e] sm:$0x3] %vm1205_vm6, %v15547_v46  ;;  %1260 = vst.msk [vmem:[#allocation2 + $0x296] sm:$0x3] %vm1205_vm6, %v15547_v46 }
 0x189   : > { %1262 = vst.msk [vmem:[#allocation2 + $0x2ae] sm:$0x3] %vm1205_vm6, %v15547_v46  ;;  %1264 = vst.msk [vmem:[#allocation2 + $0x2c6] sm:$0x3] %vm1205_vm6, %v15547_v46 }
 0x18a   : > { %1266 = vst.msk [vmem:[#allocation2 + $0x2de] sm:$0x3] %vm1205_vm6, %v15547_v46  ;;  %1268 = vst.msk [vmem:[#allocation2 + $0x2f6] sm:$0x3] %vm1205_vm6, %v15547_v46  ;;  %vm3910_vm6 = vcmask 719872  }
 0x18b   : > { %1073 = vst.msk [vmem:[#allocation2] sm:$0x3f] %vm1072_vm13, %v15547_v46  ;;  %1074 = vst.msk [vmem:[#allocation2 + $0x18] sm:$0x3f] %vm1072_vm13, %v15547_v46 }
 0x18c   : > { %1075 = vst.msk [vmem:[#allocation2 + $0x30] sm:$0x3f] %vm1072_vm13, %v15547_v46  ;;  %1076 = vst.msk [vmem:[#allocation2 + $0x48] sm:$0x3f] %vm1072_vm13, %v15547_v46 }
 0x18d   : > { %1077 = vst.msk [vmem:[#allocation2 + $0x60] sm:$0x3f] %vm1072_vm13, %v15547_v46  ;;  %1078 = vst.msk [vmem:[#allocation2 + $0x78] sm:$0x3f] %vm1072_vm13, %v15547_v46 }
 0x18e   : > { %1079 = vst.msk [vmem:[#allocation2 + $0x90] sm:$0x3f] %vm1072_vm13, %v15547_v46  ;;  %1080 = vst.msk [vmem:[#allocation2 + $0xa8] sm:$0x3f] %vm1072_vm13, %v15547_v46 }
 0x18f   : > { %1081 = vst.msk [vmem:[#allocation2 + $0xc0] sm:$0x3f] %vm1072_vm13, %v15547_v46  ;;  %1082 = vst.msk [vmem:[#allocation2 + $0xd8] sm:$0x3f] %vm1072_vm13, %v15547_v46 }
 0x190   : > { %1083 = vst.msk [vmem:[#allocation2 + $0xf0] sm:$0x3f] %vm1072_vm13, %v15547_v46  ;;  %1084 = vst.msk [vmem:[#allocation2 + $0x108] sm:$0x3f] %vm1072_vm13, %v15547_v46 }
 0x191   : > { %1085 = vst.msk [vmem:[#allocation2 + $0x120] sm:$0x3f] %vm1072_vm13, %v15547_v46  ;;  %1086 = vst.msk [vmem:[#allocation2 + $0x138] sm:$0x3f] %vm1072_vm13, %v15547_v46 }
 0x192   : > { %1087 = vst.msk [vmem:[#allocation2 + $0x150] sm:$0x3f] %vm1072_vm13, %v15547_v46  ;;  %1088 = vst.msk [vmem:[#allocation2 + $0x168] sm:$0x3f] %vm1072_vm13, %v15547_v46 }
 0x193   : > { %1089 = vst.msk [vmem:[#allocation2 + $0x180] sm:$0x3f] %vm1072_vm13, %v15547_v46  ;;  %1090 = vst.msk [vmem:[#allocation2 + $0x198] sm:$0x3f] %vm1072_vm13, %v15547_v46 }
 0x194   : > { %1091 = vst.msk [vmem:[#allocation2 + $0x1b0] sm:$0x3f] %vm1072_vm13, %v15547_v46  ;;  %1092 = vst.msk [vmem:[#allocation2 + $0x1c8] sm:$0x3f] %vm1072_vm13, %v15547_v46 }
 0x195   : > { %1093 = vst.msk [vmem:[#allocation2 + $0x1e0] sm:$0x3f] %vm1072_vm13, %v15547_v46  ;;  %1094 = vst.msk [vmem:[#allocation2 + $0x1f8] sm:$0x3f] %vm1072_vm13, %v15547_v46 }
 0x196   : > { %1095 = vst.msk [vmem:[#allocation2 + $0x210] sm:$0x3f] %vm1072_vm13, %v15547_v46  ;;  %1096 = vst.msk [vmem:[#allocation2 + $0x228] sm:$0x3f] %vm1072_vm13, %v15547_v46 }
 0x197   : > { %1097 = vst.msk [vmem:[#allocation2 + $0x240] sm:$0x3f] %vm1072_vm13, %v15547_v46  ;;  %1098 = vst.msk [vmem:[#allocation2 + $0x258] sm:$0x3f] %vm1072_vm13, %v15547_v46  ;;  %v14677_v61 = vld [vmem:[#allocation2 + $0xd8] ss:$48 sps:$4 sm:$0xff]  }
 0x198   : > { %1099 = vst.msk [vmem:[#allocation2 + $0x270] sm:$0x3f] %vm1072_vm13, %v15547_v46  ;;  %1100 = vst.msk [vmem:[#allocation2 + $0x288] sm:$0x3f] %vm1072_vm13, %v15547_v46 }
 0x199   : > { %1101 = vst.msk [vmem:[#allocation2 + $0x2a0] sm:$0x3f] %vm1072_vm13, %v15547_v46  ;;  %1102 = vst.msk [vmem:[#allocation2 + $0x2b8] sm:$0x3f] %vm1072_vm13, %v15547_v46 }
 0x19a   : > { %1103 = vst.msk [vmem:[#allocation2 + $0x2d0] sm:$0x3f] %vm1072_vm13, %v15547_v46  ;;  %1104 = vst.msk [vmem:[#allocation2 + $0x2e8] sm:$0x3f] %vm1072_vm13, %v15547_v46 }
 0x19b   : > { %1105 = vst.msk [vmem:[#allocation2 + $0x10] sm:$0x3f] %vm1072_vm13, %v15547_v46  ;;  %1106 = vst.msk [vmem:[#allocation2 + $0x28] sm:$0x3f] %vm1072_vm13, %v15547_v46 }
 0x19c   : > { %1107 = vst.msk [vmem:[#allocation2 + $0x40] sm:$0x3f] %vm1072_vm13, %v15547_v46  ;;  %1108 = vst.msk [vmem:[#allocation2 + $0x58] sm:$0x3f] %vm1072_vm13, %v15547_v46 }
 0x19d   : > { %1109 = vst.msk [vmem:[#allocation2 + $0x70] sm:$0x3f] %vm1072_vm13, %v15547_v46  ;;  %1110 = vst.msk [vmem:[#allocation2 + $0x88] sm:$0x3f] %vm1072_vm13, %v15547_v46 }
 0x19e   : > { %1111 = vst.msk [vmem:[#allocation2 + $0xa0] sm:$0x3f] %vm1072_vm13, %v15547_v46  ;;  %1112 = vst.msk [vmem:[#allocation2 + $0xb8] sm:$0x3f] %vm1072_vm13, %v15547_v46 }
 0x19f   : > { %1113 = vst.msk [vmem:[#allocation2 + $0xd0] sm:$0x3f] %vm1072_vm13, %v15547_v46  ;;  %1114 = vst.msk [vmem:[#allocation2 + $0xe8] sm:$0x3f] %vm1072_vm13, %v15547_v46 }
 0x1a0   : > { %1115 = vst.msk [vmem:[#allocation2 + $0x100] sm:$0x3f] %vm1072_vm13, %v15547_v46  ;;  %1116 = vst.msk [vmem:[#allocation2 + $0x118] sm:$0x3f] %vm1072_vm13, %v15547_v46 }
 0x1a1   : > { %1117 = vst.msk [vmem:[#allocation2 + $0x130] sm:$0x3f] %vm1072_vm13, %v15547_v46  ;;  %1118 = vst.msk [vmem:[#allocation2 + $0x148] sm:$0x3f] %vm1072_vm13, %v15547_v46 }
 0x1a2   : > { %1119 = vst.msk [vmem:[#allocation2 + $0x160] sm:$0x3f] %vm1072_vm13, %v15547_v46  ;;  %1120 = vst.msk [vmem:[#allocation2 + $0x178] sm:$0x3f] %vm1072_vm13, %v15547_v46 }
 0x1a3   : > { %1121 = vst.msk [vmem:[#allocation2 + $0x190] sm:$0x3f] %vm1072_vm13, %v15547_v46  ;;  %1122 = vst.msk [vmem:[#allocation2 + $0x1a8] sm:$0x3f] %vm1072_vm13, %v15547_v46 }
 0x1a4   : > { %1123 = vst.msk [vmem:[#allocation2 + $0x1c0] sm:$0x3f] %vm1072_vm13, %v15547_v46  ;;  %1124 = vst.msk [vmem:[#allocation2 + $0x1d8] sm:$0x3f] %vm1072_vm13, %v15547_v46 }
 0x1a5   : > { %1125 = vst.msk [vmem:[#allocation2 + $0x1f0] sm:$0x3f] %vm1072_vm13, %v15547_v46  ;;  %1126 = vst.msk [vmem:[#allocation2 + $0x208] sm:$0x3f] %vm1072_vm13, %v15547_v46 }
 0x1a6   : > { %1127 = vst.msk [vmem:[#allocation2 + $0x220] sm:$0x3f] %vm1072_vm13, %v15547_v46  ;;  %1128 = vst.msk [vmem:[#allocation2 + $0x238] sm:$0x3f] %vm1072_vm13, %v15547_v46 }
 0x1a7   : > { %1129 = vst.msk [vmem:[#allocation2 + $0x250] sm:$0x3f] %vm1072_vm13, %v15547_v46  ;;  %1130 = vst.msk [vmem:[#allocation2 + $0x268] sm:$0x3f] %vm1072_vm13, %v15547_v46 }
 0x1a8   : > { %1131 = vst.msk [vmem:[#allocation2 + $0x280] sm:$0x3f] %vm1072_vm13, %v15547_v46  ;;  %1132 = vst.msk [vmem:[#allocation2 + $0x298] sm:$0x3f] %vm1072_vm13, %v15547_v46 }
 0x1a9   : > { %1133 = vst.msk [vmem:[#allocation2 + $0x2b0] sm:$0x3f] %vm1072_vm13, %v15547_v46  ;;  %1134 = vst.msk [vmem:[#allocation2 + $0x2c8] sm:$0x3f] %vm1072_vm13, %v15547_v46 }
 0x1aa   : > { %1135 = vst.msk [vmem:[#allocation2 + $0x2e0] sm:$0x3f] %vm1072_vm13, %v15547_v46  ;;  %1136 = vst.msk [vmem:[#allocation2 + $0x2f8] sm:$0x3f] %vm1072_vm13, %v15547_v46  ;;  %vm3940_vm13 = vcmask 752640  }
 0x20e   : > { %v16381_v3 = vpop.f32.mrf.mxu0 }
 0x20f   : > { %1273 = vrot.lane.b32.xlu0 %v16381_v3, %s15502_s29  ;;  %1063 = vst [vmem:[%s16385_s30] sm:$0xff] %v16381_v3 }
 0x210   : > { %v16389_v32 = vpop.f32.mrf.mxu0 }
 0x211   : > { %1065 = vst.msk [vmem:[%s16385_s30 + $0x8] sm:$0xff] %vm1064_vm5, %v16389_v32  ;;  %v1516_v52 = vrot.slane %v16389_v32, %v16502_v36 }
 0x212   : > { %v16394_v19 = vpop.f32.mrf.mxu0 }
 0x213   : > { %1066 = vst [vmem:[%s16385_s30 + $0x10] sm:$0xff] %v16394_v19  ;;  %1285 = vrot.lane.b32.xlu0 %v16381_v3, %s15507_s14  ;;  %1275 = vrot.lane.b32.xlu1 %v16394_v19, %s15502_s29 }
 0x214   : > { %v16402_v26 = vpop.f32.mrf.mxu0 }
 0x215   : > { %1067 = vst.msk [vmem:[%s16385_s30 + $0x18] sm:$0xff] %vm1064_vm5, %v16402_v26 }
 0x216   : > { %v16407_v44 = vpop.f32.mrf.mxu0 }
 0x217   : > { %1297 = vrot.lane.b32.xlu0 %v16381_v3, %s15516_s17  ;;  %1287 = vrot.lane.b32.xlu1 %v16394_v19, %s15507_s14  ;;  %1068 = vst [vmem:[%s16385_s30 + $0x20] sm:$0xff] %v16407_v44 }
 0x218   : > { %v16415_v9 = vpop.f32.mrf.mxu0 }
 0x219   : > { %1069 = vst.msk [vmem:[%s16385_s30 + $0x28] sm:$0xff] %vm1064_vm5, %v16415_v9 }
 0x21a   : > { %v16420_v7 = vpop.f32.mrf.mxu0 }
 0x21b   : > { %1309 = vrot.lane.b32.xlu0 %v16381_v3, %s15521_s11  ;;  %1299 = vrot.lane.b32.xlu1 %v16394_v19, %s15516_s17  ;;  %1070 = vst [vmem:[%s16385_s30 + $0x30] sm:$0xff] %v16420_v7 }
 0x21c   : > { %v16428_v16 = vpop.f32.mrf.mxu0 }
 0x21d   : > { %1071 = vst.msk [vmem:[%s16385_s30 + $0x38] sm:$0xff] %vm1064_vm5, %v16428_v16  ;;  %vm3950_vm5 = vcmask 64512  }
 0x21f   : > { %1321 = vrot.lane.b32.xlu0 %v16381_v3, %s15530_s10  ;;  %1311 = vrot.lane.b32.xlu1 %v16394_v19, %s15521_s11 }
 0x223   : > { %1333 = vrot.lane.b32.xlu0 %v16381_v3, %s15535_s8  ;;  %1323 = vrot.lane.b32.xlu1 %v16394_v19, %s15530_s10 }
 0x227   : > { %1345 = vrot.lane.b32.xlu0 %v16381_v3, %s22947_s12  ;;  %1335 = vrot.lane.b32.xlu1 %v16394_v19, %s15535_s8 }
 0x22b   : > { %1361 = vrot.lane.b32.xlu0 %v16389_v32, %s15502_s29  ;;  %1347 = vrot.lane.b32.xlu1 %v16394_v19, %s22947_s12 }
 0x22f   : > { %1363 = vrot.lane.b32.xlu1 %v16402_v26, %s15502_s29  ;;  %1277 = vrot.lane.b32.xlu0 %v16407_v44, %s15502_s29 }
 0x233   : > { %1289 = vrot.lane.b32.xlu0 %v16407_v44, %s15507_s14  ;;  %1279 = vrot.lane.b32.xlu1 %v16420_v7, %s15502_s29 }
 0x237   : > { %1301 = vrot.lane.b32.xlu0 %v16407_v44, %s15516_s17  ;;  %1291 = vrot.lane.b32.xlu1 %v16420_v7, %s15507_s14  ;;  %s15549_s14 = smov 22  }
 0x23b   : > { %1313 = vrot.lane.b32.xlu0 %v16407_v44, %s15521_s11  ;;  %1303 = vrot.lane.b32.xlu1 %v16420_v7, %s15516_s17  ;;  %s15550_s17 = smov 66  }
 0x23f   : > { %1325 = vrot.lane.b32.xlu0 %v16407_v44, %s15530_s10  ;;  %1315 = vrot.lane.b32.xlu1 %v16420_v7, %s15521_s11  ;;  %s22948_s11 = smov 88  }
 0x243   : > { %1337 = vrot.lane.b32.xlu0 %v16407_v44, %s15535_s8  ;;  %1327 = vrot.lane.b32.xlu1 %v16420_v7, %s15530_s10 }
 0x247   : > { %1349 = vrot.lane.b32.xlu0 %v16407_v44, %s22947_s12  ;;  %1339 = vrot.lane.b32.xlu1 %v16420_v7, %s15535_s8  ;;  %s15552_s8 = smov 4  }
 0x24b   : > { %1365 = vrot.lane.b32.xlu0 %v16415_v9, %s15502_s29  ;;  %1351 = vrot.lane.b32.xlu1 %v16420_v7, %s22947_s12  ;;  %s15556_s12 = smov 52  }
 0x24f   : > { %1367 = vrot.lane.b32.xlu1 %v16428_v16, %s15502_s29  ;;  %s15548_s29 = smov 6  }
 0x281   : > { %v16483_v41 = vpop.permute.xlu0 %1273 }
 0x285   : > { %v16485_v1 = vpop.permute.xlu0 %1285  ;;  %v16489_v37 = vpop.permute.xlu1 %1275 }
 0x286   : > { %v1373_v4 = vcombine.low %v16381_v3, %v16485_v1  ;;  %v1374_v50 = vcombine.high %v16381_v3, %v16485_v1  ;;  %v1509_v3 = vcombine.high %v16389_v32, %v15547_v46 }
 0x288   : > { %v1381_v31 = vrot.slane %v1373_v4, %v16502_v36  ;;  %v1523_v55 = vrot.slane %v1509_v3, %v16502_v36 }
 0x289   : > { %v16487_v38 = vpop.permute.xlu0 %1297  ;;  %v16493_v60 = vpop.permute.xlu1 %1287 }
 0x28a   : > { %v1389_v23 = vcombine.low %v16483_v41, %v16487_v38  ;;  %v1390_v49 = vcombine.high %v16483_v41, %v16487_v38  ;;  %v1388_v38 = vrot.slane %v1374_v50, %v16502_v36 }
 0x28c   : > { %v16576_v29 = vrot.slane %v1389_v23, %v16502_v36  ;;  %v1404_v14 = vrot.slane %v1390_v49, %v16502_v36 }
 0x28d   : > { %v16491_v13 = vpop.permute.xlu0 %1309  ;;  %v16508_v33 = vpop.permute.xlu1 %1299 }
 0x28e   : > { %v1437_v20 = vcombine.low %v1381_v31, %v16576_v29  ;;  %v1438_v59 = vcombine.high %v1381_v31, %v16576_v29  ;;  %v1453_v0 = vcombine.low %v1388_v38, %v1404_v14 }
 0x290   : > { %v1445_v21 = vrot.slane %v1437_v20, %v16780_v34  ;;  %v1452_v41 = vrot.slane %v1438_v59, %v16780_v34  ;;  %v1461_v29 = vrot.slane %v1453_v0, %v16780_v34 }
 0x291   : > { %v16495_v28 = vpop.permute.xlu0 %1321  ;;  %v16788_v22 = vpop.permute.xlu1 %1311 }
 0x295   : > { %v16504_v18 = vpop.permute.xlu0 %1333  ;;  %v16796_v47 = vpop.permute.xlu1 %1323 }
 0x296   : > { %v1405_v51 = vcombine.low %v16491_v13, %v16504_v18  ;;  %v1406_v58 = vcombine.high %v16491_v13, %v16504_v18 }
 0x298   : > { %v1413_v63 = vrot.slane %v1405_v51, %v16502_v36  ;;  %v1420_v10 = vrot.slane %v1406_v58, %v16502_v36 }
 0x299   : > { %v1346_v39 = vpop.permute.xlu0 %1345  ;;  %v16818_v1 = vpop.permute.xlu1 %1335 }
 0x29a   : > { %v1421_v54 = vcombine.low %v16495_v28, %v1346_v39  ;;  %v1422_v48 = vcombine.high %v16495_v28, %v1346_v39 }
 0x29c   : > { %v1429_v30 = vrot.slane %v1421_v54, %v16502_v36  ;;  %v1436_v53 = vrot.slane %v1422_v48, %v16502_v36 }
 0x29d   : > { %v1362_v56 = vpop.permute.xlu0 %1361  ;;  %v16830_v18 = vpop.permute.xlu1 %1347 }
 0x29e   : > { %v1469_v27 = vcombine.low %v1413_v63, %v1429_v30  ;;  %v1531_v2 = vrot.slane %v1362_v56, %v16502_v36  ;;  %v1470_v24 = vcombine.high %v1413_v63, %v1429_v30  ;;  %v1524_v6 = vcombine.high %v1362_v56, %v15547_v46 }
 0x29f   : > { %v1485_v35 = vcombine.low %v1420_v10, %v1436_v53  ;;  %v1486_v39 = vcombine.high %v1420_v10, %v1436_v53  ;;  %v1623_v31 = vcombine.low %v16796_v47, %v16830_v18  ;;  %v1454_v30 = vcombine.high %v1388_v38, %v1404_v14 }
 0x2a0   : > { %v1477_v25 = vrot.slane %v1469_v27, %v16780_v34  ;;  %v1539_v43 = vcombine.low %v1516_v52, %v1531_v2  ;;  %v1540_v5 = vcombine.high %v1516_v52, %v1531_v2  ;;  %v1484_v11 = vrot.slane %v1470_v24, %v16780_v34 }
 0x2a1   : > { %v1538_v13 = vrot.slane %v1524_v6, %v16502_v36  ;;  %v16823_v8 = vpop.permute.xlu0 %1277  ;;  %v1493_v23 = vrot.slane %v1485_v35, %v16780_v34  ;;  %v1591_v56 = vcombine.low %v16489_v37, %v16508_v33  ;;  %v1607_v27 = vcombine.low %v16788_v22, %v16818_v1 }
 0x2a2   : > { %v1501_v12 = vcombine.low %v1445_v21, %v1477_v25  ;;  %v1547_v45 = vrot.slane %v1539_v43, %v16780_v34  ;;  %v1502_v57 = vcombine.high %v1445_v21, %v1477_v25  ;;  %v1554_v42 = vrot.slane %v1540_v5, %v16780_v34  ;;  %v16869_v5 = vpop.permute.xlu1 %1363 }
 0x2a3   : > { %v1503_v62 = vcombine.low %v1452_v41, %v1484_v11  ;;  %v1504_v32 = vcombine.high %v1452_v41, %v1484_v11  ;;  %v1555_v17 = vcombine.low %v1523_v55, %v1538_v13  ;;  %v1505_v54 = vcombine.low %v1461_v29, %v1493_v23 }
 0x2a4   : > { %2245 = vrot.lane.b32.xlu0 %v1501_v12, %s15548_s29  ;;  %2247 = vrot.lane.b32.xlu1 %v1547_v45, %s15548_s29  ;;  %v1571_v28 = vcombine.high %v1547_v45, %v15547_v46  ;;  %v1572_v4 = vcombine.high %v1554_v42, %v15547_v46  ;;  %v1556_v63 = vcombine.high %v1523_v55, %v1538_v13 }
 0x2a5   : > { %v16835_v51 = vpop.permute.xlu0 %1289  ;;  %v16841_v20 = vrot.slane %v1555_v17, %v16780_v34  ;;  %v1575_v52 = vcombine.low %v16394_v19, %v16493_v60  ;;  %v16853_v2 = vrot.slane %v1623_v31, %v16502_v36  ;;  %v1506_v21 = vcombine.high %v1461_v29, %v1493_v23 }
 0x2a6   : > { %v16856_v25 = vrot.slane %v1486_v39, %v16780_v34  ;;  %v16861_v48 = vrot.slane %v1556_v63, %v16780_v34  ;;  %v16864_v24 = vrot.slane %v1591_v56, %v16502_v36  ;;  %v16867_v12 = vrot.slane %v1607_v27, %v16502_v36  ;;  %v17064_v63 = vpop.permute.xlu1 %1279 }
 0x2a7   : > { %v16873_v45 = vrot.slane %v1454_v30, %v16780_v34  ;;  %v1583_v49 = vrot.slane %v1575_v52, %v16502_v36  ;;  %v1733_v50 = vrot.slane %v16869_v5, %v16502_v36  ;;  %v1573_v53 = vcombine.high %v16841_v20, %v15547_v46 }
 0x2a8   : > { %2249 = vrot.lane.b32.xlu0 %v1502_v57, %s15548_s29  ;;  %2255 = vrot.lane.b32.xlu1 %v1554_v42, %s15548_s29  ;;  %v1671_v59 = vcombine.low %v16867_v12, %v16853_v2  ;;  %v1718_v11 = vrot.slane %v16402_v26, %v16502_v36  ;;  %v1574_v41 = vcombine.high %v16861_v48, %v15547_v46 }
 0x2a9   : > { %v16858_v43 = vpop.permute.xlu0 %1301  ;;  %v1507_v58 = vcombine.low %v16873_v45, %v16856_v25  ;;  %v1639_v57 = vcombine.low %v1583_v49, %v16864_v24  ;;  %v1508_v42 = vcombine.high %v16873_v45, %v16856_v25  ;;  %v1624_v38 = vcombine.high %v16796_v47, %v16830_v18 }
 0x2aa   : > { %v1679_v14 = vrot.slane %v1671_v59, %v16780_v34  ;;  %v1741_v10 = vcombine.low %v1718_v11, %v1733_v50  ;;  %v1672_v35 = vcombine.high %v16867_v12, %v16853_v2  ;;  %v1742_v13 = vcombine.high %v1718_v11, %v1733_v50 }
 0x2ab   : > { %v1647_v3 = vrot.slane %v1639_v57, %v16780_v34  ;;  %v1592_v55 = vcombine.high %v16489_v37, %v16508_v33  ;;  %v1608_v23 = vcombine.high %v16788_v22, %v16818_v1  ;;  %v1576_v47 = vcombine.high %v16394_v19, %v16493_v60 }
 0x2ac   : > { %2253 = vrot.lane.b32.xlu0 %v1503_v62, %s15548_s29  ;;  %2251 = vrot.lane.b32.xlu1 %v1571_v28, %s15548_s29  ;;  %v1749_v0 = vrot.slane %v1741_v10, %v16780_v34  ;;  %v1638_v18 = vrot.slane %v1624_v38, %v16502_v36  ;;  %v1686_v17 = vrot.slane %v1672_v35, %v16780_v34 }
 0x2ad   : > { %v17021_v6 = vpop.permute.xlu0 %1313  ;;  %v1703_v62 = vcombine.low %v1647_v3, %v1679_v14  ;;  %v1726_v37 = vcombine.high %v16869_v5, %v15547_v46  ;;  %v1756_v33 = vrot.slane %v1742_v13, %v16780_v34  ;;  %v1606_v29 = vrot.slane %v1592_v55, %v16502_v36 }
 0x2ae   : > { %v1622_v22 = vrot.slane %v1608_v23, %v16502_v36  ;;  %v1711_v19 = vcombine.high %v16402_v26, %v15547_v46  ;;  %v1590_v39 = vrot.slane %v1576_v47, %v16502_v36  ;;  %v1773_v30 = vcombine.high %v1749_v0, %v15547_v46 }
 0x2af   : > { %v1774_v25 = vcombine.high %v1756_v33, %v15547_v46  ;;  %v1777_v57 = vcombine.low %v16407_v44, %v16835_v51 }
 0x2b0   : > { %2257 = vrot.lane.b32.xlu0 %v1504_v32, %s15548_s29  ;;  %2259 = vrot.lane.b32.xlu1 %v1572_v4, %s15548_s29  ;;  %v1640_v32 = vcombine.high %v1583_v49, %v16864_v24  ;;  %v1704_v4 = vcombine.high %v1647_v3, %v1679_v14  ;;  %v1687_v31 = vcombine.low %v1622_v22, %v1638_v18  ;;  %v17074_v24 = vpop.permute.xlu1 %1291 }
 0x2b1   : > { %v17036_v28 = vpop.permute.xlu0 %1325  ;;  %v1655_v56 = vcombine.low %v1590_v39, %v1606_v29  ;;  %v1725_v27 = vrot.slane %v1711_v19, %v16502_v36  ;;  %v1688_v12 = vcombine.high %v1622_v22, %v1638_v18  ;;  %v1656_v50 = vcombine.high %v1590_v39, %v1606_v29 }
 0x2b2   : > { %v1654_v1 = vrot.slane %v1640_v32, %v16780_v34  ;;  %v1695_v52 = vrot.slane %v1687_v31, %v16780_v34  ;;  %v1785_v13 = vrot.slane %v1777_v57, %v16502_v36  ;;  %v1920_v18 = vrot.slane %v16415_v9, %v16502_v36 }
 0x2b3   : > { %v1702_v10 = vrot.slane %v1688_v12, %v16780_v34 }
 0x2b4   : > { %2261 = vrot.lane.b32.xlu0 %v1505_v54, %s15548_s29  ;;  %2263 = vrot.lane.b32.xlu1 %v16841_v20, %s15548_s29  ;;  %v1705_v54 = vcombine.low %v1654_v1, %v1686_v17  ;;  %v1740_v20 = vrot.slane %v1726_v37, %v16502_v36  ;;  %v1706_v26 = vcombine.high %v1654_v1, %v1686_v17 }
 0x2b5   : > { %v17059_v60 = vpop.permute.xlu0 %1337 }
 0x2b6   : > { %v1757_v2 = vcombine.low %v1725_v27, %v1740_v20  ;;  %v1809_v5 = vcombine.low %v17021_v6, %v17059_v60  ;;  %v1758_v59 = vcombine.high %v1725_v27, %v1740_v20  ;;  %v1810_v1 = vcombine.high %v17021_v6, %v17059_v60 }
 0x2b8   : > { %2265 = vrot.lane.b32.xlu0 %v1506_v21, %s15548_s29  ;;  %2271 = vrot.lane.b32.xlu1 %v16861_v48, %s15548_s29  ;;  %v1663_v48 = vrot.slane %v1655_v56, %v16780_v34  ;;  %v1817_v11 = vrot.slane %v1809_v5, %v16502_v36  ;;  %v1772_v3 = vrot.slane %v1758_v59, %v16780_v34 }
 0x2b9   : > { %v1350_v21 = vpop.permute.xlu0 %1349  ;;  %v1794_v56 = vcombine.high %v16823_v8, %v16858_v43  ;;  %v1824_v6 = vrot.slane %v1810_v1, %v16502_v36 }
 0x2ba   : > { %v1825_v45 = vcombine.low %v17036_v28, %v1350_v21  ;;  %v1707_v49 = vcombine.low %v1663_v48, %v1695_v52  ;;  %v1708_v14 = vcombine.high %v1663_v48, %v1695_v52  ;;  %v1776_v29 = vcombine.high %v1772_v3, %v15547_v46 }
 0x2bb   : > { %v1826_v19 = vcombine.high %v17036_v28, %v1350_v21 }
 0x2bc   : > { %2269 = vrot.lane.b32.xlu0 %v1507_v58, %s15548_s29  ;;  %2267 = vrot.lane.b32.xlu1 %v1573_v53, %s15548_s29  ;;  %v1765_v58 = vrot.slane %v1757_v2, %v16780_v34  ;;  %v1793_v53 = vcombine.low %v16823_v8, %v16858_v43  ;;  %v1808_v8 = vrot.slane %v1794_v56, %v16502_v36 }
 0x2bd   : > { %v1366_v35 = vpop.permute.xlu0 %1365  ;;  %v1840_v28 = vrot.slane %v1826_v19, %v16502_v36 }
 0x2be   : > { %v1801_v38 = vrot.slane %v1793_v53, %v16502_v36  ;;  %v1935_v32 = vrot.slane %v1366_v35, %v16502_v36  ;;  %v1775_v23 = vcombine.high %v1765_v58, %v15547_v46  ;;  %v1928_v2 = vcombine.high %v1366_v35, %v15547_v46 }
 0x2bf   : > { %v1889_v48 = vcombine.low %v1824_v6, %v1840_v28 }
 0x2c0   : > { %2273 = vrot.lane.b32.xlu0 %v1508_v42, %s15548_s29  ;;  %2275 = vrot.lane.b32.xlu1 %v1574_v41, %s15548_s29  ;;  %v1833_v42 = vrot.slane %v1825_v45, %v16502_v36  ;;  %v17090_v41 = vpop.permute.xlu1 %1303  ;;  %v1841_v47 = vcombine.low %v1785_v13, %v1801_v38  ;;  %v1944_v20 = vcombine.high %v1920_v18, %v1935_v32 }
 0x2c1   : > { %v1842_v27 = vcombine.high %v1785_v13, %v1801_v38  ;;  %v1942_v5 = vrot.slane %v1928_v2, %v16502_v36  ;;  %v1995_v13 = vcombine.low %v17064_v63, %v17090_v41 }
 0x2c2   : > { %v1849_v22 = vrot.slane %v1841_v47, %v16780_v34  ;;  %v1874_v39 = vcombine.high %v1817_v11, %v1833_v42  ;;  %v1958_v21 = vrot.slane %v1944_v20, %v16780_v34 }
 0x2c3   : > { %v1856_v43 = vrot.slane %v1842_v27, %v16780_v34 }
 0x2c4   : > { %2277 = vrot.lane.b32.xlu0 %v1703_v62, %s15548_s29  ;;  %2279 = vrot.lane.b32.xlu1 %v1749_v0, %s15548_s29  ;;  %v1670_v62 = vrot.slane %v1656_v50, %v16780_v34  ;;  %v1873_v0 = vcombine.low %v1817_v11, %v1833_v42  ;;  %v1888_v52 = vrot.slane %v1874_v39, %v16780_v34 }
 0x2c5   : > { %v1976_v57 = vcombine.high %v1958_v21, %v15547_v46  ;;  %v1890_v42 = vcombine.high %v1824_v6, %v1840_v28 }
 0x2c6   : > { %v1709_v55 = vcombine.low %v1670_v62, %v1702_v10  ;;  %v1710_v17 = vcombine.high %v1670_v62, %v1702_v10  ;;  %v1881_v37 = vrot.slane %v1873_v0, %v16780_v34  ;;  %v1907_v12 = vcombine.low %v1856_v43, %v1888_v52 }
 0x2c7   : > { %v1979_v0 = vcombine.low %v16420_v7, %v17074_v24  ;;  %v1904_v47 = vrot.slane %v1890_v42, %v16780_v34 }
 0x2c8   : > { %2281 = vrot.lane.b32.xlu0 %v1704_v4, %s15548_s29  ;;  %2287 = vrot.lane.b32.xlu1 %v1756_v33, %s15548_s29  ;;  %v17103_v4 = vpop.permute.xlu1 %1315  ;;  %v1943_v33 = vcombine.low %v1920_v18, %v1935_v32  ;;  %v1905_v31 = vcombine.low %v1849_v22, %v1881_v37  ;;  %v1906_v60 = vcombine.high %v1849_v22, %v1881_v37 }
 0x2c9   : > { %v1987_v7 = vrot.slane %v1979_v0, %v16502_v36 }
 0x2cc   : > { %2285 = vrot.lane.b32.xlu0 %v1705_v54, %s15548_s29  ;;  %2283 = vrot.lane.b32.xlu1 %v1773_v30, %s15548_s29  ;;  %v17114_v54 = vpop.permute.xlu1 %1327  ;;  %v1951_v30 = vrot.slane %v1943_v33, %v16780_v34 }
 0x2ce   : > { %v1975_v45 = vcombine.high %v1951_v30, %v15547_v46 }
 0x2d0   : > { %2289 = vrot.lane.b32.xlu0 %v1706_v26, %s15548_s29  ;;  %2291 = vrot.lane.b32.xlu1 %v1774_v25, %s15548_s29  ;;  %v1778_v26 = vcombine.high %v16407_v44, %v16835_v51  ;;  %v1913_v44 = vcombine.high %v16415_v9, %v15547_v46  ;;  %v17133_v51 = vpop.permute.xlu1 %1339  ;;  %v1908_v9 = vcombine.high %v1856_v43, %v1888_v52 }
 0x2d1   : > { %v2012_v6 = vcombine.high %v17103_v4, %v17133_v51 }
 0x2d2   : > { %v1792_v25 = vrot.slane %v1778_v26, %v16502_v36  ;;  %v1927_v59 = vrot.slane %v1913_v44, %v16502_v36  ;;  %v15309_v44 = vld [vmem:[%s16385_s30 + $0x30] sm:$0xff] }
 0x2d4   : > { %2293 = vrot.lane.b32.xlu0 %v1707_v49, %s15548_s29  ;;  %2295 = vrot.lane.b32.xlu1 %v1765_v58, %s15548_s29  ;;  %v1857_v49 = vcombine.low %v1792_v25, %v1808_v8  ;;  %v1897_v58 = vrot.slane %v1889_v48, %v16780_v34  ;;  %v1959_v50 = vcombine.low %v1927_v59, %v1942_v5  ;;  %v1352_v53 = vpop.permute.xlu1 %1351 }
 0x2d5   : > { %v2027_v10 = vcombine.low %v17114_v54, %v1352_v53  ;;  %v1960_v38 = vcombine.high %v1927_v59, %v1942_v5  ;;  %v1858_v62 = vcombine.high %v1792_v25, %v1808_v8  ;;  %v2028_v28 = vcombine.high %v17114_v54, %v1352_v53 }
 0x2d6   : > { %v1865_v11 = vrot.slane %v1857_v49, %v16780_v34  ;;  %v1967_v35 = vrot.slane %v1959_v50, %v16780_v34  ;;  %v1996_v8 = vcombine.high %v17064_v63, %v17090_v41  ;;  %v1980_v25 = vcombine.high %v15309_v44, %v17074_v24 }
 0x2d7   : > { %v2035_v32 = vrot.slane %v2027_v10, %v16502_v36  ;;  %v1974_v18 = vrot.slane %v1960_v38, %v16780_v34  ;;  %v1872_v33 = vrot.slane %v1858_v62, %v16780_v34  ;;  %v2042_v54 = vrot.slane %v2028_v28, %v16502_v36 }
 0x2d8   : > { %2297 = vrot.lane.b32.xlu0 %v1708_v14, %s15548_s29  ;;  %2303 = vrot.lane.b32.xlu1 %v1772_v3, %s15548_s29  ;;  %v2011_v14 = vcombine.low %v17103_v4, %v17133_v51  ;;  %v1909_v3 = vcombine.low %v1865_v11, %v1897_v58  ;;  %v1368_v37 = vpop.permute.xlu1 %1367  ;;  %v1977_v19 = vcombine.high %v1967_v35, %v15547_v46 }
 0x2d9   : > { %v1911_v22 = vcombine.low %v1872_v33, %v1904_v47  ;;  %v2137_v1 = vrot.slane %v1368_v37, %v16502_v36  ;;  %v1912_v20 = vcombine.high %v1872_v33, %v1904_v47  ;;  %v1978_v27 = vcombine.high %v1974_v18, %v15547_v46 }
 0x2da   : > { %v2026_v4 = vrot.slane %v2012_v6, %v16502_v36  ;;  %v2010_v63 = vrot.slane %v1996_v8, %v16502_v36  ;;  %v2115_v24 = vcombine.high %v16428_v16, %v15547_v46 }
 0x2dc   : > { %2301 = vrot.lane.b32.xlu0 %v1709_v55, %s15548_s29  ;;  %2299 = vrot.lane.b32.xlu1 %v1775_v23, %s15548_s29  ;;  %v2019_v55 = vrot.slane %v2011_v14, %v16502_v36  ;;  %v1910_v23 = vcombine.high %v1865_v11, %v1897_v58  ;;  %v2091_v49 = vcombine.low %v2026_v4, %v2042_v54 }
 0x2dd   : > { %v2129_v53 = vrot.slane %v2115_v24, %v16502_v36  ;;  %v2092_v10 = vcombine.high %v2026_v4, %v2042_v54  ;;  %v14669_v4 = vld [vmem:[#allocation2 + $0x18] ss:$48 sps:$4 sm:$0xff]  }
 0x2e0   : > { %2305 = vrot.lane.b32.xlu0 %v1710_v17, %s15548_s29  ;;  %2307 = vrot.lane.b32.xlu1 %v1776_v29, %s15548_s29  ;;  %v2003_v17 = vrot.slane %v1995_v13, %v16502_v36  ;;  %v2075_v29 = vcombine.low %v2019_v55, %v2035_v32 }
 0x2e2   : > { %v2043_v39 = vcombine.low %v1987_v7, %v2003_v17  ;;  %v2044_v43 = vcombine.high %v1987_v7, %v2003_v17 }
 0x2e4   : > { %2309 = vrot.lane.b32.xlu0 %v1905_v31, %s15548_s29  ;;  %2311 = vrot.lane.b32.xlu1 %v1951_v30, %s15548_s29  ;;  %v2122_v31 = vrot.slane %v16428_v16, %v16502_v36  ;;  %v2083_v30 = vrot.slane %v2075_v29, %v16780_v34  ;;  %v2051_v26 = vrot.slane %v2043_v39, %v16780_v34 }
 0x2e5   : > { %v2058_v41 = vrot.slane %v2044_v43, %v16780_v34  ;;  %v2099_v16 = vrot.slane %v2091_v49, %v16780_v34 }
 0x2e6   : > { %v2145_v56 = vcombine.low %v2122_v31, %v2137_v1  ;;  %v2107_v52 = vcombine.low %v2051_v26, %v2083_v30  ;;  %v2146_v2 = vcombine.high %v2122_v31, %v2137_v1  ;;  %v2108_v51 = vcombine.high %v2051_v26, %v2083_v30 }
 0x2e8   : > { %2313 = vrot.lane.b32.xlu0 %v1906_v60, %s15548_s29  ;;  %2319 = vrot.lane.b32.xlu1 %v1958_v21, %s15548_s29  ;;  %v2076_v60 = vcombine.high %v2019_v55, %v2035_v32  ;;  %v2153_v21 = vrot.slane %v2145_v56, %v16780_v34  ;;  %v2160_v5 = vrot.slane %v2146_v2, %v16780_v34 }
 0x2e9   : > { %v2106_v55 = vrot.slane %v2092_v10, %v16780_v34 }
 0x2ea   : > { %v2090_v48 = vrot.slane %v2076_v60, %v16780_v34  ;;  %v2177_v58 = vcombine.high %v2153_v21, %v15547_v46  ;;  %v2178_v42 = vcombine.high %v2160_v5, %v15547_v46 }
 0x2ec   : > { %2317 = vrot.lane.b32.xlu0 %v1907_v12, %s15548_s29  ;;  %2315 = vrot.lane.b32.xlu1 %v1975_v45, %s15548_s29  ;;  %v2130_v12 = vcombine.high %v1368_v37, %v15547_v46  ;;  %v1994_v45 = vrot.slane %v1980_v25, %v16502_v36  ;;  %v2109_v59 = vcombine.low %v2058_v41, %v2090_v48  ;;  %v14667_v25 = vld [vmem:[#allocation2] ss:$48 sps:$4 sm:$0xff]  }
 0x2ee   : > { %v2059_v50 = vcombine.low %v1994_v45, %v2010_v63  ;;  %v2060_v62 = vcombine.high %v1994_v45, %v2010_v63 }
 0x2f0   : > { %2321 = vrot.lane.b32.xlu0 %v1908_v9, %s15548_s29  ;;  %2323 = vrot.lane.b32.xlu1 %v1976_v57, %s15548_s29  ;;  %v2144_v9 = vrot.slane %v2130_v12, %v16502_v36  ;;  %v2110_v57 = vcombine.high %v2058_v41, %v2090_v48  ;;  %v2067_v14 = vrot.slane %v2059_v50, %v16780_v34 }
 0x2f1   : > { %v2074_v47 = vrot.slane %v2060_v62, %v16780_v34  ;;  %v2575_v62 = vrot.slane %v14667_v25, %v16502_v36 }
 0x2f2   : > { %v2161_v11 = vcombine.low %v2129_v53, %v2144_v9  ;;  %v2162_v38 = vcombine.high %v2129_v53, %v2144_v9  ;;  %v2112_v0 = vcombine.high %v2067_v14, %v2099_v16 }
 0x2f3   : > { %v2113_v17 = vcombine.low %v2074_v47, %v2106_v55  ;;  %v2114_v29 = vcombine.high %v2074_v47, %v2106_v55 }
 0x2f4   : > { %2325 = vrot.lane.b32.xlu0 %v1909_v3, %s15548_s29  ;;  %2327 = vrot.lane.b32.xlu1 %v1967_v35, %s15548_s29  ;;  %v2111_v3 = vcombine.low %v2067_v14, %v2099_v16  ;;  %v2169_v35 = vrot.slane %v2161_v11, %v16780_v34 }
 0x2f6   : > { %v2179_v33 = vcombine.high %v2169_v35, %v15547_v46 }
 0x2f8   : > { %2329 = vrot.lane.b32.xlu0 %v1910_v23, %s15548_s29  ;;  %2335 = vrot.lane.b32.xlu1 %v1974_v18, %s15548_s29  ;;  %v2176_v23 = vrot.slane %v2162_v38, %v16780_v34  ;;  %v14717_v38 = vld [vmem:[#allocation2 + $0x19] ss:$48 sps:$4 sm:$0xff]  }
 0x2fa   : > { %v2180_v1 = vcombine.high %v2176_v23, %v15547_v46 }
 0x2fc   : > { %2333 = vrot.lane.b32.xlu0 %v1911_v22, %s15548_s29  ;;  %2331 = vrot.lane.b32.xlu1 %v1977_v19, %s15548_s29 }
 0x300   : > { %2337 = vrot.lane.b32.xlu0 %v1912_v20, %s15548_s29  ;;  %2339 = vrot.lane.b32.xlu1 %v1978_v27, %s15548_s29 }
 0x304   : > { %2341 = vrot.lane.b32.xlu0 %v2107_v52, %s15548_s29  ;;  %2343 = vrot.lane.b32.xlu1 %v2153_v21, %s15548_s29 }
 0x308   : > { %2345 = vrot.lane.b32.xlu0 %v2108_v51, %s15548_s29  ;;  %2351 = vrot.lane.b32.xlu1 %v2160_v5, %s15548_s29 }
 0x30c   : > { %2349 = vrot.lane.b32.xlu0 %v2109_v59, %s15548_s29  ;;  %2347 = vrot.lane.b32.xlu1 %v2177_v58, %s15548_s29 }
 0x310   : > { %2353 = vrot.lane.b32.xlu0 %v2110_v57, %s15548_s29  ;;  %2355 = vrot.lane.b32.xlu1 %v2178_v42, %s15548_s29  ;;  %v2591_v57 = vrot.slane %v14669_v4, %v16502_v36  ;;  %v14715_v42 = vld [vmem:[#allocation2 + $0x1] ss:$48 sps:$4 sm:$0xff]  }
 0x314   : > { %2357 = vrot.lane.b32.xlu0 %v2111_v3, %s15548_s29  ;;  %2359 = vrot.lane.b32.xlu1 %v2169_v35, %s15548_s29 }
 0x316   : > { %v2246_v13 = vpop.permute.xlu0 %2245  ;;  %v2248_v32 = vpop.permute.xlu1 %2247 }
 0x317   : > { %2438 = vst.msk [vmem:[#allocation2 + $0x6] sm:$0xff] %vm2437_vm4, %v2246_v13 }
 0x318   : > { %2440 = vst.msk [vmem:[#allocation2 + $0xe] sm:$0x3] %vm2439_vm14, %v2248_v32  ;;  %2361 = vrot.lane.b32.xlu0 %v2112_v0, %s15548_s29  ;;  %2367 = vrot.lane.b32.xlu1 %v2176_v23, %s15548_s29  ;;  %v14731_v32 = vld [vmem:[#allocation2 + $0x2] ss:$48 sps:$4 sm:$0xff]  }
 0x31a   : > { %v2250_v18 = vpop.permute.xlu0 %2249  ;;  %v2256_v37 = vpop.permute.xlu1 %2255 }
 0x31b   : > { %2441 = vst.msk [vmem:[#allocation2 + $0x1e] sm:$0xff] %vm2437_vm4, %v2250_v18 }
 0x31c   : > { %2444 = vst.msk [vmem:[#allocation2 + $0x3e] sm:$0x3] %vm2439_vm14, %v2256_v37  ;;  %2365 = vrot.lane.b32.xlu0 %v2113_v17, %s15548_s29  ;;  %2363 = vrot.lane.b32.xlu1 %v2179_v33, %s15548_s29 }
 0x31e   : > { %v2254_v7 = vpop.permute.xlu0 %2253  ;;  %v2252_v22 = vpop.permute.xlu1 %2251  ;;  %v2503_v44 = vld [vmem:[#allocation2] sm:$0xff] }
 0x31f   : > { %2443 = vst.msk [vmem:[#allocation2 + $0x36] sm:$0xff] %vm2437_vm4, %v2254_v7  ;;  %v11231_v21 = vld [vmem:[#allocation2 + $0xe] sm:$0xff]  ;;  %v11230_v54 = vld [vmem:[#allocation2 + $0x6] sm:$0xff] }
 0x320   : > { %2442 = vst.msk [vmem:[#allocation2 + $0x26] sm:$0x3] %vm2439_vm14, %v2252_v22  ;;  %2369 = vrot.lane.b32.xlu0 %v2114_v29, %s15548_s29  ;;  %2371 = vrot.lane.b32.xlu1 %v2180_v1, %s15548_s29  ;;  %v3970_v11 = vld [vmem:[#allocation2 + $0x1] sm:$0xff]  ;;  %v2631_v29 = vcombine.low %v2575_v62, %v2591_v57  ;;  %v2632_v22 = vcombine.high %v2575_v62, %v2591_v57  ;;  %s15555_s29 = smov 8  }
 0x322   : > { %v2258_v19 = vpop.permute.xlu0 %2257  ;;  %v2260_v39 = vpop.permute.xlu1 %2259  ;;  %v2505_v52 = vld [vmem:[#allocation2 + $0x18] sm:$0xff] }
 0x323   : > { %2445 = vst.msk [vmem:[#allocation2 + $0x4e] sm:$0xff] %vm2437_vm4, %v2258_v19  ;;  %v11235_v26 = vld [vmem:[#allocation2 + $0x3e] sm:$0xff]  ;;  %v17266_v19 = vrot.slane %v14715_v42, %v16502_v36 }
 0x324   : > { %2446 = vst.msk [vmem:[#allocation2 + $0x56] sm:$0x3] %vm2439_vm14, %v2260_v39  ;;  %v11232_v2 = vld [vmem:[#allocation2 + $0x1e] sm:$0xff]  ;;  %v11839_v45 = vcombine.high %v11231_v21, %v11235_v26 }
 0x325   : > { %v14699_v8 = vld [vmem:[#allocation2 + $0xe] ss:$48 sps:$4 sm:$0xff]  }
 0x326   : > { %v2262_v31 = vpop.permute.xlu0 %2261  ;;  %v2264_v20 = vpop.permute.xlu1 %2263  ;;  %v2507_v6 = vld [vmem:[#allocation2 + $0x30] sm:$0xff]  ;;  %v14683_v12 = vld [vmem:[#allocation2 + $0xa] ss:$48 sps:$4 sm:$0xff]   ;;  %v17243_v3 = vrot.slane %v14699_v8, %v16502_v36  ;;  %v17254_v55 = vrot.slane %v11839_v45, %v16502_v36 }
 0x327   : > { %2447 = vst.msk [vmem:[#allocation2 + $0x66] sm:$0xff] %vm2437_vm4, %v2262_v31  ;;  %v11234_v51 = vld [vmem:[#allocation2 + $0x36] sm:$0xff]  ;;  %v2568_v9 = vcombine.high %v2503_v44, %v2507_v6  ;;  %v11233_v58 = vld [vmem:[#allocation2 + $0x26] sm:$0xff]  ;;  %v11309_v47 = vrot.slane %v14683_v12, %v16502_v36  ;;  %v17290_v12 = vrot.slane %v2631_v29, %v16780_v34 }
 0x328   : > { %2448 = vst.msk [vmem:[#allocation2 + $0x6e] sm:$0x3] %vm2439_vm14, %v2264_v20  ;;  %v3974_v49 = vld [vmem:[#allocation2 + $0x31] sm:$0xff]  ;;  %v11294_v59 = vcombine.low %v11230_v54, %v11234_v51  ;;  %23211 = vst [vmem:[#allocation19_spill] sm:$0xff] %v17254_v55 }
 0x329   : > { %v4035_v35 = vcombine.high %v3970_v11, %v3974_v49  ;;  %v14763_v23 = vld [vmem:[#allocation2 + $0x6] ss:$48 sps:$4 sm:$0xff]   ;;  %v2582_v17 = vrot.slane %v2568_v9, %v16502_v36  ;;  %23216 = vst [vmem:[#allocation24_spill] sm:$0xff] %v17290_v12  ;;  %v14671_v11 = vld [vmem:[#allocation2 + $0x60] ss:$48 sps:$4 sm:$0xff]  }
 0x32a   : > { %v2266_v30 = vpop.permute.xlu0 %2265  ;;  %v2272_v46 = vpop.permute.xlu1 %2271  ;;  %v2509_v28 = vld [vmem:[#allocation2 + $0x48] sm:$0xff]  ;;  %v14685_v5 = vld [vmem:[#allocation2 + $0x22] ss:$48 sps:$4 sm:$0xff]   ;;  %v17258_v18 = vrot.slane %v11294_v59, %v16502_v36 }
 0x32b   : > { %2449 = vst.msk [vmem:[#allocation2 + $0x7e] sm:$0xff] %vm2437_vm4, %v2266_v30  ;;  %v11236_v60 = vld [vmem:[#allocation2 + $0x4e] sm:$0xff]  ;;  %v11237_v63 = vld [vmem:[#allocation2 + $0x56] sm:$0xff]  ;;  %v2584_v24 = vcombine.high %v2505_v52, %v2509_v28  ;;  %v11325_v10 = vrot.slane %v14685_v5, %v16502_v36  ;;  %v17278_v28 = vrot.slane %v14731_v32, %v16502_v36  ;;  %v17281_v52 = vrot.slane %v14763_v23, %v16502_v36 }
 0x32c   : > { %2452 = vst.msk [vmem:[#allocation2 + $0x9e] sm:$0x3] %vm2439_vm14, %v2272_v46  ;;  %v11310_v41 = vcombine.low %v11232_v2, %v11236_v60  ;;  %v14701_v50 = vld [vmem:[#allocation2 + $0x26] ss:$48 sps:$4 sm:$0xff]   ;;  %v11855_v16 = vcombine.high %v11233_v58, %v11237_v63  ;;  %23212 = vst [vmem:[#allocation20_spill] sm:$0xff] %v17258_v18  ;;  %v17293_v5 = vrot.slane %v2632_v22, %v16780_v34 }
 0x32d   : > { %v17251_v0 = vrot.slane %v2584_v24, %v16502_v36  ;;  %v11862_v37 = vrot.slane %v14701_v50, %v16502_v36  ;;  %v14779_v33 = vld [vmem:[#allocation2 + $0x3] ss:$48 sps:$4 sm:$0xff]   ;;  %v11374_v31 = vcombine.low %v11309_v47, %v11325_v10  ;;  %v11375_v20 = vcombine.high %v11309_v47, %v11325_v10  ;;  %v3972_v30 = vld [vmem:[#allocation2 + $0x19] sm:$0xff]  ;;  %v3976_v46 = vld [vmem:[#allocation2 + $0x49] sm:$0xff]  ;;  %23214 = vst [vmem:[#allocation22_spill] sm:$0xff] %v17281_v52 }
 0x32e   : > { %v2270_v56 = vpop.permute.xlu0 %2269  ;;  %v2268_v27 = vpop.permute.xlu1 %2267  ;;  %v17248_v13 = vrot.slane %v11310_v41, %v16502_v36  ;;  %v17263_v1 = vrot.slane %v11855_v16, %v16502_v36  ;;  %v14733_v60 = vld [vmem:[#allocation2 + $0x1a] ss:$48 sps:$4 sm:$0xff]   ;;  %v14764_v2 = vld [vmem:[#allocation2 + $0x1e] ss:$48 sps:$4 sm:$0xff]   ;;  %v17287_v4 = vrot.slane %v14779_v33, %v16502_v36  ;;  %v4051_v24 = vcombine.high %v3972_v30, %v3976_v46 }
 0x32f   : > { %2451 = vst.msk [vmem:[#allocation2 + $0x96] sm:$0xff] %vm2437_vm4, %v2270_v56  ;;  %v4058_v56 = vrot.slane %v14717_v38, %v16502_v36  ;;  %v2647_v6 = vcombine.low %v2582_v17, %v17251_v0  ;;  %v11239_v21 = vld [vmem:[#allocation2 + $0x6e] sm:$0xff]  ;;  %v11903_v44 = vcombine.high %v17243_v3, %v11862_v37  ;;  %v2648_v25 = vcombine.high %v2582_v17, %v17251_v0  ;;  %v2511_v17 = vld [vmem:[#allocation2 + $0x60] sm:$0xff] }
 0x330   : > { %2450 = vst.msk [vmem:[#allocation2 + $0x86] sm:$0x3] %vm2439_vm14, %v2268_v27  ;;  %23210 = vst [vmem:[#allocation18_spill] sm:$0xff] %v17248_v13  ;;  %v17271_v27 = vrot.slane %v4035_v35, %v16502_v36  ;;  %v11359_v26 = vcombine.high %v17258_v18, %v17248_v13  ;;  %v11918_v41 = vcombine.low %v17254_v55, %v17263_v1 }
 0x331   : > { %23213 = vst [vmem:[#allocation21_spill] sm:$0xff] %v17263_v1  ;;  %23215 = vst [vmem:[#allocation23_spill] sm:$0xff] %v17287_v4  ;;  %v17301_v50 = vrot.slane %v11374_v31, %v16780_v34  ;;  %v4098_v57 = vcombine.low %v17266_v19, %v4058_v56  ;;  %v4099_v16 = vcombine.high %v17266_v19, %v4058_v56  ;;  %v11238_v31 = vld [vmem:[#allocation2 + $0x66] sm:$0xff] }
 0x332   : > { %v2274_v43 = vpop.permute.xlu0 %2273  ;;  %v2276_v48 = vpop.permute.xlu1 %2275  ;;  %v2513_v49 = vld [vmem:[#allocation2 + $0x78] sm:$0xff]  ;;  %v17310_v10 = vrot.slane %v11359_v26, %v16780_v34  ;;  %v5510_v35 = vrot.slane %v14733_v60, %v16502_v36  ;;  %v17320_v0 = vrot.slane %v11903_v44, %v16780_v34  ;;  %v17323_v32 = vrot.slane %v2648_v25, %v16780_v34 }
 0x333   : > { %2453 = vst.msk [vmem:[#allocation2 + $0xae] sm:$0xff] %vm2437_vm4, %v2274_v43  ;;  %v11243_v8 = vld [vmem:[#allocation2 + $0x9e] sm:$0xff]  ;;  %v11902_v43 = vcombine.low %v17243_v3, %v11862_v37  ;;  %23217 = vst [vmem:[#allocation25_spill] sm:$0xff] %v17301_v50  ;;  %v17313_v3 = vrot.slane %v2647_v6, %v16780_v34  ;;  %v17326_v23 = vrot.slane %v14764_v2, %v16502_v36 }
 0x334   : > { %2454 = vst.msk [vmem:[#allocation2 + $0xb6] sm:$0x3] %vm2439_vm14, %v2276_v48  ;;  %v14673_v48 = vld [vmem:[#allocation2 + $0x78] ss:$48 sps:$4 sm:$0xff]   ;;  %v14703_v63 = vld [vmem:[#allocation2 + $0x6e] ss:$48 sps:$4 sm:$0xff]   ;;  %v11871_v38 = vcombine.high %v11239_v21, %v11243_v8  ;;  %v17329_v29 = vrot.slane %v11918_v41, %v16780_v34  ;;  %v4065_v22 = vrot.slane %v4051_v24, %v16502_v36  ;;  %v17338_v46 = vrot.slane %v4098_v57, %v16780_v34 }
 0x335   : > { %v11240_v9 = vld [vmem:[#allocation2 + $0x7e] sm:$0xff]  ;;  %23218 = vst [vmem:[#allocation26_spill] sm:$0xff] %v17310_v10  ;;  %v17317_v62 = vrot.slane %v11902_v43, %v16780_v34  ;;  %23220 = vst [vmem:[#allocation28_spill] sm:$0xff] %v17320_v0  ;;  %v17335_v30 = vrot.slane %v14703_v63, %v16502_v36  ;;  %v17341_v56 = vrot.slane %v4099_v16, %v16780_v34 }
 0x336   : > { %v2278_v53 = vpop.permute.xlu0 %2277  ;;  %v2280_v14 = vpop.permute.xlu1 %2279  ;;  %v17298_v59 = vld [vmem:[#allocation2 + $0x90] sm:$0xff]  ;;  %23221 = vst [vmem:[#allocation29_spill] sm:$0xff] %v17323_v32  ;;  %23222 = vst [vmem:[#allocation30_spill] sm:$0xff] %v17326_v23  ;;  %v17346_v60 = vrot.slane %v11871_v38, %v16502_v36  ;;  %v5550_v21 = vcombine.low %v17278_v28, %v5510_v35  ;;  %v2607_v8 = vrot.slane %v14671_v11, %v16502_v36  ;;  %v3978_v24 = vld [vmem:[#allocation2 + $0x61] sm:$0xff] }
 0x337   : > { %2455 = vst.msk [vmem:[#allocation2 + $0xc6] sm:$0xff] %vm2437_vm4, %v2278_v53  ;;  %v17304_v53 = vrot.slane %v11375_v20, %v16780_v34  ;;  %v11242_v42 = vld [vmem:[#allocation2 + $0x96] sm:$0xff]  ;;  %23219 = vst [vmem:[#allocation27_spill] sm:$0xff] %v17317_v62  ;;  %v2600_v6 = vcombine.high %v2511_v17, %v17298_v59  ;;  %v5551_v25 = vcombine.high %v17278_v28, %v5510_v35 }
 0x338   : > { %2456 = vst.msk [vmem:[#allocation2 + $0xce] sm:$0x3] %vm2439_vm14, %v2280_v14  ;;  %23223 = vst [vmem:[#allocation31_spill] sm:$0xff] %v17329_v29  ;;  %v14687_v20 = vld [vmem:[#allocation2 + $0x6a] ss:$48 sps:$4 sm:$0xff]   ;;  %v11326_v26 = vcombine.low %v11238_v31, %v11242_v42  ;;  %v3982_v2 = vld [vmem:[#allocation2 + $0x91] sm:$0xff]  ;;  %v4115_v16 = vcombine.high %v17271_v27, %v4065_v22 }
 0x339   : > { %23224 = vst [vmem:[#allocation32_spill] sm:$0xff] %v17338_v46  ;;  %23225 = vst [vmem:[#allocation33_spill] sm:$0xff] %v17346_v60  ;;  %v11341_v59 = vrot.slane %v14687_v20, %v16502_v36  ;;  %v4067_v57 = vcombine.high %v3978_v24, %v3982_v2  ;;  %v14721_v35 = vld [vmem:[#allocation2 + $0x79] ss:$48 sps:$4 sm:$0xff]  }
 0x33a   : > { %v2282_v7 = vpop.permute.xlu0 %2281  ;;  %v2288_v39 = vpop.permute.xlu1 %2287  ;;  %v2517_v51 = vld [vmem:[#allocation2 + $0xa8] sm:$0xff]  ;;  %v14689_v14 = vld [vmem:[#allocation2 + $0x82] ss:$48 sps:$4 sm:$0xff]   ;;  %v17369_v42 = vrot.slane %v11326_v26, %v16502_v36  ;;  %v17412_v24 = vrot.slane %v14721_v35, %v16502_v36 }
 0x33b   : > { %2457 = vst.msk [vmem:[#allocation2 + $0xde] sm:$0xff] %vm2437_vm4, %v2282_v7  ;;  %v11244_v58 = vld [vmem:[#allocation2 + $0xae] sm:$0xff]  ;;  %v2616_v33 = vcombine.high %v2513_v49, %v2517_v51  ;;  %v14705_v7 = vld [vmem:[#allocation2 + $0x86] ss:$48 sps:$4 sm:$0xff]   ;;  %v11357_v43 = vrot.slane %v14689_v14, %v16502_v36  ;;  %v17372_v14 = vrot.slane %v2600_v6, %v16502_v36 }
 0x33c   : > { %2460 = vst.msk [vmem:[#allocation2 + $0xfe] sm:$0x3] %vm2439_vm14, %v2288_v39  ;;  %v11342_v37 = vcombine.low %v11240_v9, %v11244_v58  ;;  %v2623_v39 = vrot.slane %v14673_v48, %v16502_v36  ;;  %v11245_v44 = vld [vmem:[#allocation2 + $0xb6] sm:$0xff]  ;;  %v17361_v41 = vrot.slane %v14705_v7, %v16502_v36  ;;  %v11241_v9 = vld [vmem:[#allocation2 + $0x86] sm:$0xff]  ;;  %v14719_v58 = vld [vmem:[#allocation2 + $0x61] ss:$48 sps:$4 sm:$0xff]   ;;  %v17378_v7 = vrot.slane %v5551_v25, %v16780_v34 }
 0x33d   : > { %v17358_v63 = vrot.slane %v2616_v33, %v16502_v36  ;;  %23227 = vst [vmem:[#allocation35_spill] sm:$0xff] %v17369_v42  ;;  %v11887_v38 = vcombine.high %v11241_v9, %v11245_v44  ;;  %v11407_v17 = vcombine.high %v11341_v59, %v11357_v43  ;;  %v17375_v33 = vrot.slane %v5550_v21, %v16780_v34 }
 0x33e   : > { %v2286_v54 = vpop.permute.xlu0 %2285  ;;  %v2284_v45 = vpop.permute.xlu1 %2283  ;;  %v17355_v48 = vrot.slane %v11342_v37, %v16502_v36  ;;  %v2663_v28 = vcombine.low %v2607_v8, %v2623_v39  ;;  %v2664_v11 = vcombine.high %v2607_v8, %v2623_v39  ;;  %v14735_v37 = vld [vmem:[#allocation2 + $0x62] ss:$48 sps:$4 sm:$0xff]   ;;  %23229 = vst [vmem:[#allocation37_spill] sm:$0xff] %v17378_v7  ;;  %v11934_v31 = vcombine.low %v17335_v30, %v17361_v41  ;;  %v14681_v7 = vld [vmem:[#allocation2 + $0x138] ss:$48 sps:$4 sm:$0xff]  }
 0x33f   : > { %2459 = vst.msk [vmem:[#allocation2 + $0xf6] sm:$0xff] %vm2437_vm4, %v2286_v54  ;;  %v5566_v54 = vcombine.low %v17281_v52, %v17326_v23  ;;  %23228 = vst [vmem:[#allocation36_spill] sm:$0xff] %v17375_v33  ;;  %v2679_v39 = vcombine.low %v17372_v14, %v17358_v63  ;;  %v17394_v2 = vrot.slane %v14719_v58, %v16502_v36  ;;  %v11247_v58 = vld [vmem:[#allocation2 + $0xce] sm:$0xff] }
 0x340   : > { %2458 = vst.msk [vmem:[#allocation2 + $0xe6] sm:$0x3] %vm2439_vm14, %v2284_v45  ;;  %23226 = vst [vmem:[#allocation34_spill] sm:$0xff] %v17355_v48  ;;  %v4114_v45 = vcombine.low %v17271_v27, %v4065_v22  ;;  %v14765_v27 = vld [vmem:[#allocation2 + $0x66] ss:$48 sps:$4 sm:$0xff]   ;;  %v17391_v6 = vrot.slane %v2663_v28, %v16780_v34  ;;  %v17397_v21 = vrot.slane %v4067_v57, %v16502_v36 }
 0x341   : > { %v17400_v8 = vrot.slane %v4115_v16, %v16780_v34  ;;  %v17404_v44 = vrot.slane %v2664_v11, %v16780_v34  ;;  %v11935_v25 = vcombine.high %v17335_v30, %v17361_v41  ;;  %v17421_v28 = vrot.slane %v14735_v37, %v16502_v36 }
 0x342   : > { %v2290_v47 = vpop.permute.xlu0 %2289  ;;  %v2292_v19 = vpop.permute.xlu1 %2291  ;;  %v17387_v20 = vrot.slane %v4114_v45, %v16780_v34  ;;  %23231 = vst [vmem:[#allocation39_spill] sm:$0xff] %v17391_v6  ;;  %v17430_v41 = vrot.slane %v2679_v39, %v16780_v34  ;;  %v17433_v16 = vrot.slane %v11934_v31, %v16780_v34  ;;  %v2680_v11 = vcombine.high %v17372_v14, %v17358_v63  ;;  %v14675_v14 = vld [vmem:[#allocation2 + $0xc0] ss:$48 sps:$4 sm:$0xff]  }
 0x343   : > { %2461 = vst.msk [vmem:[#allocation2 + $0x10e] sm:$0xff] %vm2437_vm4, %v2290_v47  ;;  %v11406_v47 = vcombine.low %v11341_v59, %v11357_v43  ;;  %23232 = vst [vmem:[#allocation40_spill] sm:$0xff] %v17400_v8  ;;  %v14781_v43 = vld [vmem:[#allocation2 + $0x1b] ss:$48 sps:$4 sm:$0xff]   ;;  %v17424_v59 = vrot.slane %v14765_v27, %v16502_v36 }
 0x344   : > { %2462 = vst.msk [vmem:[#allocation2 + $0x116] sm:$0x3] %vm2439_vm14, %v2292_v19  ;;  %v11391_v19 = vcombine.high %v17369_v42, %v17355_v48  ;;  %23230 = vst [vmem:[#allocation38_spill] sm:$0xff] %v17387_v20  ;;  %v11251_v57 = vld [vmem:[#allocation2 + $0xfe] sm:$0xff]  ;;  %v17446_v27 = vrot.slane %v14781_v43, %v16502_v36  ;;  %v4130_v43 = vcombine.low %v17394_v2, %v17412_v24 }
 0x345   : > { %v17415_v45 = vrot.slane %v11406_v47, %v16780_v34  ;;  %23235 = vst [vmem:[#allocation43_spill] sm:$0xff] %v17424_v59  ;;  %23237 = vst [vmem:[#allocation45_spill] sm:$0xff] %v17433_v16  ;;  %v14707_v47 = vld [vmem:[#allocation2 + $0xce] ss:$48 sps:$4 sm:$0xff]   ;;  %v11975_v35 = vcombine.high %v11247_v58, %v11251_v57 }
 0x346   : > { %v2294_v51 = vpop.permute.xlu0 %2293  ;;  %v2296_v49 = vpop.permute.xlu1 %2295  ;;  %v17427_v30 = vrot.slane %v11391_v19, %v16780_v34  ;;  %23239 = vst [vmem:[#allocation47_spill] sm:$0xff] %v17446_v27  ;;  %v2523_v63 = vld [vmem:[#allocation2 + $0xf0] sm:$0xff]  ;;  %v11246_v19 = vld [vmem:[#allocation2 + $0xc6] sm:$0xff]  ;;  %v17475_v18 = vrot.slane %v14707_v47, %v16502_v36  ;;  %v2521_v47 = vld [vmem:[#allocation2 + $0xd8] sm:$0xff] }
 0x347   : > { %2463 = vst.msk [vmem:[#allocation2 + $0x126] sm:$0xff] %vm2437_vm4, %v2294_v51  ;;  %v17409_v51 = vrot.slane %v11887_v38, %v16502_v36  ;;  %23234 = vst [vmem:[#allocation42_spill] sm:$0xff] %v17415_v45  ;;  %v11250_v39 = vld [vmem:[#allocation2 + $0xf6] sm:$0xff]  ;;  %v17528_v42 = vld [vmem:[#allocation2 + $0xc1] sm:$0xff] }
 0x348   : > { %2464 = vst.msk [vmem:[#allocation2 + $0x12e] sm:$0x3] %vm2439_vm14, %v2296_v49  ;;  %v17418_v49 = vrot.slane %v11407_v17, %v16780_v34  ;;  %23236 = vst [vmem:[#allocation44_spill] sm:$0xff] %v17427_v30  ;;  %v17441_v17 = vrot.slane %v5566_v54, %v16780_v34  ;;  %v14691_v40 = vld [vmem:[#allocation2 + $0xca] ss:$48 sps:$4 sm:$0xff]   ;;  %v11430_v55 = vcombine.low %v11246_v19, %v11250_v39 }
 0x349   : > { %23233 = vst [vmem:[#allocation41_spill] sm:$0xff] %v17409_v51  ;;  %v11950_v54 = vcombine.low %v17346_v60, %v17409_v51  ;;  %v14723_v51 = vld [vmem:[#allocation2 + $0xc1] ss:$48 sps:$4 sm:$0xff]   ;;  %v17524_v39 = vld [vmem:[#allocation2 + $0xe6] sm:$0xff] }
 0x34a   : > { %v2298_v22 = vpop.permute.xlu0 %2297  ;;  %v2304_v26 = vpop.permute.xlu1 %2303  ;;  %23238 = vst [vmem:[#allocation46_spill] sm:$0xff] %v17441_v17  ;;  %v11252_v15 = vld [vmem:[#allocation2 + $0x10e] sm:$0xff] }
 0x34b   : > { %2465 = vst.msk [vmem:[#allocation2 + $0x13e] sm:$0xff] %vm2437_vm4, %v2298_v22  ;;  %v2519_v22 = vld [vmem:[#allocation2 + $0xc0] sm:$0xff]  ;;  %v2525_v57 = vld [vmem:[#allocation2 + $0x108] sm:$0xff] }
 0x34c   : > { %2468 = vst.msk [vmem:[#allocation2 + $0x15e] sm:$0x3] %vm2439_vm14, %v2304_v26  ;;  %v17452_v26 = vrot.slane %v11935_v25, %v16780_v34  ;;  %v11248_v25 = vld [vmem:[#allocation2 + $0xde] sm:$0xff]  ;;  %v2704_v1 = vcombine.high %v2519_v22, %v2523_v63  ;;  %v4131_v22 = vcombine.high %v17394_v2, %v17412_v24  ;;  %v17491_v63 = vrot.slane %v14675_v14, %v16502_v36  ;;  %v14709_v13 = vld [vmem:[#allocation2 + $0xe6] ss:$48 sps:$4 sm:$0xff]  }
 0x34d   : > { %v14693_v37 = vld [vmem:[#allocation2 + $0xe2] ss:$48 sps:$4 sm:$0xff]   ;;  %v11446_v19 = vcombine.low %v11248_v25, %v11252_v15  ;;  %v2720_v60 = vcombine.high %v2521_v47, %v2525_v57  ;;  %v17505_v15 = vld [vmem:[#allocation2 + $0x79] sm:$0xff]  ;;  %v17507_v14 = vld [vmem:[#allocation2 + $0xa9] sm:$0xff]  ;;  %v17519_v47 = vrot.slane %v11430_v55, %v16502_v36 }
 0x34e   : > { %v2302_v9 = vpop.permute.xlu0 %2301  ;;  %v2300_v38 = vpop.permute.xlu1 %2299  ;;  %23240 = vst [vmem:[#allocation48_spill] sm:$0xff] %v17452_v26  ;;  %v17509_v25 = vld [vmem:[#allocation2 + $0xf1] sm:$0xff]  ;;  %v17516_v57 = vrot.slane %v14693_v37, %v16502_v36  ;;  %v17522_v24 = vrot.slane %v2704_v1, %v16502_v36  ;;  %v17536_v1 = vrot.slane %v14723_v51, %v16502_v36  ;;  %v17539_v4 = vrot.slane %v4131_v22, %v16780_v34  ;;  %v2527_v32 = vld [vmem:[#allocation2 + $0x120] sm:$0xff] }
 0x34f   : > { %2467 = vst.msk [vmem:[#allocation2 + $0x156] sm:$0xff] %vm2437_vm4, %v2302_v9  ;;  %v17526_v2 = vld [vmem:[#allocation2 + $0x116] sm:$0xff]  ;;  %v17542_v23 = vrot.slane %v11446_v19, %v16502_v36  ;;  %v17554_v33 = vrot.slane %v2720_v60, %v16502_v36  ;;  %v17557_v19 = vrot.slane %v14709_v13, %v16502_v36 }
 0x350   : > { %2466 = vst.msk [vmem:[#allocation2 + $0x146] sm:$0x3] %vm2439_vm14, %v2300_v38  ;;  %v17471_v38 = vrot.slane %v2680_v11, %v16780_v34  ;;  %v17483_v11 = vrot.slane %v11950_v54, %v16780_v34  ;;  %v14737_v54 = vld [vmem:[#allocation2 + $0x7a] ss:$48 sps:$4 sm:$0xff]  }
 0x351   : > { %v17549_v52 = vrot.slane %v14737_v54, %v16502_v36 }
 0x352   : > { %v2306_v31 = vpop.permute.xlu0 %2305  ;;  %23241 = vst [vmem:[#allocation49_spill] sm:$0xff] %v17471_v38  ;;  %v2308_v58 = vpop.permute.xlu1 %2307  ;;  %23242 = vst [vmem:[#allocation50_spill] sm:$0xff] %v17483_v11  ;;  %v11256_v27 = vld [vmem:[#allocation2 + $0x13e] sm:$0xff] }
 0x353   : > { %2469 = vst.msk [vmem:[#allocation2 + $0x16e] sm:$0xff] %vm2437_vm4, %v2306_v31  ;;  %v17486_v31 = vrot.slane %v4130_v43, %v16780_v34  ;;  %v17499_v43 = vrot.slane %v14677_v61, %v16502_v36  ;;  %v17513_v61 = vrot.slane %v14691_v40, %v16502_v36  ;;  %v11254_v40 = vld [vmem:[#allocation2 + $0x126] sm:$0xff]  ;;  %v2529_v37 = vld [vmem:[#allocation2 + $0x138] sm:$0xff] }
 0x354   : > { %2470 = vst.msk [vmem:[#allocation2 + $0x176] sm:$0x3] %vm2439_vm14, %v2308_v58  ;;  %v17496_v58 = vrot.slane %v11975_v35, %v16502_v36 }
 0x355   : > { %23243 = vst [vmem:[#allocation51_spill] sm:$0xff] %v17486_v31  ;;  %v2767_v22 = vcombine.low %v17491_v63, %v17499_v43  ;;  %v11510_v11 = vcombine.low %v17513_v61, %v17516_v57  ;;  %v2768_v29 = vcombine.high %v17491_v63, %v17499_v43 }
 0x356   : > { %23244 = vst [vmem:[#allocation52_spill] sm:$0xff] %v17496_v58  ;;  %v2310_v9 = vpop.permute.xlu0 %2309  ;;  %v2312_v35 = vpop.permute.xlu1 %2311  ;;  %v11258_v48 = vld [vmem:[#allocation2 + $0x156] sm:$0xff] }
 0x357   : > { %2471 = vst.msk [vmem:[#allocation2 + $0x186] sm:$0xff] %vm2437_vm4, %v2310_v9  ;;  %v14679_v9 = vld [vmem:[#allocation2 + $0x120] ss:$48 sps:$4 sm:$0xff]   ;;  %v14695_v17 = vld [vmem:[#allocation2 + $0x12a] ss:$48 sps:$4 sm:$0xff]   ;;  %v11462_v60 = vcombine.low %v11254_v40, %v11258_v48  ;;  %v11495_v48 = vcombine.high %v17519_v47, %v17542_v23 }
 0x358   : > { %2472 = vst.msk [vmem:[#allocation2 + $0x18e] sm:$0x3] %vm2439_vm14, %v2312_v35  ;;  %v2531_v31 = vld [vmem:[#allocation2 + $0x150] sm:$0xff]  ;;  %v2743_v13 = vrot.slane %v14679_v9, %v16502_v36  ;;  %v2759_v35 = vrot.slane %v14681_v7, %v16502_v36  ;;  %v11477_v20 = vrot.slane %v14695_v17, %v16502_v36  ;;  %v17582_v17 = vrot.slane %v2767_v22, %v16780_v34 }
 0x359   : > { %v2736_v7 = vcombine.high %v2527_v32, %v2531_v31  ;;  %v17585_v9 = vrot.slane %v11462_v60, %v16502_v36  ;;  %v14711_v40 = vld [vmem:[#allocation2 + $0x12e] ss:$48 sps:$4 sm:$0xff]   ;;  %v17592_v32 = vrot.slane %v11510_v11, %v16780_v34  ;;  %v14725_v11 = vld [vmem:[#allocation2 + $0xd9] ss:$48 sps:$4 sm:$0xff]  }
 0x35a   : > { %v2314_v55 = vpop.permute.xlu0 %2313  ;;  %v2533_v51 = vld [vmem:[#allocation2 + $0x168] sm:$0xff]  ;;  %v2320_v54 = vpop.permute.xlu1 %2319  ;;  %v14697_v46 = vld [vmem:[#allocation2 + $0x142] ss:$48 sps:$4 sm:$0xff]   ;;  %v2799_v63 = vcombine.low %v2743_v13, %v2759_v35  ;;  %v2800_v43 = vcombine.high %v2743_v13, %v2759_v35  ;;  %23245 = vst [vmem:[#allocation53_spill] sm:$0xff] %v17582_v17 }
 0x35b   : > { %v11260_v59 = vld [vmem:[#allocation2 + $0x16e] sm:$0xff]  ;;  %2473 = vst.msk [vmem:[#allocation2 + $0x19e] sm:$0xff] %vm2437_vm4, %v2314_v55  ;;  %v11511_v55 = vcombine.high %v17513_v61, %v17516_v57  ;;  %v2752_v38 = vcombine.high %v2529_v37, %v2533_v51  ;;  %v11493_v26 = vrot.slane %v14697_v46, %v16502_v36  ;;  %v2783_v61 = vcombine.low %v17522_v24, %v17554_v33 }
 0x35c   : > { %v11478_v8 = vcombine.low %v11256_v27, %v11260_v59  ;;  %2476 = vst.msk [vmem:[#allocation2 + $0x1be] sm:$0x3] %vm2439_vm14, %v2320_v54  ;;  %v14713_v59 = vld [vmem:[#allocation2 + $0x146] ss:$48 sps:$4 sm:$0xff]   ;;  %v17589_v37 = vrot.slane %v2799_v63, %v16780_v34  ;;  %23247 = vst [vmem:[#allocation55_spill] sm:$0xff] %v17592_v32  ;;  %v17595_v31 = vrot.slane %v2800_v43, %v16780_v34 }
 0x35d   : > { %v11542_v46 = vcombine.low %v11477_v20, %v11493_v26  ;;  %v17598_v35 = vrot.slane %v2752_v38, %v16502_v36  ;;  %v17609_v22 = vrot.slane %v14713_v59, %v16502_v36  ;;  %v17614_v38 = vrot.slane %v2768_v29, %v16780_v34 }
 0x35e   : > { %v17574_v0 = vrot.slane %v11478_v8, %v16502_v36  ;;  %v2318_v27 = vpop.permute.xlu0 %2317  ;;  %v2316_v57 = vpop.permute.xlu1 %2315  ;;  %v11543_v8 = vcombine.high %v11477_v20, %v11493_v26  ;;  %23246 = vst [vmem:[#allocation54_spill] sm:$0xff] %v17589_v37  ;;  %v2832_v60 = vcombine.high %v17582_v17, %v17589_v37  ;;  %v17617_v13 = vrot.slane %v2736_v7, %v16502_v36  ;;  %v11257_v37 = vld [vmem:[#allocation2 + $0x146] sm:$0xff] }
 0x35f   : > { %2475 = vst.msk [vmem:[#allocation2 + $0x1b6] sm:$0xff] %vm2437_vm4, %v2318_v27  ;;  %v17601_v20 = vrot.slane %v11542_v46, %v16780_v34  ;;  %v12038_v27 = vcombine.low %v17475_v18, %v17557_v19  ;;  %v17625_v43 = vrot.slane %v11511_v55, %v16780_v34  ;;  %v11261_v46 = vld [vmem:[#allocation2 + $0x176] sm:$0xff]  ;;  %v17628_v29 = vrot.slane %v14711_v40, %v16502_v36 }
 0x360   : > { %2474 = vst.msk [vmem:[#allocation2 + $0x1a6] sm:$0x3] %vm2439_vm14, %v2316_v57  ;;  %v17604_v26 = vrot.slane %v11543_v8, %v16780_v34  ;;  %v11527_v51 = vcombine.high %v17585_v9, %v17574_v0  ;;  %v11259_v57 = vld [vmem:[#allocation2 + $0x15e] sm:$0xff]  ;;  %v12039_v7 = vcombine.high %v17475_v18, %v17557_v19  ;;  %v23249_v8 = vcombine.high %v17290_v12, %v17391_v6 }
 0x361   : > { %23248 = vst [vmem:[#allocation56_spill] sm:$0xff] %v17601_v20  ;;  %v11563_v59 = vcombine.high %v17592_v32, %v17601_v20  ;;  %v2833_v17 = vcombine.low %v17614_v38, %v17595_v31  ;;  %v2815_v55 = vcombine.low %v17617_v13, %v17598_v35  ;;  %v23250_v40 = vcombine.high %v17301_v50, %v17415_v45  ;;  %v14729_v50 = vld [vmem:[#allocation2 + $0x139] ss:$48 sps:$4 sm:$0xff]  }
 0x362   : > { %v2322_v54 = vpop.permute.xlu0 %2321  ;;  %v2324_v63 = vpop.permute.xlu1 %2323  ;;  %v11565_v18 = vcombine.high %v17625_v43, %v17604_v26  ;;  %v17648_v19 = vrot.slane %v11527_v51, %v16780_v34  ;;  %v17663_v51 = vrot.slane %v14725_v11, %v16502_v36  ;;  %v17673_v20 = vrot.slane %v12038_v27, %v16780_v34  ;;  %v3988_v11 = vld [vmem:[#allocation2 + $0xd9] sm:$0xff] }
 0x363   : > { %2477 = vst.msk [vmem:[#allocation2 + $0x1ce] sm:$0xff] %vm2437_vm4, %v2322_v54  ;;  %v13615_v54 = vpack.i.bf16 %v2832_v60, %v23249_v8  ;;  %v13775_v32 = vpack.i.bf16 %v11563_v59, %v23250_v40  ;;  %v12070_v60 = vcombine.low %v17628_v29, %v17609_v22  ;;  %v17654_v8 = vrot.slane %v11495_v48, %v16780_v34 }
 0x364   : > { %2478 = vst.msk [vmem:[#allocation2 + $0x1d6] sm:$0x3] %vm2439_vm14, %v2324_v63  ;;  %v23252_v59 = vcombine.high %v17524_v39, %v17526_v2  ;;  %v17670_v48 = vrot.slane %v2783_v61, %v16780_v34  ;;  %23254 = vst [vmem:[#allocation59_spill] sm:$0xff] %v17673_v20  ;;  %v17676_v39 = vrot.slane %v12039_v7, %v16780_v34 }
 0x365   : > { %13616 = vrot.lane.b32.xlu0 %v13615_v54, %s15549_s14  ;;  %23251 = vst [vmem:[#allocation57_spill] sm:$0xff] %v17654_v8  ;;  %13776 = vrot.lane.b32.xlu1 %v13775_v32, %s15504_s28  ;;  %v11255_v54 = vld [vmem:[#allocation2 + $0x12e] sm:$0xff]  ;;  %v12023_v2 = vcombine.high %v11257_v37, %v11261_v46  ;;  %v2834_v61 = vcombine.high %v17614_v38, %v17595_v31 }
 0x366   : > { %v2326_v63 = vpop.permute.xlu0 %2325  ;;  %v17660_v40 = vrot.slane %v23252_v59, %v16502_v36  ;;  %v2328_v6 = vpop.permute.xlu1 %2327  ;;  %v3992_v59 = vld [vmem:[#allocation2 + $0x109] sm:$0xff]  ;;  %v17685_v32 = vrot.slane %v2815_v55, %v16780_v34  ;;  %v12007_v27 = vcombine.high %v11255_v54, %v11259_v57  ;;  %v23256_v7 = vcombine.high %v17304_v53, %v17418_v49 }
 0x367   : > { %2479 = vst.msk [vmem:[#allocation2 + $0x1e6] sm:$0xff] %vm2437_vm4, %v2326_v63  ;;  %v23255_v63 = vcombine.low %v17293_v5, %v17404_v44  ;;  %v11560_v46 = vcombine.low %v17654_v8, %v17648_v19  ;;  %v2784_v31 = vcombine.high %v17522_v24, %v17554_v33  ;;  %v23258_v57 = vcombine.high %v17505_v15, %v17507_v14  ;;  %v14727_v33 = vld [vmem:[#allocation2 + $0x121] ss:$48 sps:$4 sm:$0xff]  }
 0x368   : > { %23253 = vst [vmem:[#allocation58_spill] sm:$0xff] %v17660_v40  ;;  %2480 = vst.msk [vmem:[#allocation2 + $0x1ee] sm:$0x3] %vm2439_vm14, %v2328_v6  ;;  %v13785_v37 = vpack.i.bf16 %v11565_v18, %v23256_v7  ;;  %v17693_v6 = vrot.slane %v12070_v60, %v16780_v34  ;;  %v12054_v38 = vcombine.low %v17496_v58, %v17660_v40  ;;  %v14769_v58 = vld [vmem:[#allocation2 + $0x126] ss:$48 sps:$4 sm:$0xff]  }
 0x369   : > { %v13620_v12 = vpack.i.bf16 %v2833_v17, %v23255_v63  ;;  %v12071_v17 = vcombine.high %v17628_v29, %v17609_v22  ;;  %v17706_v55 = vrot.slane %v23258_v57, %v16502_v36  ;;  %v4187_v18 = vcombine.high %v3988_v11, %v3992_v59  ;;  %v4000_v22 = vld [vmem:[#allocation2 + $0x169] sm:$0xff] }
 0x36a   : > { %23257 = vst [vmem:[#allocation60_spill] sm:$0xff] %v17693_v6  ;;  %v2330_v63 = vpop.permute.xlu0 %2329  ;;  %v2336_v60 = vpop.permute.xlu1 %2335  ;;  %13786 = vrot.lane.b32.xlu1 %v13785_v37, %s23052_s16  ;;  %v4234_v24 = vcombine.low %v17536_v1, %v17663_v51  ;;  %v4235_v29 = vcombine.high %v17536_v1, %v17663_v51  ;;  %v23260_v15 = vcombine.high %v17528_v42, %v17509_v25  ;;  %v3996_v51 = vld [vmem:[#allocation2 + $0x139] sm:$0xff]  ;;  %v23285_v40 = vld [vmem:[#allocation32_spill] sm:$0xff] }
 0x36b   : > { %13621 = vrot.lane.b32.xlu0 %v13620_v12, %s15534_s7  ;;  %2481 = vst.msk [vmem:[#allocation2 + $0x1fe] sm:$0xff] %vm2437_vm4, %v2330_v63  ;;  %v17711_v12 = vrot.slane %v12023_v2, %v16502_v36  ;;  %v23261_v54 = vcombine.high %v17293_v5, %v17404_v44  ;;  %v2835_v11 = vcombine.low %v17670_v48, %v17685_v32  ;;  %v3998_v44 = vld [vmem:[#allocation2 + $0x151] sm:$0xff] }
 0x36c   : > { %v17721_v14 = vrot.slane %v23260_v15, %v16502_v36  ;;  %2484 = vst.msk [vmem:[#allocation2 + $0x21e] sm:$0x3] %vm2439_vm14, %v2336_v60  ;;  %v2816_v59 = vcombine.high %v17617_v13, %v17598_v35  ;;  %v17732_v1 = vrot.slane %v12007_v27, %v16502_v36  ;;  %v23263_v42 = vcombine.low %v17310_v10, %v17427_v30 }
 0x36d   : > { %23259 = vst [vmem:[#allocation61_spill] sm:$0xff] %v17711_v12  ;;  %v13625_v2 = vpack.i.bf16 %v2834_v61, %v23261_v54  ;;  %v12102_v7 = vcombine.low %v17673_v20, %v17693_v6  ;;  %v17740_v5 = vrot.slane %v12071_v17, %v16780_v34  ;;  %v4226_v61 = vrot.slane %v14729_v50, %v16502_v36 }
 0x36e   : > { %23262 = vst [vmem:[#allocation62_spill] sm:$0xff] %v17732_v1  ;;  %v13795_v25 = vpack.i.bf16 %v11560_v46, %v23263_v42  ;;  %v2334_v37 = vpop.permute.xlu0 %2333  ;;  %v17745_v35 = vrot.slane %v2784_v31, %v16780_v34  ;;  %v4146_v13 = vcombine.low %v17397_v21, %v17706_v55  ;;  %v17750_v27 = vrot.slane %v4187_v18, %v16502_v36  ;;  %v2332_v17 = vpop.permute.xlu1 %2331  ;;  %v3994_v31 = vld [vmem:[#allocation2 + $0x121] sm:$0xff] }
 0x36f   : > { %13626 = vrot.lane.b32.xlu0 %v13625_v2, %s15550_s17  ;;  %v4219_v46 = vcombine.high %v3996_v51, %v4000_v22  ;;  %2483 = vst.msk [vmem:[#allocation2 + $0x216] sm:$0xff] %vm2437_vm4, %v2334_v37  ;;  %v17755_v50 = vrot.slane %v12054_v38, %v16780_v34  ;;  %v12086_v63 = vcombine.low %v17732_v1, %v17711_v12  ;;  %v14739_v18 = vld [vmem:[#allocation2 + $0xc2] ss:$48 sps:$4 sm:$0xff]   ;;  %v14745_v51 = vld [vmem:[#allocation2 + $0x13a] ss:$48 sps:$4 sm:$0xff]  }
 0x370   : > { %13796 = vrot.lane.b32.xlu1 %v13795_v25, %s15534_s7  ;;  %v4210_v57 = vrot.slane %v14727_v33, %v16502_v36  ;;  %v4147_v60 = vcombine.high %v17397_v21, %v17706_v55  ;;  %2482 = vst.msk [vmem:[#allocation2 + $0x206] sm:$0x3] %vm2439_vm14, %v2332_v17  ;;  %v23265_v22 = vcombine.low %v17313_v3, %v17430_v41 }
 0x371   : > { %23264 = vst [vmem:[#allocation63_spill] sm:$0xff] %v17755_v50  ;;  %v2836_v38 = vcombine.high %v17670_v48, %v17685_v32  ;;  %v17769_v54 = vrot.slane %v2816_v59, %v16780_v34  ;;  %v4203_v2 = vcombine.high %v3994_v31, %v3998_v44  ;;  %v23266_v33 = vcombine.low %v17317_v62, %v17433_v16 }
 0x372   : > { %v13630_v15 = vpack.i.bf16 %v2835_v11, %v23265_v22  ;;  %v12104_v21 = vcombine.low %v17676_v39, %v17740_v5  ;;  %v4266_v55 = vcombine.low %v4210_v57, %v4226_v61  ;;  %v4267_v25 = vcombine.high %v4210_v57, %v4226_v61  ;;  %v2338_v37 = vpop.permute.xlu0 %2337  ;;  %v14743_v22 = vld [vmem:[#allocation2 + $0x122] ss:$48 sps:$4 sm:$0xff]  }
 0x373   : > { %v13970_v42 = vpack.i.bf16 %v12102_v7, %v23266_v33  ;;  %v17778_v48 = vrot.slane %v4234_v24, %v16780_v34  ;;  %v17781_v32 = vrot.slane %v4146_v13, %v16780_v34  ;;  %v17784_v11 = vrot.slane %v4219_v46, %v16502_v36  ;;  %2485 = vst.msk [vmem:[#allocation2 + $0x22e] sm:$0xff] %vm2437_vm4, %v2338_v37  ;;  %v2340_v7 = vpop.permute.xlu1 %2339  ;;  %v14741_v46 = vld [vmem:[#allocation2 + $0xda] ss:$48 sps:$4 sm:$0xff]   ;;  %v23271_v33 = vld [vmem:[#allocation48_spill] sm:$0xff] }
 0x374   : > { %13631 = vrot.lane.b32.xlu0 %v13630_v15, %s22948_s11  ;;  %v4250_v59 = vcombine.low %v17721_v14, %v17750_v27  ;;  %v17791_v44 = vrot.slane %v12086_v63, %v16780_v34  ;;  %v17794_v24 = vrot.slane %v4235_v29, %v16780_v34  ;;  %v5582_v61 = vcombine.low %v17421_v28, %v17549_v52  ;;  %v23270_v15 = vld [vmem:[#allocation28_spill] sm:$0xff] }
 0x375   : > { %23267 = vst [vmem:[#allocation64_spill] sm:$0xff] %v17778_v48  ;;  %13971 = vrot.lane.b32.xlu1 %v13970_v42, %s15530_s10  ;;  %v17799_v13 = vrot.slane %v14739_v18, %v16502_v36  ;;  %2486 = vst.msk [vmem:[#allocation2 + $0x236] sm:$0x3] %vm2439_vm14, %v2340_v7  ;;  %v23269_v17 = vcombine.high %v17313_v3, %v17430_v41  ;;  %v2837_v63 = vcombine.low %v17745_v35, %v17769_v54 }
 0x376   : > { %23268 = vst [vmem:[#allocation65_spill] sm:$0xff] %v17791_v44  ;;  %v4217_v57 = vrot.slane %v4203_v2, %v16502_v36  ;;  %v17809_v29 = vrot.slane %v4147_v60, %v16780_v34  ;;  %v23272_v18 = vcombine.low %v23270_v15, %v23271_v33  ;;  %v12105_v37 = vcombine.high %v17676_v39, %v17740_v5  ;;  %v2342_v41 = vpop.permute.xlu0 %2341 }
 0x377   : > { %v13635_v31 = vpack.i.bf16 %v2836_v38, %v23269_v17  ;;  %v17817_v7 = vrot.slane %v4266_v55, %v16780_v34  ;;  %v4281_v3 = vrot.slane %v4267_v25, %v16780_v34  ;;  %v23274_v38 = vld [vmem:[#allocation38_spill] sm:$0xff]  ;;  %v17824_v2 = vrot.slane %v4250_v59, %v16780_v34  ;;  %2487 = vst.msk [vmem:[#allocation2 + $0x246] sm:$0xff] %vm2437_vm4, %v2342_v41  ;;  %v2344_v39 = vpop.permute.xlu1 %2343 }
 0x378   : > { %v13980_v42 = vpack.i.bf16 %v12104_v21, %v23272_v18  ;;  %v4282_v17 = vcombine.low %v4217_v57, %v17784_v11  ;;  %v5678_v21 = vrot.slane %v14745_v51, %v16502_v36  ;;  %v2838_v5 = vcombine.high %v17745_v35, %v17769_v54  ;;  %2488 = vst.msk [vmem:[#allocation2 + $0x24e] sm:$0x3] %vm2439_vm14, %v2344_v39  ;;  %v23275_v51 = vld [vmem:[#allocation29_spill] sm:$0xff] }
 0x379   : > { %23273 = vst [vmem:[#allocation28_spill] sm:$0xff] %v17817_v7  ;;  %13636 = vrot.lane.b32.xlu0 %v13635_v31, %s15504_s28  ;;  %v12107_v55 = vcombine.high %v17755_v50, %v17791_v44  ;;  %v4251_v59 = vcombine.high %v17721_v14, %v17750_v27  ;;  %v23276_v31 = vld [vmem:[#allocation49_spill] sm:$0xff]  ;;  %v5646_v60 = vrot.slane %v14741_v46, %v16502_v36  ;;  %v23279_v46 = vld [vmem:[#allocation40_spill] sm:$0xff] }
 0x37a   : > { %13981 = vrot.lane.b32.xlu1 %v13980_v42, %s15511_s6  ;;  %v23277_v18 = vcombine.low %v23275_v51, %v23276_v31  ;;  %v4283_v42 = vcombine.high %v4217_v57, %v17784_v11  ;;  %v5662_v35 = vrot.slane %v14743_v22, %v16502_v36  ;;  %v23278_v54 = vcombine.high %v23270_v15, %v23271_v33  ;;  %v2346_v39 = vpop.permute.xlu0 %2345  ;;  %v14766_v15 = vld [vmem:[#allocation2 + $0x7e] ss:$48 sps:$4 sm:$0xff]   ;;  %v23290_v50 = vld [vmem:[#allocation36_spill] sm:$0xff] }
 0x37b   : > { %v4299_v25 = vcombine.high %v17778_v48, %v17817_v7  ;;  %v4300_v14 = vcombine.low %v17794_v24, %v4281_v3  ;;  %v4301_v27 = vcombine.high %v17794_v24, %v4281_v3  ;;  %v4290_v11 = vrot.slane %v4282_v17, %v16780_v34  ;;  %2489 = vst.msk [vmem:[#allocation2 + $0x25e] sm:$0xff] %vm2437_vm4, %v2346_v39  ;;  %v2352_v33 = vpop.permute.xlu1 %2351  ;;  %v23283_v39 = vld [vmem:[#allocation50_spill] sm:$0xff] }
 0x37c   : > { %v13640_v41 = vpack.i.bf16 %v2837_v63, %v23277_v18  ;;  %v13985_v1 = vpack.i.bf16 %v12105_v37, %v23278_v54  ;;  %v17857_v57 = vrot.slane %v5582_v61, %v16780_v34  ;;  %v5718_v22 = vcombine.low %v5662_v35, %v5678_v21  ;;  %v14768_v18 = vld [vmem:[#allocation2 + $0xde] ss:$48 sps:$4 sm:$0xff]   ;;  %2492 = vst.msk [vmem:[#allocation2 + $0x27e] sm:$0x3] %vm2439_vm14, %v2352_v33 }
 0x37d   : > { %v23281_v24 = vcombine.high %v23275_v51, %v23276_v31  ;;  %v4169_v3 = vcombine.high %v23279_v46, %v17809_v29  ;;  %v5583_v17 = vcombine.high %v17421_v28, %v17549_v52  ;;  %v5719_v61 = vcombine.high %v5662_v35, %v5678_v21  ;;  %v23282_v54 = vld [vmem:[#allocation31_spill] sm:$0xff] }
 0x37e   : > { %13641 = vrot.lane.b32.xlu0 %v13640_v41, %s15552_s8  ;;  %23280 = vst [vmem:[#allocation48_spill] sm:$0xff] %v17857_v57  ;;  %13986 = vrot.lane.b32.xlu1 %v13985_v1, %s15553_s26  ;;  %v14770_v41 = vld [vmem:[#allocation2 + $0x13e] ss:$48 sps:$4 sm:$0xff]   ;;  %v23284_v63 = vcombine.high %v23282_v54, %v23283_v39  ;;  %v4265_v1 = vrot.slane %v4251_v59, %v16780_v34  ;;  %v14749_v31 = vld [vmem:[#allocation2 + $0x198] ss:$48 sps:$4 sm:$0xff]   ;;  %v2350_v54 = vpop.permute.xlu0 %2349 }
 0x37f   : > { %v13645_v37 = vpack.i.bf16 %v2838_v5, %v23281_v24  ;;  %v4297_v51 = vrot.slane %v4283_v42, %v16780_v34  ;;  %v5686_v5 = vcombine.low %v17799_v13, %v5646_v60  ;;  %v14767_v24 = vld [vmem:[#allocation2 + $0xc6] ss:$48 sps:$4 sm:$0xff]   ;;  %v23286_v52 = vld [vmem:[#allocation51_spill] sm:$0xff]  ;;  %v23288_v35 = vcombine.low %v17341_v56, %v17539_v4  ;;  %2491 = vst.msk [vmem:[#allocation2 + $0x276] sm:$0xff] %vm2437_vm4, %v2350_v54 }
 0x380   : > { %v13995_v12 = vpack.i.bf16 %v12107_v55, %v23284_v63  ;;  %v23287_v28 = vcombine.high %v23285_v40, %v23286_v52  ;;  %v23289_v55 = vcombine.high %v17341_v56, %v17539_v4  ;;  %v5687_v59 = vcombine.high %v17799_v13, %v5646_v60  ;;  %v14747_v42 = vld [vmem:[#allocation2 + $0x180] ss:$48 sps:$4 sm:$0xff]   ;;  %v2348_v4 = vpop.permute.xlu1 %2347  ;;  %v14753_v54 = vld [vmem:[#allocation2 + $0x1f8] ss:$48 sps:$4 sm:$0xff]  }
 0x381   : > { %v13655_v33 = vpack.i.bf16 %v4300_v14, %v23288_v35  ;;  %v4302_v39 = vcombine.low %v17824_v2, %v4290_v11  ;;  %v17895_v14 = vrot.slane %v14766_v15, %v16502_v36  ;;  %v4303_v56 = vcombine.high %v17824_v2, %v4290_v11  ;;  %2490 = vst.msk [vmem:[#allocation2 + $0x266] sm:$0x3] %vm2439_vm14, %v2348_v4  ;;  %v14816_v40 = vld [vmem:[#allocation2 + $0xdf] ss:$48 sps:$4 sm:$0xff]  }
 0x382   : > { %v13650_v21 = vpack.i.bf16 %v4299_v25, %v23287_v28  ;;  %v17884_v63 = vpack.i.bf16 %v4301_v27, %v23289_v55  ;;  %13646 = vrot.lane.b32.xlu0 %v13645_v37, %s23052_s16  ;;  %v5615_v25 = vcombine.high %v23290_v50, %v17857_v57  ;;  %v17892_v28 = vrot.slane %v5718_v22, %v16780_v34  ;;  %v14797_v57 = vld [vmem:[#allocation2 + $0x199] ss:$48 sps:$4 sm:$0xff]  }
 0x383   : > { %13996 = vrot.lane.b32.xlu1 %v13995_v12, %s15537_s9  ;;  %v5597_v13 = vrot.slane %v5583_v17, %v16780_v34  ;;  %v5733_v60 = vrot.slane %v5719_v61, %v16780_v34  ;;  %v17903_v27 = vrot.slane %v14770_v41, %v16502_v36  ;;  %v4304_v22 = vcombine.low %v4265_v1, %v4297_v51  ;;  %v2354_v41 = vpop.permute.xlu0 %2353 }
 0x384   : > { %23291 = vst [vmem:[#allocation38_spill] sm:$0xff] %v17892_v28  ;;  %v17907_v15 = vrot.slane %v5686_v5, %v16780_v34  ;;  %v2863_v37 = vrot.slane %v14749_v31, %v16502_v36  ;;  %v17911_v12 = vrot.slane %v14768_v18, %v16502_v36  ;;  %v4305_v2 = vcombine.high %v4265_v1, %v4297_v51  ;;  %v23294_v18 = vld [vmem:[#allocation43_spill] sm:$0xff]  ;;  %v2356_v55 = vpop.permute.xlu1 %2355 }
 0x385   : > { %v5701_v11 = vrot.slane %v5687_v59, %v16780_v34  ;;  %v2847_v17 = vrot.slane %v14747_v42, %v16502_v36  ;;  %v5669_v61 = vrot.slane %v14769_v58, %v16502_v36  ;;  %v23293_v5 = vcombine.low %v23274_v38, %v17781_v32  ;;  %2493 = vst.msk [vmem:[#allocation2 + $0x28e] sm:$0xff] %vm2437_vm4, %v2354_v41 }
 0x386   : > { %23292 = vst [vmem:[#allocation29_spill] sm:$0xff] %v17907_v15  ;;  %13651 = vrot.lane.b32.xlu0 %v13650_v21, %s15549_s14  ;;  %v5751_v31 = vcombine.high %v17907_v15, %v17892_v28  ;;  %v5598_v1 = vcombine.low %v23294_v18, %v17895_v14  ;;  %v5637_v51 = vrot.slane %v14767_v24, %v16502_v36  ;;  %2494 = vst.msk [vmem:[#allocation2 + $0x296] sm:$0x3] %vm2439_vm14, %v2356_v55  ;;  %v23297_v24 = vld [vmem:[#allocation37_spill] sm:$0xff] }
 0x387   : > { %v17920_v35 = vpack.i.bf16 %v4302_v39, %v23293_v5  ;;  %v23295_v58 = vcombine.high %v23274_v38, %v17781_v32  ;;  %v5752_v59 = vcombine.low %v5701_v11, %v5733_v60  ;;  %v5753_v42 = vcombine.high %v5701_v11, %v5733_v60  ;;  %v14751_v39 = vld [vmem:[#allocation2 + $0x1e0] ss:$48 sps:$4 sm:$0xff]   ;;  %v14774_v11 = vld [vmem:[#allocation2 + $0x1fc] ss:$48 sps:$4 sm:$0xff]   ;;  %v2358_v55 = vpop.permute.xlu0 %2357 }
 0x388   : > { %v5734_v4 = vcombine.low %v5669_v61, %v17903_v27  ;;  %v23296_v5 = vcombine.low %v23279_v46, %v17809_v29  ;;  %v5616_v41 = vcombine.low %v23297_v24, %v5597_v13  ;;  %v2903_v62 = vcombine.low %v2847_v17, %v2863_v37  ;;  %2495 = vst.msk [vmem:[#allocation2 + $0x2a6] sm:$0xff] %vm2437_vm4, %v2358_v55 }
 0x389   : > { %v17931_v21 = vpack.i.bf16 %v4303_v56, %v23295_v58  ;;  %v5702_v16 = vcombine.low %v5637_v51, %v17911_v12  ;;  %v17942_v32 = vpack.i.bf16 %v4305_v2, %v4169_v3  ;;  %v5617_v38 = vcombine.high %v23297_v24, %v5597_v13  ;;  %v14785_v3 = vld [vmem:[#allocation2 + $0x7b] ss:$48 sps:$4 sm:$0xff]   ;;  %v2360_v13 = vpop.permute.xlu1 %2359 }
 0x38a   : > { %v17938_v44 = vpack.i.bf16 %v4304_v22, %v23296_v5  ;;  %v2895_v56 = vrot.slane %v14753_v54, %v16502_v36  ;;  %v5599_v60 = vcombine.high %v23294_v18, %v17895_v14  ;;  %13656 = vrot.lane.b32.xlu0 %v13655_v33, %s15534_s7  ;;  %v17949_v29 = vpack.i.bf16 %v5751_v31, %v5615_v25  ;;  %v14772_v33 = vld [vmem:[#allocation2 + $0x19c] ss:$48 sps:$4 sm:$0xff]   ;;  %v14773_v25 = vld [vmem:[#allocation2 + $0x1e4] ss:$48 sps:$4 sm:$0xff]  }
 0x38b   : > { %v5606_v46 = vrot.slane %v5598_v1, %v16780_v34  ;;  %v2904_v22 = vcombine.high %v2847_v17, %v2863_v37  ;;  %v5735_v58 = vcombine.high %v5669_v61, %v17903_v27  ;;  %v17954_v2 = vpack.i.bf16 %v5752_v59, %v5616_v41  ;;  %2496 = vst.msk [vmem:[#allocation2 + $0x2ae] sm:$0x3] %vm2439_vm14, %v2360_v13  ;;  %v23299_v17 = vld [vmem:[#allocation22_spill] sm:$0xff] }
 0x38c   : > { %v17956_v54 = vpack.i.bf16 %v5753_v42, %v5617_v38  ;;  %v2879_v14 = vrot.slane %v14751_v39, %v16502_v36  ;;  %v5742_v18 = vrot.slane %v5734_v4, %v16780_v34  ;;  %v17962_v37 = vrot.slane %v2903_v62, %v16780_v34  ;;  %v23300_v61 = vld [vmem:[#allocation30_spill] sm:$0xff]  ;;  %v14793_v39 = vld [vmem:[#allocation2 + $0x13b] ss:$48 sps:$4 sm:$0xff]   ;;  %v2362_v38 = vpop.permute.xlu0 %2361 }
 0x38d   : > { %v5710_v27 = vrot.slane %v5702_v16, %v16780_v34  ;;  %v23301_v31 = vcombine.high %v23299_v17, %v23300_v61  ;;  %v5703_v59 = vcombine.high %v5637_v51, %v17911_v12  ;;  %v14771_v42 = vld [vmem:[#allocation2 + $0x184] ss:$48 sps:$4 sm:$0xff]   ;;  %v5613_v24 = vrot.slane %v5599_v60, %v16780_v34  ;;  %2497 = vst.msk [vmem:[#allocation2 + $0x2be] sm:$0xff] %vm2437_vm4, %v2362_v38  ;;  %v2368_v60 = vpop.permute.xlu1 %2367  ;;  %v14776_v28 = vld [vmem:[#allocation2 + $0x25c] ss:$48 sps:$4 sm:$0xff]  }
 0x38e   : > { %23298 = vst [vmem:[#allocation49_spill] sm:$0xff] %v17962_v37  ;;  %v2935_v4 = vcombine.low %v2879_v14, %v2895_v56  ;;  %v2936_v5 = vcombine.high %v2879_v14, %v2895_v56  ;;  %v17974_v41 = vrot.slane %v14774_v11, %v16502_v36  ;;  %v14783_v62 = vld [vmem:[#allocation2 + $0x63] ss:$48 sps:$4 sm:$0xff]   ;;  %13661 = vrot.lane.b32.xlu0 %v17884_v63, %s15550_s17  ;;  %v14789_v56 = vld [vmem:[#allocation2 + $0xdb] ss:$48 sps:$4 sm:$0xff]  }
 0x38f   : > { %v17969_v1 = vrot.slane %v23301_v31, %v16780_v34  ;;  %v23302_v16 = vld [vmem:[#allocation46_spill] sm:$0xff]  ;;  %v17980_v13 = vrot.slane %v2904_v22, %v16780_v34  ;;  %v5749_v51 = vrot.slane %v5735_v58, %v16780_v34  ;;  %v5754_v11 = vcombine.low %v5710_v27, %v5742_v18  ;;  %2500 = vst.msk [vmem:[#allocation2 + $0x2de] sm:$0x3] %vm2439_vm14, %v2368_v60 }
 0x390   : > { %v5618_v55 = vcombine.low %v23302_v16, %v5606_v46  ;;  %v5619_v12 = vcombine.high %v23302_v16, %v5606_v46  ;;  %v14791_v14 = vld [vmem:[#allocation2 + $0x123] ss:$48 sps:$4 sm:$0xff]   ;;  %v5755_v17 = vcombine.high %v5710_v27, %v5742_v18  ;;  %v17986_v61 = vrot.slane %v14772_v33, %v16502_v36 }
 0x391   : > { %v17989_v63 = vrot.slane %v14773_v25, %v16502_v36  ;;  %v5717_v22 = vrot.slane %v5703_v59, %v16780_v34  ;;  %v17994_v46 = vrot.slane %v14771_v42, %v16502_v36  ;;  %v17997_v58 = vrot.slane %v14785_v3, %v16502_v36  ;;  %v14787_v31 = vld [vmem:[#allocation2 + $0xc3] ss:$48 sps:$4 sm:$0xff]   ;;  %v2366_v59 = vpop.permute.xlu0 %2365 }
 0x392   : > { %v18000_v38 = vrot.slane %v14793_v39, %v16502_v36  ;;  %v18003_v18 = vrot.slane %v2935_v4, %v16780_v34  ;;  %v18006_v33 = vrot.slane %v2936_v5, %v16780_v34  ;;  %v5620_v25 = vcombine.low %v17969_v1, %v5613_v24  ;;  %13666 = vrot.lane.b32.xlu0 %v17920_v35, %s22948_s11  ;;  %v2364_v5 = vpop.permute.xlu1 %2363  ;;  %v14755_v35 = vld [vmem:[#allocation2 + $0x240] ss:$48 sps:$4 sm:$0xff]  }
 0x393   : > { %v2951_v27 = vcombine.low %v17989_v63, %v17974_v41  ;;  %v5756_v3 = vcombine.low %v5717_v22, %v5749_v51  ;;  %v6978_v42 = vrot.slane %v14783_v62, %v16502_v36  ;;  %v7098_v39 = vrot.slane %v14789_v56, %v16502_v36  ;;  %2499 = vst.msk [vmem:[#allocation2 + $0x2d6] sm:$0xff] %vm2437_vm4, %v2366_v59 }
 0x394   : > { %23303 = vst [vmem:[#allocation40_spill] sm:$0xff] %v18003_v18  ;;  %v7114_v4 = vrot.slane %v14791_v14, %v16502_v36  ;;  %v18017_v16 = vpack.i.bf16 %v5754_v11, %v5618_v55  ;;  %v18019_v60 = vpack.i.bf16 %v5755_v17, %v5619_v12  ;;  %v2919_v20 = vcombine.low %v17994_v46, %v17986_v61  ;;  %v14757_v12 = vld [vmem:[#allocation2 + $0x258] ss:$48 sps:$4 sm:$0xff]  }
 0x395   : > { %v5757_v6 = vcombine.high %v5717_v22, %v5749_v51  ;;  %2498 = vst.msk [vmem:[#allocation2 + $0x2c6] sm:$0x3] %vm2439_vm14, %v2364_v5  ;;  %v5621_v62 = vcombine.high %v17969_v1, %v5613_v24  ;;  %v7034_v56 = vcombine.low %v6978_v42, %v17997_v58  ;;  %v7082_v14 = vrot.slane %v14787_v31, %v16502_v36  ;;  %v14775_v1 = vld [vmem:[#allocation2 + $0x244] ss:$48 sps:$4 sm:$0xff]   ;;  %v2370_v24 = vpop.permute.xlu0 %2369  ;;  %v23304_v31 = vld [vmem:[#allocation47_spill] sm:$0xff] }
 0x396   : > { %v7170_v59 = vcombine.low %v7114_v4, %v18000_v38  ;;  %v18035_v17 = vrot.slane %v2951_v27, %v16780_v34  ;;  %13671 = vrot.lane.b32.xlu0 %v17931_v21, %s15504_s28  ;;  %v18039_v22 = vpack.i.bf16 %v5756_v3, %v5620_v25  ;;  %v23305_v5 = vld [vmem:[#allocation23_spill] sm:$0xff]  ;;  %v2952_v11 = vcombine.high %v17989_v63, %v17974_v41  ;;  %v2372_v51 = vpop.permute.xlu1 %2371 }
 0x397   : > { %v7002_v55 = vcombine.low %v23305_v5, %v23304_v31  ;;  %v7138_v15 = vcombine.low %v7082_v14, %v7098_v39  ;;  %2501 = vst.msk [vmem:[#allocation2 + $0x2ee] sm:$0xff] %vm2437_vm4, %v2370_v24  ;;  %v18047_v27 = vrot.slane %v2919_v20, %v16780_v34  ;;  %v18049_v50 = vpack.i.bf16 %v5757_v6, %v5621_v62  ;;  %v14795_v3 = vld [vmem:[#allocation2 + $0x181] ss:$48 sps:$4 sm:$0xff]  }
 0x398   : > { %v7035_v21 = vcombine.high %v6978_v42, %v17997_v58  ;;  %v7171_v25 = vcombine.high %v7114_v4, %v18000_v38  ;;  %2502 = vst.msk [vmem:[#allocation2 + $0x2f6] sm:$0x3] %vm2439_vm14, %v2372_v51  ;;  %v18055_v48 = vrot.slane %v7034_v56, %v16780_v34  ;;  %v18058_v41 = vrot.slane %v7170_v59, %v16780_v34  ;;  %v14801_v56 = vld [vmem:[#allocation2 + $0x1f9] ss:$48 sps:$4 sm:$0xff]   ;;  %v14814_v58 = vld [vmem:[#allocation2 + $0x7f] ss:$48 sps:$4 sm:$0xff]  }
 0x399   : > { %v2920_v20 = vcombine.high %v17994_v46, %v17986_v61  ;;  %v7003_v6 = vcombine.high %v23305_v5, %v23304_v31  ;;  %v2999_v63 = vrot.slane %v14757_v12, %v16502_v36  ;;  %v7139_v42 = vcombine.high %v7082_v14, %v7098_v39  ;;  %v14761_v5 = vld [vmem:[#allocation2 + $0x2b8] ss:$48 sps:$4 sm:$0xff]  }
 0x39a   : > { %23306 = vst [vmem:[#allocation43_spill] sm:$0xff] %v18055_v48  ;;  %23307 = vst [vmem:[#allocation37_spill] sm:$0xff] %v18058_v41  ;;  %13676 = vrot.lane.b32.xlu0 %v17938_v44, %s15552_s8  ;;  %v2983_v4 = vrot.slane %v14755_v35, %v16502_v36  ;;  %v18073_v62 = vrot.slane %v7002_v55, %v16780_v34  ;;  %v18076_v61 = vrot.slane %v7138_v15, %v16780_v34  ;;  %v14759_v35 = vld [vmem:[#allocation2 + $0x2a0] ss:$48 sps:$4 sm:$0xff]   ;;  %vm3945_vm4 = vcmask 932864  }
 0x39b   : > { %v18079_v46 = vrot.slane %v2952_v11, %v16780_v34  ;;  %v2990_v59 = vrot.slane %v14775_v1, %v16502_v36  ;;  %v3006_v12 = vrot.slane %v14776_v28, %v16502_v36  ;;  %v18084_v39 = vrot.slane %v7035_v21, %v16780_v34  ;;  %v14799_v28 = vld [vmem:[#allocation2 + $0x1e1] ss:$48 sps:$4 sm:$0xff]  }
 0x39c   : > { %23308 = vst [vmem:[#allocation22_spill] sm:$0xff] %v18073_v62  ;;  %23309 = vst [vmem:[#allocation30_spill] sm:$0xff] %v18076_v61  ;;  %v18087_v44 = vrot.slane %v7171_v25, %v16780_v34  ;;  %v7067_v14 = vcombine.high %v18073_v62, %v18055_v48  ;;  %v7203_v15 = vcombine.high %v18076_v61, %v18058_v41  ;;  %v14818_v62 = vld [vmem:[#allocation2 + $0x13f] ss:$48 sps:$4 sm:$0xff]   ;;  %v14811_v48 = vld [vmem:[#allocation2 + $0x7] ss:$48 sps:$4 sm:$0xff]  }
 0x39d   : > { %v18094_v55 = vrot.slane %v2920_v20, %v16780_v34  ;;  %v18097_v11 = vrot.slane %v7003_v6, %v16780_v34  ;;  %v3039_v51 = vcombine.low %v2983_v4, %v2999_v63  ;;  %v18100_v1 = vrot.slane %v7139_v42, %v16780_v34  ;;  %v14805_v20 = vld [vmem:[#allocation2 + $0x259] ss:$48 sps:$4 sm:$0xff]  }
 0x39e   : > { %v18103_v24 = vrot.slane %v14795_v3, %v16502_v36  ;;  %v18106_v31 = vrot.slane %v14797_v57, %v16502_v36  ;;  %13681 = vrot.lane.b32.xlu0 %v17942_v32, %s23052_s16  ;;  %v3040_v21 = vcombine.high %v2983_v4, %v2999_v63  ;;  %v18115_v6 = vrot.slane %v14801_v56, %v16502_v36  ;;  %v14812_v32 = vld [vmem:[#allocation2 + $0x1f] ss:$48 sps:$4 sm:$0xff]  }
 0x39f   : > { %v3055_v42 = vcombine.low %v2990_v59, %v3006_v12  ;;  %v3056_v3 = vcombine.high %v2990_v59, %v3006_v12  ;;  %v7068_v57 = vcombine.low %v18097_v11, %v18084_v39  ;;  %v7204_v38 = vcombine.low %v18100_v1, %v18087_v44  ;;  %v14778_v25 = vld [vmem:[#allocation2 + $0x2bc] ss:$48 sps:$4 sm:$0xff]  }
 0x3a0   : > { %v3015_v63 = vrot.slane %v14759_v35, %v16502_v36  ;;  %v3031_v4 = vrot.slane %v14761_v5, %v16502_v36  ;;  %v18123_v61 = vpack.i.bf16 %v7203_v15, %v7067_v14  ;;  %v18126_v56 = vrot.slane %v14799_v28, %v16502_v36  ;;  %v14813_v5 = vld [vmem:[#allocation2 + $0x67] ss:$48 sps:$4 sm:$0xff]  }
 0x3a1   : > { %v18129_v59 = vrot.slane %v3039_v51, %v16780_v34  ;;  %v7069_v12 = vcombine.high %v18097_v11, %v18084_v39  ;;  %v7205_v41 = vcombine.high %v18100_v1, %v18087_v44  ;;  %v4370_v35 = vcombine.low %v18103_v24, %v18106_v31  ;;  %v14777_v51 = vld [vmem:[#allocation2 + $0x2a4] ss:$48 sps:$4 sm:$0xff]  }
 0x3a2   : > { %13686 = vrot.lane.b32.xlu0 %v17949_v29, %s15549_s14  ;;  %v3071_v14 = vcombine.low %v3015_v63, %v3031_v4  ;;  %v18140_v15 = vrot.slane %v3040_v21, %v16780_v34  ;;  %v3072_v28 = vcombine.high %v3015_v63, %v3031_v4  ;;  %v4402_v39 = vcombine.low %v18126_v56, %v18115_v6  ;;  %v14803_v11 = vld [vmem:[#allocation2 + $0x241] ss:$48 sps:$4 sm:$0xff]   ;;  %v14815_v21 = vld [vmem:[#allocation2 + $0xc7] ss:$48 sps:$4 sm:$0xff]  }
 0x3a3   : > { %23310 = vst [vmem:[#allocation46_spill] sm:$0xff] %v18129_v59  ;;  %v18145_v44 = vrot.slane %v3055_v42, %v16780_v34  ;;  %v18148_v1 = vrot.slane %v3056_v3, %v16780_v34  ;;  %v18150_v7 = vpack.i.bf16 %v7204_v38, %v7068_v57  ;;  %v18153_v29 = vrot.slane %v14814_v58, %v16502_v36  ;;  %v14817_v63 = vld [vmem:[#allocation2 + $0x127] ss:$48 sps:$4 sm:$0xff]  }
 0x3a4   : > { %v18156_v4 = vrot.slane %v3071_v14, %v16780_v34  ;;  %v3086_v52 = vrot.slane %v3072_v28, %v16780_v34  ;;  %v3038_v45 = vrot.slane %v14778_v25, %v16502_v36  ;;  %v4466_v42 = vrot.slane %v14805_v20, %v16502_v36 }
 0x3a5   : > { %v18162_v3 = vrot.slane %v4370_v35, %v16780_v34  ;;  %v18165_v38 = vrot.slane %v14812_v32, %v16502_v36  ;;  %v6985_v58 = vrot.slane %v14813_v5, %v16502_v36  ;;  %v18169_v57 = vrot.slane %v14818_v62, %v16502_v36  ;;  %v14809_v32 = vld [vmem:[#allocation2 + $0x2b9] ss:$48 sps:$4 sm:$0xff]  }
 0x3a6   : > { %23311 = vst [vmem:[#allocation47_spill] sm:$0xff] %v18156_v4  ;;  %13691 = vrot.lane.b32.xlu0 %v17954_v2, %s15534_s7  ;;  %v3104_v14 = vcombine.high %v18129_v59, %v18156_v4  ;;  %v3022_v25 = vrot.slane %v14777_v51, %v16502_v36  ;;  %v18177_v20 = vrot.slane %v4402_v39, %v16780_v34  ;;  %vm3915_vm14 = vcmask 900096  }
 0x3a7   : > { %23312 = vst [vmem:[#allocation23_spill] sm:$0xff] %v18162_v3  ;;  %v4450_v35 = vrot.slane %v14803_v11, %v16502_v36  ;;  %v18181_v28 = vrot.slane %v14811_v48, %v16502_v36  ;;  %v7050_v62 = vcombine.low %v6985_v58, %v18153_v29  ;;  %v18185_v5 = vrot.slane %v14816_v40, %v16502_v36  ;;  %v14807_v48 = vld [vmem:[#allocation2 + $0x2a1] ss:$48 sps:$4 sm:$0xff]  }
 0x3a8   : > { %v18188_v2 = vrot.slane %v14817_v63, %v16502_v36  ;;  %v23313_v51 = vcombine.high %v17962_v37, %v18003_v18  ;;  %v3105_v39 = vcombine.low %v18140_v15, %v3086_v52  ;;  %v3087_v4 = vcombine.low %v3022_v25, %v3038_v45 }
 0x3a9   : > { %v4506_v11 = vcombine.low %v4450_v35, %v4466_v42  ;;  %v18194_v10 = vpack.i.bf16 %v7205_v41, %v7069_v12  ;;  %v7018_v30 = vcombine.low %v18181_v28, %v18165_v38  ;;  %v18199_v40 = vrot.slane %v14815_v21, %v16502_v36 }
 0x3aa   : > { %v14005_v59 = vpack.i.bf16 %v3104_v14, %v23313_v51  ;;  %v7186_v63 = vcombine.low %v18188_v2, %v18169_v57  ;;  %13696 = vrot.lane.b32.xlu0 %v17956_v54, %s15550_s17  ;;  %v4371_v41 = vcombine.high %v18103_v24, %v18106_v31  ;;  %v4403_v12 = vcombine.high %v18126_v56, %v18115_v6 }
 0x3ab   : > { %v3088_v51 = vcombine.high %v3022_v25, %v3038_v45  ;;  %v4498_v21 = vrot.slane %v14809_v32, %v16502_v36  ;;  %v7058_v37 = vrot.slane %v7050_v62, %v16780_v34  ;;  %v7154_v18 = vcombine.low %v18199_v40, %v18185_v5 }
 0x3ac   : > { %14006 = vrot.lane.b32.xlu1 %v14005_v59, %s15549_s14  ;;  %v23314_v54 = vcombine.low %v17980_v13, %v18006_v33  ;;  %v3106_v14 = vcombine.high %v18140_v15, %v3086_v52  ;;  %v3095_v8 = vrot.slane %v3087_v4, %v16780_v34  ;;  %v18222_v24 = vrot.slane %v4506_v11, %v16780_v34 }
 0x3ad   : > { %v4482_v45 = vrot.slane %v14807_v48, %v16502_v36  ;;  %v7026_v31 = vrot.slane %v7018_v30, %v16780_v34  ;;  %v7194_v6 = vrot.slane %v7186_v63, %v16780_v34  ;;  %v4507_v56 = vcombine.high %v4450_v35, %v4466_v42 }
 0x3ae   : > { %v14010_v59 = vpack.i.bf16 %v3105_v39, %v23314_v54  ;;  %23315 = vst [vmem:[#allocation66_spill] sm:$0xff] %v18222_v24  ;;  %13701 = vrot.lane.b32.xlu0 %v18017_v16, %s22948_s11  ;;  %v18231_v25 = vrot.slane %v4371_v41, %v16780_v34  ;;  %v18234_v52 = vrot.slane %v4403_v12, %v16780_v34  ;;  %v14819_v41 = vld [vmem:[#allocation2 + $0x185] ss:$48 sps:$4 sm:$0xff]  }
 0x3af   : > { %v7051_v15 = vcombine.high %v6985_v58, %v18153_v29  ;;  %v3102_v4 = vrot.slane %v3088_v51, %v16780_v34  ;;  %v4538_v32 = vcombine.low %v4482_v45, %v4498_v21  ;;  %v7070_v30 = vcombine.low %v7026_v31, %v7058_v37  ;;  %v14825_v12 = vld [vmem:[#allocation2 + $0x2a5] ss:$48 sps:$4 sm:$0xff]   ;;  %v14826_v51 = vld [vmem:[#allocation2 + $0x2bd] ss:$48 sps:$4 sm:$0xff]  }
 0x3b0   : > { %14011 = vrot.lane.b32.xlu1 %v14010_v59, %s15534_s7  ;;  %v7162_v62 = vrot.slane %v7154_v18, %v16780_v34  ;;  %v23316_v42 = vcombine.high %v17980_v13, %v18006_v33  ;;  %v3107_v35 = vcombine.low %v18145_v44, %v3095_v8  ;;  %v4539_v39 = vcombine.high %v4482_v45, %v4498_v21  ;;  %v14841_v21 = vld [vmem:[#allocation2 + $0x13c] ss:$48 sps:$4 sm:$0xff]  }
 0x3b1   : > { %v7019_v11 = vcombine.high %v18181_v28, %v18165_v38  ;;  %v18246_v63 = vrot.slane %v4507_v56, %v16780_v34  ;;  %v7187_v58 = vcombine.high %v18188_v2, %v18169_v57  ;;  %v4436_v13 = vcombine.low %v18231_v25, %v18234_v52  ;;  %v14822_v38 = vld [vmem:[#allocation2 + $0x1fd] ss:$48 sps:$4 sm:$0xff]  }
 0x3b2   : > { %v14015_v16 = vpack.i.bf16 %v3106_v14, %v23316_v42  ;;  %v7206_v48 = vcombine.low %v7162_v62, %v7194_v6  ;;  %v7207_v29 = vcombine.high %v7162_v62, %v7194_v6  ;;  %13706 = vrot.lane.b32.xlu0 %v18019_v60, %s15504_s28  ;;  %v18256_v18 = vrot.slane %v7051_v15, %v16780_v34  ;;  %v14824_v28 = vld [vmem:[#allocation2 + $0x25d] ss:$48 sps:$4 sm:$0xff]  }
 0x3b3   : > { %v7155_v33 = vcombine.high %v18199_v40, %v18185_v5  ;;  %v3108_v14 = vcombine.high %v18145_v44, %v3095_v8  ;;  %v3109_v57 = vcombine.low %v18148_v1, %v3102_v4  ;;  %v18263_v2 = vrot.slane %v4538_v32, %v16780_v34  ;;  %v14820_v8 = vld [vmem:[#allocation2 + $0x19d] ss:$48 sps:$4 sm:$0xff]   ;;  %v14823_v32 = vld [vmem:[#allocation2 + $0x245] ss:$48 sps:$4 sm:$0xff]  }
 0x3b4   : > { %14016 = vrot.lane.b32.xlu1 %v14015_v16, %s15550_s17  ;;  %v7071_v60 = vcombine.high %v7026_v31, %v7058_v37  ;;  %v23318_v54 = vcombine.low %v18047_v27, %v18035_v17  ;;  %v3110_v45 = vcombine.high %v18148_v1, %v3102_v4  ;;  %v4553_v5 = vrot.slane %v4539_v39, %v16780_v34  ;;  %v14821_v4 = vld [vmem:[#allocation2 + $0x1e5] ss:$48 sps:$4 sm:$0xff]   ;;  %v14829_v16 = vld [vmem:[#allocation2 + $0x1c] ss:$48 sps:$4 sm:$0xff]  }
 0x3b5   : > { %23317 = vst [vmem:[#allocation67_spill] sm:$0xff] %v18263_v2  ;;  %v18271_v40 = vrot.slane %v7019_v11, %v16780_v34  ;;  %v18273_v44 = vpack.i.bf16 %v7206_v48, %v7070_v30  ;;  %v4437_v37 = vcombine.high %v18231_v25, %v18234_v52  ;;  %v18280_v31 = vrot.slane %v7187_v58, %v16780_v34  ;;  %v14833_v39 = vld [vmem:[#allocation2 + $0x7c] ss:$48 sps:$4 sm:$0xff]   ;;  %v14839_v48 = vld [vmem:[#allocation2 + $0x124] ss:$48 sps:$4 sm:$0xff]  }
 0x3b6   : > { %v14020_v59 = vpack.i.bf16 %v3107_v35, %v23318_v54  ;;  %v18275_v6 = vpack.i.bf16 %v7207_v29, %v7071_v60  ;;  %13711 = vrot.lane.b32.xlu0 %v18039_v22, %s15552_s8  ;;  %v18288_v56 = vrot.slane %v7155_v33, %v16780_v34  ;;  %v18291_v15 = vrot.slane %v14819_v41, %v16502_v36  ;;  %v14831_v35 = vld [vmem:[#allocation2 + $0x64] ss:$48 sps:$4 sm:$0xff]   ;;  %v14837_v11 = vld [vmem:[#allocation2 + $0xdc] ss:$48 sps:$4 sm:$0xff]  }
 0x3b7   : > { %v7072_v1 = vcombine.low %v18271_v40, %v18256_v18  ;;  %v23319_v25 = vcombine.high %v18047_v27, %v18035_v17  ;;  %v23320_v22 = vcombine.low %v18094_v55, %v18079_v46  ;;  %v4571_v62 = vcombine.high %v18222_v24, %v18263_v2  ;;  %v14835_v33 = vld [vmem:[#allocation2 + $0xc4] ss:$48 sps:$4 sm:$0xff]  }
 0x3b8   : > { %14021 = vrot.lane.b32.xlu1 %v14020_v59, %s22948_s11  ;;  %v18302_v42 = vrot.slane %v14826_v51, %v16502_v36  ;;  %v23321_v29 = vcombine.high %v18094_v55, %v18079_v46  ;;  %v4572_v27 = vcombine.low %v18246_v63, %v4553_v5  ;;  %v4369_v58 = vrot.slane %v14822_v38, %v16502_v36  ;;  %v14827_v51 = vld [vmem:[#allocation2 + $0x4] ss:$48 sps:$4 sm:$0xff]  }
 0x3b9   : > { %v14025_v52 = vpack.i.bf16 %v3108_v14, %v23319_v25  ;;  %v14030_v30 = vpack.i.bf16 %v3109_v57, %v23320_v22  ;;  %v18310_v41 = vrot.slane %v14824_v28, %v16502_v36  ;;  %v4573_v14 = vcombine.high %v18246_v63, %v4553_v5 }
 0x3ba   : > { %v14035_v17 = vpack.i.bf16 %v3110_v45, %v23321_v29  ;;  %v7208_v57 = vcombine.low %v18288_v56, %v18280_v31  ;;  %v4489_v60 = vrot.slane %v14825_v12, %v16502_v36  ;;  %v18317_v54 = vrot.slane %v14841_v21, %v16502_v36  ;;  %13716 = vrot.lane.b32.xlu0 %v18049_v50, %s23052_s16 }
 0x3bb   : > { %v4337_v46 = vrot.slane %v14820_v8, %v16502_v36  ;;  %v4353_v55 = vrot.slane %v14821_v4, %v16502_v36  ;;  %v4457_v63 = vrot.slane %v14823_v32, %v16502_v36  ;;  %v18327_v28 = vrot.slane %v14833_v39, %v16502_v36 }
 0x3bc   : > { %14026 = vrot.lane.b32.xlu1 %v14025_v52, %s15504_s28  ;;  %v4554_v38 = vcombine.low %v4489_v60, %v18302_v42  ;;  %v18330_v12 = vrot.slane %v14837_v11, %v16502_v36  ;;  %v18333_v21 = vrot.slane %v14839_v48, %v16502_v36  ;;  %v23322_v50 = vcombine.high %v18162_v3, %v18177_v20 }
 0x3bd   : > { %v18338_v45 = vpack.i.bf16 %v4572_v27, %v4436_v13  ;;  %v4418_v5 = vcombine.low %v4353_v55, %v4369_v58  ;;  %v4522_v8 = vcombine.low %v4457_v63, %v18310_v41  ;;  %v8414_v4 = vrot.slane %v14829_v16, %v16502_v36 }
 0x3be   : > { %v14040_v59 = vpack.i.bf16 %v4571_v62, %v23322_v50  ;;  %v18343_v32 = vrot.slane %v14831_v35, %v16502_v36  ;;  %v18346_v25 = vrot.slane %v14835_v33, %v16502_v36  ;;  %v8622_v52 = vcombine.low %v18333_v21, %v18317_v54  ;;  %13721 = vrot.lane.b32.xlu0 %v18123_v61, %s15549_s14  ;;  %v14843_v50 = vld [vmem:[#allocation2 + $0x182] ss:$48 sps:$4 sm:$0xff]  }
 0x3bf   : > { %v18353_v13 = vpack.i.bf16 %v4573_v14, %v4437_v37  ;;  %v18355_v22 = vpack.i.bf16 %v7208_v57, %v7072_v1  ;;  %v4386_v62 = vcombine.low %v18291_v15, %v4337_v46  ;;  %v4562_v16 = vrot.slane %v4554_v38, %v16780_v34 }
 0x3c0   : > { %14031 = vrot.lane.b32.xlu1 %v14030_v30, %s15552_s8  ;;  %v8398_v35 = vrot.slane %v14827_v51, %v16502_v36  ;;  %v8486_v39 = vcombine.low %v18343_v32, %v18327_v28  ;;  %v8590_v11 = vcombine.low %v18346_v25, %v18330_v12  ;;  %v4426_v61 = vrot.slane %v4418_v5, %v16780_v34  ;;  %v14847_v5 = vld [vmem:[#allocation2 + $0x1e2] ss:$48 sps:$4 sm:$0xff]  }
 0x3c1   : > { %v7073_v37 = vcombine.high %v18271_v40, %v18256_v18  ;;  %v4419_v30 = vcombine.high %v4353_v55, %v4369_v58  ;;  %v4555_v1 = vcombine.high %v4489_v60, %v18302_v42  ;;  %v4530_v48 = vrot.slane %v4522_v8, %v16780_v34  ;;  %v14862_v8 = vld [vmem:[#allocation2 + $0x80] ss:$48 sps:$4 sm:$0xff]  }
 0x3c2   : > { %v7209_v29 = vcombine.high %v18288_v56, %v18280_v31  ;;  %v8454_v27 = vcombine.low %v8398_v35, %v8414_v4  ;;  %v18372_v33 = vrot.slane %v8622_v52, %v16780_v34  ;;  %13726 = vrot.lane.b32.xlu0 %v18150_v7, %s15534_s7  ;;  %v4394_v14 = vrot.slane %v4386_v62, %v16780_v34  ;;  %v14849_v56 = vld [vmem:[#allocation2 + $0x1fa] ss:$48 sps:$4 sm:$0xff]  }
 0x3c3   : > { %v4387_v18 = vcombine.high %v18291_v15, %v4337_v46  ;;  %v4523_v40 = vcombine.high %v4457_v63, %v18310_v41  ;;  %v4574_v42 = vcombine.low %v4530_v48, %v4562_v16  ;;  %v4575_v58 = vcombine.high %v4530_v48, %v4562_v16  ;;  %v14845_v15 = vld [vmem:[#allocation2 + $0x19a] ss:$48 sps:$4 sm:$0xff]  }
 0x3c4   : > { %23323 = vst [vmem:[#allocation68_spill] sm:$0xff] %v18372_v33  ;;  %14036 = vrot.lane.b32.xlu1 %v14035_v17, %s23052_s16  ;;  %v18381_v57 = vrot.slane %v8486_v39, %v16780_v34  ;;  %v18384_v31 = vrot.slane %v8590_v11, %v16780_v34  ;;  %v4438_v60 = vcombine.low %v4394_v14, %v4426_v61  ;;  %v14857_v46 = vld [vmem:[#allocation2 + $0x2ba] ss:$48 sps:$4 sm:$0xff]   ;;  %v14860_v11 = vld [vmem:[#allocation2 + $0x20] ss:$48 sps:$4 sm:$0xff]  }
 0x3c5   : > { %v18387_v7 = vrot.slane %v4419_v30, %v16780_v34  ;;  %v18390_v17 = vrot.slane %v4555_v1, %v16780_v34  ;;  %v8455_v51 = vcombine.high %v8398_v35, %v8414_v4  ;;  %v4439_v41 = vcombine.high %v4394_v14, %v4426_v61  ;;  %v14853_v16 = vld [vmem:[#allocation2 + $0x25a] ss:$48 sps:$4 sm:$0xff]   ;;  %v14855_v35 = vld [vmem:[#allocation2 + $0x2a2] ss:$48 sps:$4 sm:$0xff]  }
 0x3c6   : > { %23324 = vst [vmem:[#allocation69_spill] sm:$0xff] %v18381_v57  ;;  %23325 = vst [vmem:[#allocation70_spill] sm:$0xff] %v18384_v31  ;;  %v18393_v55 = vrot.slane %v8454_v27, %v16780_v34  ;;  %v8655_v63 = vcombine.high %v18384_v31, %v18372_v33  ;;  %v8487_v38 = vcombine.high %v18343_v32, %v18327_v28  ;;  %13731 = vrot.lane.b32.xlu0 %v18194_v10, %s15550_s17  ;;  %v14861_v61 = vld [vmem:[#allocation2 + $0x68] ss:$48 sps:$4 sm:$0xff]   ;;  %v14877_v33 = vld [vmem:[#allocation2 + $0x20] ss:$48 sps:$4 sm:$0xff]  }
 0x3c7   : > { %v18403_v4 = vrot.slane %v4387_v18, %v16780_v34  ;;  %v18406_v52 = vrot.slane %v4523_v40, %v16780_v34  ;;  %v8591_v62 = vcombine.high %v18346_v25, %v18330_v12  ;;  %v14055_v28 = vpack.i.bf16 %v4574_v42, %v4438_v60  ;;  %v14859_v18 = vld [vmem:[#allocation2 + $0x8] ss:$48 sps:$4 sm:$0xff]   ;;  %v14866_v40 = vld [vmem:[#allocation2 + $0x140] ss:$48 sps:$4 sm:$0xff]  }
 0x3c8   : > { %23326 = vst [vmem:[#allocation71_spill] sm:$0xff] %v18393_v55  ;;  %14041 = vrot.lane.b32.xlu1 %v14040_v59, %s15549_s14  ;;  %v18410_v32 = vpack.i.bf16 %v7209_v29, %v7073_v37  ;;  %v18412_v39 = vpack.i.bf16 %v4575_v58, %v4439_v41  ;;  %v8519_v10 = vcombine.high %v18393_v55, %v18381_v57  ;;  %v14851_v59 = vld [vmem:[#allocation2 + $0x242] ss:$48 sps:$4 sm:$0xff]   ;;  %v14863_v58 = vld [vmem:[#allocation2 + $0xc8] ss:$48 sps:$4 sm:$0xff]  }
 0x3c9   : > { %v4440_v30 = vcombine.low %v18403_v4, %v18387_v7  ;;  %v4576_v1 = vcombine.low %v18406_v52, %v18390_v17  ;;  %v8469_v12 = vrot.slane %v8455_v51, %v16780_v34  ;;  %v8623_v25 = vcombine.high %v18333_v21, %v18317_v54  ;;  %v14864_v37 = vld [vmem:[#allocation2 + $0xe0] ss:$48 sps:$4 sm:$0xff]   ;;  %v14879_v55 = vld [vmem:[#allocation2 + $0x68] ss:$48 sps:$4 sm:$0xff]  }
 0x3ca   : > { %v18423_v48 = vpack.i.bf16 %v8655_v63, %v8519_v10  ;;  %v8501_v29 = vrot.slane %v8487_v38, %v16780_v34  ;;  %v4441_v27 = vcombine.high %v18403_v4, %v18387_v7  ;;  %v18429_v14 = vrot.slane %v14849_v56, %v16502_v36  ;;  %13736 = vrot.lane.b32.xlu0 %v18273_v44, %s22948_s11  ;;  %v14881_v57 = vld [vmem:[#allocation2 + $0x80] ss:$48 sps:$4 sm:$0xff]  }
 0x3cb   : > { %v8605_v54 = vrot.slane %v8591_v62, %v16780_v34  ;;  %v18437_v21 = vrot.slane %v14845_v15, %v16502_v36  ;;  %v18440_v42 = vrot.slane %v14857_v46, %v16502_v36  ;;  %v4577_v56 = vcombine.high %v18406_v52, %v18390_v17 }
 0x3cc   : > { %14046 = vrot.lane.b32.xlu1 %v18338_v45, %s15534_s7  ;;  %v5766_v60 = vrot.slane %v14843_v50, %v16502_v36  ;;  %v5798_v7 = vrot.slane %v14847_v5, %v16502_v36  ;;  %v18447_v44 = vrot.slane %v14862_v8, %v16502_v36  ;;  %v18449_v45 = vpack.i.bf16 %v4576_v1, %v4440_v30  ;;  %v14865_v50 = vld [vmem:[#allocation2 + $0x128] ss:$48 sps:$4 sm:$0xff]  }
 0x3cd   : > { %v8637_v51 = vrot.slane %v8623_v25, %v16780_v34  ;;  %v5918_v15 = vrot.slane %v14853_v16, %v16502_v36  ;;  %v5934_v46 = vrot.slane %v14855_v35, %v16502_v36  ;;  %v5902_v63 = vrot.slane %v14851_v59, %v16502_v36 }
 0x3ce   : > { %23327 = vst [vmem:[#allocation72_spill] sm:$0xff] %v18447_v44  ;;  %v5854_v41 = vcombine.low %v5798_v7, %v18429_v14  ;;  %v18457_v17 = vrot.slane %v14860_v11, %v16502_v36  ;;  %v18460_v38 = vrot.slane %v14861_v61, %v16502_v36  ;;  %13741 = vrot.lane.b32.xlu0 %v18275_v6, %s15504_s28 }
 0x3cf   : > { %v5822_v5 = vcombine.low %v5766_v60, %v18437_v21  ;;  %v5990_v8 = vcombine.low %v5934_v46, %v18440_v42  ;;  %v18469_v4 = vrot.slane %v14864_v37, %v16502_v36  ;;  %v8520_v52 = vcombine.low %v8469_v12, %v8501_v29 }
 0x3d0   : > { %23328 = vst [vmem:[#allocation73_spill] sm:$0xff] %v18457_v17  ;;  %23329 = vst [vmem:[#allocation74_spill] sm:$0xff] %v18460_v38  ;;  %14051 = vrot.lane.b32.xlu1 %v18353_v13, %s15550_s17  ;;  %v18472_v62 = vrot.slane %v14859_v18, %v16502_v36  ;;  %v8502_v16 = vcombine.low %v18460_v38, %v18447_v44  ;;  %v18477_v35 = vrot.slane %v14866_v40, %v16502_v36  ;;  %v14920_v38 = vld [vmem:[#allocation2 + $0x25f] ss:$48 sps:$4 sm:$0xff]  }
 0x3d1   : > { %23330 = vst [vmem:[#allocation75_spill] sm:$0xff] %v18469_v4  ;;  %v8656_v6 = vcombine.low %v8605_v54, %v8637_v51  ;;  %v8521_v10 = vcombine.high %v8469_v12, %v8501_v29  ;;  %v5958_v13 = vcombine.low %v5902_v63, %v5918_v15  ;;  %v18480_v59 = vrot.slane %v14863_v58, %v16502_v36  ;;  %v14922_v44 = vld [vmem:[#allocation2 + $0x2bf] ss:$48 sps:$4 sm:$0xff]  }
 0x3d2   : > { %23331 = vst [vmem:[#allocation76_spill] sm:$0xff] %v18472_v62  ;;  %23332 = vst [vmem:[#allocation77_spill] sm:$0xff] %v18477_v35  ;;  %v8657_v11 = vcombine.high %v8605_v54, %v8637_v51  ;;  %v18483_v61 = vrot.slane %v5854_v41, %v16780_v34  ;;  %v8470_v30 = vcombine.low %v18472_v62, %v18457_v17  ;;  %13746 = vrot.lane.b32.xlu0 %v18355_v22, %s15552_s8  ;;  %v14868_v41 = vld [vmem:[#allocation2 + $0x19e] ss:$48 sps:$4 sm:$0xff]  }
 0x3d3   : > { %23333 = vst [vmem:[#allocation78_spill] sm:$0xff] %v18480_v59  ;;  %v18488_v1 = vrot.slane %v14865_v50, %v16502_v36  ;;  %v18494_v12 = vrot.slane %v5822_v5, %v16780_v34  ;;  %v18497_v25 = vrot.slane %v5990_v8, %v16780_v34  ;;  %v8606_v37 = vcombine.low %v18480_v59, %v18469_v4  ;;  %v14870_v50 = vld [vmem:[#allocation2 + $0x1fe] ss:$48 sps:$4 sm:$0xff]  }
 0x3d4   : > { %23334 = vst [vmem:[#allocation79_spill] sm:$0xff] %v18483_v61  ;;  %14056 = vrot.lane.b32.xlu1 %v14055_v28, %s22948_s11  ;;  %v18502_v29 = vrot.slane %v8502_v16, %v16780_v34  ;;  %v5823_v40 = vcombine.high %v5766_v60, %v18437_v21  ;;  %v5855_v22 = vcombine.high %v5798_v7, %v18429_v14  ;;  %v14869_v21 = vld [vmem:[#allocation2 + $0x1e6] ss:$48 sps:$4 sm:$0xff]   ;;  %v14872_v14 = vld [vmem:[#allocation2 + $0x25e] ss:$48 sps:$4 sm:$0xff]  }
 0x3d5   : > { %23335 = vst [vmem:[#allocation80_spill] sm:$0xff] %v18488_v1  ;;  %23336 = vst [vmem:[#allocation81_spill] sm:$0xff] %v18494_v12  ;;  %v8638_v18 = vcombine.low %v18488_v1, %v18477_v35  ;;  %v14070_v28 = vpack.i.bf16 %v4577_v56, %v4441_v27  ;;  %v18509_v54 = vrot.slane %v5958_v13, %v16780_v34  ;;  %v14873_v27 = vld [vmem:[#allocation2 + $0x2a6] ss:$48 sps:$4 sm:$0xff]   ;;  %v14874_v56 = vld [vmem:[#allocation2 + $0x2be] ss:$48 sps:$4 sm:$0xff]  }
 0x3d6   : > { %23337 = vst [vmem:[#allocation82_spill] sm:$0xff] %v18497_v25  ;;  %23338 = vst [vmem:[#allocation83_spill] sm:$0xff] %v18502_v29  ;;  %v5959_v58 = vcombine.high %v5902_v63, %v5918_v15  ;;  %v5991_v51 = vcombine.high %v5934_v46, %v18440_v42  ;;  %v13760_v5 = vpack.i.bf16 %v8656_v6, %v8520_v52  ;;  %13751 = vrot.lane.b32.xlu0 %v18410_v32, %s23052_s16  ;;  %v14867_v15 = vld [vmem:[#allocation2 + $0x186] ss:$48 sps:$4 sm:$0xff]  }
 0x3d7   : > { %23339 = vst [vmem:[#allocation84_spill] sm:$0xff] %v18509_v54  ;;  %v18512_v8 = vpack.i.bf16 %v8657_v11, %v8521_v10  ;;  %v5887_v16 = vcombine.high %v18494_v12, %v18483_v61  ;;  %v18517_v31 = vrot.slane %v8470_v30, %v16780_v34  ;;  %v6023_v42 = vcombine.high %v18509_v54, %v18497_v25  ;;  %v14871_v52 = vld [vmem:[#allocation2 + $0x246] ss:$48 sps:$4 sm:$0xff]   ;;  %v23344_v11 = vld [vmem:[#allocation35_spill] sm:$0xff] }
 0x3d8   : > { %14061 = vrot.lane.b32.xlu1 %v18412_v39, %s15504_s28  ;;  %v18526_v60 = vrot.slane %v8606_v37, %v16780_v34  ;;  %v11526_v7 = vcombine.low %v17585_v9, %v17574_v0  ;;  %v18533_v63 = vrot.slane %v8638_v18, %v16780_v34  ;;  %v5837_v32 = vrot.slane %v5823_v40, %v16780_v34  ;;  %v23343_v13 = vld [vmem:[#allocation34_spill] sm:$0xff] }
 0x3d9   : > { %23340 = vst [vmem:[#allocation85_spill] sm:$0xff] %v18517_v31  ;;  %v8522_v46 = vcombine.low %v18517_v31, %v18502_v29  ;;  %v5869_v39 = vrot.slane %v5855_v22, %v16780_v34  ;;  %v5973_v6 = vrot.slane %v5959_v58, %v16780_v34  ;;  %v6005_v10 = vrot.slane %v5991_v51, %v16780_v34  ;;  %v23345_v22 = vld [vmem:[#allocation18_spill] sm:$0xff]  ;;  %v18576_v58 = vpop.permute.xlu0 %13616 }
 0x3da   : > { %23341 = vst [vmem:[#allocation86_spill] sm:$0xff] %v18526_v60  ;;  %23342 = vst [vmem:[#allocation87_spill] sm:$0xff] %v18533_v63  ;;  %v11390_v30 = vcombine.low %v23344_v11, %v23343_v13  ;;  %v11494_v0 = vcombine.low %v17519_v47, %v17542_v23  ;;  %v11428_v9 = vcombine.low %v17304_v53, %v17418_v49  ;;  %13756 = vrot.lane.b32.xlu0 %v18423_v48, %s15549_s14  ;;  %v23346_v23 = vld [vmem:[#allocation20_spill] sm:$0xff] }
 0x3db   : > { %v11564_v37 = vcombine.low %v17625_v43, %v17604_v26  ;;  %v18548_v18 = vrot.slane %v14870_v50, %v16502_v36  ;;  %v18551_v40 = vrot.slane %v14874_v56, %v16502_v36  ;;  %v11358_v47 = vcombine.low %v23346_v23, %v23345_v22  ;;  %v23351_v23 = vld [vmem:[#allocation57_spill] sm:$0xff] }
 0x3dc   : > { %14066 = vrot.lane.b32.xlu1 %v18449_v45, %s15552_s8  ;;  %v18560_v53 = vrot.slane %v11526_v7, %v16780_v34  ;;  %v18563_v49 = vrot.slane %v14868_v41, %v16502_v36  ;;  %v8658_v26 = vcombine.low %v18526_v60, %v18533_v63  ;;  %v18568_v43 = vrot.slane %v14869_v21, %v16502_v36  ;;  %v14889_v60 = vld [vmem:[#allocation2 + $0x140] ss:$48 sps:$4 sm:$0xff]   ;;  %v14887_v31 = vld [vmem:[#allocation2 + $0x128] ss:$48 sps:$4 sm:$0xff]  }
 0x3dd   : > { %v18571_v48 = vrot.slane %v14872_v14, %v16502_v36  ;;  %v18574_v45 = vrot.slane %v14873_v27, %v16502_v36  ;;  %v6024_v51 = vcombine.low %v5973_v6, %v6005_v10  ;;  %v18579_v50 = vrot.slane %v11390_v30, %v16780_v34  ;;  %v14885_v63 = vld [vmem:[#allocation2 + $0xe0] ss:$48 sps:$4 sm:$0xff]   ;;  %v14883_v1 = vld [vmem:[#allocation2 + $0xc8] ss:$48 sps:$4 sm:$0xff]  }
 0x3de   : > { %23347 = vst [vmem:[#allocation34_spill] sm:$0xff] %v18560_v53  ;;  %v18582_v41 = vrot.slane %v11494_v0, %v16780_v34  ;;  %v18585_v56 = vrot.slane %v14867_v15, %v16502_v36  ;;  %v6025_v21 = vcombine.high %v5973_v6, %v6005_v10  ;;  %v5870_v14 = vcombine.low %v18568_v43, %v18548_v18  ;;  %v18605_v0 = vpop.permute.xlu0 %13621 }
 0x3df   : > { %23348 = vst [vmem:[#allocation35_spill] sm:$0xff] %v18579_v50  ;;  %v18590_v7 = vrot.slane %v14871_v52, %v16502_v36  ;;  %v6006_v27 = vcombine.low %v18574_v45, %v18551_v40  ;;  %13761 = vrot.lane.b32.xlu0 %v13760_v5, %s15534_s7  ;;  %v18597_v13 = vrot.slane %v11358_v47, %v16780_v34 }
 0x3e0   : > { %23349 = vst [vmem:[#allocation18_spill] sm:$0xff] %v18582_v41  ;;  %14071 = vrot.lane.b32.xlu1 %v14070_v28, %s23052_s16  ;;  %v11559_v15 = vcombine.high %v18582_v41, %v18560_v53  ;;  %v5838_v6 = vcombine.low %v18585_v56, %v18563_v49  ;;  %v14075_v10 = vpack.i.bf16 %v6023_v42, %v5887_v16  ;;  %v23369_v41 = vld [vmem:[#allocation24_spill] sm:$0xff] }
 0x3e1   : > { %23350 = vst [vmem:[#allocation20_spill] sm:$0xff] %v18597_v13  ;;  %v5888_v11 = vcombine.low %v5837_v32, %v5869_v39  ;;  %v5889_v52 = vcombine.high %v5837_v32, %v5869_v39  ;;  %v5974_v30 = vcombine.low %v18590_v7, %v18571_v48  ;;  %v13770_v5 = vpack.i.bf16 %v8658_v26, %v8522_v46 }
 0x3e2   : > { %v13780_v22 = vpack.i.bf16 %v11564_v37, %v11428_v9  ;;  %v11423_v28 = vcombine.high %v18597_v13, %v18579_v50  ;;  %v11561_v47 = vcombine.high %v23351_v23, %v17648_v19  ;;  %v5878_v32 = vrot.slane %v5870_v14, %v16780_v34  ;;  %v23352_v9 = vld [vmem:[#allocation44_spill] sm:$0xff]  ;;  %v23353_v37 = vld [vmem:[#allocation26_spill] sm:$0xff]  ;;  %v23355_v14 = vld [vmem:[#allocation25_spill] sm:$0xff] }
 0x3e3   : > { %v14080_v16 = vpack.i.bf16 %v6024_v51, %v5888_v11  ;;  %v14085_v42 = vpack.i.bf16 %v6025_v21, %v5889_v52  ;;  %v6014_v39 = vrot.slane %v6006_v27, %v16780_v34  ;;  %13766 = vrot.lane.b32.xlu0 %v18512_v8, %s15550_s17  ;;  %v5846_v19 = vrot.slane %v5838_v6, %v16780_v34  ;;  %v14875_v23 = vld [vmem:[#allocation2 + $0x8] ss:$48 sps:$4 sm:$0xff]  }
 0x3e4   : > { %14076 = vrot.lane.b32.xlu1 %v14075_v10, %s15549_s14  ;;  %v13790_v46 = vpack.i.bf16 %v11559_v15, %v11423_v28  ;;  %v11425_v26 = vcombine.high %v23353_v37, %v23352_v9  ;;  %v5982_v51 = vrot.slane %v5974_v30, %v16780_v34  ;;  %v23354_v21 = vld [vmem:[#allocation42_spill] sm:$0xff]  ;;  %v23356_v27 = vld [vmem:[#allocation56_spill] sm:$0xff]  ;;  %v23357_v52 = vld [vmem:[#allocation55_spill] sm:$0xff]  ;;  %v5871_v8 = vcombine.high %v18568_v43, %v18548_v18  ;;  %v18626_v10 = vpop.permute.xlu0 %13626 }
 0x3e5   : > { %v11426_v11 = vcombine.low %v23355_v14, %v23354_v21  ;;  %v11562_v29 = vcombine.low %v23357_v52, %v23356_v27  ;;  %v5839_v6 = vcombine.high %v18585_v56, %v18563_v49  ;;  %v6007_v30 = vcombine.high %v18574_v45, %v18551_v40  ;;  %v14905_v9 = vld [vmem:[#allocation2 + $0x2bb] ss:$48 sps:$4 sm:$0xff]   ;;  %v14903_v56 = vld [vmem:[#allocation2 + $0x2a3] ss:$48 sps:$4 sm:$0xff]  }
 0x3e6   : > { %v18628_v15 = vpack.i.bf16 %v11561_v47, %v11425_v26  ;;  %v18635_v28 = vrot.slane %v14881_v57, %v16502_v36  ;;  %v5890_v37 = vcombine.low %v5846_v19, %v5878_v32  ;;  %v6026_v21 = vcombine.low %v5982_v51, %v6014_v39  ;;  %v14897_v43 = vld [vmem:[#allocation2 + $0x1fb] ss:$48 sps:$4 sm:$0xff]   ;;  %v14891_v27 = vld [vmem:[#allocation2 + $0x183] ss:$48 sps:$4 sm:$0xff]  }
 0x3e7   : > { %v5891_v14 = vcombine.high %v5846_v19, %v5878_v32  ;;  %v18638_v18 = vrot.slane %v14889_v60, %v16502_v36  ;;  %13771 = vrot.lane.b32.xlu0 %v13770_v5, %s22948_s11  ;;  %v5975_v49 = vcombine.high %v18590_v7, %v18571_v48  ;;  %v18645_v40 = vrot.slane %v14877_v33, %v16502_v36  ;;  %v14901_v45 = vld [vmem:[#allocation2 + $0x25b] ss:$48 sps:$4 sm:$0xff]   ;;  %v14895_v19 = vld [vmem:[#allocation2 + $0x1e3] ss:$48 sps:$4 sm:$0xff]  }
 0x3e8   : > { %14081 = vrot.lane.b32.xlu1 %v14080_v16, %s15534_s7  ;;  %v18648_v57 = vrot.slane %v14879_v55, %v16502_v36  ;;  %v6027_v47 = vcombine.high %v5982_v51, %v6014_v39  ;;  %v5885_v60 = vrot.slane %v5871_v8, %v16780_v34  ;;  %v18652_v32 = vrot.slane %v14885_v63, %v16502_v36  ;;  %v14893_v16 = vld [vmem:[#allocation2 + $0x19b] ss:$48 sps:$4 sm:$0xff]   ;;  %v18657_v48 = vpop.permute.xlu0 %13631  ;;  %v23370_v13 = vld [vmem:[#allocation54_spill] sm:$0xff] }
 0x3e9   : > { %v18655_v5 = vrot.slane %v14887_v31, %v16502_v36  ;;  %23358 = vst [vmem:[#allocation57_spill] sm:$0xff] %v18657_v48  ;;  %v18659_v33 = vpack.i.bf16 %v11562_v29, %v11426_v11  ;;  %v6021_v55 = vrot.slane %v6007_v30, %v16780_v34  ;;  %v18663_v7 = vrot.slane %v14875_v23, %v16502_v36  ;;  %v14899_v11 = vld [vmem:[#allocation2 + $0x243] ss:$48 sps:$4 sm:$0xff]   ;;  %v23371_v50 = vld [vmem:[#allocation53_spill] sm:$0xff] }
 0x3ea   : > { %v3207_v39 = vcombine.low %v18648_v57, %v18635_v28  ;;  %v14090_v26 = vpack.i.bf16 %v6026_v21, %v5890_v37  ;;  %v5853_v63 = vrot.slane %v5839_v6, %v16780_v34  ;;  %v18669_v31 = vrot.slane %v14883_v1, %v16502_v36 }
 0x3eb   : > { %v3343_v51 = vcombine.low %v18655_v5, %v18638_v18  ;;  %13781 = vrot.lane.b32.xlu0 %v13780_v22, %s15552_s8  ;;  %v5989_v29 = vrot.slane %v5975_v49, %v16780_v34  ;;  %v3175_v23 = vcombine.low %v18663_v7, %v18645_v40  ;;  %v18679_v52 = vrot.slane %v14905_v9, %v16502_v36 }
 0x3ec   : > { %14086 = vrot.lane.b32.xlu1 %v14085_v42, %s15550_s17  ;;  %v14095_v8 = vpack.i.bf16 %v6027_v47, %v5891_v14  ;;  %v5892_v1 = vcombine.low %v5853_v63, %v5885_v60  ;;  %v3311_v6 = vcombine.low %v18669_v31, %v18652_v32  ;;  %v18684_v30 = vrot.slane %v14897_v43, %v16502_v36  ;;  %v18686_v22 = vpop.permute.xlu0 %13636 }
 0x3ed   : > { %23359 = vst [vmem:[#allocation44_spill] sm:$0xff] %v18686_v22  ;;  %v6028_v42 = vcombine.low %v5989_v29, %v6021_v55  ;;  %v3215_v37 = vrot.slane %v3207_v39, %v16780_v34  ;;  %v18690_v21 = vrot.slane %v14901_v45, %v16502_v36  ;;  %v7386_v49 = vrot.slane %v14903_v56, %v16502_v36 }
 0x3ee   : > { %v3351_v9 = vrot.slane %v3343_v51, %v16780_v34  ;;  %v6029_v14 = vcombine.high %v5989_v29, %v6021_v55  ;;  %v7234_v47 = vrot.slane %v14893_v16, %v16502_v36  ;;  %v7250_v35 = vrot.slane %v14895_v19, %v16502_v36 }
 0x3ef   : > { %13791 = vrot.lane.b32.xlu0 %v13790_v46, %s15549_s14  ;;  %v3183_v43 = vrot.slane %v3175_v23, %v16780_v34  ;;  %v7354_v39 = vrot.slane %v14899_v11, %v16502_v36  ;;  %v7442_v45 = vcombine.low %v7386_v49, %v18679_v52  ;;  %v3319_v59 = vrot.slane %v3311_v6, %v16780_v34 }
 0x3f0   : > { %14091 = vrot.lane.b32.xlu1 %v14090_v26, %s22948_s11  ;;  %v5893_v56 = vcombine.high %v5853_v63, %v5885_v60  ;;  %v7218_v51 = vrot.slane %v14891_v27, %v16502_v36  ;;  %v7306_v55 = vcombine.low %v7250_v35, %v18684_v30  ;;  %v18704_v16 = vpop.permute.xlu0 %13641  ;;  %v14100_v19 = vpack.i.bf16 %v6028_v42, %v5892_v1  ;;  %v14914_v42 = vld [vmem:[#allocation2 + $0x144] ss:$48 sps:$4 sm:$0xff]  }
 0x3f1   : > { %v3239_v29 = vcombine.low %v3183_v43, %v3215_v37  ;;  %v7410_v46 = vcombine.low %v7354_v39, %v18690_v21  ;;  %v3344_v26 = vcombine.high %v18655_v5, %v18638_v18  ;;  %v3375_v23 = vcombine.low %v3319_v59, %v3351_v9  ;;  %v14910_v18 = vld [vmem:[#allocation2 + $0x84] ss:$48 sps:$4 sm:$0xff]  }
 0x3f2   : > { %v14105_v11 = vpack.i.bf16 %v6029_v14, %v5893_v56  ;;  %v7274_v4 = vcombine.low %v7218_v51, %v7234_v47  ;;  %v3208_v6 = vcombine.high %v18648_v57, %v18635_v28  ;;  %v18715_v60 = vrot.slane %v7442_v45, %v16780_v34  ;;  %v14912_v57 = vld [vmem:[#allocation2 + $0xe4] ss:$48 sps:$4 sm:$0xff]   ;;  %v18726_v14 = vpop.permute.xlu1 %13776  ;;  %v14911_v56 = vld [vmem:[#allocation2 + $0xcc] ss:$48 sps:$4 sm:$0xff]  }
 0x3f3   : > { %13801 = vrot.lane.b32.xlu0 %v18628_v15, %s15550_s17  ;;  %v3312_v63 = vcombine.high %v18669_v31, %v18652_v32  ;;  %v7443_v27 = vcombine.high %v7386_v49, %v18679_v52  ;;  %v3376_v5 = vcombine.high %v3319_v59, %v3351_v9  ;;  %v18721_v1 = vrot.slane %v7306_v55, %v16780_v34  ;;  %v14909_v49 = vld [vmem:[#allocation2 + $0x6c] ss:$48 sps:$4 sm:$0xff]   ;;  %v14908_v9 = vld [vmem:[#allocation2 + $0x24] ss:$48 sps:$4 sm:$0xff]  }
 0x3f4   : > { %14096 = vrot.lane.b32.xlu1 %v14095_v8, %s15504_s28  ;;  %23360 = vst [vmem:[#allocation26_spill] sm:$0xff] %v18715_v60  ;;  %v3176_v28 = vcombine.high %v18663_v7, %v18645_v40  ;;  %v7307_v15 = vcombine.high %v7250_v35, %v18684_v30  ;;  %v14913_v8 = vld [vmem:[#allocation2 + $0x12c] ss:$48 sps:$4 sm:$0xff]   ;;  %23362 = vst [vmem:[#allocation25_spill] sm:$0xff] %v18726_v14  ;;  %v18728_v45 = vpop.permute.xlu0 %13646  ;;  %v18731_v32 = vrot.slane %v7410_v46, %v16780_v34 }
 0x3f5   : > { %23361 = vst [vmem:[#allocation42_spill] sm:$0xff] %v18721_v1  ;;  %v18734_v59 = vrot.slane %v3344_v26, %v16780_v34  ;;  %v7275_v31 = vcombine.high %v7218_v51, %v7234_v47  ;;  %v7411_v52 = vcombine.high %v7354_v39, %v18690_v21  ;;  %v13810_v40 = vpack.i.bf16 %v3375_v23, %v3239_v29  ;;  %v14907_v46 = vld [vmem:[#allocation2 + $0xc] ss:$48 sps:$4 sm:$0xff]  }
 0x3f6   : > { %23363 = vst [vmem:[#allocation56_spill] sm:$0xff] %v18731_v32  ;;  %v3240_v7 = vcombine.high %v3183_v43, %v3215_v37  ;;  %v18738_v35 = vrot.slane %v7274_v4, %v16780_v34  ;;  %v18741_v30 = vrot.slane %v3208_v6, %v16780_v34  ;;  %v7475_v47 = vcombine.high %v18731_v32, %v18715_v60  ;;  %v14916_v23 = vld [vmem:[#allocation2 + $0x19f] ss:$48 sps:$4 sm:$0xff]  }
 0x3f7   : > { %13806 = vrot.lane.b32.xlu0 %v18659_v33, %s22948_s11  ;;  %v18749_v21 = vrot.slane %v3312_v63, %v16780_v34  ;;  %v18752_v37 = vrot.slane %v7443_v27, %v16780_v34  ;;  %v18757_v39 = vrot.slane %v3176_v28, %v16780_v34  ;;  %v18760_v33 = vrot.slane %v7307_v15, %v16780_v34  ;;  %v14915_v28 = vld [vmem:[#allocation2 + $0x187] ss:$48 sps:$4 sm:$0xff]  }
 0x3f8   : > { %23364 = vst [vmem:[#allocation55_spill] sm:$0xff] %v18738_v35  ;;  %14101 = vrot.lane.b32.xlu1 %v14100_v19, %s15552_s8  ;;  %v13815_v4 = vpack.i.bf16 %v3376_v5, %v3240_v7  ;;  %v7339_v43 = vcombine.high %v18738_v35, %v18721_v1  ;;  %v18762_v51 = vpop.permute.xlu0 %13651  ;;  %v18767_v19 = vrot.slane %v7275_v31, %v16780_v34  ;;  %v14917_v15 = vld [vmem:[#allocation2 + $0x1e7] ss:$48 sps:$4 sm:$0xff]   ;;  %v14918_v31 = vld [vmem:[#allocation2 + $0x1ff] ss:$48 sps:$4 sm:$0xff]  }
 0x3f9   : > { %v3377_v55 = vcombine.low %v18749_v21, %v18734_v59  ;;  %v18770_v29 = vrot.slane %v7411_v52, %v16780_v34  ;;  %v18773_v26 = vrot.slane %v14910_v18, %v16502_v36  ;;  %v3241_v6 = vcombine.low %v18757_v39, %v18741_v30  ;;  %v18786_v52 = vpop.permute.xlu1 %13786 }
 0x3fa   : > { %v18778_v63 = vrot.slane %v14912_v57, %v16502_v36  ;;  %v18781_v27 = vrot.slane %v14913_v8, %v16502_v36  ;;  %v18784_v5 = vrot.slane %v14914_v42, %v16502_v36  ;;  %23365 = vst [vmem:[#allocation88_spill] sm:$0xff] %v18786_v52  ;;  %v14110_v18 = vpack.i.bf16 %v7475_v47, %v7339_v43  ;;  %v14919_v8 = vld [vmem:[#allocation2 + $0x247] ss:$48 sps:$4 sm:$0xff]  }
 0x3fb   : > { %13811 = vrot.lane.b32.xlu0 %v13810_v40, %s15530_s10  ;;  %v7476_v57 = vcombine.low %v18770_v29, %v18752_v37  ;;  %v18793_v7 = vrot.slane %v14909_v49, %v16502_v36  ;;  %v14921_v42 = vld [vmem:[#allocation2 + $0x2a7] ss:$48 sps:$4 sm:$0xff]   ;;  %v7340_v62 = vcombine.low %v18767_v19, %v18760_v33  ;;  %v18798_v17 = vrot.slane %v14908_v9, %v16502_v36 }
 0x3fc   : > { %14106 = vrot.lane.b32.xlu1 %v14105_v11, %s23052_s16  ;;  %v18801_v40 = vrot.slane %v14911_v56, %v16502_v36  ;;  %v3359_v11 = vcombine.low %v18781_v27, %v18784_v5  ;;  %v18805_v47 = vpop.permute.xlu0 %13656  ;;  %v13820_v49 = vpack.i.bf16 %v3377_v55, %v3241_v6  ;;  %v18808_v43 = vrot.slane %v14907_v46, %v16502_v36 }
 0x3fd   : > { %v3223_v32 = vcombine.low %v18793_v7, %v18773_v26  ;;  %v18813_v60 = vrot.slane %v14916_v23, %v16502_v36  ;;  %v18818_v56 = vrot.slane %v14915_v28, %v16502_v36  ;;  %v18821_v35 = vrot.slane %v14917_v15, %v16502_v36 }
 0x3fe   : > { %v3327_v9 = vcombine.low %v18801_v40, %v18778_v63  ;;  %v18824_v55 = vrot.slane %v14918_v31, %v16502_v36  ;;  %v14115_v46 = vpack.i.bf16 %v7476_v57, %v7340_v62  ;;  %v3378_v23 = vcombine.high %v18749_v21, %v18734_v59 }
 0x3ff   : > { %13816 = vrot.lane.b32.xlu0 %v13815_v4, %s15554_s24  ;;  %v7477_v6 = vcombine.high %v18770_v29, %v18752_v37  ;;  %v3191_v28 = vcombine.low %v18808_v43, %v18798_v17  ;;  %v18835_v15 = vrot.slane %v3359_v11, %v16780_v34  ;;  %v7290_v31 = vcombine.low %v18818_v56, %v18813_v60 }
 0x400   : > { %14111 = vrot.lane.b32.xlu1 %v14110_v18, %s15549_s14  ;;  %v7322_v4 = vcombine.low %v18821_v35, %v18824_v55  ;;  %v18841_v18 = vpop.permute.xlu1 %13796  ;;  %v18843_v62 = vpop.permute.xlu0 %13661  ;;  %v18846_v59 = vrot.slane %v14919_v8, %v16502_v36  ;;  %v18849_v21 = vrot.slane %v14920_v38, %v16502_v36  ;;  %v18852_v37 = vrot.slane %v14921_v42, %v16502_v36 }
 0x401   : > { %23366 = vst [vmem:[#allocation89_spill] sm:$0xff] %v18841_v18  ;;  %v18855_v29 = vrot.slane %v14922_v44, %v16502_v36  ;;  %v3242_v57 = vcombine.high %v18757_v39, %v18741_v30  ;;  %v7341_v11 = vcombine.high %v18767_v19, %v18760_v33  ;;  %v3231_v1 = vrot.slane %v3223_v32, %v16780_v34 }
 0x402   : > { %v3335_v8 = vrot.slane %v3327_v9, %v16780_v34  ;;  %v7330_v38 = vrot.slane %v7322_v4, %v16780_v34  ;;  %v7426_v44 = vcombine.low %v18846_v59, %v18849_v21  ;;  %v3199_v39 = vrot.slane %v3191_v28, %v16780_v34  ;;  %v23368_v4 = vld [vmem:[#allocation39_spill] sm:$0xff] }
 0x403   : > { %13821 = vrot.lane.b32.xlu0 %v13820_v49, %s15511_s6  ;;  %v7458_v42 = vcombine.low %v18852_v37, %v18855_v29  ;;  %v13825_v30 = vpack.i.bf16 %v3378_v23, %v3242_v57  ;;  %v14120_v19 = vpack.i.bf16 %v7477_v6, %v7341_v11  ;;  %v7298_v49 = vrot.slane %v7290_v31, %v16780_v34  ;;  %v23373_v6 = vld [vmem:[#allocation51_spill] sm:$0xff]  ;;  %v23374_v31 = vld [vmem:[#allocation32_spill] sm:$0xff] }
 0x404   : > { %14116 = vrot.lane.b32.xlu1 %v14115_v46, %s15534_s7  ;;  %v3379_v32 = vcombine.low %v3335_v8, %v18835_v15  ;;  %v18872_v33 = vpop.permute.xlu0 %13666  ;;  %v7434_v9 = vrot.slane %v7426_v44, %v16780_v34  ;;  %v2695_v53 = vcombine.low %v23369_v41, %v23368_v4  ;;  %v2831_v54 = vcombine.low %v23371_v50, %v23370_v13  ;;  %v18884_v25 = vpop.permute.xlu1 %13971 }
 0x405   : > { %23367 = vst [vmem:[#allocation90_spill] sm:$0xff] %v18872_v33  ;;  %v7466_v46 = vrot.slane %v7458_v42, %v16780_v34  ;;  %v3243_v23 = vcombine.low %v3199_v39, %v3231_v1  ;;  %v3224_v28 = vcombine.high %v18793_v7, %v18773_v26  ;;  %v13619_v57 = vunpack.i.h.bf16 %v18576_v58  ;;  %23372 = vst [vmem:[#allocation39_spill] sm:$0xff] %v18884_v25 }
 0x406   : > { %v7342_v44 = vcombine.low %v7298_v49, %v7330_v38  ;;  %v3192_v50 = vcombine.high %v18808_v43, %v18798_v17  ;;  %v3328_v13 = vcombine.high %v18801_v40, %v18778_v63  ;;  %v3360_v26 = vcombine.high %v18781_v27, %v18784_v5  ;;  %v23376_v40 = vld [vmem:[#allocation28_spill] sm:$0xff] }
 0x407   : > { %13826 = vrot.lane.b32.xlu0 %v13825_v30, %s15553_s26  ;;  %v7478_v41 = vcombine.low %v7434_v9, %v7466_v46  ;;  %v13830_v42 = vpack.i.bf16 %v3379_v32, %v3243_v23  ;;  %v3380_v11 = vcombine.high %v3335_v8, %v18835_v15  ;;  %v7479_v30 = vcombine.high %v7434_v9, %v7466_v46  ;;  %v23377_v43 = vld [vmem:[#allocation64_spill] sm:$0xff] }
 0x408   : > { %14121 = vrot.lane.b32.xlu1 %v14120_v19, %s15550_s17  ;;  %v18896_v7 = vpop.permute.xlu0 %13671  ;;  %v7323_v19 = vcombine.high %v18821_v35, %v18824_v55  ;;  %v3244_v12 = vcombine.high %v3199_v39, %v3231_v1  ;;  %v18902_v32 = vrot.slane %v3224_v28, %v16780_v34  ;;  %v7291_v17 = vcombine.high %v18818_v56, %v18813_v60  ;;  %v14923_v15 = vld [vmem:[#allocation2 + $0x9] ss:$48 sps:$4 sm:$0xff]   ;;  %v14925_v9 = vld [vmem:[#allocation2 + $0x21] ss:$48 sps:$4 sm:$0xff]  }
 0x409   : > { %23375 = vst [vmem:[#allocation24_spill] sm:$0xff] %v18896_v7  ;;  %v14125_v4 = vpack.i.bf16 %v7478_v41, %v7342_v44  ;;  %v7427_v63 = vcombine.high %v18846_v59, %v18849_v21  ;;  %v13618_v27 = vunpack.i.l.bf16 %v18576_v58  ;;  %v7343_v5 = vcombine.high %v7298_v49, %v7330_v38  ;;  %v18924_v21 = vpop.permute.xlu1 %13981  ;;  %v14927_v46 = vld [vmem:[#allocation2 + $0x69] ss:$48 sps:$4 sm:$0xff]   ;;  %v14929_v23 = vld [vmem:[#allocation2 + $0x81] ss:$48 sps:$4 sm:$0xff]  }
 0x40a   : > { %v18912_v1 = vrot.slane %v3328_v13, %v16780_v34  ;;  %v3374_v35 = vrot.slane %v3360_v26, %v16780_v34  ;;  %v3206_v56 = vrot.slane %v3192_v50, %v16780_v34  ;;  %v18919_v55 = vrot.slane %v7323_v19, %v16780_v34  ;;  %23378 = vst [vmem:[#allocation54_spill] sm:$0xff] %v18924_v21  ;;  %v14931_v50 = vld [vmem:[#allocation2 + $0xc9] ss:$48 sps:$4 sm:$0xff]   ;;  %v14933_v13 = vld [vmem:[#allocation2 + $0xe1] ss:$48 sps:$4 sm:$0xff]  }
 0x40b   : > { %13831 = vrot.lane.b32.xlu0 %v13830_v42, %s15555_s29  ;;  %v7459_v58 = vcombine.high %v18852_v37, %v18855_v29  ;;  %v13835_v38 = vpack.i.bf16 %v3380_v11, %v3244_v12  ;;  %v14130_v39 = vpack.i.bf16 %v7479_v30, %v7343_v5  ;;  %v7305_v44 = vrot.slane %v7291_v17, %v16780_v34  ;;  %v14949_v12 = vld [vmem:[#allocation2 + $0x25c] ss:$48 sps:$4 sm:$0xff]  }
 0x40c   : > { %14126 = vrot.lane.b32.xlu1 %v14125_v4, %s22948_s11  ;;  %v18926_v8 = vpop.permute.xlu0 %13676  ;;  %v3381_v49 = vcombine.low %v18912_v1, %v3374_v35  ;;  %v3245_v28 = vcombine.low %v3206_v56, %v18902_v32  ;;  %v7441_v37 = vrot.slane %v7427_v63, %v16780_v34  ;;  %v18934_v41 = vsel %vm23175_vm9, %v2831_v54, %v13619_v57  ;;  %v14935_v54 = vld [vmem:[#allocation2 + $0x129] ss:$48 sps:$4 sm:$0xff]   ;;  %v14937_v57 = vld [vmem:[#allocation2 + $0x141] ss:$48 sps:$4 sm:$0xff]   ;;  %s23380_s11 = smov 74  }
 0x40d   : > { %v7473_v29 = vrot.slane %v7459_v58, %v16780_v34  ;;  %v3896_v42 = vsel %vm23175_vm9, %v2695_v53, %v13618_v27  ;;  %v7344_v4 = vcombine.low %v7305_v44, %v18919_v55  ;;  %v3382_v19 = vcombine.high %v18912_v1, %v3374_v35  ;;  %v14953_v60 = vld [vmem:[#allocation2 + $0x2bc] ss:$48 sps:$4 sm:$0xff]  }
 0x40e   : > { %v13840_v26 = vpack.i.bf16 %v3381_v49, %v3245_v28  ;;  %v18946_v17 = vrot.slane %v14923_v15, %v16502_v36  ;;  %v18949_v63 = vrot.slane %v14925_v9, %v16502_v36  ;;  %v18952_v27 = vrot.slane %v14927_v46, %v16502_v36  ;;  %v18959_v49 = vpop.permute.xlu1 %13986 }
 0x40f   : > { %13836 = vrot.lane.b32.xlu0 %v13835_v38, %s15537_s9  ;;  %v7480_v30 = vcombine.low %v7441_v37, %v7473_v29  ;;  %v18955_v5 = vrot.slane %v14929_v23, %v16502_v36  ;;  %v13623_v58 = vunpack.i.l.bf16 %v18605_v0  ;;  %v3246_v35 = vcombine.high %v3206_v56, %v18902_v32  ;;  %23379 = vst [vmem:[#allocation53_spill] sm:$0xff] %v18959_v49  ;;  %v14943_v32 = vld [vmem:[#allocation2 + $0x1e4] ss:$48 sps:$4 sm:$0xff]   ;;  %v14945_v56 = vld [vmem:[#allocation2 + $0x1fc] ss:$48 sps:$4 sm:$0xff]  }
 0x410   : > { %14131 = vrot.lane.b32.xlu1 %v14130_v39, %s15504_s28  ;;  %v18943_v53 = vpop.permute.xlu0 %13681  ;;  %v7481_v38 = vcombine.high %v7441_v37, %v7473_v29  ;;  %v14941_v39 = vld [vmem:[#allocation2 + $0x19c] ss:$48 sps:$4 sm:$0xff]   ;;  %v4642_v15 = vcombine.low %v18946_v17, %v18949_v63  ;;  %v18967_v46 = vrot.slane %v14931_v50, %v16502_v36  ;;  %v18970_v23 = vrot.slane %v14933_v13, %v16502_v36  ;;  %v14951_v50 = vld [vmem:[#allocation2 + $0x2a4] ss:$48 sps:$4 sm:$0xff]  }
 0x411   : > { %v14135_v1 = vpack.i.bf16 %v7480_v30, %v7344_v4  ;;  %v4674_v9 = vcombine.low %v18952_v27, %v18955_v5  ;;  %v7345_v37 = vcombine.high %v7305_v44, %v18919_v55  ;;  %v18976_v29 = vrot.slane %v14935_v54, %v16502_v36  ;;  %v14939_v4 = vld [vmem:[#allocation2 + $0x184] ss:$48 sps:$4 sm:$0xff]  }
 0x412   : > { %v13845_v13 = vpack.i.bf16 %v3382_v19, %v3246_v35  ;;  %v4778_v28 = vcombine.low %v18967_v46, %v18970_v23  ;;  %v3901_v55 = vsel %vm3900_vm8, %v3896_v42, %v13623_v58  ;;  %v13629_v19 = vunpack.i.h.bf16 %v18626_v10 }
 0x413   : > { %13841 = vrot.lane.b32.xlu0 %v13840_v26, %s15556_s12  ;;  %v18979_v26 = vrot.slane %v14937_v57, %v16502_v36  ;;  %v4682_v59 = vrot.slane %v4674_v9, %v16780_v34  ;;  %v14140_v44 = vpack.i.bf16 %v7481_v38, %v7345_v37  ;;  %v18991_v57 = vrot.slane %v14941_v39, %v16502_v36  ;;  %v19003_v37 = vpop.permute.xlu1 %13996 }
 0x414   : > { %14136 = vrot.lane.b32.xlu1 %v14135_v1, %s15552_s8  ;;  %v18982_v30 = vpop.permute.xlu0 %13686  ;;  %v14947_v1 = vld [vmem:[#allocation2 + $0x244] ss:$48 sps:$4 sm:$0xff]   ;;  %v4650_v35 = vrot.slane %v4642_v15, %v16780_v34  ;;  %v8702_v9 = vrot.slane %v14943_v32, %v16502_v36  ;;  %v8718_v11 = vrot.slane %v14945_v56, %v16502_v36  ;;  %v13628_v42 = vunpack.i.l.bf16 %v18626_v10  ;;  %23381 = vst [vmem:[#allocation51_spill] sm:$0xff] %v19003_v37 }
 0x415   : > { %v4810_v54 = vcombine.low %v18976_v29, %v18979_v26  ;;  %v4786_v58 = vrot.slane %v4778_v28, %v16780_v34  ;;  %v8670_v39 = vrot.slane %v14939_v4, %v16502_v36  ;;  %v8806_v32 = vrot.slane %v14947_v1, %v16502_v36 }
 0x416   : > { %v8758_v15 = vcombine.low %v8702_v9, %v8718_v11  ;;  %v8822_v56 = vrot.slane %v14949_v12, %v16502_v36  ;;  %v8838_v28 = vrot.slane %v14951_v50, %v16502_v36  ;;  %v23382_v4 = vunpack.i.h.bf16 %v18605_v0 }
 0x417   : > { %13846 = vrot.lane.b32.xlu0 %v13845_v13, %s23380_s11  ;;  %v4818_v38 = vrot.slane %v4810_v54, %v16780_v34  ;;  %v4706_v13 = vcombine.low %v4650_v35, %v4682_v59  ;;  %v8854_v54 = vrot.slane %v14953_v60, %v16502_v36  ;;  %v19019_v12 = vsel %vm3905_vm7, %v3901_v55, %v13628_v42 }
 0x418   : > { %14141 = vrot.lane.b32.xlu1 %v14140_v44, %s23052_s16  ;;  %v19005_v52 = vpop.permute.xlu0 %13691  ;;  %v8726_v44 = vcombine.low %v8670_v39, %v18991_v57  ;;  %v3902_v14 = vsel %vm3900_vm8, %v18934_v41, %v23382_v4  ;;  %v8862_v1 = vcombine.low %v8806_v32, %v8822_v56  ;;  %23383 = vst [vmem:[#allocation32_spill] sm:$0xff] %v19019_v12  ;;  %v13663_v48 = vunpack.i.l.bf16 %v18843_v62 }
 0x419   : > { %v4842_v10 = vcombine.low %v4786_v58, %v4818_v38  ;;  %v19022_v3 = vrot.slane %v8758_v15, %v16780_v34  ;;  %v8894_v50 = vcombine.low %v8838_v28, %v8854_v54  ;;  %v19025_v60 = vsel %vm3905_vm7, %v3902_v14, %v13629_v19 }
 0x41a   : > { %23385 = vst [vmem:[#allocation64_spill] sm:$0xff] %v19025_v60  ;;  %v4843_v24 = vcombine.high %v4786_v58, %v4818_v38  ;;  %v19035_v55 = vrot.slane %v8726_v44, %v16780_v34  ;;  %v19038_v42 = vrot.slane %v8862_v1, %v16780_v34  ;;  %v4707_v19 = vcombine.high %v4650_v35, %v4682_v59 }
 0x41b   : > { %v13850_v2 = vpack.i.bf16 %v4842_v10, %v4706_v13  ;;  %23384 = vst [vmem:[#allocation28_spill] sm:$0xff] %v19022_v3  ;;  %v19041_v14 = vrot.slane %v8894_v50, %v16780_v34  ;;  %v8727_v10 = vcombine.high %v8670_v39, %v18991_v57  ;;  %v8759_v0 = vcombine.high %v8702_v9, %v8718_v11 }
 0x41c   : > { %v19029_v4 = vpop.permute.xlu0 %13696  ;;  %23386 = vst [vmem:[#allocation91_spill] sm:$0xff] %v19035_v55  ;;  %23387 = vst [vmem:[#allocation92_spill] sm:$0xff] %v19038_v42  ;;  %v22958_v58 = vunpack.i.h.bf16 %v18686_v22  ;;  %v13855_v44 = vpack.i.bf16 %v4843_v24, %v4707_v19  ;;  %v22959_v1 = vunpack.i.l.bf16 %v18686_v22  ;;  %v13644_v59 = vunpack.i.h.bf16 %v18704_v16  ;;  %v14963_v19 = vld [vmem:[#allocation2 + $0x24a] ss:$48 sps:$4 sm:$0xff]  }
 0x41d   : > { %13851 = vrot.lane.b32.xlu0 %v13850_v2, %s15530_s10  ;;  %23388 = vst [vmem:[#allocation93_spill] sm:$0xff] %v19041_v14  ;;  %v8791_v2 = vcombine.high %v19035_v55, %v19022_v3  ;;  %v8927_v38 = vcombine.high %v19038_v42, %v19041_v14  ;;  %v13643_v35 = vunpack.i.l.bf16 %v18704_v16  ;;  %v8863_v50 = vcombine.high %v8806_v32, %v8822_v56  ;;  %v14967_v14 = vld [vmem:[#allocation2 + $0x2aa] ss:$48 sps:$4 sm:$0xff]  }
 0x41e   : > { %v19031_v61 = vpop.permute.xlu1 %14006  ;;  %v8773_v39 = vrot.slane %v8759_v0, %v16780_v34  ;;  %v8895_v13 = vcombine.high %v8838_v28, %v8854_v54  ;;  %v8741_v15 = vrot.slane %v8727_v10, %v16780_v34  ;;  %v4643_v56 = vcombine.high %v18946_v17, %v18949_v63 }
 0x41f   : > { %v14145_v9 = vpack.i.bf16 %v8927_v38, %v8791_v2  ;;  %v8877_v16 = vrot.slane %v8863_v50, %v16780_v34  ;;  %v4675_v2 = vcombine.high %v18952_v27, %v18955_v5  ;;  %v4779_v28 = vcombine.high %v18967_v46, %v18970_v23  ;;  %v14955_v38 = vld [vmem:[#allocation2 + $0x18a] ss:$48 sps:$4 sm:$0xff]  }
 0x420   : > { %v19054_v41 = vpop.permute.xlu0 %13701  ;;  %v8909_v32 = vrot.slane %v8895_v13, %v16780_v34  ;;  %v19076_v54 = vsel %vm23174_vm10, %v22959_v1, %v13643_v35  ;;  %v19081_v0 = vsel %vm23174_vm10, %v22958_v58, %v13644_v59  ;;  %v4811_v17 = vcombine.high %v18976_v29, %v18979_v26  ;;  %v14959_v26 = vld [vmem:[#allocation2 + $0x1ea] ss:$48 sps:$4 sm:$0xff]  }
 0x421   : > { %23389 = vst [vmem:[#allocation94_spill] sm:$0xff] %v19054_v41  ;;  %13856 = vrot.lane.b32.xlu0 %v13855_v44, %s15554_s24  ;;  %14146 = vrot.lane.b32.xlu1 %v14145_v9, %s15549_s14  ;;  %v13654_v5 = vunpack.i.h.bf16 %v18762_v51  ;;  %v8792_v46 = vcombine.low %v8741_v15, %v8773_v39  ;;  %v4689_v10 = vrot.slane %v4675_v2, %v16780_v34  ;;  %v14957_v44 = vld [vmem:[#allocation2 + $0x1a2] ss:$48 sps:$4 sm:$0xff]   ;;  %v13653_v59 = vunpack.i.l.bf16 %v18762_v51 }
 0x422   : > { %v19056_v57 = vpop.permute.xlu1 %14011  ;;  %v8928_v23 = vcombine.low %v8877_v16, %v8909_v32  ;;  %v4657_v35 = vrot.slane %v4643_v56, %v16780_v34  ;;  %v4793_v50 = vrot.slane %v4779_v28, %v16780_v34  ;;  %v4825_v29 = vrot.slane %v4811_v17, %v16780_v34  ;;  %v14961_v9 = vld [vmem:[#allocation2 + $0x202] ss:$48 sps:$4 sm:$0xff]  }
 0x423   : > { %v8929_v1 = vcombine.high %v8877_v16, %v8909_v32  ;;  %v14965_v2 = vld [vmem:[#allocation2 + $0x262] ss:$48 sps:$4 sm:$0xff]   ;;  %v23392_v11 = vcombine.low %v23377_v43, %v23376_v40  ;;  %v8793_v16 = vcombine.high %v8741_v15, %v8773_v39  ;;  %v19112_v32 = vrot.slane %v14955_v38, %v16502_v36 }
 0x424   : > { %v19086_v63 = vpop.permute.xlu0 %13706  ;;  %v14150_v58 = vpack.i.bf16 %v8928_v23, %v8792_v46  ;;  %v4708_v42 = vcombine.low %v4657_v35, %v4689_v10  ;;  %v4844_v56 = vcombine.low %v4793_v50, %v4825_v29  ;;  %v14969_v28 = vld [vmem:[#allocation2 + $0x2c2] ss:$48 sps:$4 sm:$0xff]   ;;  %v19115_v51 = vrot.slane %v14957_v44, %v16502_v36 }
 0x425   : > { %23390 = vst [vmem:[#allocation95_spill] sm:$0xff] %v19086_v63  ;;  %v19108_v46 = vsel %vm23175_vm9, %v23392_v11, %v13654_v5  ;;  %v4845_v24 = vcombine.high %v4793_v50, %v4825_v29  ;;  %v11613_v13 = vrot.slane %v14959_v26, %v16502_v36  ;;  %v11629_v3 = vrot.slane %v14961_v9, %v16502_v36  ;;  %v14971_v11 = vld [vmem:[#allocation2 + $0xd] ss:$48 sps:$4 sm:$0xff]   ;;  %v14972_v39 = vld [vmem:[#allocation2 + $0x25] ss:$48 sps:$4 sm:$0xff]  }
 0x426   : > { %v19088_v27 = vpop.permute.xlu1 %14016  ;;  %14151 = vrot.lane.b32.xlu1 %v14150_v58, %s15534_s7  ;;  %v13860_v23 = vpack.i.bf16 %v4844_v56, %v4708_v42  ;;  %v14155_v40 = vpack.i.bf16 %v8929_v1, %v8793_v16  ;;  %v11646_v43 = vcombine.low %v19112_v32, %v19115_v51  ;;  %v19122_v58 = vrot.slane %v14963_v19, %v16502_v36  ;;  %v14973_v5 = vld [vmem:[#allocation2 + $0x6d] ss:$48 sps:$4 sm:$0xff]   ;;  %v14974_v50 = vld [vmem:[#allocation2 + $0x85] ss:$48 sps:$4 sm:$0xff]  }
 0x427   : > { %v19125_v15 = vrot.slane %v14965_v2, %v16502_v36  ;;  %v4709_v42 = vcombine.high %v4657_v35, %v4689_v10  ;;  %v11678_v38 = vcombine.low %v11613_v13, %v11629_v3  ;;  %v19129_v44 = vrot.slane %v14967_v14, %v16502_v36  ;;  %v14975_v29 = vld [vmem:[#allocation2 + $0xcd] ss:$48 sps:$4 sm:$0xff]   ;;  %v14976_v35 = vld [vmem:[#allocation2 + $0xe5] ss:$48 sps:$4 sm:$0xff]  }
 0x428   : > { %v19100_v55 = vpop.permute.xlu0 %13711  ;;  %13861 = vrot.lane.b32.xlu0 %v13860_v23, %s15511_s6  ;;  %v11765_v1 = vrot.slane %v14969_v28, %v16502_v36  ;;  %v23394_v9 = vcombine.low %v23374_v31, %v23373_v6  ;;  %v13659_v56 = vunpack.i.h.bf16 %v18805_v47  ;;  %v13658_v10 = vunpack.i.l.bf16 %v18805_v47  ;;  %v14977_v28 = vld [vmem:[#allocation2 + $0x12d] ss:$48 sps:$4 sm:$0xff]   ;;  %v14978_v16 = vld [vmem:[#allocation2 + $0x145] ss:$48 sps:$4 sm:$0xff]  }
 0x429   : > { %v11782_v14 = vcombine.low %v19122_v58, %v19125_v15  ;;  %v13865_v23 = vpack.i.bf16 %v4845_v24, %v4709_v42  ;;  %v19146_v21 = vrot.slane %v11646_v43, %v16780_v34  ;;  %v19149_v6 = vrot.slane %v11678_v38, %v16780_v34 }
 0x42a   : > { %v19102_v17 = vpop.permute.xlu1 %14021  ;;  %v5362_v2 = vsel %vm23175_vm9, %v23394_v9, %v13653_v59  ;;  %14156 = vrot.lane.b32.xlu1 %v14155_v40, %s15550_s17  ;;  %v11814_v31 = vcombine.low %v19129_v44, %v11765_v1  ;;  %v19156_v47 = vrot.slane %v14971_v11, %v16502_v36  ;;  %v19159_v40 = vrot.slane %v14972_v39, %v16502_v36 }
 0x42b   : > { %23391 = vst [vmem:[#allocation96_spill] sm:$0xff] %v19102_v17  ;;  %23395 = vst [vmem:[#allocation98_spill] sm:$0xff] %v19146_v21  ;;  %v19153_v59 = vrot.slane %v11782_v14, %v16780_v34  ;;  %v19162_v9 = vrot.slane %v14973_v5, %v16502_v36  ;;  %v11699_v24 = vcombine.high %v19146_v21, %v19149_v6 }
 0x42c   : > { %v19132_v26 = vpop.permute.xlu0 %13716  ;;  %23396 = vst [vmem:[#allocation99_spill] sm:$0xff] %v19149_v6  ;;  %13866 = vrot.lane.b32.xlu0 %v13865_v23, %s15553_s26  ;;  %v19168_v43 = vrot.slane %v11814_v31, %v16780_v34  ;;  %v19171_v42 = vrot.slane %v14974_v50, %v16502_v36  ;;  %v19174_v11 = vrot.slane %v14975_v29, %v16502_v36  ;;  %v14981_v6 = vld [vmem:[#allocation2 + $0x1a1] ss:$48 sps:$4 sm:$0xff]  }
 0x42d   : > { %23397 = vst [vmem:[#allocation100_spill] sm:$0xff] %v19153_v59  ;;  %v4658_v39 = vcombine.low %v19156_v47, %v19159_v40  ;;  %v19181_v5 = vrot.slane %v14976_v35, %v16502_v36  ;;  %v19184_v14 = vrot.slane %v14977_v28, %v16502_v36  ;;  %v19187_v23 = vrot.slane %v14978_v16, %v16502_v36 }
 0x42e   : > { %v19134_v19 = vpop.permute.xlu1 %14026  ;;  %23398 = vst [vmem:[#allocation101_spill] sm:$0xff] %v19168_v43  ;;  %v11835_v50 = vcombine.high %v19153_v59, %v19168_v43  ;;  %v4690_v29 = vcombine.low %v19162_v9, %v19171_v42  ;;  %v11647_v31 = vcombine.high %v19112_v32, %v19115_v51  ;;  %v11679_v22 = vcombine.high %v11613_v13, %v11629_v3 }
 0x42f   : > { %23393 = vst [vmem:[#allocation97_spill] sm:$0xff] %v19134_v19  ;;  %v13664_v35 = vunpack.i.h.bf16 %v18843_v62  ;;  %v4794_v28 = vcombine.low %v19174_v11, %v19181_v5  ;;  %v4826_v16 = vcombine.low %v19184_v14, %v19187_v23  ;;  %v11783_v12 = vcombine.high %v19122_v58, %v19125_v15 }
 0x430   : > { %v19195_v60 = vpop.permute.xlu0 %13721  ;;  %v14160_v25 = vpack.i.bf16 %v11835_v50, %v11699_v24  ;;  %v4698_v37 = vrot.slane %v4690_v29, %v16780_v34  ;;  %v19207_v3 = vrot.slane %v11679_v22, %v16780_v34  ;;  %v4666_v32 = vrot.slane %v4658_v39, %v16780_v34  ;;  %v14979_v39 = vld [vmem:[#allocation2 + $0x189] ss:$48 sps:$4 sm:$0xff]  }
 0x431   : > { %v4802_v51 = vrot.slane %v4794_v28, %v16780_v34  ;;  %v4834_v49 = vrot.slane %v4826_v16, %v16780_v34  ;;  %v11815_v21 = vcombine.high %v19129_v44, %v11765_v1  ;;  %v23400_v58 = vunpack.i.l.bf16 %v18728_v45  ;;  %v14983_v50 = vld [vmem:[#allocation2 + $0x1e9] ss:$48 sps:$4 sm:$0xff]   ;;  %v14985_v44 = vld [vmem:[#allocation2 + $0x201] ss:$48 sps:$4 sm:$0xff]  }
 0x432   : > { %v19176_v38 = vpop.permute.xlu1 %14031  ;;  %23399 = vst [vmem:[#allocation102_spill] sm:$0xff] %v19207_v3  ;;  %v5366_v22 = vsel %vm3900_vm8, %v5362_v2, %v13658_v10  ;;  %v5367_v15 = vsel %vm3900_vm8, %v19108_v46, %v13659_v56  ;;  %14161 = vrot.lane.b32.xlu1 %v14160_v25, %s15504_s28  ;;  %v19226_v24 = vrot.slane %v11647_v31, %v16780_v34  ;;  %v14987_v2 = vld [vmem:[#allocation2 + $0x249] ss:$48 sps:$4 sm:$0xff]   ;;  %v14989_v10 = vld [vmem:[#allocation2 + $0x261] ss:$48 sps:$4 sm:$0xff]   ;;  %v23405_v46 = vunpack.i.h.bf16 %v18728_v45 }
 0x433   : > { %v19219_v62 = vsel %vm3925_vm2, %v19076_v54, %v23400_v58  ;;  %v4710_v1 = vcombine.low %v4666_v32, %v4698_v37  ;;  %v4846_v29 = vcombine.low %v4802_v51, %v4834_v49  ;;  %v19229_v28 = vrot.slane %v11783_v12, %v16780_v34  ;;  %v14991_v16 = vld [vmem:[#allocation2 + $0x2a9] ss:$48 sps:$4 sm:$0xff]  }
 0x434   : > { %23401 = vst [vmem:[#allocation103_spill] sm:$0xff] %v19219_v62  ;;  %23402 = vst [vmem:[#allocation104_spill] sm:$0xff] %v19226_v24  ;;  %v19232_v54 = vrot.slane %v11815_v21, %v16780_v34  ;;  %v19238_v25 = vsel %vm3925_vm2, %v19081_v0, %v23405_v46  ;;  %v19241_v56 = vsel %vm3905_vm7, %v5366_v22, %v13663_v48  ;;  %v14993_v21 = vld [vmem:[#allocation2 + $0x2c1] ss:$48 sps:$4 sm:$0xff]   ;;  %v19248_v58 = vpop.permute.xlu0 %13726 }
 0x435   : > { %23403 = vst [vmem:[#allocation105_spill] sm:$0xff] %v19229_v28  ;;  %23406 = vst [vmem:[#allocation107_spill] sm:$0xff] %v19238_v25  ;;  %v19244_v31 = vsel %vm3905_vm7, %v5367_v15, %v13664_v35  ;;  %v11701_v12 = vcombine.high %v19226_v24, %v19207_v3  ;;  %v13870_v45 = vpack.i.bf16 %v4846_v29, %v4710_v1  ;;  %v13684_v35 = vunpack.i.h.bf16 %v18943_v53  ;;  %v15002_v24 = vld [vmem:[#allocation2 + $0x2bd] ss:$48 sps:$4 sm:$0xff]  }
 0x436   : > { %v19209_v13 = vpop.permute.xlu1 %14036  ;;  %23404 = vst [vmem:[#allocation106_spill] sm:$0xff] %v19232_v54  ;;  %23407 = vst [vmem:[#allocation108_spill] sm:$0xff] %v19241_v56  ;;  %v11837_v0 = vcombine.high %v19229_v28, %v19232_v54  ;;  %v4847_v46 = vcombine.high %v4802_v51, %v4834_v49  ;;  %v19255_v48 = vrot.slane %v14981_v6, %v16502_v36  ;;  %v15013_v28 = vld [vmem:[#allocation2 + $0xe2] ss:$48 sps:$4 sm:$0xff]  }
 0x437   : > { %23408 = vst [vmem:[#allocation109_spill] sm:$0xff] %v19244_v31  ;;  %v19259_v22 = vrot.slane %v14979_v39, %v16502_v36  ;;  %v19262_v15 = vrot.slane %v14983_v50, %v16502_v36  ;;  %v19265_v31 = vrot.slane %v14985_v44, %v16502_v36  ;;  %13871 = vrot.lane.b32.xlu0 %v13870_v45, %s15555_s29  ;;  %v14038_v41 = vunpack.i.l.bf16 %v19209_v13 }
 0x438   : > { %23409 = vst [vmem:[#allocation110_spill] sm:$0xff] %v19255_v48  ;;  %v14170_v1 = vpack.i.bf16 %v11837_v0, %v11701_v12  ;;  %v4711_v29 = vcombine.high %v4666_v32, %v4698_v37  ;;  %v19269_v49 = vrot.slane %v14987_v2, %v16502_v36  ;;  %v19272_v6 = vrot.slane %v14989_v10, %v16502_v36  ;;  %v23417_v0 = vld [vmem:[#allocation48_spill] sm:$0xff] }
 0x439   : > { %23410 = vst [vmem:[#allocation111_spill] sm:$0xff] %v19259_v22  ;;  %23411 = vst [vmem:[#allocation112_spill] sm:$0xff] %v19262_v15  ;;  %v10195_v51 = vcombine.high %v19259_v22, %v19255_v48  ;;  %v10227_v39 = vcombine.high %v19262_v15, %v19265_v31  ;;  %v19279_v50 = vrot.slane %v14991_v16, %v16502_v36  ;;  %v23418_v16 = vld [vmem:[#allocation36_spill] sm:$0xff]  ;;  %v19297_v15 = vpop.permute.xlu0 %13731  ;;  %v13679_v37 = vunpack.i.h.bf16 %v18926_v8 }
 0x43a   : > { %v19250_v59 = vpop.permute.xlu1 %14041  ;;  %23412 = vst [vmem:[#allocation113_spill] sm:$0xff] %v19265_v31  ;;  %23413 = vst [vmem:[#allocation114_spill] sm:$0xff] %v19269_v49  ;;  %v19282_v44 = vrot.slane %v14993_v21, %v16502_v36  ;;  %14171 = vrot.lane.b32.xlu1 %v14170_v1, %s23052_s16  ;;  %v13875_v2 = vpack.i.bf16 %v4847_v46, %v4711_v29  ;;  %v10331_v10 = vcombine.high %v19269_v49, %v19272_v6  ;;  %v23419_v46 = vld [vmem:[#allocation38_spill] sm:$0xff]  ;;  %v23420_v29 = vld [vmem:[#allocation29_spill] sm:$0xff] }
 0x43b   : > { %23414 = vst [vmem:[#allocation115_spill] sm:$0xff] %v19272_v6  ;;  %23415 = vst [vmem:[#allocation116_spill] sm:$0xff] %v19279_v50  ;;  %v10241_v21 = vrot.slane %v10227_v39, %v16780_v34  ;;  %v13678_v1 = vunpack.i.l.bf16 %v18926_v8  ;;  %v5750_v32 = vcombine.low %v23420_v29, %v23419_v46  ;;  %v4659_v45 = vcombine.high %v19156_v47, %v19159_v40  ;;  %v14997_v31 = vld [vmem:[#allocation2 + $0x1e5] ss:$48 sps:$4 sm:$0xff]  }
 0x43c   : > { %23416 = vst [vmem:[#allocation117_spill] sm:$0xff] %v19282_v44  ;;  %v10363_v56 = vcombine.high %v19279_v50, %v19282_v44  ;;  %13876 = vrot.lane.b32.xlu0 %v13875_v2, %s15537_s9  ;;  %v10209_v39 = vrot.slane %v10195_v51, %v16780_v34  ;;  %v10345_v33 = vrot.slane %v10331_v10, %v16780_v34  ;;  %v13683_v8 = vunpack.i.l.bf16 %v18943_v53  ;;  %v14999_v22 = vld [vmem:[#allocation2 + $0x245] ss:$48 sps:$4 sm:$0xff]  }
 0x43d   : > { %v4691_v46 = vcombine.high %v19162_v9, %v19171_v42  ;;  %v4795_v2 = vcombine.high %v19174_v11, %v19181_v5  ;;  %v4827_v47 = vcombine.high %v19184_v14, %v19187_v23  ;;  %v13689_v40 = vunpack.i.h.bf16 %v18982_v30  ;;  %v14995_v9 = vld [vmem:[#allocation2 + $0x185] ss:$48 sps:$4 sm:$0xff]   ;;  %v14996_v42 = vld [vmem:[#allocation2 + $0x19d] ss:$48 sps:$4 sm:$0xff]   ;;  %v19330_v48 = vpop.permute.xlu0 %13736 }
 0x43e   : > { %v19284_v12 = vpop.permute.xlu1 %14046  ;;  %v10377_v50 = vrot.slane %v10363_v56, %v16780_v34  ;;  %v10248_v51 = vcombine.low %v10209_v39, %v10241_v21  ;;  %v4673_v56 = vrot.slane %v4659_v45, %v16780_v34  ;;  %v23421_v11 = vunpack.i.l.bf16 %v18896_v7  ;;  %v14998_v45 = vld [vmem:[#allocation2 + $0x1fd] ss:$48 sps:$4 sm:$0xff]   ;;  %23423 = vst [vmem:[#allocation48_spill] sm:$0xff] %v19330_v48 }
 0x43f   : > { %v4705_v49 = vrot.slane %v4691_v46, %v16780_v34  ;;  %v4809_v53 = vrot.slane %v4795_v2, %v16780_v34  ;;  %v4841_v6 = vrot.slane %v4827_v47, %v16780_v34  ;;  %v23422_v14 = vunpack.i.h.bf16 %v18896_v7  ;;  %v15000_v46 = vld [vmem:[#allocation2 + $0x25d] ss:$48 sps:$4 sm:$0xff]   ;;  %v15001_v7 = vld [vmem:[#allocation2 + $0x2a5] ss:$48 sps:$4 sm:$0xff]  }
 0x440   : > { %v10384_v29 = vcombine.low %v10345_v33, %v10377_v50  ;;  %v10385_v10 = vcombine.high %v10345_v33, %v10377_v50  ;;  %v5382_v5 = vsel %vm23174_vm10, %v23421_v11, %v13678_v1  ;;  %v10249_v50 = vcombine.high %v10209_v39, %v10241_v21 }
 0x441   : > { %v5383_v23 = vsel %vm23174_vm10, %v23422_v14, %v13679_v37  ;;  %v19335_v47 = vsel %vm3925_vm2, %v5382_v5, %v13683_v8  ;;  %v4712_v1 = vcombine.low %v4673_v56, %v4705_v49  ;;  %v4848_v11 = vcombine.low %v4809_v53, %v4841_v6 }
 0x442   : > { %v19310_v44 = vpop.permute.xlu1 %14051  ;;  %v14200_v33 = vpack.i.bf16 %v10384_v29, %v10248_v51  ;;  %23425 = vst [vmem:[#allocation38_spill] sm:$0xff] %v19335_v47  ;;  %v19338_v43 = vsel %vm3925_vm2, %v5383_v23, %v13684_v35  ;;  %v19341_v37 = vsel %vm23175_vm9, %v5750_v32, %v13689_v40  ;;  %v13688_v21 = vunpack.i.l.bf16 %v18982_v30 }
 0x443   : > { %23426 = vst [vmem:[#allocation29_spill] sm:$0xff] %v19338_v43  ;;  %v13693_v39 = vunpack.i.l.bf16 %v19005_v52  ;;  %v14205_v51 = vpack.i.bf16 %v10385_v10, %v10249_v50  ;;  %v13880_v29 = vpack.i.bf16 %v4848_v11, %v4712_v1  ;;  %v4849_v8 = vcombine.high %v4809_v53, %v4841_v6  ;;  %v15009_v50 = vld [vmem:[#allocation2 + $0x82] ss:$48 sps:$4 sm:$0xff]   ;;  %v23431_v1 = vld [vmem:[#allocation49_spill] sm:$0xff] }
 0x444   : > { %14201 = vrot.lane.b32.xlu1 %v14200_v33, %s15552_s8  ;;  %v19347_v5 = vrot.slane %v14995_v9, %v16502_v36  ;;  %v19350_v35 = vrot.slane %v14996_v42, %v16502_v36  ;;  %v19353_v14 = vrot.slane %v14997_v31, %v16502_v36  ;;  %v10170_v32 = vrot.slane %v14998_v45, %v16502_v36  ;;  %v15003_v9 = vld [vmem:[#allocation2 + $0xa] ss:$48 sps:$4 sm:$0xff]   ;;  %v15005_v42 = vld [vmem:[#allocation2 + $0x22] ss:$48 sps:$4 sm:$0xff]  }
 0x445   : > { %v19357_v30 = vrot.slane %v14999_v22, %v16502_v36  ;;  %v19360_v40 = vrot.slane %v15000_v46, %v16502_v36  ;;  %13881 = vrot.lane.b32.xlu0 %v13880_v29, %s15556_s12  ;;  %v4713_v6 = vcombine.high %v4673_v56, %v4705_v49  ;;  %v19366_v53 = vrot.slane %v15001_v7, %v16502_v36  ;;  %v15007_v56 = vld [vmem:[#allocation2 + $0x6a] ss:$48 sps:$4 sm:$0xff]   ;;  %v23430_v46 = vld [vmem:[#allocation40_spill] sm:$0xff]  ;;  %v23433_v11 = vld [vmem:[#allocation46_spill] sm:$0xff] }
 0x446   : > { %v19332_v2 = vpop.permute.xlu1 %14056  ;;  %v10178_v10 = vcombine.low %v19347_v5, %v19350_v35  ;;  %v19369_v31 = vrot.slane %v15002_v24, %v16502_v36  ;;  %v23427_v22 = vcombine.low %v23418_v16, %v23417_v0  ;;  %v13694_v33 = vunpack.i.h.bf16 %v19005_v52  ;;  %v19380_v24 = vpop.permute.xlu0 %13741  ;;  %v23432_v16 = vld [vmem:[#allocation47_spill] sm:$0xff] }
 0x447   : > { %23424 = vst [vmem:[#allocation36_spill] sm:$0xff] %v19332_v2  ;;  %v10210_v49 = vcombine.low %v19353_v14, %v10170_v32  ;;  %v10314_v7 = vcombine.low %v19357_v30, %v19360_v40  ;;  %23428 = vst [vmem:[#allocation118_spill] sm:$0xff] %v19380_v24  ;;  %v2967_v0 = vcombine.low %v23431_v1, %v23430_v46  ;;  %v15011_v29 = vld [vmem:[#allocation2 + $0xca] ss:$48 sps:$4 sm:$0xff]   ;;  %v13699_v47 = vunpack.i.h.bf16 %v19029_v4  ;;  %v15017_v1 = vld [vmem:[#allocation2 + $0x142] ss:$48 sps:$4 sm:$0xff]  }
 0x448   : > { %v6814_v23 = vsel %vm23175_vm9, %v23427_v22, %v13688_v21  ;;  %14206 = vrot.lane.b32.xlu1 %v14205_v51, %s23052_s16  ;;  %v3103_v21 = vcombine.low %v23433_v11, %v23432_v16  ;;  %v13885_v52 = vpack.i.bf16 %v4849_v8, %v4713_v6  ;;  %v10346_v51 = vcombine.low %v19366_v53, %v19369_v31  ;;  %v15015_v46 = vld [vmem:[#allocation2 + $0x12a] ss:$48 sps:$4 sm:$0xff]   ;;  %s23566_s16 = smov 88  }
 0x449   : > { %v6818_v22 = vsel %vm3900_vm8, %v6814_v23, %v13693_v39  ;;  %v19393_v43 = vrot.slane %v10178_v10, %v16780_v34  ;;  %v19396_v3 = vrot.slane %v10210_v49, %v16780_v34  ;;  %v19400_v8 = vrot.slane %v10314_v7, %v16780_v34 }
 0x44a   : > { %v19382_v45 = vpop.permute.xlu1 %14061  ;;  %13886 = vrot.lane.b32.xlu0 %v13885_v52, %s23380_s11  ;;  %v19403_v6 = vrot.slane %v10346_v51, %v16780_v34  ;;  %v19406_v39 = vrot.slane %v15003_v9, %v16502_v36  ;;  %v19409_v10 = vrot.slane %v15005_v42, %v16502_v36  ;;  %v13698_v23 = vunpack.i.l.bf16 %v19029_v4 }
 0x44b   : > { %23429 = vst [vmem:[#allocation119_spill] sm:$0xff] %v19382_v45  ;;  %23434 = vst [vmem:[#allocation40_spill] sm:$0xff] %v19393_v43  ;;  %v14009_v49 = vunpack.i.h.bf16 %v19031_v61  ;;  %v19414_v16 = vrot.slane %v15007_v56, %v16502_v36  ;;  %v19417_v11 = vrot.slane %v15009_v50, %v16502_v36  ;;  %v10243_v7 = vcombine.high %v19393_v43, %v19396_v3  ;;  %v19439_v43 = vpop.permute.xlu0 %13746 }
 0x44c   : > { %23435 = vst [vmem:[#allocation49_spill] sm:$0xff] %v19396_v3  ;;  %23436 = vst [vmem:[#allocation47_spill] sm:$0xff] %v19400_v8  ;;  %v10379_v9 = vcombine.high %v19400_v8, %v19403_v6  ;;  %v6094_v42 = vcombine.low %v19406_v39, %v19409_v10  ;;  %v19426_v52 = vrot.slane %v15011_v29, %v16502_v36  ;;  %v14008_v8 = vunpack.i.l.bf16 %v19031_v61 }
 0x44d   : > { %23437 = vst [vmem:[#allocation46_spill] sm:$0xff] %v19403_v6  ;;  %v6126_v4 = vcombine.low %v19414_v16, %v19417_v11  ;;  %v19431_v56 = vrot.slane %v15013_v28, %v16502_v36  ;;  %v19434_v50 = vrot.slane %v15015_v46, %v16502_v36  ;;  %v19437_v51 = vrot.slane %v15017_v1, %v16502_v36 }
 0x44e   : > { %v19441_v3 = vpop.permute.xlu1 %14066  ;;  %v14210_v29 = vpack.i.bf16 %v10379_v9, %v10243_v7  ;;  %v10179_v6 = vcombine.high %v19347_v5, %v19350_v35  ;;  %v10211_v54 = vcombine.high %v19353_v14, %v10170_v32  ;;  %v10315_v62 = vcombine.high %v19357_v30, %v19360_v40  ;;  %v15019_v14 = vld [vmem:[#allocation2 + $0x188] ss:$48 sps:$4 sm:$0xff]   ;;  %v15021_v32 = vld [vmem:[#allocation2 + $0x1a0] ss:$48 sps:$4 sm:$0xff]  }
 0x44f   : > { %v6134_v28 = vrot.slane %v6126_v4, %v16780_v34  ;;  %v6230_v46 = vcombine.low %v19426_v52, %v19431_v56  ;;  %v6262_v1 = vcombine.low %v19434_v50, %v19437_v51  ;;  %v6819_v61 = vsel %vm3900_vm8, %v19341_v37, %v13694_v33 }
 0x450   : > { %v19457_v7 = vsel %vm3905_vm7, %v6818_v22, %v13698_v23  ;;  %14211 = vrot.lane.b32.xlu1 %v14210_v29, %s15549_s14  ;;  %v19461_v5 = vrot.slane %v10211_v54, %v16780_v34  ;;  %v10347_v35 = vcombine.high %v19366_v53, %v19369_v31  ;;  %v19466_v9 = vsel %vm3905_vm7, %v6819_v61, %v13699_v47  ;;  %v15023_v31 = vld [vmem:[#allocation2 + $0x1e8] ss:$48 sps:$4 sm:$0xff]   ;;  %v15025_v47 = vld [vmem:[#allocation2 + $0x200] ss:$48 sps:$4 sm:$0xff]  }
 0x451   : > { %23438 = vst [vmem:[#allocation120_spill] sm:$0xff] %v19457_v7  ;;  %23440 = vst [vmem:[#allocation122_spill] sm:$0xff] %v19466_v9  ;;  %v6102_v30 = vrot.slane %v6094_v42, %v16780_v34  ;;  %v6238_v37 = vrot.slane %v6230_v46, %v16780_v34  ;;  %v6270_v40 = vrot.slane %v6262_v1, %v16780_v34  ;;  %v15027_v23 = vld [vmem:[#allocation2 + $0x248] ss:$48 sps:$4 sm:$0xff]   ;;  %v14013_v4 = vunpack.i.l.bf16 %v19056_v57  ;;  %v15029_v1 = vld [vmem:[#allocation2 + $0x260] ss:$48 sps:$4 sm:$0xff]  }
 0x452   : > { %23439 = vst [vmem:[#allocation121_spill] sm:$0xff] %v19461_v5  ;;  %v3899_v33 = vsel %vm23175_vm9, %v3103_v21, %v14009_v49  ;;  %v19473_v22 = vrot.slane %v10179_v6, %v16780_v34  ;;  %v19476_v54 = vrot.slane %v10315_v62, %v16780_v34  ;;  %v19479_v53 = vrot.slane %v10347_v35, %v16780_v34  ;;  %v15031_v21 = vld [vmem:[#allocation2 + $0x2a8] ss:$48 sps:$4 sm:$0xff]   ;;  %v15033_v49 = vld [vmem:[#allocation2 + $0x2c0] ss:$48 sps:$4 sm:$0xff]   ;;  %v19483_v6 = vpop.permute.xlu0 %13751  ;;  %v19485_v61 = vpop.permute.xlu1 %14071 }
 0x453   : > { %v3898_v42 = vsel %vm23175_vm9, %v2967_v0, %v14008_v8  ;;  %v6158_v29 = vcombine.low %v6102_v30, %v6134_v28  ;;  %v6294_v46 = vcombine.low %v6238_v37, %v6270_v40  ;;  %23442 = vst [vmem:[#allocation124_spill] sm:$0xff] %v19485_v61  ;;  %v19492_v9 = vrot.slane %v15019_v14, %v16502_v36 }
 0x454   : > { %23441 = vst [vmem:[#allocation123_spill] sm:$0xff] %v19473_v22  ;;  %v10245_v62 = vcombine.high %v19473_v22, %v19461_v5  ;;  %v10381_v35 = vcombine.high %v19476_v54, %v19479_v53  ;;  %v19495_v0 = vrot.slane %v15021_v32, %v16502_v36  ;;  %v6159_v25 = vcombine.high %v6102_v30, %v6134_v28 }
 0x455   : > { %v13890_v7 = vpack.i.bf16 %v6294_v46, %v6158_v29  ;;  %v6295_v18 = vcombine.high %v6238_v37, %v6270_v40  ;;  %v19499_v61 = vrot.slane %v15023_v31, %v16502_v36  ;;  %v19502_v22 = vrot.slane %v15025_v47, %v16502_v36  ;;  %v23452_v37 = vld [vmem:[#allocation22_spill] sm:$0xff] }
 0x456   : > { %v14220_v45 = vpack.i.bf16 %v10381_v35, %v10245_v62  ;;  %v3447_v5 = vcombine.low %v19492_v9, %v19495_v0  ;;  %v19508_v14 = vrot.slane %v15027_v23, %v16502_v36  ;;  %v19511_v32 = vrot.slane %v15029_v1, %v16502_v36  ;;  %v19527_v1 = vpop.permute.xlu0 %13756 }
 0x457   : > { %13891 = vrot.lane.b32.xlu0 %v13890_v7, %s15530_s10  ;;  %v19514_v28 = vrot.slane %v15031_v21, %v16502_v36  ;;  %v3575_v30 = vrot.slane %v15033_v49, %v16502_v36  ;;  %v14014_v40 = vunpack.i.h.bf16 %v19056_v57  ;;  %v3903_v31 = vsel %vm3900_vm8, %v3898_v42, %v14013_v4  ;;  %23443 = vst [vmem:[#allocation125_spill] sm:$0xff] %v19527_v1  ;;  %v19529_v21 = vpop.permute.xlu1 %14076  ;;  %v15050_v1 = vld [vmem:[#allocation2 + $0x2c4] ss:$48 sps:$4 sm:$0xff]  }
 0x458   : > { %14221 = vrot.lane.b32.xlu1 %v14220_v45, %s15550_s17  ;;  %v3479_v7 = vcombine.low %v19499_v61, %v19502_v22  ;;  %v14018_v47 = vunpack.i.l.bf16 %v19088_v27  ;;  %v13895_v23 = vpack.i.bf16 %v6295_v18, %v6159_v25  ;;  %v3583_v29 = vcombine.low %v19508_v14, %v19511_v32 }
 0x459   : > { %v3615_v46 = vcombine.low %v19514_v28, %v3575_v30  ;;  %v6095_v45 = vcombine.high %v19406_v39, %v19409_v10  ;;  %v6127_v42 = vcombine.high %v19414_v16, %v19417_v11  ;;  %v6231_v18 = vcombine.high %v19426_v52, %v19431_v56 }
 0x45a   : > { %v3487_v57 = vrot.slane %v3479_v7, %v16780_v34  ;;  %v14019_v25 = vunpack.i.h.bf16 %v19088_v27  ;;  %v3455_v4 = vrot.slane %v3447_v5, %v16780_v34  ;;  %v3591_v49 = vrot.slane %v3583_v29, %v16780_v34 }
 0x45b   : > { %13896 = vrot.lane.b32.xlu0 %v13895_v23, %s15554_s24  ;;  %v3623_v62 = vrot.slane %v3615_v46, %v16780_v34  ;;  %v3904_v35 = vsel %vm3900_vm8, %v3899_v33, %v14014_v40  ;;  %v23006_v39 = vunpack.i.h.bf16 %v19086_v63  ;;  %v6141_v10 = vrot.slane %v6127_v42, %v16780_v34  ;;  %v19560_v46 = vpop.permute.xlu0 %13761 }
 0x45c   : > { %v6263_v16 = vcombine.high %v19434_v50, %v19437_v51  ;;  %v23007_v11 = vunpack.i.l.bf16 %v19086_v63  ;;  %v19550_v27 = vsel %vm3905_vm7, %v3903_v31, %v14018_v47  ;;  %v3511_v52 = vcombine.low %v3455_v4, %v3487_v57  ;;  %23446 = vst [vmem:[#allocation128_spill] sm:$0xff] %v19560_v46  ;;  %v19562_v31 = vpop.permute.xlu1 %14081 }
 0x45d   : > { %23444 = vst [vmem:[#allocation126_spill] sm:$0xff] %v19550_v27  ;;  %v3647_v56 = vcombine.low %v3591_v49, %v3623_v62  ;;  %v6109_v5 = vrot.slane %v6095_v45, %v16780_v34  ;;  %v6245_v7 = vrot.slane %v6231_v18, %v16780_v34  ;;  %v3648_v40 = vcombine.high %v3591_v49, %v3623_v62  ;;  %v15035_v62 = vld [vmem:[#allocation2 + $0xe] ss:$48 sps:$4 sm:$0xff]  }
 0x45e   : > { %v6277_v33 = vrot.slane %v6263_v16, %v16780_v34  ;;  %v19556_v23 = vsel %vm3905_vm7, %v3904_v35, %v14019_v25  ;;  %v13714_v29 = vunpack.i.h.bf16 %v19100_v55  ;;  %v13713_v50 = vunpack.i.l.bf16 %v19100_v55  ;;  %v15036_v35 = vld [vmem:[#allocation2 + $0x26] ss:$48 sps:$4 sm:$0xff]   ;;  %v15037_v16 = vld [vmem:[#allocation2 + $0x6e] ss:$48 sps:$4 sm:$0xff]  }
 0x45f   : > { %23445 = vst [vmem:[#allocation127_spill] sm:$0xff] %v19556_v23  ;;  %v14225_v51 = vpack.i.bf16 %v3647_v56, %v3511_v52  ;;  %v6160_v47 = vcombine.low %v6109_v5, %v6141_v10  ;;  %v3512_v45 = vcombine.high %v3455_v4, %v3487_v57  ;;  %v3448_v18 = vcombine.high %v19492_v9, %v19495_v0  ;;  %v15045_v52 = vld [vmem:[#allocation2 + $0x1ec] ss:$48 sps:$4 sm:$0xff]  }
 0x460   : > { %v6296_v42 = vcombine.low %v6245_v7, %v6277_v33  ;;  %v6297_v8 = vcombine.high %v6245_v7, %v6277_v33  ;;  %v3480_v25 = vcombine.high %v19499_v61, %v19502_v22  ;;  %v3584_v55 = vcombine.high %v19508_v14, %v19511_v32  ;;  %v15038_v7 = vld [vmem:[#allocation2 + $0x86] ss:$48 sps:$4 sm:$0xff]   ;;  %v15039_v33 = vld [vmem:[#allocation2 + $0xce] ss:$48 sps:$4 sm:$0xff]  }
 0x461   : > { %14226 = vrot.lane.b32.xlu1 %v14225_v51, %s15530_s10  ;;  %v3616_v49 = vcombine.high %v19514_v28, %v3575_v30  ;;  %v14230_v4 = vpack.i.bf16 %v3648_v40, %v3512_v45  ;;  %v6161_v56 = vcombine.high %v6109_v5, %v6141_v10  ;;  %v15040_v51 = vld [vmem:[#allocation2 + $0xe6] ss:$48 sps:$4 sm:$0xff]   ;;  %v3462_v9 = vrot.slane %v3448_v18, %v16780_v34  ;;  %v15041_v14 = vld [vmem:[#allocation2 + $0x12e] ss:$48 sps:$4 sm:$0xff]   ;;  %v19588_v18 = vpop.permute.xlu0 %13766 }
 0x462   : > { %v13900_v57 = vpack.i.bf16 %v6296_v42, %v6160_v47  ;;  %v3494_v22 = vrot.slane %v3480_v25, %v16780_v34  ;;  %v3598_v61 = vrot.slane %v3584_v55, %v16780_v34  ;;  %v15042_v32 = vld [vmem:[#allocation2 + $0x146] ss:$48 sps:$4 sm:$0xff]   ;;  %v13719_v30 = vunpack.i.h.bf16 %v19132_v26  ;;  %23447 = vst [vmem:[#allocation129_spill] sm:$0xff] %v19588_v18  ;;  %v19590_v25 = vpop.permute.xlu1 %14086 }
 0x463   : > { %v3630_v0 = vrot.slane %v3616_v49, %v16780_v34  ;;  %v13718_v40 = vunpack.i.l.bf16 %v19132_v26  ;;  %v13905_v10 = vpack.i.bf16 %v6297_v8, %v6161_v56  ;;  %v19583_v42 = vrot.slane %v15035_v62, %v16502_v36  ;;  %v15046_v28 = vld [vmem:[#allocation2 + $0x204] ss:$48 sps:$4 sm:$0xff]  }
 0x464   : > { %13901 = vrot.lane.b32.xlu0 %v13900_v57, %s15511_s6  ;;  %v3513_v5 = vcombine.low %v3462_v9, %v3494_v22  ;;  %v19586_v45 = vrot.slane %v15036_v35, %v16502_v36  ;;  %v19593_v55 = vrot.slane %v15037_v16, %v16502_v36  ;;  %v19596_v26 = vrot.slane %v15038_v7, %v16502_v36 }
 0x465   : > { %14231 = vrot.lane.b32.xlu1 %v14230_v4, %s15554_s24  ;;  %v3649_v47 = vcombine.low %v3598_v61, %v3630_v0  ;;  %v19599_v8 = vrot.slane %v15039_v33, %v16502_v36  ;;  %v19602_v49 = vrot.slane %v15040_v51, %v16502_v36  ;;  %v19607_v57 = vrot.slane %v15041_v14, %v16502_v36 }
 0x466   : > { %v6110_v35 = vcombine.low %v19583_v42, %v19586_v45  ;;  %v19610_v4 = vrot.slane %v15042_v32, %v16502_v36  ;;  %v6834_v16 = vsel %vm23174_vm10, %v23007_v11, %v13713_v50  ;;  %v6142_v56 = vcombine.low %v19593_v55, %v19596_v26  ;;  %v15047_v11 = vld [vmem:[#allocation2 + $0x24c] ss:$48 sps:$4 sm:$0xff]  }
 0x467   : > { %v14235_v62 = vpack.i.bf16 %v3649_v47, %v3513_v5  ;;  %v6246_v7 = vcombine.low %v19599_v8, %v19602_v49  ;;  %v3650_v33 = vcombine.high %v3598_v61, %v3630_v0  ;;  %v6835_v51 = vsel %vm23174_vm10, %v23006_v39, %v13714_v29  ;;  %v15044_v29 = vld [vmem:[#allocation2 + $0x1a4] ss:$48 sps:$4 sm:$0xff]  }
 0x468   : > { %13906 = vrot.lane.b32.xlu0 %v13905_v10, %s15553_s26  ;;  %v6278_v50 = vcombine.low %v19607_v57, %v19610_v4  ;;  %v3514_v32 = vcombine.high %v3462_v9, %v3494_v22  ;;  %v15043_v10 = vld [vmem:[#allocation2 + $0x18c] ss:$48 sps:$4 sm:$0xff]   ;;  %v19628_v5 = vsel %vm3925_vm2, %v6834_v16, %v13718_v40  ;;  %v19631_v47 = vsel %vm3925_vm2, %v6835_v51, %v13719_v30  ;;  %v15048_v40 = vld [vmem:[#allocation2 + $0x264] ss:$48 sps:$4 sm:$0xff]   ;;  %v19638_v16 = vpop.permute.xlu0 %13771  ;;  %v19640_v30 = vpop.permute.xlu1 %14091 }
 0x469   : > { %14236 = vrot.lane.b32.xlu1 %v14235_v62, %s15511_s6  ;;  %23448 = vst [vmem:[#allocation130_spill] sm:$0xff] %v19628_v5  ;;  %v6150_v0 = vrot.slane %v6142_v56, %v16780_v34  ;;  %v6118_v62 = vrot.slane %v6110_v35, %v16780_v34  ;;  %v6254_v39 = vrot.slane %v6246_v7, %v16780_v34  ;;  %23449 = vst [vmem:[#allocation131_spill] sm:$0xff] %v19638_v16  ;;  %v23451_v51 = vld [vmem:[#allocation43_spill] sm:$0xff]  ;;  %v23453_v56 = vld [vmem:[#allocation37_spill] sm:$0xff] }
 0x46a   : > { %v6286_v9 = vrot.slane %v6278_v50, %v16780_v34  ;;  %v14240_v22 = vpack.i.bf16 %v3650_v33, %v3514_v32  ;;  %23450 = vst [vmem:[#allocation132_spill] sm:$0xff] %v19640_v30  ;;  %v7066_v14 = vcombine.low %v23452_v37, %v23451_v51  ;;  %v23454_v61 = vld [vmem:[#allocation30_spill] sm:$0xff]  ;;  %v13724_v46 = vunpack.i.h.bf16 %v19195_v60  ;;  %v15049_v7 = vld [vmem:[#allocation2 + $0x2ac] ss:$48 sps:$4 sm:$0xff]  }
 0x46b   : > { %v7202_v18 = vcombine.low %v23454_v61, %v23453_v56  ;;  %v13723_v35 = vunpack.i.l.bf16 %v19195_v60  ;;  %v14034_v33 = vunpack.i.h.bf16 %v19176_v38  ;;  %v14033_v50 = vunpack.i.l.bf16 %v19176_v38 }
 0x46c   : > { %v6162_v32 = vcombine.low %v6118_v62, %v6150_v0  ;;  %v6298_v16 = vcombine.low %v6254_v39, %v6286_v9  ;;  %v19652_v23 = vrot.slane %v15043_v10, %v16502_v36  ;;  %v19655_v37 = vrot.slane %v15044_v29, %v16502_v36 }
 0x46d   : > { %14241 = vrot.lane.b32.xlu1 %v14240_v22, %s15553_s26  ;;  %v19658_v61 = vrot.slane %v15045_v52, %v16502_v36  ;;  %v19661_v60 = vrot.slane %v15046_v28, %v16502_v36  ;;  %v6299_v56 = vcombine.high %v6254_v39, %v6286_v9  ;;  %v19664_v38 = vrot.slane %v15047_v11, %v16502_v36 }
 0x46e   : > { %v13910_v51 = vpack.i.bf16 %v6298_v16, %v6162_v32  ;;  %v19667_v27 = vrot.slane %v15048_v40, %v16502_v36  ;;  %v3463_v10 = vcombine.low %v19652_v23, %v19655_v37  ;;  %v19674_v52 = vrot.slane %v15049_v7, %v16502_v36  ;;  %v19684_v40 = vpop.permute.xlu0 %13781  ;;  %v19686_v16 = vpop.permute.xlu1 %14096 }
 0x46f   : > { %v3495_v29 = vcombine.low %v19658_v61, %v19661_v60  ;;  %v19677_v28 = vrot.slane %v15050_v1, %v16502_v36  ;;  %v8267_v39 = vsel %vm23175_vm9, %v7202_v18, %v13724_v46  ;;  %v8266_v11 = vsel %vm23175_vm9, %v7066_v14, %v13723_v35  ;;  %23455 = vst [vmem:[#allocation43_spill] sm:$0xff] %v19686_v16 }
 0x470   : > { %13911 = vrot.lane.b32.xlu0 %v13910_v51, %s15555_s29  ;;  %v6163_v9 = vcombine.high %v6118_v62, %v6150_v0  ;;  %v3599_v22 = vcombine.low %v19664_v38, %v19667_v27  ;;  %v13729_v7 = vunpack.i.h.bf16 %v19248_v58  ;;  %v13728_v32 = vunpack.i.l.bf16 %v19248_v58 }
 0x471   : > { %v3503_v1 = vrot.slane %v3495_v29, %v16780_v34  ;;  %v3631_v46 = vcombine.low %v19674_v52, %v19677_v28  ;;  %v23456_v18 = vunpack.i.l.bf16 %v19134_v19  ;;  %v23457_v0 = vunpack.i.h.bf16 %v19134_v19 }
 0x472   : > { %v14039_v35 = vunpack.i.h.bf16 %v19209_v13  ;;  %v13915_v51 = vpack.i.bf16 %v6299_v56, %v6163_v9  ;;  %v3471_v17 = vrot.slane %v3463_v10, %v16780_v34  ;;  %v3607_v58 = vrot.slane %v3599_v22, %v16780_v34 }
 0x473   : > { %v3923_v14 = vsel %vm23174_vm10, %v23456_v18, %v14033_v50  ;;  %v3924_v62 = vsel %vm23174_vm10, %v23457_v0, %v14034_v33  ;;  %v3639_v29 = vrot.slane %v3631_v46, %v16780_v34  ;;  %v6111_v63 = vcombine.high %v19583_v42, %v19586_v45  ;;  %v23460_v18 = vld [vmem:[#allocation23_spill] sm:$0xff] }
 0x474   : > { %13916 = vrot.lane.b32.xlu0 %v13915_v51, %s15537_s9  ;;  %v6143_v50 = vcombine.high %v19593_v55, %v19596_v26  ;;  %v6247_v33 = vcombine.high %v19599_v8, %v19602_v49  ;;  %v6279_v56 = vcombine.high %v19607_v57, %v19610_v4  ;;  %v8270_v10 = vsel %vm3900_vm8, %v8266_v11, %v13728_v32  ;;  %v19719_v26 = vpop.permute.xlu0 %13791  ;;  %v19721_v8 = vpop.permute.xlu1 %14101 }
 0x475   : > { %v8271_v9 = vsel %vm3900_vm8, %v8267_v39, %v13729_v7  ;;  %v3515_v22 = vcombine.low %v3471_v17, %v3503_v1  ;;  %v3651_v46 = vcombine.low %v3607_v58, %v3639_v29  ;;  %v6125_v42 = vrot.slane %v6111_v63, %v16780_v34 }
 0x476   : > { %v6157_v13 = vrot.slane %v6143_v50, %v16780_v34  ;;  %v6261_v45 = vrot.slane %v6247_v33, %v16780_v34  ;;  %v6293_v55 = vrot.slane %v6279_v56, %v16780_v34  ;;  %v19724_v49 = vsel %vm3925_vm2, %v3924_v62, %v14039_v35  ;;  %v23462_v33 = vld [vmem:[#allocation67_spill] sm:$0xff]  ;;  %v23463_v56 = vld [vmem:[#allocation66_spill] sm:$0xff] }
 0x477   : > { %23458 = vst [vmem:[#allocation22_spill] sm:$0xff] %v19724_v49  ;;  %v13734_v57 = vunpack.i.h.bf16 %v19297_v15  ;;  %v14245_v4 = vpack.i.bf16 %v3651_v46, %v3515_v22  ;;  %v3652_v39 = vcombine.high %v3607_v58, %v3639_v29  ;;  %v19728_v11 = vsel %vm3925_vm2, %v3923_v14, %v14038_v41  ;;  %v15051_v14 = vld [vmem:[#allocation2 + $0xb] ss:$48 sps:$4 sm:$0xff]   ;;  %v15053_v29 = vld [vmem:[#allocation2 + $0x23] ss:$48 sps:$4 sm:$0xff]  }
 0x478   : > { %23459 = vst [vmem:[#allocation37_spill] sm:$0xff] %v19728_v11  ;;  %v13733_v63 = vunpack.i.l.bf16 %v19297_v15  ;;  %v6164_v7 = vcombine.low %v6125_v42, %v6157_v13  ;;  %v6300_v32 = vcombine.low %v6261_v45, %v6293_v55  ;;  %v4434_v0 = vcombine.low %v23460_v18, %v18177_v20  ;;  %v15055_v46 = vld [vmem:[#allocation2 + $0x6b] ss:$48 sps:$4 sm:$0xff]  }
 0x479   : > { %v14044_v51 = vunpack.i.h.bf16 %v19250_v59  ;;  %14246 = vrot.lane.b32.xlu1 %v14245_v4, %s15555_s29  ;;  %v3516_v62 = vcombine.high %v3471_v17, %v3503_v1  ;;  %v6301_v35 = vcombine.high %v6261_v45, %v6293_v55  ;;  %v3464_v58 = vcombine.high %v19652_v23, %v19655_v37  ;;  %v15057_v23 = vld [vmem:[#allocation2 + $0x83] ss:$48 sps:$4 sm:$0xff]   ;;  %v19754_v45 = vpop.permute.xlu0 %13801  ;;  %v19756_v55 = vpop.permute.xlu1 %14106 }
 0x47a   : > { %v13920_v50 = vpack.i.bf16 %v6300_v32, %v6164_v7  ;;  %v3496_v41 = vcombine.high %v19658_v61, %v19661_v60  ;;  %v3600_v15 = vcombine.high %v19664_v38, %v19667_v27  ;;  %v19742_v20 = vsel %vm3905_vm7, %v8271_v9, %v13734_v57  ;;  %v15059_v38 = vld [vmem:[#allocation2 + $0xcb] ss:$48 sps:$4 sm:$0xff]   ;;  %v15061_v9 = vld [vmem:[#allocation2 + $0xe3] ss:$48 sps:$4 sm:$0xff]  }
 0x47b   : > { %23461 = vst [vmem:[#allocation30_spill] sm:$0xff] %v19742_v20  ;;  %v4570_v22 = vcombine.low %v23463_v56, %v23462_v33  ;;  %v14250_v17 = vpack.i.bf16 %v3652_v39, %v3516_v62  ;;  %v3632_v1 = vcombine.high %v19674_v52, %v19677_v28  ;;  %v19749_v37 = vsel %vm3905_vm7, %v8270_v10, %v13733_v63  ;;  %v15063_v57 = vld [vmem:[#allocation2 + $0x12b] ss:$48 sps:$4 sm:$0xff]  }
 0x47c   : > { %23464 = vst [vmem:[#allocation23_spill] sm:$0xff] %v19749_v37  ;;  %v14043_v61 = vunpack.i.l.bf16 %v19250_v59  ;;  %13921 = vrot.lane.b32.xlu0 %v13920_v50, %s15556_s12  ;;  %v6165_v27 = vcombine.high %v6125_v42, %v6157_v13  ;;  %v3510_v60 = vrot.slane %v3496_v41, %v16780_v34  ;;  %v3478_v28 = vrot.slane %v3464_v58, %v16780_v34  ;;  %v15065_v42 = vld [vmem:[#allocation2 + $0x143] ss:$48 sps:$4 sm:$0xff]  }
 0x47d   : > { %v5365_v52 = vsel %vm23175_vm9, %v4570_v22, %v14044_v51  ;;  %14251 = vrot.lane.b32.xlu1 %v14250_v17, %s15537_s9  ;;  %v3614_v10 = vrot.slane %v3600_v15, %v16780_v34  ;;  %v3646_v59 = vrot.slane %v3632_v1, %v16780_v34  ;;  %v14049_v13 = vunpack.i.h.bf16 %v19284_v12  ;;  %v19798_v17 = vpop.permute.xlu0 %13806  ;;  %v19800_v1 = vpop.permute.xlu1 %14111 }
 0x47e   : > { %v13925_v4 = vpack.i.bf16 %v6301_v35, %v6165_v27  ;;  %v19765_v39 = vrot.slane %v15051_v14, %v16502_v36  ;;  %v19768_v63 = vrot.slane %v15053_v29, %v16502_v36  ;;  %v3517_v7 = vcombine.low %v3478_v28, %v3510_v60  ;;  %23465 = vst [vmem:[#allocation67_spill] sm:$0xff] %v19798_v17 }
 0x47f   : > { %v3653_v32 = vcombine.low %v3614_v10, %v3646_v59  ;;  %v19771_v18 = vrot.slane %v15055_v46, %v16502_v36  ;;  %v19774_v51 = vrot.slane %v15057_v23, %v16502_v36  ;;  %v14048_v62 = vunpack.i.l.bf16 %v19284_v12  ;;  %v15081_v46 = vld [vmem:[#allocation2 + $0x2c1] ss:$48 sps:$4 sm:$0xff]  }
 0x480   : > { %13926 = vrot.lane.b32.xlu0 %v13925_v4, %s23380_s11  ;;  %v7546_v35 = vcombine.low %v19765_v39, %v19768_v63  ;;  %v19781_v50 = vrot.slane %v15059_v38, %v16502_v36  ;;  %v19784_v58 = vrot.slane %v15061_v9, %v16502_v36  ;;  %v19789_v14 = vrot.slane %v15063_v57, %v16502_v36  ;;  %v15069_v38 = vld [vmem:[#allocation2 + $0x1a1] ss:$48 sps:$4 sm:$0xff]   ;;  %v15071_v9 = vld [vmem:[#allocation2 + $0x1e9] ss:$48 sps:$4 sm:$0xff]  }
 0x481   : > { %v14255_v41 = vpack.i.bf16 %v3653_v32, %v3517_v7  ;;  %v7578_v15 = vcombine.low %v19771_v18, %v19774_v51  ;;  %v19792_v12 = vrot.slane %v15065_v42, %v16502_v36  ;;  %v5364_v29 = vsel %vm23175_vm9, %v4434_v0, %v14043_v61  ;;  %v15067_v61 = vld [vmem:[#allocation2 + $0x189] ss:$48 sps:$4 sm:$0xff]   ;;  %v15073_v4 = vld [vmem:[#allocation2 + $0x201] ss:$48 sps:$4 sm:$0xff]  }
 0x482   : > { %v7682_v56 = vcombine.low %v19781_v50, %v19784_v58  ;;  %v3654_v22 = vcombine.high %v3614_v10, %v3646_v59  ;;  %v3518_v0 = vcombine.high %v3478_v28, %v3510_v60  ;;  %v5368_v57 = vsel %vm3900_vm8, %v5364_v29, %v14048_v62  ;;  %v15075_v7 = vld [vmem:[#allocation2 + $0x249] ss:$48 sps:$4 sm:$0xff]   ;;  %v15077_v32 = vld [vmem:[#allocation2 + $0x261] ss:$48 sps:$4 sm:$0xff]  }
 0x483   : > { %14256 = vrot.lane.b32.xlu1 %v14255_v41, %s15556_s12  ;;  %v7586_v23 = vrot.slane %v7578_v15, %v16780_v34  ;;  %v7714_v27 = vcombine.low %v19789_v14, %v19792_v12  ;;  %v5369_v10 = vsel %vm3900_vm8, %v5365_v52, %v14049_v13  ;;  %v14054_v42 = vunpack.i.h.bf16 %v19310_v44  ;;  %v15079_v29 = vld [vmem:[#allocation2 + $0x2a9] ss:$48 sps:$4 sm:$0xff]  }
 0x484   : > { %v7554_v41 = vrot.slane %v7546_v35, %v16780_v34  ;;  %v7690_v15 = vrot.slane %v7682_v56, %v16780_v34  ;;  %v14260_v28 = vpack.i.bf16 %v3654_v22, %v3518_v0  ;;  %v14053_v62 = vunpack.i.l.bf16 %v19310_v44  ;;  %v19837_v0 = vpop.permute.xlu0 %13811 }
 0x485   : > { %v7722_v60 = vrot.slane %v7714_v27, %v16780_v34  ;;  %v13749_v52 = vunpack.i.h.bf16 %v19439_v43  ;;  %v13748_v13 = vunpack.i.l.bf16 %v19439_v43  ;;  %v19820_v35 = vrot.slane %v15067_v61, %v16502_v36 }
 0x486   : > { %v7610_v59 = vcombine.low %v7554_v41, %v7586_v23  ;;  %v19823_v56 = vrot.slane %v15069_v38, %v16502_v36  ;;  %v19826_v22 = vrot.slane %v15071_v9, %v16502_v36  ;;  %v19829_v44 = vrot.slane %v15073_v4, %v16502_v36 }
 0x487   : > { %v7746_v19 = vcombine.low %v7690_v15, %v7722_v60  ;;  %14261 = vrot.lane.b32.xlu1 %v14260_v28, %s23380_s11  ;;  %v19832_v43 = vrot.slane %v15075_v7, %v16502_v36  ;;  %v19835_v27 = vrot.slane %v15077_v32, %v16502_v36  ;;  %v19839_v28 = vpop.permute.xlu1 %14116  ;;  %v19842_v61 = vsel %vm3905_vm7, %v5369_v10, %v14054_v42 }
 0x488   : > { %23466 = vst [vmem:[#allocation66_spill] sm:$0xff] %v19842_v61  ;;  %v7747_v33 = vcombine.high %v7690_v15, %v7722_v60  ;;  %v4914_v9 = vcombine.low %v19820_v35, %v19823_v56  ;;  %v4946_v4 = vcombine.low %v19826_v22, %v19829_v44  ;;  %v19849_v7 = vrot.slane %v15079_v29, %v16502_v36 }
 0x489   : > { %v13930_v38 = vpack.i.bf16 %v7746_v19, %v7610_v59  ;;  %v19852_v32 = vrot.slane %v15081_v46, %v16502_v36  ;;  %v5050_v20 = vcombine.low %v19832_v43, %v19835_v27  ;;  %v19857_v10 = vsel %vm3905_vm7, %v5368_v57, %v14053_v62 }
 0x48a   : > { %23467 = vst [vmem:[#allocation133_spill] sm:$0xff] %v19857_v10  ;;  %v13753_v59 = vunpack.i.l.bf16 %v19483_v6  ;;  %v7611_v42 = vcombine.high %v7554_v41, %v7586_v23  ;;  %v23468_v15 = vunpack.i.l.bf16 %v19380_v24  ;;  %v23469_v46 = vunpack.i.h.bf16 %v19380_v24  ;;  %v23483_v24 = vld [vmem:[#allocation82_spill] sm:$0xff] }
 0x48b   : > { %13931 = vrot.lane.b32.xlu0 %v13930_v38, %s15530_s10  ;;  %v4954_v61 = vrot.slane %v4946_v4, %v16780_v34  ;;  %v5082_v57 = vcombine.low %v19849_v7, %v19852_v32  ;;  %v13754_v62 = vunpack.i.h.bf16 %v19483_v6  ;;  %v4922_v10 = vrot.slane %v4914_v9, %v16780_v34  ;;  %v19881_v4 = vpop.permute.xlu0 %13816 }
 0x48c   : > { %v8286_v60 = vsel %vm23174_vm10, %v23468_v15, %v13748_v13  ;;  %v8287_v29 = vsel %vm23174_vm10, %v23469_v46, %v13749_v52  ;;  %v13935_v19 = vpack.i.bf16 %v7747_v33, %v7611_v42  ;;  %v7547_v23 = vcombine.high %v19765_v39, %v19768_v63  ;;  %v19883_v15 = vpop.permute.xlu1 %14121  ;;  %v23472_v63 = vld [vmem:[#allocation119_spill] sm:$0xff] }
 0x48d   : > { %v5058_v41 = vrot.slane %v5050_v20, %v16780_v34  ;;  %v5090_v13 = vrot.slane %v5082_v57, %v16780_v34  ;;  %v7579_v52 = vcombine.high %v19771_v18, %v19774_v51  ;;  %v7683_v38 = vcombine.high %v19781_v50, %v19784_v58  ;;  %23470 = vst [vmem:[#allocation134_spill] sm:$0xff] %v19883_v15 }
 0x48e   : > { %v19887_v33 = vsel %vm3925_vm2, %v8286_v60, %v13753_v59  ;;  %v14068_v39 = vunpack.i.l.bf16 %v19441_v3  ;;  %v7715_v20 = vcombine.high %v19789_v14, %v19792_v12  ;;  %v23022_v18 = vunpack.i.l.bf16 %v23472_v63 }
 0x48f   : > { %23471 = vst [vmem:[#allocation135_spill] sm:$0xff] %v19887_v33  ;;  %13936 = vrot.lane.b32.xlu0 %v13935_v19, %s15554_s24  ;;  %v4978_v51 = vcombine.low %v4922_v10, %v4954_v61  ;;  %v5114_v50 = vcombine.low %v5058_v41, %v5090_v13  ;;  %v7593_v58 = vrot.slane %v7579_v52, %v16780_v34  ;;  %v14069_v9 = vunpack.i.h.bf16 %v19441_v3  ;;  %v23474_v52 = vld [vmem:[#allocation124_spill] sm:$0xff] }
 0x490   : > { %v7561_v42 = vrot.slane %v7547_v23, %v16780_v34  ;;  %v7697_v59 = vrot.slane %v7683_v38, %v16780_v34  ;;  %v7729_v60 = vrot.slane %v7715_v20, %v16780_v34  ;;  %v19900_v46 = vsel %vm3925_vm2, %v8287_v29, %v13754_v62  ;;  %v15083_v20 = vld [vmem:[#allocation2 + $0xf] ss:$48 sps:$4 sm:$0xff]   ;;  %v15098_v33 = vld [vmem:[#allocation2 + $0x2c5] ss:$48 sps:$4 sm:$0xff]  }
 0x491   : > { %23473 = vst [vmem:[#allocation136_spill] sm:$0xff] %v19900_v46  ;;  %v23024_v19 = vunpack.i.h.bf16 %v23472_v63  ;;  %v14265_v14 = vpack.i.bf16 %v5114_v50, %v4978_v51  ;;  %v5115_v12 = vcombine.high %v5058_v41, %v5090_v13  ;;  %v5384_v57 = vsel %vm23174_vm10, %v23022_v18, %v14068_v39  ;;  %v15084_v41 = vld [vmem:[#allocation2 + $0x27] ss:$48 sps:$4 sm:$0xff]   ;;  %v19912_v13 = vpop.permute.xlu0 %13821  ;;  %v19914_v51 = vpop.permute.xlu1 %14126 }
 0x492   : > { %v14074_v6 = vunpack.i.h.bf16 %v23474_v52  ;;  %v7612_v3 = vcombine.low %v7561_v42, %v7593_v58  ;;  %v7748_v2 = vcombine.low %v7697_v59, %v7729_v60  ;;  %v4979_v23 = vcombine.high %v4922_v10, %v4954_v61  ;;  %23475 = vst [vmem:[#allocation124_spill] sm:$0xff] %v19912_v13  ;;  %23476 = vst [vmem:[#allocation137_spill] sm:$0xff] %v19914_v51  ;;  %v15086_v10 = vld [vmem:[#allocation2 + $0x87] ss:$48 sps:$4 sm:$0xff]  }
 0x493   : > { %14266 = vrot.lane.b32.xlu1 %v14265_v14, %s15530_s10  ;;  %v7749_v38 = vcombine.high %v7697_v59, %v7729_v60  ;;  %v4915_v29 = vcombine.high %v19820_v35, %v19823_v56  ;;  %v4947_v62 = vcombine.high %v19826_v22, %v19829_v44  ;;  %v5385_v39 = vsel %vm23174_vm10, %v23024_v19, %v14069_v9  ;;  %v15085_v56 = vld [vmem:[#allocation2 + $0x6f] ss:$48 sps:$4 sm:$0xff]   ;;  %v15088_v18 = vld [vmem:[#allocation2 + $0xe7] ss:$48 sps:$4 sm:$0xff]  }
 0x494   : > { %v13940_v50 = vpack.i.bf16 %v7748_v2, %v7612_v3  ;;  %v5051_v61 = vcombine.high %v19832_v43, %v19835_v27  ;;  %v5083_v35 = vcombine.high %v19849_v7, %v19852_v32  ;;  %v14073_v22 = vunpack.i.l.bf16 %v23474_v52  ;;  %v15087_v14 = vld [vmem:[#allocation2 + $0xcf] ss:$48 sps:$4 sm:$0xff]   ;;  %v15090_v32 = vld [vmem:[#allocation2 + $0x147] ss:$48 sps:$4 sm:$0xff]  }
 0x495   : > { %v14270_v44 = vpack.i.bf16 %v5115_v12, %v4979_v23  ;;  %v7613_v59 = vcombine.high %v7561_v42, %v7593_v58  ;;  %v4961_v60 = vrot.slane %v4947_v62, %v16780_v34  ;;  %v19926_v63 = vsel %vm3925_vm2, %v5385_v39, %v14074_v6  ;;  %v15089_v7 = vld [vmem:[#allocation2 + $0x12f] ss:$48 sps:$4 sm:$0xff]  }
 0x496   : > { %23477 = vst [vmem:[#allocation138_spill] sm:$0xff] %v19926_v63  ;;  %13941 = vrot.lane.b32.xlu0 %v13940_v50, %s15511_s6  ;;  %v4929_v2 = vrot.slane %v4915_v29, %v16780_v34  ;;  %v5065_v43 = vrot.slane %v5051_v61, %v16780_v34  ;;  %v5097_v27 = vrot.slane %v5083_v35, %v16780_v34  ;;  %v23478_v9 = vld [vmem:[#allocation79_spill] sm:$0xff]  ;;  %v23479_v12 = vld [vmem:[#allocation81_spill] sm:$0xff]  ;;  %v14078_v39 = vunpack.i.l.bf16 %v19529_v21  ;;  %v19958_v61 = vpop.permute.xlu1 %14131 }
 0x497   : > { %v5886_v58 = vcombine.low %v23479_v12, %v23478_v9  ;;  %14271 = vrot.lane.b32.xlu1 %v14270_v44, %s15554_s24  ;;  %v13945_v42 = vpack.i.bf16 %v7749_v38, %v7613_v59  ;;  %v19936_v52 = vrot.slane %v15083_v20, %v16502_v36  ;;  %v19939_v6 = vrot.slane %v15084_v41, %v16502_v36  ;;  %v19956_v41 = vpop.permute.xlu0 %13826  ;;  %v15093_v19 = vld [vmem:[#allocation2 + $0x1ed] ss:$48 sps:$4 sm:$0xff]  }
 0x498   : > { %v4980_v3 = vcombine.low %v4929_v2, %v4961_v60  ;;  %v5116_v23 = vcombine.low %v5065_v43, %v5097_v27  ;;  %v19942_v29 = vrot.slane %v15085_v56, %v16502_v36  ;;  %v19945_v62 = vrot.slane %v15086_v10, %v16502_v36  ;;  %23480 = vst [vmem:[#allocation79_spill] sm:$0xff] %v19956_v41 }
 0x499   : > { %v7562_v50 = vcombine.low %v19936_v52, %v19939_v6  ;;  %v19951_v38 = vrot.slane %v15087_v14, %v16502_v36  ;;  %v19954_v20 = vrot.slane %v15088_v18, %v16502_v36  ;;  %23481 = vst [vmem:[#allocation81_spill] sm:$0xff] %v19958_v61  ;;  %v19964_v10 = vrot.slane %v15089_v7, %v16502_v36 }
 0x49a   : > { %13946 = vrot.lane.b32.xlu0 %v13945_v42, %s15553_s26  ;;  %v14275_v35 = vpack.i.bf16 %v5116_v23, %v4980_v3  ;;  %v7594_v56 = vcombine.low %v19942_v29, %v19945_v62  ;;  %v19967_v44 = vrot.slane %v15090_v32, %v16502_v36  ;;  %v13784_v59 = vunpack.i.h.bf16 %v19684_v40  ;;  %v15091_v3 = vld [vmem:[#allocation2 + $0x18d] ss:$48 sps:$4 sm:$0xff]   ;;  %v15092_v23 = vld [vmem:[#allocation2 + $0x1a5] ss:$48 sps:$4 sm:$0xff]   ;;  %v19997_v49 = vpop.permute.xlu1 %14136 }
 0x49b   : > { %v13783_v18 = vunpack.i.l.bf16 %v19684_v40  ;;  %v7698_v14 = vcombine.low %v19951_v38, %v19954_v20  ;;  %v5117_v9 = vcombine.high %v5065_v43, %v5097_v27  ;;  %v19974_v12 = vsel %vm3925_vm2, %v5384_v57, %v14073_v22  ;;  %v23484_v40 = vld [vmem:[#allocation84_spill] sm:$0xff]  ;;  %v15095_v27 = vld [vmem:[#allocation2 + $0x24d] ss:$48 sps:$4 sm:$0xff]   ;;  %v19995_v11 = vpop.permute.xlu0 %13831 }
 0x49c   : > { %23482 = vst [vmem:[#allocation139_spill] sm:$0xff] %v19974_v12  ;;  %14276 = vrot.lane.b32.xlu1 %v14275_v35, %s15511_s6  ;;  %v7602_v42 = vrot.slane %v7594_v56, %v16780_v34  ;;  %v7730_v7 = vcombine.low %v19964_v10, %v19967_v44  ;;  %v4981_v32 = vcombine.high %v4929_v2, %v4961_v60  ;;  %v14079_v48 = vunpack.i.h.bf16 %v19529_v21  ;;  %v15094_v22 = vld [vmem:[#allocation2 + $0x205] ss:$48 sps:$4 sm:$0xff]   ;;  %v15097_v12 = vld [vmem:[#allocation2 + $0x2ad] ss:$48 sps:$4 sm:$0xff]  }
 0x49d   : > { %v6022_v37 = vcombine.low %v23484_v40, %v23483_v24  ;;  %v6816_v43 = vsel %vm23175_vm9, %v5886_v58, %v14078_v39  ;;  %v7570_v57 = vrot.slane %v7562_v50, %v16780_v34  ;;  %v15096_v35 = vld [vmem:[#allocation2 + $0x265] ss:$48 sps:$4 sm:$0xff]   ;;  %v14084_v56 = vunpack.i.h.bf16 %v19562_v31  ;;  %v23485_v40 = vld [vmem:[#allocation25_spill] sm:$0xff] }
 0x49e   : > { %v7706_v63 = vrot.slane %v7698_v14, %v16780_v34  ;;  %v7738_v60 = vrot.slane %v7730_v7, %v16780_v34  ;;  %v14280_v2 = vpack.i.bf16 %v5117_v9, %v4981_v32  ;;  %v14083_v24 = vunpack.i.l.bf16 %v19562_v31 }
 0x49f   : > { %v23486_v21 = vunpack.i.l.bf16 %v23485_v40  ;;  %v23487_v39 = vunpack.i.h.bf16 %v23485_v40  ;;  %v7614_v46 = vcombine.low %v7570_v57, %v7602_v42  ;;  %v20001_v7 = vrot.slane %v15091_v3, %v16502_v36 }
 0x4a0   : > { %v7750_v14 = vcombine.low %v7706_v63, %v7738_v60  ;;  %14281 = vrot.lane.b32.xlu1 %v14280_v2, %s15553_s26  ;;  %v7751_v9 = vcombine.high %v7706_v63, %v7738_v60  ;;  %v20004_v31 = vrot.slane %v15092_v23, %v16502_v36  ;;  %v20013_v32 = vrot.slane %v15095_v27, %v16502_v36 }
 0x4a1   : > { %v12642_v58 = vsel %vm23174_vm10, %v23486_v21, %v13783_v18  ;;  %v12643_v50 = vsel %vm23174_vm10, %v23487_v39, %v13784_v59  ;;  %v20007_v18 = vrot.slane %v15093_v19, %v16502_v36  ;;  %v20010_v59 = vrot.slane %v15094_v22, %v16502_v36  ;;  %v23488_v39 = vld [vmem:[#allocation88_spill] sm:$0xff] }
 0x4a2   : > { %v20016_v21 = vrot.slane %v15096_v35, %v16502_v36  ;;  %v13950_v2 = vpack.i.bf16 %v7750_v14, %v7614_v46  ;;  %v4930_v63 = vcombine.low %v20001_v7, %v20004_v31  ;;  %v20021_v3 = vrot.slane %v15097_v12, %v16502_v36 }
 0x4a3   : > { %v20024_v23 = vrot.slane %v15098_v33, %v16502_v36  ;;  %v6817_v19 = vsel %vm23175_vm9, %v6022_v37, %v14079_v48  ;;  %v6820_v22 = vsel %vm3900_vm8, %v6816_v43, %v14083_v24  ;;  %v4962_v27 = vcombine.low %v20007_v18, %v20010_v59 }
 0x4a4   : > { %v5066_v35 = vcombine.low %v20013_v32, %v20016_v21  ;;  %v6821_v46 = vsel %vm3900_vm8, %v6817_v19, %v14084_v56  ;;  %v14089_v60 = vunpack.i.h.bf16 %v19590_v25  ;;  %13951 = vrot.lane.b32.xlu0 %v13950_v2, %s15555_s29  ;;  %v7615_v12 = vcombine.high %v7570_v57, %v7602_v42  ;;  %v20049_v19 = vpop.permute.xlu0 %13836  ;;  %v20051_v42 = vpop.permute.xlu1 %14141 }
 0x4a5   : > { %v5098_v33 = vcombine.low %v20021_v3, %v20024_v23  ;;  %v23489_v48 = vunpack.i.l.bf16 %v23488_v39  ;;  %v23491_v43 = vunpack.i.h.bf16 %v23488_v39  ;;  %v14088_v56 = vunpack.i.l.bf16 %v19590_v25 }
 0x4a6   : > { %v4970_v14 = vrot.slane %v4962_v27, %v16780_v34  ;;  %v13955_v57 = vpack.i.bf16 %v7751_v9, %v7615_v12  ;;  %v4938_v2 = vrot.slane %v4930_v63, %v16780_v34  ;;  %v5074_v40 = vrot.slane %v5066_v35, %v16780_v34  ;;  %v23493_v12 = vld [vmem:[#allocation35_spill] sm:$0xff] }
 0x4a7   : > { %v20040_v37 = vsel %vm3925_vm2, %v12642_v58, %v23489_v48  ;;  %v20045_v24 = vsel %vm3925_vm2, %v12643_v50, %v23491_v43  ;;  %v5106_v58 = vrot.slane %v5098_v33, %v16780_v34  ;;  %v13794_v39 = vunpack.i.h.bf16 %v19719_v26  ;;  %v23494_v33 = vld [vmem:[#allocation20_spill] sm:$0xff] }
 0x4a8   : > { %23490 = vst [vmem:[#allocation82_spill] sm:$0xff] %v20040_v37  ;;  %23492 = vst [vmem:[#allocation84_spill] sm:$0xff] %v20045_v24  ;;  %v7563_v50 = vcombine.high %v19936_v52, %v19939_v6  ;;  %v7595_v25 = vcombine.high %v19942_v29, %v19945_v62  ;;  %v7699_v27 = vcombine.high %v19951_v38, %v19954_v20  ;;  %v13793_v48 = vunpack.i.l.bf16 %v19719_v26  ;;  %v23495_v24 = vld [vmem:[#allocation34_spill] sm:$0xff] }
 0x4a9   : > { %13956 = vrot.lane.b32.xlu0 %v13955_v57, %s15537_s9  ;;  %v4982_v9 = vcombine.low %v4938_v2, %v4970_v14  ;;  %v5118_v63 = vcombine.low %v5074_v40, %v5106_v58  ;;  %v7731_v35 = vcombine.high %v19964_v10, %v19967_v44  ;;  %v11422_v43 = vcombine.low %v23494_v33, %v23493_v12  ;;  %v23496_v52 = vld [vmem:[#allocation18_spill] sm:$0xff] }
 0x4aa   : > { %v11558_v6 = vcombine.low %v23496_v52, %v23495_v24  ;;  %v7577_v29 = vrot.slane %v7563_v50, %v16780_v34  ;;  %v7609_v62 = vrot.slane %v7595_v25, %v16780_v34  ;;  %v7713_v26 = vrot.slane %v7699_v27, %v16780_v34  ;;  %v20082_v24 = vpop.permute.xlu0 %13841  ;;  %v20084_v50 = vpop.permute.xlu1 %14146  ;;  %v23505_v52 = vld [vmem:[#allocation60_spill] sm:$0xff] }
 0x4ab   : > { %v14285_v38 = vpack.i.bf16 %v5118_v63, %v4982_v9  ;;  %v7745_v20 = vrot.slane %v7731_v35, %v16780_v34  ;;  %v5119_v57 = vcombine.high %v5074_v40, %v5106_v58  ;;  %v20076_v37 = vsel %vm3905_vm7, %v6820_v22, %v14088_v56  ;;  %23499 = vst [vmem:[#allocation20_spill] sm:$0xff] %v20084_v50  ;;  %v23500_v9 = vld [vmem:[#allocation89_spill] sm:$0xff] }
 0x4ac   : > { %23497 = vst [vmem:[#allocation88_spill] sm:$0xff] %v20076_v37  ;;  %v20079_v10 = vsel %vm3905_vm7, %v6821_v46, %v14089_v60  ;;  %v12623_v44 = vsel %vm23175_vm9, %v11558_v6, %v13794_v39  ;;  %v4983_v12 = vcombine.high %v4938_v2, %v4970_v14  ;;  %v12622_v25 = vsel %vm23175_vm9, %v11422_v43, %v13793_v48  ;;  %v23506_v6 = vld [vmem:[#allocation59_spill] sm:$0xff]  ;;  %v15130_v37 = vld [vmem:[#allocation2 + $0x2c6] ss:$48 sps:$4 sm:$0xff]  }
 0x4ad   : > { %23498 = vst [vmem:[#allocation35_spill] sm:$0xff] %v20079_v10  ;;  %v13804_v27 = vunpack.i.h.bf16 %v19754_v45  ;;  %14286 = vrot.lane.b32.xlu1 %v14285_v38, %s15555_s29  ;;  %v7616_v40 = vcombine.low %v7577_v29, %v7609_v62  ;;  %v7752_v58 = vcombine.low %v7713_v26, %v7745_v20  ;;  %v13803_v22 = vunpack.i.l.bf16 %v19754_v45  ;;  %v15101_v38 = vld [vmem:[#allocation2 + $0x1a2] ss:$48 sps:$4 sm:$0xff]  }
 0x4ae   : > { %v14290_v56 = vpack.i.bf16 %v5119_v57, %v4983_v12  ;;  %v4931_v46 = vcombine.high %v20001_v7, %v20004_v31  ;;  %v4963_v60 = vcombine.high %v20007_v18, %v20010_v59  ;;  %v7753_v2 = vcombine.high %v7713_v26, %v7745_v20  ;;  %v15103_v26 = vld [vmem:[#allocation2 + $0x1ea] ss:$48 sps:$4 sm:$0xff]   ;;  %v20120_v20 = vpop.permute.xlu0 %13846  ;;  %v20122_v57 = vpop.permute.xlu1 %14151 }
 0x4af   : > { %v13960_v14 = vpack.i.bf16 %v7752_v58, %v7616_v40  ;;  %v5067_v39 = vcombine.high %v20013_v32, %v20016_v21  ;;  %v5099_v48 = vcombine.high %v20021_v3, %v20024_v23  ;;  %v23501_v63 = vunpack.i.l.bf16 %v23500_v9  ;;  %23507 = vst [vmem:[#allocation89_spill] sm:$0xff] %v20122_v57  ;;  %v15105_v58 = vld [vmem:[#allocation2 + $0x202] ss:$48 sps:$4 sm:$0xff]  }
 0x4b0   : > { %v23502_v45 = vunpack.i.h.bf16 %v23500_v9  ;;  %v7617_v7 = vcombine.high %v7577_v29, %v7609_v62  ;;  %v4977_v31 = vrot.slane %v4963_v60, %v16780_v34  ;;  %v4945_v59 = vrot.slane %v4931_v46, %v16780_v34  ;;  %v15099_v62 = vld [vmem:[#allocation2 + $0x18a] ss:$48 sps:$4 sm:$0xff]  }
 0x4b1   : > { %v12626_v35 = vsel %vm3900_vm8, %v12622_v25, %v23501_v63  ;;  %13961 = vrot.lane.b32.xlu0 %v13960_v14, %s15556_s12  ;;  %14291 = vrot.lane.b32.xlu1 %v14290_v56, %s15537_s9  ;;  %v5081_v32 = vrot.slane %v5067_v39, %v16780_v34  ;;  %v5113_v21 = vrot.slane %v5099_v48, %v16780_v34  ;;  %v15109_v56 = vld [vmem:[#allocation2 + $0x262] ss:$48 sps:$4 sm:$0xff]   ;;  %v23508_v14 = vld [vmem:[#allocation45_spill] sm:$0xff]  ;;  %v23509_v39 = vld [vmem:[#allocation27_spill] sm:$0xff]  ;;  %v13833_v13 = vunpack.i.l.bf16 %v19995_v11 }
 0x4b2   : > { %v12627_v33 = vsel %vm3900_vm8, %v12623_v44, %v23502_v45  ;;  %v20113_v23 = vsel %vm3905_vm7, %v12626_v35, %v13803_v22  ;;  %v12103_v29 = vcombine.high %v23506_v6, %v23505_v52  ;;  %v23033_v44 = vunpack.i.h.bf16 %v19686_v16  ;;  %v15107_v22 = vld [vmem:[#allocation2 + $0x24a] ss:$48 sps:$4 sm:$0xff]   ;;  %v15113_v63 = vld [vmem:[#allocation2 + $0x2c2] ss:$48 sps:$4 sm:$0xff]  }
 0x4b3   : > { %23503 = vst [vmem:[#allocation34_spill] sm:$0xff] %v20113_v23  ;;  %v20116_v43 = vsel %vm3905_vm7, %v12627_v33, %v13804_v27  ;;  %v13965_v12 = vpack.i.bf16 %v7753_v2, %v7617_v7  ;;  %v4984_v25 = vcombine.low %v4945_v59, %v4977_v31  ;;  %v5120_v40 = vcombine.low %v5081_v32, %v5113_v21  ;;  %v15111_v9 = vld [vmem:[#allocation2 + $0x2aa] ss:$48 sps:$4 sm:$0xff]  }
 0x4b4   : > { %23504 = vst [vmem:[#allocation18_spill] sm:$0xff] %v20116_v43  ;;  %v23030_v27 = vunpack.i.l.bf16 %v19686_v16  ;;  %v11967_v48 = vcombine.high %v23509_v39, %v23508_v14  ;;  %v14103_v35 = vunpack.i.l.bf16 %v19721_v8  ;;  %v4985_v45 = vcombine.high %v4945_v59, %v4977_v31  ;;  %v23510_v52 = vld [vmem:[#allocation65_spill] sm:$0xff]  ;;  %v23511_v6 = vld [vmem:[#allocation63_spill] sm:$0xff] }
 0x4b5   : > { %13966 = vrot.lane.b32.xlu0 %v13965_v12, %s23380_s11  ;;  %v14295_v2 = vpack.i.bf16 %v5120_v40, %v4984_v25  ;;  %v5121_v33 = vcombine.high %v5081_v32, %v5113_v21  ;;  %v12106_v18 = vcombine.low %v23511_v6, %v23510_v52  ;;  %v20135_v46 = vrot.slane %v15099_v62, %v16502_v36  ;;  %v23513_v40 = vld [vmem:[#allocation50_spill] sm:$0xff]  ;;  %v23515_v6 = vld [vmem:[#allocation21_spill] sm:$0xff] }
 0x4b6   : > { %v13975_v7 = vpack.i.bf16 %v12103_v29, %v11967_v48  ;;  %v20138_v60 = vrot.slane %v15101_v38, %v16502_v36  ;;  %v20142_v14 = vrot.slane %v15103_v26, %v16502_v36  ;;  %v20145_v12 = vrot.slane %v15105_v58, %v16502_v36  ;;  %v20162_v38 = vpop.permute.xlu0 %13851  ;;  %v20164_v26 = vpop.permute.xlu1 %14156  ;;  %v23514_v58 = vld [vmem:[#allocation31_spill] sm:$0xff] }
 0x4b7   : > { %14296 = vrot.lane.b32.xlu1 %v14295_v2, %s15556_s12  ;;  %v20148_v31 = vrot.slane %v15107_v22, %v16502_v36  ;;  %v20151_v59 = vrot.slane %v15109_v56, %v16502_v36  ;;  %v14104_v32 = vunpack.i.h.bf16 %v19721_v8  ;;  %v20157_v29 = vrot.slane %v15111_v9, %v16502_v36  ;;  %23512 = vst [vmem:[#allocation60_spill] sm:$0xff] %v20164_v26 }
 0x4b8   : > { %v6366_v21 = vcombine.low %v20135_v46, %v20138_v60  ;;  %v20160_v62 = vrot.slane %v15113_v63, %v16502_v36  ;;  %v14300_v25 = vpack.i.bf16 %v5121_v33, %v4985_v45  ;;  %v11970_v22 = vcombine.low %v23514_v58, %v23513_v40  ;;  %v23516_v40 = vld [vmem:[#allocation19_spill] sm:$0xff] }
 0x4b9   : > { %13976 = vrot.lane.b32.xlu0 %v13975_v7, %s15554_s24  ;;  %v6398_v8 = vcombine.low %v20142_v14, %v20145_v12  ;;  %v6502_v56 = vcombine.low %v20148_v31, %v20151_v59  ;;  %v6836_v39 = vsel %vm23174_vm10, %v23030_v27, %v14103_v35  ;;  %v13814_v48 = vunpack.i.h.bf16 %v19837_v0  ;;  %v23518_v27 = vld [vmem:[#allocation33_spill] sm:$0xff] }
 0x4ba   : > { %v13813_v9 = vunpack.i.l.bf16 %v19837_v0  ;;  %v6534_v63 = vcombine.low %v20157_v29, %v20160_v62  ;;  %v14108_v2 = vunpack.i.l.bf16 %v19756_v55  ;;  %v13990_v45 = vpack.i.bf16 %v12106_v18, %v11970_v22  ;;  %v23517_v0 = vld [vmem:[#allocation41_spill] sm:$0xff] }
 0x4bb   : > { %14301 = vrot.lane.b32.xlu1 %v14300_v25, %s23380_s11  ;;  %v6374_v33 = vrot.slane %v6366_v21, %v16780_v34  ;;  %v6406_v7 = vrot.slane %v6398_v8, %v16780_v34  ;;  %v6510_v52 = vrot.slane %v6502_v56, %v16780_v34  ;;  %v11919_v58 = vcombine.high %v23516_v40, %v23515_v6  ;;  %v23519_v21 = vld [vmem:[#allocation58_spill] sm:$0xff]  ;;  %v23520_v25 = vld [vmem:[#allocation52_spill] sm:$0xff]  ;;  %v23521_v8 = vld [vmem:[#allocation61_spill] sm:$0xff] }
 0x4bc   : > { %v6542_v35 = vrot.slane %v6534_v63, %v16780_v34  ;;  %v11951_v3 = vcombine.high %v23518_v27, %v23517_v0  ;;  %v6837_v26 = vsel %vm23174_vm10, %v23033_v44, %v14104_v32  ;;  %v14109_v18 = vunpack.i.h.bf16 %v19756_v55  ;;  %v23522_v56 = vld [vmem:[#allocation62_spill] sm:$0xff]  ;;  %v20202_v27 = vpop.permute.xlu0 %13856  ;;  %v20204_v0 = vpop.permute.xlu1 %14161  ;;  %v23525_v32 = vld [vmem:[#allocation107_spill] sm:$0xff] }
 0x4bd   : > { %13991 = vrot.lane.b32.xlu0 %v13990_v45, %s15555_s29  ;;  %v12055_v22 = vcombine.high %v23520_v25, %v23519_v21  ;;  %v12087_v63 = vcombine.high %v23522_v56, %v23521_v8  ;;  %v6430_v57 = vcombine.low %v6374_v33, %v6406_v7  ;;  %23524 = vst [vmem:[#allocation45_spill] sm:$0xff] %v20204_v0  ;;  %v23529_v8 = vld [vmem:[#allocation103_spill] sm:$0xff]  ;;  %v23554_v15 = vunpack.i.l.bf16 %v19956_v41 }
 0x4be   : > { %v6566_v6 = vcombine.low %v6510_v52, %v6542_v35  ;;  %v20200_v40 = vrot.slane %v11951_v3, %v16780_v34  ;;  %v3932_v55 = vsel %vm3930_vm3, %v23525_v32, %v13814_v48  ;;  %v20209_v45 = vrot.slane %v11919_v58, %v16780_v34  ;;  %v23535_v32 = vld [vmem:[#allocation55_spill] sm:$0xff] }
 0x4bf   : > { %v20212_v21 = vrot.slane %v12055_v22, %v16780_v34  ;;  %v20215_v25 = vrot.slane %v12087_v63, %v16780_v34  ;;  %v3931_v3 = vsel %vm3930_vm3, %v23529_v8, %v13813_v9  ;;  %v20220_v56 = vsel %vm3925_vm2, %v6836_v39, %v14108_v2  ;;  %v23532_v2 = vld [vmem:[#allocation106_spill] sm:$0xff] }
 0x4c0   : > { %23523 = vst [vmem:[#allocation59_spill] sm:$0xff] %v20200_v40  ;;  %23526 = vst [vmem:[#allocation27_spill] sm:$0xff] %v20209_v45  ;;  %v14305_v44 = vpack.i.bf16 %v6566_v6, %v6430_v57  ;;  %v6567_v50 = vcombine.high %v6510_v52, %v6542_v35  ;;  %v20223_v43 = vsel %vm3925_vm2, %v6837_v26, %v14109_v18  ;;  %v13819_v48 = vunpack.i.h.bf16 %v19881_v4  ;;  %v23533_v52 = vld [vmem:[#allocation105_spill] sm:$0xff]  ;;  %v23534_v6 = vld [vmem:[#allocation42_spill] sm:$0xff] }
 0x4c1   : > { %23527 = vst [vmem:[#allocation65_spill] sm:$0xff] %v20212_v21  ;;  %23528 = vst [vmem:[#allocation63_spill] sm:$0xff] %v20215_v25  ;;  %v11972_v58 = vcombine.low %v20209_v45, %v20200_v40  ;;  %v12108_v22 = vcombine.low %v20212_v21, %v20215_v25  ;;  %v13818_v63 = vunpack.i.l.bf16 %v19881_v4  ;;  %v6431_v39 = vcombine.high %v6374_v33, %v6406_v7  ;;  %v20245_v33 = vpop.permute.xlu0 %13861  ;;  %v20247_v7 = vpop.permute.xlu1 %14171  ;;  %v15164_v45 = vld [vmem:[#allocation2 + $0x1aa] ss:$48 sps:$4 sm:$0xff]   ;;  %v15193_v0 = vld [vmem:[#allocation2 + $0x2af] ss:$48 sps:$4 sm:$0xff]  }
 0x4c2   : > { %23530 = vst [vmem:[#allocation50_spill] sm:$0xff] %v20220_v56  ;;  %23531 = vst [vmem:[#allocation31_spill] sm:$0xff] %v20223_v43  ;;  %14306 = vrot.lane.b32.xlu1 %v14305_v44, %s15530_s10  ;;  %v6367_v57 = vcombine.high %v20135_v46, %v20138_v60  ;;  %v14114_v26 = vunpack.i.h.bf16 %v19800_v1  ;;  %v11836_v35 = vcombine.low %v23533_v52, %v23532_v2  ;;  %v15115_v46 = vld [vmem:[#allocation2 + $0x186] ss:$48 sps:$4 sm:$0xff]   ;;  %v15116_v60 = vld [vmem:[#allocation2 + $0x19e] ss:$48 sps:$4 sm:$0xff]   ;;  %v23578_v40 = vunpack.i.h.bf16 %v20051_v42 }
 0x4c3   : > { %v14000_v9 = vpack.i.bf16 %v12108_v22, %v11972_v58  ;;  %v6399_v18 = vcombine.high %v20142_v14, %v20145_v12  ;;  %v7338_v8 = vcombine.low %v23535_v32, %v23534_v6  ;;  %v14310_v23 = vpack.i.bf16 %v6567_v50, %v6431_v39  ;;  %23536 = vst [vmem:[#allocation21_spill] sm:$0xff] %v20245_v33  ;;  %v23539_v14 = vld [vmem:[#allocation26_spill] sm:$0xff]  ;;  %v23540_v12 = vld [vmem:[#allocation56_spill] sm:$0xff] }
 0x4c4   : > { %v6503_v4 = vcombine.high %v20148_v31, %v20151_v59  ;;  %v6535_v44 = vcombine.high %v20157_v29, %v20160_v62  ;;  %23537 = vst [vmem:[#allocation19_spill] sm:$0xff] %v20247_v7  ;;  %v20250_v58 = vsel %vm3935_vm1, %v3932_v55, %v13819_v48  ;;  %v7474_v22 = vcombine.low %v23540_v12, %v23539_v14  ;;  %v23541_v50 = vld [vmem:[#allocation102_spill] sm:$0xff]  ;;  %v23542_v39 = vld [vmem:[#allocation104_spill] sm:$0xff]  ;;  %v15118_v62 = vld [vmem:[#allocation2 + $0x1fe] ss:$48 sps:$4 sm:$0xff]  }
 0x4c5   : > { %23538 = vst [vmem:[#allocation41_spill] sm:$0xff] %v20250_v58  ;;  %14001 = vrot.lane.b32.xlu0 %v14000_v9, %s15556_s12  ;;  %v11700_v31 = vcombine.low %v23542_v39, %v23541_v50  ;;  %v6413_v59 = vrot.slane %v6399_v18, %v16780_v34  ;;  %v15117_v29 = vld [vmem:[#allocation2 + $0x1e6] ss:$48 sps:$4 sm:$0xff]   ;;  %v20259_v52 = vsel %vm3935_vm1, %v3931_v3, %v13818_v63  ;;  %v15120_v9 = vld [vmem:[#allocation2 + $0x25e] ss:$48 sps:$4 sm:$0xff]   ;;  %v14113_v18 = vunpack.i.l.bf16 %v19800_v1 }
 0x4c6   : > { %v15119_v2 = vld [vmem:[#allocation2 + $0x246] ss:$48 sps:$4 sm:$0xff]   ;;  %23543 = vst [vmem:[#allocation33_spill] sm:$0xff] %v20259_v52  ;;  %14311 = vrot.lane.b32.xlu1 %v14310_v23, %s15554_s24  ;;  %v6381_v55 = vrot.slane %v6367_v57, %v16780_v34  ;;  %v6517_v48 = vrot.slane %v6503_v4, %v16780_v34  ;;  %v6549_v6 = vrot.slane %v6535_v44, %v16780_v34  ;;  %v15122_v14 = vld [vmem:[#allocation2 + $0x2be] ss:$48 sps:$4 sm:$0xff]   ;;  %v14119_v50 = vunpack.i.h.bf16 %v19839_v28 }
 0x4c7   : > { %v15121_v32 = vld [vmem:[#allocation2 + $0x2a6] ss:$48 sps:$4 sm:$0xff]   ;;  %v8269_v12 = vsel %vm23175_vm9, %v7474_v22, %v14114_v26  ;;  %v14165_v39 = vpack.i.bf16 %v11836_v35, %v11700_v31  ;;  %v14118_v3 = vunpack.i.l.bf16 %v19839_v28  ;;  %v11574_v57 = vrot.slane %v15115_v46, %v16502_v36  ;;  %v20278_v31 = vpop.permute.xlu0 %13866  ;;  %v20280_v46 = vpop.permute.xlu1 %14201  ;;  %v15191_v7 = vld [vmem:[#allocation2 + $0x24f] ss:$48 sps:$4 sm:$0xff]  }
 0x4c8   : > { %v6432_v63 = vcombine.low %v6381_v55, %v6413_v59  ;;  %v6568_v23 = vcombine.low %v6517_v48, %v6549_v6  ;;  %v11590_v4 = vrot.slane %v15116_v60, %v16502_v36  ;;  %v11606_v44 = vrot.slane %v15117_v29, %v16502_v36  ;;  %23544 = vst [vmem:[#allocation58_spill] sm:$0xff] %v20278_v31  ;;  %v15161_v43 = vld [vmem:[#allocation2 + $0x2c6] ss:$48 sps:$4 sm:$0xff]  }
 0x4c9   : > { %14166 = vrot.lane.b32.xlu0 %v14165_v39, %s15552_s8  ;;  %v11622_v17 = vrot.slane %v15118_v62, %v16502_v36  ;;  %v11710_v26 = vrot.slane %v15119_v2, %v16502_v36  ;;  %v11726_v22 = vrot.slane %v15120_v9, %v16502_v36  ;;  %v11742_v35 = vrot.slane %v15121_v32, %v16502_v36  ;;  %v15126_v62 = vld [vmem:[#allocation2 + $0x206] ss:$48 sps:$4 sm:$0xff]   ;;  %v15129_v32 = vld [vmem:[#allocation2 + $0x2ae] ss:$48 sps:$4 sm:$0xff]  }
 0x4ca   : > { %v14315_v1 = vpack.i.bf16 %v6568_v23, %v6432_v63  ;;  %v11758_v28 = vrot.slane %v15122_v14, %v16502_v36  ;;  %23545 = vst [vmem:[#allocation52_spill] sm:$0xff] %v20280_v46  ;;  %v8268_v39 = vsel %vm23175_vm9, %v7338_v8, %v14113_v18  ;;  %v11630_v60 = vcombine.low %v11574_v57, %v11590_v4  ;;  %v15123_v18 = vld [vmem:[#allocation2 + $0x18e] ss:$48 sps:$4 sm:$0xff]  }
 0x4cb   : > { %v11662_v58 = vcombine.low %v11606_v44, %v11622_v17  ;;  %v6569_v29 = vcombine.high %v6517_v48, %v6549_v6  ;;  %v11766_v2 = vcombine.low %v11710_v26, %v11726_v22  ;;  %v6433_v9 = vcombine.high %v6381_v55, %v6413_v59  ;;  %v15209_v46 = vld [vmem:[#allocation2 + $0x141] ss:$48 sps:$4 sm:$0xff]  }
 0x4cc   : > { %14316 = vrot.lane.b32.xlu1 %v14315_v1, %s15511_s6  ;;  %v11798_v63 = vcombine.low %v11742_v35, %v11758_v28  ;;  %v20287_v14 = vsel %vm3900_vm8, %v8268_v39, %v14118_v3  ;;  %v20290_v23 = vrot.slane %v11630_v60, %v16780_v34  ;;  %v20296_v48 = vsel %vm3900_vm8, %v8269_v12, %v14119_v50  ;;  %v15124_v1 = vld [vmem:[#allocation2 + $0x1a6] ss:$48 sps:$4 sm:$0xff]   ;;  %v15125_v60 = vld [vmem:[#allocation2 + $0x1ee] ss:$48 sps:$4 sm:$0xff]   ;;  %v20311_v3 = vpop.permute.xlu0 %13871  ;;  %v20313_v39 = vpop.permute.xlu1 %14206 }
 0x4cd   : > { %23546 = vst [vmem:[#allocation61_spill] sm:$0xff] %v20287_v14  ;;  %v20293_v8 = vrot.slane %v11662_v58, %v16780_v34  ;;  %23549 = vst [vmem:[#allocation103_spill] sm:$0xff] %v20296_v48  ;;  %v20299_v6 = vrot.slane %v11766_v2, %v16780_v34  ;;  %v14320_v55 = vpack.i.bf16 %v6569_v29, %v6433_v9  ;;  %v15127_v29 = vld [vmem:[#allocation2 + $0x24e] ss:$48 sps:$4 sm:$0xff]   ;;  %v15128_v9 = vld [vmem:[#allocation2 + $0x266] ss:$48 sps:$4 sm:$0xff]   ;;  %v13834_v52 = vunpack.i.h.bf16 %v19995_v11 }
 0x4ce   : > { %23547 = vst [vmem:[#allocation62_spill] sm:$0xff] %v20290_v23  ;;  %v20302_v59 = vrot.slane %v11798_v63, %v16780_v34  ;;  %v11631_v50 = vcombine.high %v11574_v57, %v11590_v4  ;;  %v11663_v2 = vcombine.high %v11606_v44, %v11622_v17  ;;  %v11767_v63 = vcombine.high %v11710_v26, %v11726_v22 }
 0x4cf   : > { %23548 = vst [vmem:[#allocation107_spill] sm:$0xff] %v20293_v8  ;;  %23550 = vst [vmem:[#allocation106_spill] sm:$0xff] %v20299_v6  ;;  %v11695_v58 = vcombine.high %v20290_v23, %v20293_v8  ;;  %v11799_v16 = vcombine.high %v11742_v35, %v11758_v28  ;;  %v20318_v10 = vrot.slane %v15123_v18, %v16502_v36  ;;  %v23553_v48 = vunpack.i.h.bf16 %v19956_v41 }
 0x4d0   : > { %23551 = vst [vmem:[#allocation105_spill] sm:$0xff] %v20302_v59  ;;  %v11831_v12 = vcombine.high %v20299_v6, %v20302_v59  ;;  %14321 = vrot.lane.b32.xlu1 %v14320_v55, %s15553_s26  ;;  %23552 = vst [vmem:[#allocation42_spill] sm:$0xff] %v20313_v39  ;;  %v11645_v17 = vrot.slane %v11631_v50, %v16780_v34  ;;  %v11677_v57 = vrot.slane %v11663_v2, %v16780_v34 }
 0x4d1   : > { %v11781_v4 = vrot.slane %v11767_v63, %v16780_v34  ;;  %v11813_v44 = vrot.slane %v11799_v16, %v16780_v34  ;;  %v6333_v26 = vrot.slane %v15124_v1, %v16502_v36  ;;  %v6349_v22 = vrot.slane %v15125_v60, %v16502_v36 }
 0x4d2   : > { %v14175_v55 = vpack.i.bf16 %v11831_v12, %v11695_v58  ;;  %v6365_v11 = vrot.slane %v15126_v62, %v16502_v36  ;;  %v11696_v35 = vcombine.low %v11645_v17, %v11677_v57  ;;  %v6453_v28 = vrot.slane %v15127_v29, %v16502_v36  ;;  %v20338_v29 = vpop.permute.xlu1 %14211 }
 0x4d3   : > { %v6469_v18 = vrot.slane %v15128_v9, %v16502_v36  ;;  %v6485_v58 = vrot.slane %v15129_v32, %v16502_v36  ;;  %v11832_v12 = vcombine.low %v11781_v4, %v11813_v44  ;;  %v6382_v50 = vcombine.low %v20318_v10, %v6333_v26 }
 0x4d4   : > { %14176 = vrot.lane.b32.xlu0 %v14175_v55, %s15549_s14  ;;  %v6414_v2 = vcombine.low %v6349_v22, %v6365_v11  ;;  %v6501_v16 = vrot.slane %v15130_v37, %v16502_v36  ;;  %v13839_v62 = vunpack.i.h.bf16 %v20049_v19  ;;  %v20336_v55 = vpop.permute.xlu0 %13876  ;;  %v3952_v37 = vsel %vm3950_vm5, %v23553_v48, %v13834_v52 }
 0x4d5   : > { %v6518_v63 = vcombine.low %v6453_v28, %v6469_v18  ;;  %v14180_v9 = vpack.i.bf16 %v11832_v12, %v11696_v35  ;;  %v13838_v14 = vunpack.i.l.bf16 %v20049_v19  ;;  %v3951_v6 = vsel %vm3950_vm5, %v23554_v15, %v13833_v13 }
 0x4d6   : > { %v6422_v32 = vrot.slane %v6414_v2, %v16780_v34  ;;  %v6550_v30 = vcombine.low %v6485_v58, %v6501_v16  ;;  %v6390_v35 = vrot.slane %v6382_v50, %v16780_v34  ;;  %v3957_v52 = vsel %vm3955_vm11, %v3952_v37, %v13839_v62  ;;  %v20363_v62 = vpop.permute.xlu1 %14221 }
 0x4d7   : > { %v6526_v12 = vrot.slane %v6518_v63, %v16780_v34  ;;  %v23054_v48 = vunpack.i.h.bf16 %v19958_v61  ;;  %v11697_v1 = vcombine.high %v11645_v17, %v11677_v57  ;;  %v11833_v60 = vcombine.high %v11781_v4, %v11813_v44  ;;  %v23556_v63 = vld [vmem:[#allocation100_spill] sm:$0xff]  ;;  %23557 = vst [vmem:[#allocation55_spill] sm:$0xff] %v20363_v62 }
 0x4d8   : > { %14181 = vrot.lane.b32.xlu0 %v14180_v9, %s15534_s7  ;;  %v6558_v2 = vrot.slane %v6550_v30, %v16780_v34  ;;  %v23055_v19 = vunpack.i.l.bf16 %v19958_v61  ;;  %v6434_v51 = vcombine.low %v6390_v35, %v6422_v32  ;;  %v3956_v15 = vsel %vm3955_vm11, %v3951_v6, %v13838_v14  ;;  %v23555_v9 = vld [vmem:[#allocation101_spill] sm:$0xff]  ;;  %v20361_v30 = vpop.permute.xlu0 %13881  ;;  %v23558_v14 = vld [vmem:[#allocation99_spill] sm:$0xff]  ;;  %v23559_v6 = vld [vmem:[#allocation98_spill] sm:$0xff] }
 0x4d9   : > { %v13844_v13 = vunpack.i.h.bf16 %v20082_v24  ;;  %v14185_v50 = vpack.i.bf16 %v11833_v60, %v11697_v1  ;;  %v11834_v23 = vcombine.low %v23556_v63, %v23555_v9  ;;  %v13843_v17 = vunpack.i.l.bf16 %v20082_v24  ;;  %v23565_v63 = vld [vmem:[#allocation114_spill] sm:$0xff] }
 0x4da   : > { %v6570_v41 = vcombine.low %v6526_v12, %v6558_v2  ;;  %v6571_v59 = vcombine.high %v6526_v12, %v6558_v2  ;;  %v6435_v4 = vcombine.high %v6390_v35, %v6422_v32  ;;  %v6383_v44 = vcombine.high %v20318_v10, %v6333_v26  ;;  %v23560_v35 = vld [vmem:[#allocation110_spill] sm:$0xff] }
 0x4db   : > { %v14138_v37 = vunpack.i.l.bf16 %v19997_v49  ;;  %v11698_v1 = vcombine.low %v23559_v6, %v23558_v14  ;;  %v6415_v60 = vcombine.high %v6349_v22, %v6365_v11  ;;  %v6519_v12 = vcombine.high %v6453_v28, %v6469_v18  ;;  %v23562_v11 = vld [vmem:[#allocation113_spill] sm:$0xff]  ;;  %v23563_v28 = vld [vmem:[#allocation112_spill] sm:$0xff] }
 0x4dc   : > { %v14325_v57 = vpack.i.bf16 %v6570_v41, %v6434_v51  ;;  %14186 = vrot.lane.b32.xlu0 %v14185_v50, %s15550_s17  ;;  %v14139_v2 = vunpack.i.h.bf16 %v19997_v49  ;;  %v14330_v9 = vpack.i.bf16 %v6571_v59, %v6435_v4  ;;  %v6551_v24 = vcombine.high %v6485_v58, %v6501_v16  ;;  %v23561_v50 = vld [vmem:[#allocation111_spill] sm:$0xff]  ;;  %v23567_v16 = vld [vmem:[#allocation117_spill] sm:$0xff]  ;;  %v23568_v4 = vld [vmem:[#allocation116_spill] sm:$0xff]  ;;  %v20393_v6 = vpop.permute.xlu0 %13886 }
 0x4dd   : > { %v14190_v51 = vpack.i.bf16 %v11834_v23, %v11698_v1  ;;  %v6397_v41 = vrot.slane %v6383_v44, %v16780_v34  ;;  %v6429_v10 = vrot.slane %v6415_v60, %v16780_v34  ;;  %v6533_v26 = vrot.slane %v6519_v12, %v16780_v34  ;;  %v23564_v49 = vld [vmem:[#allocation115_spill] sm:$0xff]  ;;  %v20395_v1 = vpop.permute.xlu1 %14226  ;;  %v15137_v12 = vld [vmem:[#allocation2 + $0x203] ss:$48 sps:$4 sm:$0xff]  }
 0x4de   : > { %14326 = vrot.lane.b32.xlu1 %v14325_v57, %s15555_s29  ;;  %v6565_v32 = vrot.slane %v6551_v24, %v16780_v34  ;;  %v10194_v22 = vcombine.low %v23561_v50, %v23560_v35  ;;  %v10226_v18 = vcombine.low %v23563_v28, %v23562_v11  ;;  %v10330_v57 = vcombine.low %v23565_v63, %v23564_v49  ;;  %v15131_v14 = vld [vmem:[#allocation2 + $0x18b] ss:$48 sps:$4 sm:$0xff]   ;;  %v15145_v63 = vld [vmem:[#allocation2 + $0x2c3] ss:$48 sps:$4 sm:$0xff]  }
 0x4df   : > { %v3961_v59 = vsel %vm3960_vm15, %v3956_v15, %v13843_v17  ;;  %v3962_v23 = vsel %vm3960_vm15, %v3957_v52, %v13844_v13  ;;  %v20388_v58 = vsel %vm23174_vm10, %v23055_v19, %v14138_v37  ;;  %v10362_v44 = vcombine.low %v23568_v4, %v23567_v16  ;;  %23569 = vst [vmem:[#allocation26_spill] sm:$0xff] %v20395_v1  ;;  %v15133_v37 = vld [vmem:[#allocation2 + $0x1a3] ss:$48 sps:$4 sm:$0xff]   ;;  %v15135_v60 = vld [vmem:[#allocation2 + $0x1eb] ss:$48 sps:$4 sm:$0xff]  }
 0x4e0   : > { %14191 = vrot.lane.b32.xlu0 %v14190_v51, %s23566_s16  ;;  %v20400_v15 = vsel %vm23174_vm10, %v23054_v48, %v14139_v2  ;;  %v6436_v52 = vcombine.low %v6397_v41, %v6429_v10  ;;  %v6572_v13 = vcombine.low %v6533_v26, %v6565_v32  ;;  %v20404_v17 = vrot.slane %v10226_v18, %v16780_v34  ;;  %v15139_v35 = vld [vmem:[#allocation2 + $0x24b] ss:$48 sps:$4 sm:$0xff]  }
 0x4e1   : > { %v20407_v24 = vrot.slane %v10194_v22, %v16780_v34  ;;  %v20410_v51 = vrot.slane %v10330_v57, %v16780_v34  ;;  %v20413_v2 = vrot.slane %v10362_v44, %v16780_v34  ;;  %v13849_v50 = vunpack.i.h.bf16 %v20120_v20  ;;  %v15143_v49 = vld [vmem:[#allocation2 + $0x2ab] ss:$48 sps:$4 sm:$0xff]  }
 0x4e2   : > { %14331 = vrot.lane.b32.xlu1 %v14330_v9, %s15537_s9  ;;  %v15141_v9 = vld [vmem:[#allocation2 + $0x263] ss:$48 sps:$4 sm:$0xff]   ;;  %v13848_v11 = vunpack.i.l.bf16 %v20120_v20  ;;  %v14335_v28 = vpack.i.bf16 %v6572_v13, %v6436_v52  ;;  %v6573_v18 = vcombine.high %v6533_v26, %v6565_v32  ;;  %v6437_v4 = vcombine.high %v6397_v41, %v6429_v10  ;;  %v23572_v48 = vld [vmem:[#allocation123_spill] sm:$0xff]  ;;  %v23580_v1 = vld [vmem:[#allocation29_spill] sm:$0xff] }
 0x4e3   : > { %v10247_v22 = vcombine.high %v20407_v24, %v20404_v17  ;;  %v10383_v57 = vcombine.high %v20410_v51, %v20413_v2  ;;  %v10380_v44 = vcombine.low %v19476_v54, %v19479_v53  ;;  %v20426_v20 = vrot.slane %v15131_v14, %v16502_v36  ;;  %v20443_v54 = vpop.permute.xlu0 %13891  ;;  %v20445_v53 = vpop.permute.xlu1 %14231  ;;  %v15155_v16 = vld [vmem:[#allocation2 + $0x24e] ss:$48 sps:$4 sm:$0xff]  }
 0x4e4   : > { %v20429_v26 = vrot.slane %v15133_v37, %v16502_v36  ;;  %v20432_v32 = vrot.slane %v15135_v60, %v16502_v36  ;;  %v20435_v13 = vrot.slane %v15137_v12, %v16502_v36  ;;  %v20438_v41 = vrot.slane %v15139_v35, %v16502_v36  ;;  %23570 = vst [vmem:[#allocation56_spill] sm:$0xff] %v20445_v53  ;;  %v15149_v35 = vld [vmem:[#allocation2 + $0x1a6] ss:$48 sps:$4 sm:$0xff]   ;;  %v15167_v53 = vld [vmem:[#allocation2 + $0x252] ss:$48 sps:$4 sm:$0xff]  }
 0x4e5   : > { %v14195_v52 = vpack.i.bf16 %v10383_v57, %v10247_v22  ;;  %v20441_v10 = vrot.slane %v15141_v9, %v16502_v36  ;;  %v14340_v14 = vpack.i.bf16 %v6573_v18, %v6437_v4  ;;  %v20450_v60 = vrot.slane %v15143_v49, %v16502_v36  ;;  %v15151_v22 = vld [vmem:[#allocation2 + $0x1ee] ss:$48 sps:$4 sm:$0xff]   ;;  %v15153_v4 = vld [vmem:[#allocation2 + $0x206] ss:$48 sps:$4 sm:$0xff]  }
 0x4e6   : > { %14336 = vrot.lane.b32.xlu1 %v14335_v28, %s15556_s12  ;;  %v7818_v37 = vcombine.low %v20426_v20, %v20429_v26  ;;  %v20453_v12 = vrot.slane %v15145_v63, %v16502_v36  ;;  %v15147_v28 = vld [vmem:[#allocation2 + $0x18e] ss:$48 sps:$4 sm:$0xff]   ;;  %v14143_v9 = vunpack.i.l.bf16 %v20051_v42  ;;  %v7850_v18 = vcombine.low %v20432_v32, %v20435_v13  ;;  %v15157_v63 = vld [vmem:[#allocation2 + $0x266] ss:$48 sps:$4 sm:$0xff]  }
 0x4e7   : > { %14196 = vrot.lane.b32.xlu0 %v14195_v52, %s15504_s28  ;;  %v23571_v57 = vld [vmem:[#allocation121_spill] sm:$0xff]  ;;  %v7954_v49 = vcombine.low %v20438_v41, %v20441_v10  ;;  %v20464_v61 = vsel %vm3965_vm12, %v3961_v59, %v13848_v11  ;;  %v20467_v8 = vsel %vm3965_vm12, %v3962_v23, %v13849_v50  ;;  %v13854_v52 = vunpack.i.h.bf16 %v20162_v38 }
 0x4e8   : > { %v10244_v19 = vcombine.low %v23572_v48, %v23571_v57  ;;  %23573 = vst [vmem:[#allocation102_spill] sm:$0xff] %v20464_v61  ;;  %23574 = vst [vmem:[#allocation104_spill] sm:$0xff] %v20467_v8  ;;  %v7986_v48 = vcombine.low %v20450_v60, %v20453_v12  ;;  %v15159_v57 = vld [vmem:[#allocation2 + $0x2ae] ss:$48 sps:$4 sm:$0xff]   ;;  %v7826_v21 = vrot.slane %v7818_v37, %v16780_v34  ;;  %v15163_v61 = vld [vmem:[#allocation2 + $0x192] ss:$48 sps:$4 sm:$0xff]  }
 0x4e9   : > { %v7858_v25 = vrot.slane %v7850_v18, %v16780_v34  ;;  %v7962_v59 = vrot.slane %v7954_v49, %v16780_v34  ;;  %v20478_v23 = vrot.slane %v15147_v28, %v16502_v36  ;;  %v20481_v50 = vrot.slane %v15149_v35, %v16502_v36  ;;  %v20496_v28 = vpop.permute.xlu0 %13896  ;;  %v20498_v49 = vpop.permute.xlu1 %14236 }
 0x4ea   : > { %14341 = vrot.lane.b32.xlu1 %v14340_v14, %s23380_s11  ;;  %v14215_v56 = vpack.i.bf16 %v10380_v44, %v10244_v19  ;;  %v7994_v11 = vrot.slane %v7986_v48, %v16780_v34  ;;  %v20484_v14 = vrot.slane %v15151_v22, %v16502_v36  ;;  %v20488_v44 = vrot.slane %v15153_v4, %v16502_v36 }
 0x4eb   : > { %v7882_v19 = vcombine.low %v7826_v21, %v7858_v25  ;;  %v20491_v37 = vrot.slane %v15155_v16, %v16502_v36  ;;  %v20494_v18 = vrot.slane %v15157_v63, %v16502_v36  ;;  %23575 = vst [vmem:[#allocation101_spill] sm:$0xff] %v20498_v49  ;;  %v12175_v22 = vcombine.high %v20478_v23, %v20481_v50 }
 0x4ec   : > { %14216 = vrot.lane.b32.xlu0 %v14215_v56, %s15534_s7  ;;  %v8018_v35 = vcombine.low %v7962_v59, %v7994_v11  ;;  %v20503_v56 = vrot.slane %v15159_v57, %v16502_v36  ;;  %v20506_v4 = vrot.slane %v15161_v43, %v16502_v36  ;;  %v20510_v16 = vsel %vm3925_vm2, %v20388_v58, %v14143_v9  ;;  %v15165_v9 = vld [vmem:[#allocation2 + $0x1f2] ss:$48 sps:$4 sm:$0xff]  }
 0x4ed   : > { %23577 = vst [vmem:[#allocation99_spill] sm:$0xff] %v20510_v16  ;;  %v12207_v63 = vcombine.high %v20484_v14, %v20488_v44  ;;  %v12311_v48 = vcombine.high %v20491_v37, %v20494_v18  ;;  %v8019_v8 = vcombine.high %v7962_v59, %v7994_v11  ;;  %v20520_v57 = vsel %vm3925_vm2, %v20400_v15, %v23578_v40  ;;  %v15166_v16 = vld [vmem:[#allocation2 + $0x20a] ss:$48 sps:$4 sm:$0xff]  }
 0x4ee   : > { %23576 = vst [vmem:[#allocation100_spill] sm:$0xff] %v20503_v56  ;;  %23579 = vst [vmem:[#allocation98_spill] sm:$0xff] %v20520_v57  ;;  %v13853_v43 = vunpack.i.l.bf16 %v20162_v38  ;;  %v14345_v49 = vpack.i.bf16 %v8018_v35, %v7882_v19  ;;  %v12343_v58 = vcombine.high %v20503_v56, %v20506_v4  ;;  %v5391_v59 = vsel %vm3930_vm3, %v23580_v1, %v13854_v52  ;;  %v15168_v15 = vld [vmem:[#allocation2 + $0x26a] ss:$48 sps:$4 sm:$0xff]   ;;  %v15169_v57 = vld [vmem:[#allocation2 + $0x2b2] ss:$48 sps:$4 sm:$0xff]  }
 0x4ef   : > { %v20528_v11 = vrot.slane %v12175_v22, %v16780_v34  ;;  %v20531_v42 = vrot.slane %v12207_v63, %v16780_v34  ;;  %v7883_v40 = vcombine.high %v7826_v21, %v7858_v25  ;;  %v15170_v38 = vld [vmem:[#allocation2 + $0x2ca] ss:$48 sps:$4 sm:$0xff]   ;;  %v13859_v19 = vunpack.i.h.bf16 %v20202_v27  ;;  %v20550_v63 = vpop.permute.xlu0 %13901 }
 0x4f0   : > { %v13858_v35 = vunpack.i.l.bf16 %v20202_v27  ;;  %14346 = vrot.lane.b32.xlu1 %v14345_v49, %s15530_s10  ;;  %v20537_v5 = vrot.slane %v12311_v48, %v16780_v34  ;;  %v20540_v1 = vrot.slane %v12343_v58, %v16780_v34  ;;  %v20545_v21 = vrot.slane %v15163_v61, %v16502_v36  ;;  %23585 = vst [vmem:[#allocation115_spill] sm:$0xff] %v20550_v63  ;;  %v20552_v27 = vpop.permute.xlu1 %14241 }
 0x4f1   : > { %23581 = vst [vmem:[#allocation110_spill] sm:$0xff] %v20528_v11  ;;  %23582 = vst [vmem:[#allocation111_spill] sm:$0xff] %v20531_v42  ;;  %v12241_v52 = vcombine.high %v20528_v11, %v20531_v42  ;;  %v14350_v22 = vpack.i.bf16 %v8019_v8, %v7883_v40  ;;  %v20548_v25 = vrot.slane %v15164_v45, %v16502_v36  ;;  %v13889_v56 = vunpack.i.h.bf16 %v20393_v6 }
 0x4f2   : > { %23583 = vst [vmem:[#allocation113_spill] sm:$0xff] %v20537_v5  ;;  %23584 = vst [vmem:[#allocation112_spill] sm:$0xff] %v20540_v1  ;;  %v12377_v49 = vcombine.high %v20537_v5, %v20540_v1  ;;  %v12157_v48 = vrot.slane %v15165_v9, %v16502_v36  ;;  %v12173_v58 = vrot.slane %v15166_v16, %v16502_v36  ;;  %v23587_v5 = vld [vmem:[#allocation38_spill] sm:$0xff] }
 0x4f3   : > { %23586 = vst [vmem:[#allocation114_spill] sm:$0xff] %v20552_v27  ;;  %v20559_v11 = vrot.slane %v15167_v53, %v16502_v36  ;;  %v12190_v61 = vcombine.low %v20545_v21, %v20548_v25  ;;  %v20564_v45 = vrot.slane %v15168_v15, %v16502_v36  ;;  %v20567_v8 = vrot.slane %v15169_v57, %v16502_v36  ;;  %v15201_v1 = vld [vmem:[#allocation2 + $0x81] ss:$48 sps:$4 sm:$0xff]  }
 0x4f4   : > { %v20570_v40 = vrot.slane %v15170_v38, %v16502_v36  ;;  %v14400_v27 = vpack.i.bf16 %v12377_v49, %v12241_v52  ;;  %14351 = vrot.lane.b32.xlu1 %v14350_v22, %s15554_s24  ;;  %v12222_v9 = vcombine.low %v12157_v48, %v12173_v58  ;;  %v7819_v53 = vcombine.high %v20426_v20, %v20429_v26 }
 0x4f5   : > { %v7851_v16 = vcombine.high %v20432_v32, %v20435_v13  ;;  %v5390_v15 = vsel %vm3930_vm3, %v23587_v5, %v13853_v43  ;;  %v12326_v57 = vcombine.low %v20559_v11, %v20564_v45  ;;  %v7955_v52 = vcombine.high %v20438_v41, %v20441_v10  ;;  %v20607_v43 = vpop.permute.xlu0 %13906 }
 0x4f6   : > { %v12358_v38 = vcombine.low %v20567_v8, %v20570_v40  ;;  %v20586_v22 = vsel %vm3935_vm1, %v5390_v15, %v13858_v35  ;;  %14401 = vrot.lane.b32.xlu0 %v14400_v27, %s15553_s26  ;;  %v20590_v20 = vrot.slane %v12222_v9, %v16780_v34  ;;  %v7987_v5 = vcombine.high %v20450_v60, %v20453_v12  ;;  %v20609_v35 = vpop.permute.xlu1 %14246 }
 0x4f7   : > { %23588 = vst [vmem:[#allocation117_spill] sm:$0xff] %v20586_v22  ;;  %v7865_v26 = vrot.slane %v7851_v16, %v16780_v34  ;;  %v20596_v32 = vsel %vm3935_vm1, %v5391_v59, %v13859_v19  ;;  %v20599_v13 = vrot.slane %v12190_v61, %v16780_v34  ;;  %v20602_v41 = vrot.slane %v12326_v57, %v16780_v34  ;;  %v15171_v16 = vld [vmem:[#allocation2 + $0x18d] ss:$48 sps:$4 sm:$0xff]  }
 0x4f8   : > { %23589 = vst [vmem:[#allocation116_spill] sm:$0xff] %v20590_v20  ;;  %23590 = vst [vmem:[#allocation121_spill] sm:$0xff] %v20596_v32  ;;  %v20605_v10 = vrot.slane %v12358_v38, %v16780_v34  ;;  %v7833_v60 = vrot.slane %v7819_v53, %v16780_v34  ;;  %v7969_v12 = vrot.slane %v7955_v52, %v16780_v34  ;;  %v13874_v49 = vunpack.i.h.bf16 %v20311_v3 }
 0x4f9   : > { %23591 = vst [vmem:[#allocation123_spill] sm:$0xff] %v20599_v13  ;;  %23592 = vst [vmem:[#allocation29_spill] sm:$0xff] %v20602_v41  ;;  %v8001_v59 = vrot.slane %v7987_v5, %v16780_v34  ;;  %v12243_v61 = vcombine.high %v20599_v13, %v20590_v20  ;;  %v13873_v38 = vunpack.i.l.bf16 %v20311_v3  ;;  %v12191_v5 = vcombine.high %v20545_v21, %v20548_v25  ;;  %v15190_v3 = vld [vmem:[#allocation2 + $0x207] ss:$48 sps:$4 sm:$0xff]   ;;  %v15197_v20 = vld [vmem:[#allocation2 + $0x21] ss:$48 sps:$4 sm:$0xff]  }
 0x4fa   : > { %23593 = vst [vmem:[#allocation38_spill] sm:$0xff] %v20605_v10  ;;  %23594 = vst [vmem:[#allocation140_spill] sm:$0xff] %v20607_v43  ;;  %v12379_v9 = vcombine.high %v20602_v41, %v20605_v10  ;;  %v7884_v57 = vcombine.low %v7833_v60, %v7865_v26  ;;  %v12223_v27 = vcombine.high %v12157_v48, %v12173_v58  ;;  %v23596_v15 = vunpack.i.h.bf16 %v20278_v31  ;;  %v15175_v48 = vld [vmem:[#allocation2 + $0x1ed] ss:$48 sps:$4 sm:$0xff]   ;;  %v15177_v58 = vld [vmem:[#allocation2 + $0x205] ss:$48 sps:$4 sm:$0xff]  }
 0x4fb   : > { %23595 = vst [vmem:[#allocation141_spill] sm:$0xff] %v20609_v35  ;;  %v8020_v53 = vcombine.low %v7969_v12, %v8001_v59  ;;  %v12327_v33 = vcombine.high %v20559_v11, %v20564_v45  ;;  %v15173_v35 = vld [vmem:[#allocation2 + $0x1a5] ss:$48 sps:$4 sm:$0xff]   ;;  %v12359_v25 = vcombine.high %v20567_v8, %v20570_v40  ;;  %v15179_v11 = vld [vmem:[#allocation2 + $0x24d] ss:$48 sps:$4 sm:$0xff]   ;;  %v20642_v45 = vpop.permute.xlu0 %13911  ;;  %v23601_v8 = vunpack.i.l.bf16 %v20278_v31 }
 0x4fc   : > { %v14410_v52 = vpack.i.bf16 %v12379_v9, %v12243_v61  ;;  %v20633_v41 = vsel %vm3950_vm5, %v23596_v15, %v13874_v49  ;;  %v20638_v21 = vrot.slane %v12223_v27, %v16780_v34  ;;  %23598 = vst [vmem:[#allocation143_spill] sm:$0xff] %v20642_v45  ;;  %v20644_v61 = vpop.permute.xlu1 %14251  ;;  %v20649_v9 = vrot.slane %v12191_v5, %v16780_v34  ;;  %v15195_v13 = vld [vmem:[#allocation2 + $0x9] ss:$48 sps:$4 sm:$0xff]  }
 0x4fd   : > { %v14355_v22 = vpack.i.bf16 %v8020_v53, %v7884_v57  ;;  %23599 = vst [vmem:[#allocation144_spill] sm:$0xff] %v20644_v61  ;;  %v7885_v15 = vcombine.high %v7833_v60, %v7865_v26  ;;  %v8021_v27 = vcombine.high %v7969_v12, %v8001_v59  ;;  %v15181_v57 = vld [vmem:[#allocation2 + $0x265] ss:$48 sps:$4 sm:$0xff]   ;;  %v15183_v53 = vld [vmem:[#allocation2 + $0x2ad] ss:$48 sps:$4 sm:$0xff]   ;;  %v5406_v40 = vsel %vm3950_vm5, %v23601_v8, %v13873_v38 }
 0x4fe   : > { %14411 = vrot.lane.b32.xlu0 %v14410_v52, %s15537_s9  ;;  %23597 = vst [vmem:[#allocation142_spill] sm:$0xff] %v20638_v21  ;;  %23600 = vst [vmem:[#allocation145_spill] sm:$0xff] %v20649_v9  ;;  %v15185_v52 = vld [vmem:[#allocation2 + $0x2c5] ss:$48 sps:$4 sm:$0xff]   ;;  %v20656_v32 = vrot.slane %v12327_v33, %v16780_v34  ;;  %v20659_v49 = vrot.slane %v12359_v25, %v16780_v34  ;;  %v13878_v5 = vunpack.i.l.bf16 %v20336_v55  ;;  %v15189_v38 = vld [vmem:[#allocation2 + $0x1ef] ss:$48 sps:$4 sm:$0xff]  }
 0x4ff   : > { %14356 = vrot.lane.b32.xlu1 %v14355_v22, %s15511_s6  ;;  %v15187_v22 = vld [vmem:[#allocation2 + $0x18f] ss:$48 sps:$4 sm:$0xff]   ;;  %v12245_v26 = vcombine.high %v20649_v9, %v20638_v21  ;;  %v14360_v60 = vpack.i.bf16 %v8021_v27, %v7885_v15  ;;  %v20665_v12 = vrot.slane %v15171_v16, %v16502_v36  ;;  %v15188_v59 = vld [vmem:[#allocation2 + $0x1a7] ss:$48 sps:$4 sm:$0xff]   ;;  %v20670_v33 = vrot.slane %v15173_v35, %v16502_v36  ;;  %v20698_v61 = vpop.permute.xlu0 %13916 }
 0x500   : > { %23602 = vst [vmem:[#allocation146_spill] sm:$0xff] %v20656_v32  ;;  %23603 = vst [vmem:[#allocation147_spill] sm:$0xff] %v20659_v49  ;;  %v12381_v8 = vcombine.high %v20656_v32, %v20659_v49  ;;  %v20673_v25 = vrot.slane %v15175_v48, %v16502_v36  ;;  %v20676_v19 = vrot.slane %v15177_v58, %v16502_v36  ;;  %v15192_v48 = vld [vmem:[#allocation2 + $0x267] ss:$48 sps:$4 sm:$0xff]  }
 0x501   : > { %v20680_v16 = vrot.slane %v15179_v11, %v16502_v36  ;;  %v20683_v15 = vrot.slane %v15181_v57, %v16502_v36  ;;  %v20686_v27 = vrot.slane %v15183_v53, %v16502_v36  ;;  %v20689_v35 = vrot.slane %v15185_v52, %v16502_v36  ;;  %v15194_v57 = vld [vmem:[#allocation2 + $0x2c7] ss:$48 sps:$4 sm:$0xff]   ;;  %23604 = vst [vmem:[#allocation148_spill] sm:$0xff] %v20698_v61  ;;  %v20700_v53 = vpop.permute.xlu1 %14256 }
 0x502   : > { %v14420_v31 = vpack.i.bf16 %v12381_v8, %v12245_v26  ;;  %v10722_v58 = vcombine.low %v20665_v12, %v20670_v33  ;;  %v20696_v11 = vrot.slane %v15187_v22, %v16502_v36  ;;  %23605 = vst [vmem:[#allocation149_spill] sm:$0xff] %v20700_v53  ;;  %v20707_v8 = vrot.slane %v15188_v59, %v16502_v36  ;;  %v15199_v61 = vld [vmem:[#allocation2 + $0x69] ss:$48 sps:$4 sm:$0xff]  }
 0x503   : > { %14361 = vrot.lane.b32.xlu1 %v14360_v60, %s15553_s26  ;;  %v10754_v60 = vcombine.low %v20673_v25, %v20676_v19  ;;  %v10858_v52 = vcombine.low %v20680_v16, %v20683_v15  ;;  %v10890_v26 = vcombine.low %v20686_v27, %v20689_v35  ;;  %v20710_v32 = vrot.slane %v15189_v38, %v16502_v36  ;;  %v20757_v42 = vpop.permute.xlu0 %13921  ;;  %v15207_v45 = vld [vmem:[#allocation2 + $0x129] ss:$48 sps:$4 sm:$0xff]  }
 0x504   : > { %14421 = vrot.lane.b32.xlu0 %v14420_v31, %s23380_s11  ;;  %v20714_v22 = vrot.slane %v10722_v58, %v16780_v34  ;;  %v20720_v53 = vrot.slane %v15190_v3, %v16502_v36  ;;  %v20723_v9 = vrot.slane %v15191_v7, %v16502_v36  ;;  %v7834_v31 = vcombine.low %v20696_v11, %v20707_v8  ;;  %v23654_v39 = vld [vmem:[#allocation143_spill] sm:$0xff] }
 0x505   : > { %v20717_v49 = vrot.slane %v10754_v60, %v16780_v34  ;;  %v20726_v59 = vrot.slane %v10858_v52, %v16780_v34  ;;  %v20729_v38 = vrot.slane %v10890_v26, %v16780_v34  ;;  %v20734_v58 = vrot.slane %v15192_v48, %v16502_v36  ;;  %23610 = vst [vmem:[#allocation154_spill] sm:$0xff] %v20757_v42 }
 0x506   : > { %23606 = vst [vmem:[#allocation150_spill] sm:$0xff] %v20714_v22  ;;  %v13884_v60 = vunpack.i.h.bf16 %v20361_v30  ;;  %v7866_v3 = vcombine.low %v20710_v32, %v20720_v53  ;;  %v20740_v7 = vrot.slane %v15193_v0, %v16502_v36  ;;  %v20743_v52 = vrot.slane %v15194_v57, %v16502_v36 }
 0x507   : > { %23607 = vst [vmem:[#allocation151_spill] sm:$0xff] %v20717_v49  ;;  %23608 = vst [vmem:[#allocation152_spill] sm:$0xff] %v20726_v59  ;;  %v10786_v21 = vcombine.low %v20714_v22, %v20717_v49  ;;  %v10922_v48 = vcombine.low %v20726_v59, %v20729_v38  ;;  %v7970_v10 = vcombine.low %v20723_v9, %v20734_v58  ;;  %v15203_v22 = vld [vmem:[#allocation2 + $0xc9] ss:$48 sps:$4 sm:$0xff]   ;;  %v15205_v49 = vld [vmem:[#allocation2 + $0xe1] ss:$48 sps:$4 sm:$0xff]   ;;  %v20759_v59 = vpop.permute.xlu1 %14261 }
 0x508   : > { %23609 = vst [vmem:[#allocation153_spill] sm:$0xff] %v20729_v38  ;;  %v5410_v0 = vsel %vm3955_vm11, %v5406_v40, %v13878_v5  ;;  %v7874_v57 = vrot.slane %v7866_v3, %v16780_v34  ;;  %v8002_v26 = vcombine.low %v20740_v7, %v20743_v52  ;;  %23611 = vst [vmem:[#allocation155_spill] sm:$0xff] %v20759_v59  ;;  %v23612_v38 = vunpack.i.h.bf16 %v20336_v55 }
 0x509   : > { %v13883_v40 = vunpack.i.l.bf16 %v20361_v30  ;;  %v14425_v5 = vpack.i.bf16 %v10922_v48, %v10786_v21  ;;  %v7842_v3 = vrot.slane %v7834_v31, %v16780_v34  ;;  %v7978_v42 = vrot.slane %v7970_v10, %v16780_v34  ;;  %v20803_v48 = vpop.permute.xlu0 %13926 }
 0x50a   : > { %v5411_v43 = vsel %vm3955_vm11, %v20633_v41, %v23612_v38  ;;  %v8010_v59 = vrot.slane %v8002_v26, %v16780_v34  ;;  %v20773_v41 = vrot.slane %v15195_v13, %v16502_v36  ;;  %v20776_v30 = vrot.slane %v15197_v20, %v16502_v36 }
 0x50b   : > { %v5415_v63 = vsel %vm3960_vm15, %v5411_v43, %v13884_v60  ;;  %14426 = vrot.lane.b32.xlu0 %v14425_v5, %s15530_s10  ;;  %v7886_v55 = vcombine.low %v7842_v3, %v7874_v57  ;;  %v20779_v21 = vrot.slane %v15199_v61, %v16502_v36  ;;  %v20782_v43 = vrot.slane %v15201_v1, %v16502_v36 }
 0x50c   : > { %23613 = vst [vmem:[#allocation156_spill] sm:$0xff] %v20773_v41  ;;  %v8022_v38 = vcombine.low %v7978_v42, %v8010_v59  ;;  %v20785_v10 = vrot.slane %v15203_v22, %v16502_v36  ;;  %v20788_v31 = vrot.slane %v15205_v49, %v16502_v36  ;;  %v13888_v60 = vunpack.i.l.bf16 %v20393_v6  ;;  %v20805_v6 = vpop.permute.xlu1 %14266 }
 0x50d   : > { %23614 = vst [vmem:[#allocation157_spill] sm:$0xff] %v20779_v21  ;;  %v9922_v13 = vcombine.low %v20773_v41, %v20776_v30  ;;  %v20794_v20 = vrot.slane %v15207_v45, %v16502_v36  ;;  %v20797_v61 = vrot.slane %v15209_v46, %v16502_v36  ;;  %v9954_v1 = vcombine.low %v20779_v21, %v20782_v43  ;;  %v15226_v45 = vld [vmem:[#allocation2 + $0x2c9] ss:$48 sps:$4 sm:$0xff]  }
 0x50e   : > { %v14365_v26 = vpack.i.bf16 %v8022_v38, %v7886_v55  ;;  %v10058_v22 = vcombine.low %v20785_v10, %v20788_v31  ;;  %v8023_v49 = vcombine.high %v7978_v42, %v8010_v59  ;;  %23615 = vst [vmem:[#allocation158_spill] sm:$0xff] %v20805_v6  ;;  %v5414_v5 = vsel %vm3960_vm15, %v5410_v0, %v13883_v40  ;;  %v23617_v55 = vld [vmem:[#allocation46_spill] sm:$0xff]  ;;  %v23618_v38 = vld [vmem:[#allocation47_spill] sm:$0xff] }
 0x50f   : > { %v20810_v41 = vsel %vm3965_vm12, %v5415_v63, %v13889_v56  ;;  %v10090_v46 = vcombine.low %v20794_v20, %v20797_v61  ;;  %v10378_v21 = vcombine.low %v23618_v38, %v23617_v55  ;;  %v20818_v42 = vrot.slane %v9922_v13, %v16780_v34 }
 0x510   : > { %23616 = vst [vmem:[#allocation159_spill] sm:$0xff] %v20810_v41  ;;  %14366 = vrot.lane.b32.xlu1 %v14365_v26, %s15555_s29  ;;  %v20821_v59 = vrot.slane %v9954_v1, %v16780_v34  ;;  %v7887_v0 = vcombine.high %v7842_v3, %v7874_v57  ;;  %v20824_v40 = vrot.slane %v10058_v22, %v16780_v34  ;;  %v14214_v3 = vunpack.i.h.bf16 %v20338_v29 }
 0x511   : > { %v20827_v56 = vrot.slane %v10090_v46, %v16780_v34  ;;  %v10723_v63 = vcombine.high %v20665_v12, %v20670_v33  ;;  %v10755_v55 = vcombine.high %v20673_v25, %v20676_v19  ;;  %v20834_v26 = vsel %vm3965_vm12, %v5414_v5, %v13888_v60 }
 0x512   : > { %23619 = vst [vmem:[#allocation46_spill] sm:$0xff] %v20834_v26  ;;  %v14370_v13 = vpack.i.bf16 %v8023_v49, %v7887_v0  ;;  %v10859_v1 = vcombine.high %v20680_v16, %v20683_v15  ;;  %v10891_v57 = vcombine.high %v20686_v27, %v20689_v35  ;;  %v9975_v22 = vcombine.high %v20818_v42, %v20821_v59  ;;  %v20859_v27 = vpop.permute.xlu0 %13931  ;;  %v20861_v35 = vpop.permute.xlu1 %14271  ;;  %v15229_v26 = vld [vmem:[#allocation2 + $0x25] ss:$48 sps:$4 sm:$0xff]  }
 0x513   : > { %v10111_v12 = vcombine.high %v20824_v40, %v20827_v56  ;;  %v20846_v19 = vrot.slane %v10755_v55, %v16780_v34  ;;  %v7835_v16 = vcombine.high %v20696_v11, %v20707_v8  ;;  %v7867_v15 = vcombine.high %v20710_v32, %v20720_v53  ;;  %23620 = vst [vmem:[#allocation47_spill] sm:$0xff] %v20861_v35  ;;  %v23668_v35 = vld [vmem:[#allocation123_spill] sm:$0xff] }
 0x514   : > { %14371 = vrot.lane.b32.xlu1 %v14370_v13, %s15537_s9  ;;  %v20850_v33 = vrot.slane %v10859_v1, %v16780_v34  ;;  %v20853_v25 = vrot.slane %v10891_v57, %v16780_v34  ;;  %v10737_v49 = vrot.slane %v10723_v63, %v16780_v34  ;;  %v7971_v5 = vcombine.high %v20723_v9, %v20734_v58  ;;  %v23622_v63 = vld [vmem:[#allocation40_spill] sm:$0xff] }
 0x515   : > { %v14430_v60 = vpack.i.bf16 %v10111_v12, %v9975_v22  ;;  %v8003_v46 = vcombine.high %v20740_v7, %v20743_v52  ;;  %v14213_v38 = vunpack.i.l.bf16 %v20338_v29  ;;  %v13894_v11 = vunpack.i.h.bf16 %v20443_v54  ;;  %v23621_v52 = vld [vmem:[#allocation49_spill] sm:$0xff] }
 0x516   : > { %v10924_v32 = vcombine.low %v20850_v33, %v20853_v25  ;;  %v7881_v53 = vrot.slane %v7867_v15, %v16780_v34  ;;  %v10788_v8 = vcombine.low %v10737_v49, %v20846_v19  ;;  %v7849_v0 = vrot.slane %v7835_v16, %v16780_v34  ;;  %v23636_v29 = vld [vmem:[#allocation37_spill] sm:$0xff] }
 0x517   : > { %14431 = vrot.lane.b32.xlu0 %v14430_v60, %s15504_s28  ;;  %v7985_v9 = vrot.slane %v7971_v5, %v16780_v34  ;;  %v8017_v58 = vrot.slane %v8003_v46, %v16780_v34  ;;  %v10242_v55 = vcombine.low %v23622_v63, %v23621_v52  ;;  %v20884_v13 = vsel %vm23175_vm9, %v10378_v21, %v14214_v3  ;;  %v20893_v46 = vpop.permute.xlu0 %13936  ;;  %v20895_v52 = vpop.permute.xlu1 %14276  ;;  %v23628_v63 = vld [vmem:[#allocation130_spill] sm:$0xff] }
 0x518   : > { %23623 = vst [vmem:[#allocation49_spill] sm:$0xff] %v20884_v13  ;;  %v14445_v1 = vpack.i.bf16 %v10924_v32, %v10788_v8  ;;  %v7888_v57 = vcombine.low %v7849_v0, %v7881_v53  ;;  %v10382_v12 = vcombine.low %v20410_v51, %v20413_v2  ;;  %v13893_v15 = vunpack.i.l.bf16 %v20443_v54  ;;  %23625 = vst [vmem:[#allocation160_spill] sm:$0xff] %v20893_v46 }
 0x519   : > { %v8024_v22 = vcombine.low %v7985_v9, %v8017_v58  ;;  %v20889_v16 = vsel %vm23175_vm9, %v10242_v55, %v14213_v38  ;;  %v8025_v5 = vcombine.high %v7985_v9, %v8017_v58  ;;  %23626 = vst [vmem:[#allocation161_spill] sm:$0xff] %v20895_v52  ;;  %v6843_v21 = vsel %vm3930_vm3, %v19631_v47, %v13894_v11  ;;  %v15211_v58 = vld [vmem:[#allocation2 + $0x5] ss:$48 sps:$4 sm:$0xff]   ;;  %v15214_v55 = vld [vmem:[#allocation2 + $0x7d] ss:$48 sps:$4 sm:$0xff]  }
 0x51a   : > { %23624 = vst [vmem:[#allocation40_spill] sm:$0xff] %v20889_v16  ;;  %v10246_v2 = vcombine.low %v20407_v24, %v20404_v17  ;;  %v13899_v54 = vunpack.i.h.bf16 %v20496_v28  ;;  %v7889_v38 = vcombine.high %v7849_v0, %v7881_v53  ;;  %v10925_v32 = vcombine.high %v20850_v33, %v20853_v25  ;;  %v23627_v17 = vld [vmem:[#allocation100_spill] sm:$0xff]  ;;  %v15212_v53 = vld [vmem:[#allocation2 + $0x1d] ss:$48 sps:$4 sm:$0xff]  }
 0x51b   : > { %14446 = vrot.lane.b32.xlu0 %v14445_v1, %s15511_s6  ;;  %v14375_v51 = vpack.i.bf16 %v8024_v22, %v7888_v57  ;;  %v12174_v8 = vcombine.low %v20478_v23, %v20481_v50  ;;  %v12206_v11 = vcombine.low %v20484_v14, %v20488_v44  ;;  %v12310_v9 = vcombine.low %v20491_v37, %v20494_v18  ;;  %v15213_v0 = vld [vmem:[#allocation2 + $0x65] ss:$48 sps:$4 sm:$0xff]   ;;  %v15216_v14 = vld [vmem:[#allocation2 + $0xdd] ss:$48 sps:$4 sm:$0xff]  }
 0x51c   : > { %v14455_v47 = vpack.i.bf16 %v10382_v12, %v10246_v2  ;;  %v12342_v24 = vcombine.low %v23627_v17, %v20506_v4  ;;  %v6842_v33 = vsel %vm3930_vm3, %v23628_v63, %v13893_v15  ;;  %v13898_v23 = vunpack.i.l.bf16 %v20496_v28  ;;  %v15215_v1 = vld [vmem:[#allocation2 + $0xc5] ss:$48 sps:$4 sm:$0xff]   ;;  %v15218_v22 = vld [vmem:[#allocation2 + $0x13d] ss:$48 sps:$4 sm:$0xff]  }
 0x51d   : > { %14376 = vrot.lane.b32.xlu1 %v14375_v51, %s15556_s12  ;;  %v14380_v50 = vpack.i.bf16 %v8025_v5, %v7889_v38  ;;  %v10789_v25 = vcombine.high %v10737_v49, %v20846_v19  ;;  %v12182_v44 = vrot.slane %v12174_v8, %v16780_v34  ;;  %v12214_v37 = vrot.slane %v12206_v11, %v16780_v34  ;;  %v15217_v57 = vld [vmem:[#allocation2 + $0x125] ss:$48 sps:$4 sm:$0xff]   ;;  %v20929_v5 = vpop.permute.xlu0 %13941  ;;  %v20931_v51 = vpop.permute.xlu1 %14281 }
 0x51e   : > { %v12318_v18 = vrot.slane %v12310_v9, %v16780_v34  ;;  %v12350_v4 = vrot.slane %v12342_v24, %v16780_v34  ;;  %v20925_v28 = vsel %vm3935_vm1, %v6843_v21, %v13899_v54  ;;  %v23630_v12 = vld [vmem:[#allocation26_spill] sm:$0xff]  ;;  %23631 = vst [vmem:[#allocation130_spill] sm:$0xff] %v20929_v5  ;;  %v20935_v8 = vrot.slane %v15211_v58, %v16502_v36  ;;  %v23667_v5 = vld [vmem:[#allocation116_spill] sm:$0xff] }
 0x51f   : > { %14456 = vrot.lane.b32.xlu0 %v14455_v47, %s23566_s16  ;;  %23629 = vst [vmem:[#allocation100_spill] sm:$0xff] %v20925_v28  ;;  %v14229_v19 = vunpack.i.h.bf16 %v23630_v12  ;;  %v14228_v49 = vunpack.i.l.bf16 %v23630_v12  ;;  %v14465_v15 = vpack.i.bf16 %v10925_v32, %v10789_v25  ;;  %23632 = vst [vmem:[#allocation26_spill] sm:$0xff] %v20931_v51  ;;  %v12238_v2 = vcombine.low %v12182_v44, %v12214_v37  ;;  %v23635_v12 = vld [vmem:[#allocation22_spill] sm:$0xff]  ;;  %v15239_v28 = vld [vmem:[#allocation2 + $0x12d] ss:$48 sps:$4 sm:$0xff]  }
 0x520   : > { %v12374_v38 = vcombine.low %v12318_v18, %v12350_v4  ;;  %v20938_v47 = vrot.slane %v15212_v53, %v16502_v36  ;;  %v20941_v21 = vrot.slane %v15213_v0, %v16502_v36  ;;  %v20944_v54 = vrot.slane %v15214_v55, %v16502_v36  ;;  %v23633_v53 = vld [vmem:[#allocation56_spill] sm:$0xff] }
 0x521   : > { %14381 = vrot.lane.b32.xlu1 %v14380_v50, %s23380_s11  ;;  %v20947_v32 = vrot.slane %v15215_v1, %v16502_v36  ;;  %v20950_v11 = vrot.slane %v15216_v14, %v16502_v36  ;;  %v20956_v24 = vrot.slane %v15217_v57, %v16502_v36  ;;  %v20959_v58 = vrot.slane %v15218_v22, %v16502_v36  ;;  %v15219_v55 = vld [vmem:[#allocation2 + $0x191] ss:$48 sps:$4 sm:$0xff]   ;;  %v15220_v1 = vld [vmem:[#allocation2 + $0x1a9] ss:$48 sps:$4 sm:$0xff]  }
 0x522   : > { %v14385_v9 = vpack.i.bf16 %v12374_v38, %v12238_v2  ;;  %v9906_v17 = vcombine.low %v20935_v8, %v20938_v47  ;;  %v14234_v0 = vunpack.i.h.bf16 %v23633_v53  ;;  %v9938_v63 = vcombine.low %v20941_v21, %v20944_v54  ;;  %v15221_v2 = vld [vmem:[#allocation2 + $0x1f1] ss:$48 sps:$4 sm:$0xff]   ;;  %v15222_v38 = vld [vmem:[#allocation2 + $0x209] ss:$48 sps:$4 sm:$0xff]  }
 0x523   : > { %14466 = vrot.lane.b32.xlu0 %v14465_v15, %s15553_s26  ;;  %v10042_v50 = vcombine.low %v20947_v32, %v20950_v11  ;;  %v12375_v25 = vcombine.high %v12318_v18, %v12350_v4  ;;  %v20967_v14 = vsel %vm3935_vm1, %v6842_v33, %v13898_v23  ;;  %v3934_v57 = vsel %vm3930_vm3, %v23635_v12, %v14229_v19  ;;  %v15223_v23 = vld [vmem:[#allocation2 + $0x251] ss:$48 sps:$4 sm:$0xff]   ;;  %v15224_v19 = vld [vmem:[#allocation2 + $0x269] ss:$48 sps:$4 sm:$0xff]   ;;  %v20981_v12 = vpop.permute.xlu0 %13946 }
 0x524   : > { %23634 = vst [vmem:[#allocation56_spill] sm:$0xff] %v20967_v14  ;;  %v10074_v22 = vcombine.low %v20956_v24, %v20959_v58  ;;  %v12239_v15 = vcombine.high %v12182_v44, %v12214_v37  ;;  %v3933_v60 = vsel %vm3930_vm3, %v23636_v29, %v14228_v49  ;;  %v14233_v3 = vunpack.i.l.bf16 %v23633_v53  ;;  %23639 = vst [vmem:[#allocation37_spill] sm:$0xff] %v20981_v12  ;;  %v15225_v53 = vld [vmem:[#allocation2 + $0x2b1] ss:$48 sps:$4 sm:$0xff]  }
 0x525   : > { %14386 = vrot.lane.b32.xlu1 %v14385_v9, %s15530_s10  ;;  %v20979_v33 = vrot.slane %v9938_v63, %v16780_v34  ;;  %v20983_v9 = vpop.permute.xlu1 %14286  ;;  %v20986_v44 = vrot.slane %v9906_v17, %v16780_v34  ;;  %v20989_v37 = vrot.slane %v10042_v50, %v16780_v34  ;;  %v20996_v7 = vsel %vm3935_vm1, %v3934_v57, %v14234_v0  ;;  %v23656_v14 = vld [vmem:[#allocation114_spill] sm:$0xff] }
 0x526   : > { %23640 = vst [vmem:[#allocation162_spill] sm:$0xff] %v20983_v9  ;;  %v20992_v29 = vrot.slane %v10074_v22, %v16780_v34  ;;  %v14390_v49 = vpack.i.bf16 %v12375_v25, %v12239_v15  ;;  %23644 = vst [vmem:[#allocation166_spill] sm:$0xff] %v20996_v7  ;;  %v20999_v4 = vrot.slane %v15219_v55, %v16502_v36  ;;  %v13914_v13 = vunpack.i.h.bf16 %v23654_v39  ;;  %v15237_v7 = vld [vmem:[#allocation2 + $0xe5] ss:$48 sps:$4 sm:$0xff]  }
 0x527   : > { %23638 = vst [vmem:[#allocation22_spill] sm:$0xff] %v20979_v33  ;;  %23641 = vst [vmem:[#allocation163_spill] sm:$0xff] %v20986_v44  ;;  %v21002_v17 = vrot.slane %v15220_v1, %v16502_v36  ;;  %v9971_v50 = vcombine.high %v20986_v44, %v20979_v33  ;;  %v21010_v25 = vrot.slane %v15221_v2, %v16502_v36  ;;  %v23650_v33 = vld [vmem:[#allocation113_spill] sm:$0xff]  ;;  %v21041_v41 = vpop.permute.xlu0 %13951 }
 0x528   : > { %23642 = vst [vmem:[#allocation164_spill] sm:$0xff] %v20989_v37  ;;  %23643 = vst [vmem:[#allocation165_spill] sm:$0xff] %v20992_v29  ;;  %v10107_v22 = vcombine.high %v20989_v37, %v20992_v29  ;;  %v21013_v0 = vrot.slane %v15222_v38, %v16502_v36  ;;  %v21016_v55 = vsel %vm3935_vm1, %v3933_v60, %v14233_v3  ;;  %v23646_v60 = vld [vmem:[#allocation140_spill] sm:$0xff]  ;;  %v23648_v29 = vld [vmem:[#allocation110_spill] sm:$0xff] }
 0x529   : > { %14391 = vrot.lane.b32.xlu1 %v14390_v49, %s15554_s24  ;;  %23645 = vst [vmem:[#allocation167_spill] sm:$0xff] %v21016_v55  ;;  %v10738_v1 = vcombine.low %v20999_v4, %v21002_v17  ;;  %v21021_v57 = vrot.slane %v15223_v23, %v16502_v36  ;;  %v21024_v15 = vrot.slane %v15224_v19, %v16502_v36  ;;  %v23647_v23 = vld [vmem:[#allocation111_spill] sm:$0xff]  ;;  %v23649_v19 = vld [vmem:[#allocation112_spill] sm:$0xff] }
 0x52a   : > { %v14475_v63 = vpack.i.bf16 %v10107_v22, %v9971_v50  ;;  %v10770_v2 = vcombine.low %v21010_v25, %v21013_v0  ;;  %v21029_v49 = vrot.slane %v15225_v53, %v16502_v36  ;;  %v21032_v38 = vrot.slane %v15226_v45, %v16502_v36  ;;  %v15227_v22 = vld [vmem:[#allocation2 + $0xd] ss:$48 sps:$4 sm:$0xff]   ;;  %v21043_v53 = vpop.permute.xlu1 %14291  ;;  %v23657_v55 = vld [vmem:[#allocation148_spill] sm:$0xff] }
 0x52b   : > { %v10874_v37 = vcombine.low %v21021_v57, %v21024_v15  ;;  %v12240_v44 = vcombine.low %v23648_v29, %v23647_v23  ;;  %v12376_v50 = vcombine.low %v23650_v33, %v23649_v19  ;;  %23651 = vst [vmem:[#allocation111_spill] sm:$0xff] %v21043_v53  ;;  %v15231_v23 = vld [vmem:[#allocation2 + $0x6d] ss:$48 sps:$4 sm:$0xff]   ;;  %v15233_v33 = vld [vmem:[#allocation2 + $0x85] ss:$48 sps:$4 sm:$0xff]   ;;  %v21056_v16 = vrot.slane %v10738_v1, %v16780_v34 }
 0x52c   : > { %14476 = vrot.lane.b32.xlu0 %v14475_v63, %s15549_s14  ;;  %v21049_v3 = vrot.slane %v10770_v2, %v16780_v34  ;;  %v10906_v29 = vcombine.low %v21029_v49, %v21032_v38  ;;  %v15235_v19 = vld [vmem:[#allocation2 + $0xcd] ss:$48 sps:$4 sm:$0xff]   ;;  %v15241_v63 = vld [vmem:[#allocation2 + $0x145] ss:$48 sps:$4 sm:$0xff]   ;;  %v13913_v2 = vunpack.i.l.bf16 %v23654_v39  ;;  %v13919_v62 = vunpack.i.h.bf16 %v23657_v55  ;;  %s23713_s14 = smov 26  }
 0x52d   : > { %23655 = vst [vmem:[#allocation112_spill] sm:$0xff] %v21056_v16  ;;  %v14395_v45 = vpack.i.bf16 %v12376_v50, %v12240_v44  ;;  %v21061_v53 = vrot.slane %v10874_v37, %v16780_v34  ;;  %v21071_v44 = vrot.slane %v15227_v22, %v16502_v36  ;;  %v21074_v39 = vrot.slane %v15229_v26, %v16502_v36 }
 0x52e   : > { %23653 = vst [vmem:[#allocation110_spill] sm:$0xff] %v21049_v3  ;;  %v21064_v9 = vrot.slane %v10906_v29, %v16780_v34  ;;  %v10791_v1 = vcombine.high %v21056_v16, %v21049_v3  ;;  %v21079_v50 = vrot.slane %v15231_v23, %v16502_v36  ;;  %v21082_v29 = vrot.slane %v15233_v33, %v16502_v36  ;;  %v21098_v23 = vpop.permute.xlu0 %13956  ;;  %v21100_v52 = vpop.permute.xlu1 %14296 }
 0x52f   : > { %14396 = vrot.lane.b32.xlu1 %v14395_v45, %s15511_s6  ;;  %23658 = vst [vmem:[#allocation113_spill] sm:$0xff] %v21071_v44  ;;  %23659 = vst [vmem:[#allocation143_spill] sm:$0xff] %v21074_v39  ;;  %v21085_v18 = vrot.slane %v15235_v19, %v16502_v36  ;;  %v10450_v45 = vcombine.low %v21071_v44, %v21074_v39  ;;  %v21090_v22 = vrot.slane %v15237_v7, %v16502_v36  ;;  %v23669_v39 = vld [vmem:[#allocation38_spill] sm:$0xff]  ;;  %v23670_v7 = vld [vmem:[#allocation29_spill] sm:$0xff] }
 0x530   : > { %v10927_v37 = vcombine.high %v21061_v53, %v21064_v9  ;;  %23660 = vst [vmem:[#allocation148_spill] sm:$0xff] %v21079_v50  ;;  %23661 = vst [vmem:[#allocation168_spill] sm:$0xff] %v21082_v29  ;;  %v21093_v26 = vrot.slane %v15239_v28, %v16502_v36  ;;  %v21096_v51 = vrot.slane %v15241_v63, %v16502_v36  ;;  %v23671_v28 = vunpack.i.l.bf16 %v23646_v60  ;;  %v15247_v63 = vld [vmem:[#allocation2 + $0x248] ss:$48 sps:$4 sm:$0xff]  }
 0x531   : > { %23662 = vst [vmem:[#allocation169_spill] sm:$0xff] %v21085_v18  ;;  %23663 = vst [vmem:[#allocation170_spill] sm:$0xff] %v21090_v22  ;;  %v10482_v19 = vcombine.low %v21079_v50, %v21082_v29  ;;  %v12242_v44 = vcombine.low %v23668_v35, %v23667_v5  ;;  %v12378_v6 = vcombine.low %v23670_v7, %v23669_v39  ;;  %v15245_v50 = vld [vmem:[#allocation2 + $0x1e8] ss:$48 sps:$4 sm:$0xff]   ;;  %v23672_v35 = vunpack.i.h.bf16 %v23646_v60 }
 0x532   : > { %23664 = vst [vmem:[#allocation171_spill] sm:$0xff] %v21093_v26  ;;  %23665 = vst [vmem:[#allocation172_spill] sm:$0xff] %v21096_v51  ;;  %v14485_v33 = vpack.i.bf16 %v10927_v37, %v10791_v1  ;;  %v6858_v46 = vsel %vm3950_vm5, %v23671_v28, %v13913_v2  ;;  %v10586_v16 = vcombine.low %v21085_v18, %v21090_v22  ;;  %v15243_v37 = vld [vmem:[#allocation2 + $0x188] ss:$48 sps:$4 sm:$0xff]   ;;  %v13918_v39 = vunpack.i.l.bf16 %v23657_v55  ;;  %v15246_v28 = vld [vmem:[#allocation2 + $0x200] ss:$48 sps:$4 sm:$0xff]  }
 0x533   : > { %23666 = vst [vmem:[#allocation173_spill] sm:$0xff] %v21100_v52  ;;  %v10618_v1 = vcombine.low %v21093_v26, %v21096_v51  ;;  %v15244_v52 = vld [vmem:[#allocation2 + $0x1a0] ss:$48 sps:$4 sm:$0xff]   ;;  %v6859_v5 = vsel %vm3950_vm5, %v23672_v35, %v13914_v13  ;;  %v21122_v2 = vrot.slane %v10482_v19, %v16780_v34  ;;  %v14405_v7 = vpack.i.bf16 %v12378_v6, %v12242_v44  ;;  %v15249_v55 = vld [vmem:[#allocation2 + $0x2a8] ss:$48 sps:$4 sm:$0xff]  }
 0x534   : > { %14486 = vrot.lane.b32.xlu0 %v14485_v33, %s15537_s9  ;;  %v15248_v18 = vld [vmem:[#allocation2 + $0x260] ss:$48 sps:$4 sm:$0xff]   ;;  %v21126_v51 = vrot.slane %v10450_v45, %v16780_v34  ;;  %v21129_v60 = vrot.slane %v10586_v16, %v16780_v34  ;;  %v6863_v19 = vsel %vm3955_vm11, %v6859_v5, %v13919_v62  ;;  %v21147_v3 = vrot.slane %v15244_v52, %v16502_v36  ;;  %v21149_v62 = vpop.permute.xlu0 %13961 }
 0x535   : > { %23673 = vst [vmem:[#allocation116_spill] sm:$0xff] %v21122_v2  ;;  %v23674_v22 = vld [vmem:[#allocation141_spill] sm:$0xff]  ;;  %v21132_v13 = vrot.slane %v10618_v1, %v16780_v34  ;;  %v23678_v44 = vld [vmem:[#allocation154_spill] sm:$0xff]  ;;  %14406 = vrot.lane.b32.xlu1 %v14405_v7, %s15555_s29  ;;  %v21144_v1 = vrot.slane %v15243_v37, %v16502_v36  ;;  %23681 = vst [vmem:[#allocation174_spill] sm:$0xff] %v21149_v62  ;;  %v21154_v5 = vrot.slane %v15245_v50, %v16502_v36 }
 0x536   : > { %v14249_v26 = vunpack.i.h.bf16 %v23674_v22  ;;  %23675 = vst [vmem:[#allocation123_spill] sm:$0xff] %v21126_v51  ;;  %23676 = vst [vmem:[#allocation38_spill] sm:$0xff] %v21129_v60  ;;  %v15250_v33 = vld [vmem:[#allocation2 + $0x2c0] ss:$48 sps:$4 sm:$0xff]   ;;  %v14248_v6 = vunpack.i.l.bf16 %v23674_v22  ;;  %v13924_v35 = vunpack.i.h.bf16 %v23678_v44  ;;  %v13923_v29 = vunpack.i.l.bf16 %v23678_v44  ;;  %v21151_v22 = vpop.permute.xlu1 %14301 }
 0x537   : > { %23677 = vst [vmem:[#allocation29_spill] sm:$0xff] %v21132_v13  ;;  %v10515_v45 = vcombine.high %v21126_v51, %v21122_v2  ;;  %v10651_v16 = vcombine.high %v21129_v60, %v21132_v13  ;;  %23679 = vst [vmem:[#allocation141_spill] sm:$0xff] %v21144_v1  ;;  %v21157_v7 = vrot.slane %v15246_v28, %v16502_v36  ;;  %v23685_v28 = vld [vmem:[#allocation142_spill] sm:$0xff]  ;;  %v23686_v60 = vld [vmem:[#allocation145_spill] sm:$0xff] }
 0x538   : > { %23680 = vst [vmem:[#allocation154_spill] sm:$0xff] %v21147_v3  ;;  %23682 = vst [vmem:[#allocation175_spill] sm:$0xff] %v21151_v22  ;;  %v21160_v44 = vrot.slane %v15247_v63, %v16502_v36  ;;  %v21163_v51 = vrot.slane %v15248_v18, %v16502_v36  ;;  %v8742_v52 = vcombine.low %v21144_v1, %v21147_v3  ;;  %v23687_v13 = vld [vmem:[#allocation147_spill] sm:$0xff] }
 0x539   : > { %v14495_v37 = vpack.i.bf16 %v10651_v16, %v10515_v45  ;;  %v21168_v2 = vrot.slane %v15249_v55, %v16502_v36  ;;  %v21171_v22 = vrot.slane %v15250_v33, %v16502_v36  ;;  %v8774_v50 = vcombine.low %v21154_v5, %v21157_v7  ;;  %v23688_v45 = vld [vmem:[#allocation146_spill] sm:$0xff] }
 0x53a   : > { %23683 = vst [vmem:[#allocation176_spill] sm:$0xff] %v21160_v44  ;;  %23684 = vst [vmem:[#allocation177_spill] sm:$0xff] %v21163_v51  ;;  %v8878_v63 = vcombine.low %v21160_v44, %v21163_v51  ;;  %v12244_v18 = vcombine.low %v23686_v60, %v23685_v28  ;;  %v12380_v16 = vcombine.low %v23688_v45, %v23687_v13  ;;  %v23689_v55 = vunpack.i.l.bf16 %v23656_v14  ;;  %v23691_v28 = vld [vmem:[#allocation144_spill] sm:$0xff]  ;;  %v21206_v45 = vpop.permute.xlu0 %13966 }
 0x53b   : > { %v6862_v1 = vsel %vm3955_vm11, %v6858_v46, %v13918_v39  ;;  %v23690_v33 = vunpack.i.h.bf16 %v23656_v14  ;;  %14496 = vrot.lane.b32.xlu0 %v14495_v37, %s15554_s24  ;;  %v8910_v44 = vcombine.low %v21168_v2, %v21171_v22  ;;  %v14254_v51 = vunpack.i.h.bf16 %v23691_v28 }
 0x53c   : > { %v3953_v3 = vsel %vm3950_vm5, %v23689_v55, %v14248_v6  ;;  %v6866_v60 = vsel %vm3960_vm15, %v6862_v1, %v13923_v29  ;;  %v21194_v13 = vrot.slane %v8774_v50, %v16780_v34  ;;  %v14415_v46 = vpack.i.bf16 %v12380_v16, %v12244_v18  ;;  %v21208_v29 = vpop.permute.xlu1 %14306 }
 0x53d   : > { %v3954_v62 = vsel %vm3950_vm5, %v23690_v33, %v14249_v26  ;;  %v6867_v39 = vsel %vm3960_vm15, %v6863_v19, %v13924_v35  ;;  %v21198_v6 = vrot.slane %v8742_v52, %v16780_v34  ;;  %v21201_v26 = vrot.slane %v8878_v63, %v16780_v34  ;;  %v23697_v33 = vld [vmem:[#allocation152_spill] sm:$0xff] }
 0x53e   : > { %23692 = vst [vmem:[#allocation142_spill] sm:$0xff] %v21194_v13  ;;  %v21204_v37 = vrot.slane %v8910_v44, %v16780_v34  ;;  %v14253_v1 = vunpack.i.l.bf16 %v23691_v28  ;;  %v13929_v50 = vunpack.i.h.bf16 %v20803_v48  ;;  %14416 = vrot.lane.b32.xlu1 %v14415_v46, %s15556_s12  ;;  %v9907_v19 = vcombine.high %v20935_v8, %v20938_v47  ;;  %v23694_v8 = vld [vmem:[#allocation151_spill] sm:$0xff]  ;;  %v23695_v47 = vld [vmem:[#allocation150_spill] sm:$0xff] }
 0x53f   : > { %23693 = vst [vmem:[#allocation145_spill] sm:$0xff] %v21198_v6  ;;  %v9939_v35 = vcombine.high %v20941_v21, %v20944_v54  ;;  %v8795_v44 = vcombine.high %v21198_v6, %v21194_v13  ;;  %v10043_v63 = vcombine.high %v20947_v32, %v20950_v11  ;;  %v10075_v18 = vcombine.high %v20956_v24, %v20959_v58  ;;  %v23696_v54 = vld [vmem:[#allocation153_spill] sm:$0xff] }
 0x540   : > { %v8931_v52 = vcombine.high %v21201_v26, %v21204_v37  ;;  %v13928_v16 = vunpack.i.l.bf16 %v20803_v48  ;;  %v10787_v21 = vcombine.high %v23695_v47, %v23694_v8  ;;  %v10923_v28 = vcombine.high %v23697_v33, %v23696_v54  ;;  %v23698_v58 = vld [vmem:[#allocation149_spill] sm:$0xff]  ;;  %v23703_v54 = vld [vmem:[#allocation155_spill] sm:$0xff] }
 0x541   : > { %v21227_v55 = vrot.slane %v9939_v35, %v16780_v34  ;;  %v21234_v14 = vrot.slane %v9907_v19, %v16780_v34  ;;  %v21237_v32 = vrot.slane %v10043_v63, %v16780_v34  ;;  %v21240_v11 = vrot.slane %v10075_v18, %v16780_v34 }
 0x542   : > { %v14505_v46 = vpack.i.bf16 %v8931_v52, %v8795_v44  ;;  %v3958_v48 = vsel %vm3955_vm11, %v3953_v3, %v14253_v1  ;;  %v3959_v24 = vsel %vm3955_vm11, %v3954_v62, %v14254_v51  ;;  %v14259_v35 = vunpack.i.h.bf16 %v23698_v58  ;;  %v21254_v3 = vpop.permute.xlu0 %13976  ;;  %v21256_v51 = vpop.permute.xlu1 %14311 }
 0x543   : > { %v14435_v8 = vpack.i.bf16 %v10923_v28, %v10787_v21  ;;  %v9973_v44 = vcombine.high %v21234_v14, %v21227_v55  ;;  %v10109_v19 = vcombine.high %v21237_v32, %v21240_v11  ;;  %v10739_v52 = vcombine.high %v20999_v4, %v21002_v17 }
 0x544   : > { %14506 = vrot.lane.b32.xlu0 %v14505_v46, %s15504_s28  ;;  %v10771_v63 = vcombine.high %v21010_v25, %v21013_v0  ;;  %v21259_v62 = vsel %vm3965_vm12, %v6867_v39, %v13929_v50  ;;  %v14258_v1 = vunpack.i.l.bf16 %v23698_v58  ;;  %v10875_v18 = vcombine.high %v21021_v57, %v21024_v15  ;;  %v23701_v39 = vld [vmem:[#allocation156_spill] sm:$0xff]  ;;  %v23702_v15 = vld [vmem:[#allocation157_spill] sm:$0xff] }
 0x545   : > { %23699 = vst [vmem:[#allocation147_spill] sm:$0xff] %v21259_v62  ;;  %14436 = vrot.lane.b32.xlu1 %v14435_v8, %s15554_s24  ;;  %v10907_v4 = vcombine.high %v21029_v49, %v21032_v38  ;;  %v21268_v17 = vsel %vm3965_vm12, %v6866_v60, %v13928_v16  ;;  %v14515_v25 = vpack.i.bf16 %v10109_v19, %v9973_v44  ;;  %v13934_v38 = vunpack.i.h.bf16 %v20859_v27 }
 0x546   : > { %23700 = vst [vmem:[#allocation146_spill] sm:$0xff] %v21268_v17  ;;  %v21271_v0 = vrot.slane %v10771_v63, %v16780_v34  ;;  %v9923_v50 = vcombine.high %v23701_v39, %v20776_v30  ;;  %v21276_v47 = vrot.slane %v10739_v52, %v16780_v34  ;;  %v21279_v21 = vrot.slane %v10875_v18, %v16780_v34  ;;  %v21307_v8 = vpop.permute.xlu0 %13991  ;;  %v21309_v44 = vpop.permute.xlu1 %14316  ;;  %v15254_v18 = vld [vmem:[#allocation2 + $0x89] ss:$48 sps:$4 sm:$0xff]  }
 0x547   : > { %v21282_v57 = vrot.slane %v10907_v4, %v16780_v34  ;;  %v9955_v49 = vcombine.high %v23702_v15, %v20782_v43  ;;  %v13933_v60 = vunpack.i.l.bf16 %v20859_v27  ;;  %v10059_v30 = vcombine.high %v20785_v10, %v20788_v31  ;;  %v15255_v4 = vld [vmem:[#allocation2 + $0xd1] ss:$48 sps:$4 sm:$0xff]  }
 0x548   : > { %14516 = vrot.lane.b32.xlu0 %v14515_v25, %s15550_s17  ;;  %v10091_v16 = vcombine.high %v20794_v20, %v20797_v61  ;;  %v14264_v33 = vunpack.i.h.bf16 %v23703_v54  ;;  %v10793_v28 = vcombine.high %v21276_v47, %v21271_v0  ;;  %v3964_v27 = vsel %vm3960_vm15, %v3959_v24, %v14259_v35  ;;  %v15251_v20 = vld [vmem:[#allocation2 + $0x11] ss:$48 sps:$4 sm:$0xff]   ;;  %v15252_v61 = vld [vmem:[#allocation2 + $0x29] ss:$48 sps:$4 sm:$0xff]   ;;  %s13234_s17 = sshll.u32 %s15612_s22, 10 }
 0x549   : > { %v10929_v43 = vcombine.high %v21279_v21, %v21282_v57  ;;  %v21299_v46 = vrot.slane %v9955_v49, %v16780_v34  ;;  %v21303_v58 = vrot.slane %v9923_v50, %v16780_v34  ;;  %v10073_v10 = vrot.slane %v10059_v30, %v16780_v34  ;;  %v15253_v35 = vld [vmem:[#allocation2 + $0x71] ss:$48 sps:$4 sm:$0xff]   ;;  %v15256_v30 = vld [vmem:[#allocation2 + $0xe9] ss:$48 sps:$4 sm:$0xff]  }
 0x54a   : > { %v10105_v31 = vrot.slane %v10091_v16, %v16780_v34  ;;  %v3963_v52 = vsel %vm3960_vm15, %v3958_v48, %v14258_v1  ;;  %v10110_v24 = vcombine.low %v20824_v40, %v20827_v56  ;;  %v23704_v25 = vld [vmem:[#allocation136_spill] sm:$0xff]  ;;  %v9974_v49 = vcombine.low %v20818_v42, %v20821_v59  ;;  %v23705_v16 = vld [vmem:[#allocation135_spill] sm:$0xff]  ;;  %v23710_v59 = vld [vmem:[#allocation65_spill] sm:$0xff] }
 0x54b   : > { %v14525_v63 = vpack.i.bf16 %v10929_v43, %v10793_v28  ;;  %v21318_v39 = vsel %vm3930_vm3, %v23704_v25, %v13934_v38  ;;  %v9976_v50 = vcombine.low %v21303_v58, %v21299_v46  ;;  %v15257_v48 = vld [vmem:[#allocation2 + $0x131] ss:$48 sps:$4 sm:$0xff]   ;;  %v15258_v1 = vld [vmem:[#allocation2 + $0x149] ss:$48 sps:$4 sm:$0xff]   ;;  %v21326_v40 = vsel %vm3930_vm3, %v23705_v16, %v13933_v60 }
 0x54c   : > { %v10112_v15 = vcombine.low %v10073_v10, %v10105_v31  ;;  %v14263_v56 = vunpack.i.l.bf16 %v23703_v54  ;;  %v21330_v28 = vsel %vm3965_vm12, %v3964_v27, %v14264_v33  ;;  %v23707_v38 = vld [vmem:[#allocation59_spill] sm:$0xff]  ;;  %v14535_v17 = vpack.i.bf16 %v10110_v24, %v9974_v49  ;;  %v21349_v49 = vpop.permute.xlu1 %14321 }
 0x54d   : > { %23706 = vst [vmem:[#allocation144_spill] sm:$0xff] %v21330_v28  ;;  %14526 = vrot.lane.b32.xlu0 %v14525_v63, %s23380_s11  ;;  %v23708_v43 = vld [vmem:[#allocation27_spill] sm:$0xff]  ;;  %v13954_v6 = vunpack.i.h.bf16 %v21041_v41  ;;  %v10401_v60 = vrot.slane %v15251_v20, %v16502_v36  ;;  %v10417_v16 = vrot.slane %v15252_v61, %v16502_v36  ;;  %v10433_v54 = vrot.slane %v15253_v35, %v16502_v36 }
 0x54e   : > { %v11973_v25 = vcombine.high %v23708_v43, %v23707_v38  ;;  %v14440_v19 = vpack.i.bf16 %v10112_v15, %v9976_v50  ;;  %v23709_v42 = vld [vmem:[#allocation63_spill] sm:$0xff]  ;;  %v10449_v33 = vrot.slane %v15254_v18, %v16502_v36  ;;  %v10537_v27 = vrot.slane %v15255_v4, %v16502_v36  ;;  %v21347_v15 = vpop.permute.xlu0 %14001 }
 0x54f   : > { %v12109_v62 = vcombine.high %v23710_v59, %v23709_v42  ;;  %v10553_v63 = vrot.slane %v15256_v30, %v16502_v36  ;;  %v10569_v24 = vrot.slane %v15257_v48, %v16502_v36  ;;  %v10585_v50 = vrot.slane %v15258_v1, %v16502_v36 }
 0x550   : > { %14441 = vrot.lane.b32.xlu1 %v14440_v19, %s15552_s8  ;;  %v13953_v20 = vunpack.i.l.bf16 %v21041_v41  ;;  %v10466_v61 = vcombine.low %v10401_v60, %v10417_v16  ;;  %v10498_v35 = vcombine.low %v10433_v54, %v10449_v33  ;;  %v10113_v18 = vcombine.high %v10073_v10, %v10105_v31 }
 0x551   : > { %14536 = vrot.lane.b32.xlu0 %v14535_v17, %s23566_s16  ;;  %v23154_v19 = vunpack.i.h.bf16 %v20981_v12  ;;  %v14450_v4 = vpack.i.bf16 %v12109_v62, %v11973_v25  ;;  %v10602_v38 = vcombine.low %v10537_v27, %v10553_v63  ;;  %v10634_v30 = vcombine.low %v10569_v24, %v10585_v50 }
 0x552   : > { %v23151_v48 = vunpack.i.l.bf16 %v20981_v12  ;;  %v10506_v1 = vrot.slane %v10498_v35, %v16780_v34  ;;  %v9977_v43 = vcombine.high %v21303_v58, %v21299_v46  ;;  %v13959_v42 = vunpack.i.h.bf16 %v21098_v23 }
 0x553   : > { %v10474_v41 = vrot.slane %v10466_v61, %v16780_v34  ;;  %v10610_v17 = vrot.slane %v10602_v38, %v16780_v34  ;;  %v10642_v10 = vrot.slane %v10634_v30, %v16780_v34  ;;  %v13958_v62 = vunpack.i.l.bf16 %v21098_v23  ;;  %v21375_v38 = vpop.permute.xlu0 %14166  ;;  %v21377_v23 = vpop.permute.xlu1 %14326  ;;  %v23712_v30 = vld [vmem:[#allocation174_spill] sm:$0xff] }
 0x554   : > { %14451 = vrot.lane.b32.xlu1 %v14450_v4, %s23380_s11  ;;  %v21365_v31 = vsel %vm3965_vm12, %v3963_v52, %v14263_v56  ;;  %v8310_v25 = vsel %vm3950_vm5, %v23151_v48, %v13953_v20  ;;  %v8311_v46 = vsel %vm3950_vm5, %v23154_v19, %v13954_v6  ;;  %v14460_v58 = vpack.i.bf16 %v10113_v18, %v9977_v43  ;;  %v23714_v18 = vld [vmem:[#allocation110_spill] sm:$0xff]  ;;  %v23715_v43 = vld [vmem:[#allocation112_spill] sm:$0xff] }
 0x555   : > { %23711 = vst [vmem:[#allocation151_spill] sm:$0xff] %v21365_v31  ;;  %v10518_v59 = vcombine.low %v10474_v41, %v10506_v1  ;;  %v10654_v61 = vcombine.low %v10610_v17, %v10642_v10  ;;  %v10655_v35 = vcombine.high %v10610_v17, %v10642_v10  ;;  %v10926_v4 = vcombine.low %v21061_v53, %v21064_v9  ;;  %v23716_v53 = vld [vmem:[#allocation160_spill] sm:$0xff] }
 0x556   : > { %v8315_v52 = vsel %vm3955_vm11, %v8311_v46, %v13959_v42  ;;  %v10519_v56 = vcombine.high %v10474_v41, %v10506_v1  ;;  %v13964_v20 = vunpack.i.h.bf16 %v23712_v30  ;;  %v13963_v48 = vunpack.i.l.bf16 %v23712_v30 }
 0x557   : > { %v14545_v12 = vpack.i.bf16 %v10654_v61, %v10518_v59  ;;  %v8314_v6 = vsel %vm3955_vm11, %v8310_v25, %v13958_v62  ;;  %v10790_v17 = vcombine.low %v23715_v43, %v23714_v18  ;;  %v10467_v9 = vcombine.high %v10401_v60, %v10417_v16  ;;  %v23717_v62 = vld [vmem:[#allocation29_spill] sm:$0xff]  ;;  %v23718_v25 = vld [vmem:[#allocation38_spill] sm:$0xff] }
 0x558   : > { %14461 = vrot.lane.b32.xlu1 %v14460_v58, %s23713_s14  ;;  %v13939_v10 = vunpack.i.h.bf16 %v23716_v53  ;;  %v14555_v19 = vpack.i.bf16 %v10655_v35, %v10519_v56  ;;  %v8318_v13 = vsel %vm3960_vm15, %v8314_v6, %v13963_v48  ;;  %v8319_v1 = vsel %vm3960_vm15, %v8315_v52, %v13964_v20 }
 0x559   : > { %14546 = vrot.lane.b32.xlu0 %v14545_v12, %s15555_s29  ;;  %v14470_v42 = vpack.i.bf16 %v10926_v4, %v10790_v17  ;;  %v10499_v41 = vcombine.high %v10433_v54, %v10449_v33  ;;  %v10603_v46 = vcombine.high %v10537_v27, %v10553_v63  ;;  %v10635_v59 = vcombine.high %v10569_v24, %v10585_v50  ;;  %v23719_v33 = vld [vmem:[#allocation116_spill] sm:$0xff]  ;;  %v23720_v27 = vld [vmem:[#allocation123_spill] sm:$0xff]  ;;  %v21403_v24 = vpop.permute.xlu0 %14176  ;;  %v21405_v50 = vpop.permute.xlu1 %14331  ;;  %v23721_v4 = vld [vmem:[#allocation158_spill] sm:$0xff] }
 0x55a   : > { %v21391_v58 = vrot.slane %v10467_v9, %v16780_v34  ;;  %v10650_v61 = vcombine.low %v23718_v25, %v23717_v62  ;;  %v13969_v60 = vunpack.i.h.bf16 %v21206_v45  ;;  %v13968_v16 = vunpack.i.l.bf16 %v21206_v45  ;;  %v23724_v17 = vld [vmem:[#allocation73_spill] sm:$0xff]  ;;  %v23725_v9 = vld [vmem:[#allocation76_spill] sm:$0xff] }
 0x55b   : > { %v10513_v48 = vrot.slane %v10499_v41, %v16780_v34  ;;  %v10617_v12 = vrot.slane %v10603_v46, %v16780_v34  ;;  %v10649_v54 = vrot.slane %v10635_v59, %v16780_v34  ;;  %v10514_v63 = vcombine.low %v23720_v27, %v23719_v33  ;;  %v23728_v46 = vld [vmem:[#allocation75_spill] sm:$0xff]  ;;  %v23731_v25 = vld [vmem:[#allocation80_spill] sm:$0xff] }
 0x55c   : > { %14471 = vrot.lane.b32.xlu1 %v14470_v42, %s15555_s29  ;;  %v13938_v35 = vunpack.i.l.bf16 %v23716_v53  ;;  %v14269_v52 = vunpack.i.h.bf16 %v23721_v4  ;;  %v21410_v45 = vsel %vm3965_vm12, %v8318_v13, %v13968_v16  ;;  %v21413_v56 = vsel %vm3965_vm12, %v8319_v1, %v13969_v60  ;;  %v23726_v42 = vld [vmem:[#allocation72_spill] sm:$0xff]  ;;  %v23727_v13 = vld [vmem:[#allocation74_spill] sm:$0xff]  ;;  %v23732_v27 = vld [vmem:[#allocation47_spill] sm:$0xff] }
 0x55d   : > { %23722 = vst [vmem:[#allocation150_spill] sm:$0xff] %v21410_v45  ;;  %23723 = vst [vmem:[#allocation153_spill] sm:$0xff] %v21413_v56  ;;  %14556 = vrot.lane.b32.xlu0 %v14555_v19, %s15537_s9  ;;  %v10520_v30 = vcombine.low %v21391_v58, %v10513_v48  ;;  %v10656_v20 = vcombine.low %v10617_v12, %v10649_v54  ;;  %v14480_v6 = vpack.i.bf16 %v10650_v61, %v10514_v63  ;;  %v23729_v1 = vld [vmem:[#allocation78_spill] sm:$0xff]  ;;  %v23730_v19 = vld [vmem:[#allocation77_spill] sm:$0xff] }
 0x55e   : > { %v14268_v43 = vunpack.i.l.bf16 %v23721_v4  ;;  %v8471_v53 = vcombine.high %v23725_v9, %v23724_v17  ;;  %v8503_v41 = vcombine.high %v23727_v13, %v23726_v42  ;;  %v8607_v59 = vcombine.high %v23729_v1, %v23728_v46  ;;  %v21442_v17 = vpop.permute.xlu0 %14181  ;;  %v23735_v42 = vld [vmem:[#allocation139_spill] sm:$0xff]  ;;  %v23736_v13 = vld [vmem:[#allocation138_spill] sm:$0xff] }
 0x55f   : > { %v14565_v62 = vpack.i.bf16 %v10656_v20, %v10520_v30  ;;  %v8639_v61 = vcombine.high %v23731_v25, %v23730_v19  ;;  %v9972_v60 = vcombine.low %v21234_v14, %v21227_v55  ;;  %v10108_v16 = vcombine.low %v21237_v32, %v21240_v11  ;;  %v21444_v32 = vpop.permute.xlu1 %14336  ;;  %v15261_v33 = vld [vmem:[#allocation2 + $0x1a8] ss:$48 sps:$4 sm:$0xff]  }
 0x560   : > { %14481 = vrot.lane.b32.xlu1 %v14480_v6, %s15530_s10  ;;  %v14274_v63 = vunpack.i.h.bf16 %v23732_v27  ;;  %v14273_v4 = vunpack.i.l.bf16 %v23732_v27  ;;  %v8517_v30 = vrot.slane %v8503_v41, %v16780_v34  ;;  %v8485_v20 = vrot.slane %v8471_v53, %v16780_v34  ;;  %v23741_v27 = vld [vmem:[#allocation26_spill] sm:$0xff] }
 0x561   : > { %14566 = vrot.lane.b32.xlu0 %v14565_v62, %s15556_s12  ;;  %v8621_v6 = vrot.slane %v8607_v59, %v16780_v34  ;;  %v8653_v14 = vrot.slane %v8639_v61, %v16780_v34  ;;  %v14490_v55 = vpack.i.bf16 %v10108_v16, %v9972_v60  ;;  %v21448_v11 = vsel %vm3935_vm1, %v21326_v40, %v13938_v35  ;;  %v23740_v60 = vld [vmem:[#allocation161_spill] sm:$0xff]  ;;  %v23760_v1 = vld [vmem:[#allocation170_spill] sm:$0xff] }
 0x562   : > { %23733 = vst [vmem:[#allocation152_spill] sm:$0xff] %v21448_v11  ;;  %v21452_v9 = vsel %vm3935_vm1, %v21318_v39, %v13939_v10  ;;  %v5392_v53 = vsel %vm3930_vm3, %v23735_v42, %v14268_v43  ;;  %v5393_v41 = vsel %vm3930_vm3, %v23736_v13, %v14269_v52  ;;  %v8524_v62 = vcombine.low %v8485_v20, %v8517_v30  ;;  %v23742_v42 = vld [vmem:[#allocation162_spill] sm:$0xff]  ;;  %v23761_v59 = vld [vmem:[#allocation169_spill] sm:$0xff] }
 0x563   : > { %23734 = vst [vmem:[#allocation149_spill] sm:$0xff] %v21452_v9  ;;  %v8660_v19 = vcombine.low %v8621_v6, %v8653_v14  ;;  %v21462_v40 = vsel %vm3935_vm1, %v5392_v53, %v14273_v4  ;;  %v21465_v39 = vsel %vm3935_vm1, %v5393_v41, %v14274_v63  ;;  %v10521_v10 = vcombine.high %v21391_v58, %v10513_v48  ;;  %v23768_v9 = vld [vmem:[#allocation82_spill] sm:$0xff] }
 0x564   : > { %14491 = vrot.lane.b32.xlu1 %v14490_v55, %s15534_s7  ;;  %23738 = vst [vmem:[#allocation156_spill] sm:$0xff] %v21462_v40  ;;  %23739 = vst [vmem:[#allocation157_spill] sm:$0xff] %v21465_v39  ;;  %v10657_v35 = vcombine.high %v10617_v12, %v10649_v54  ;;  %v10792_v52 = vcombine.low %v21276_v47, %v21271_v0  ;;  %v10928_v25 = vcombine.low %v21279_v21, %v21282_v57  ;;  %v21480_v12 = vpop.permute.xlu0 %14186  ;;  %v21482_v21 = vpop.permute.xlu1 %14341  ;;  %v23743_v57 = vld [vmem:[#allocation53_spill] sm:$0xff]  ;;  %v23766_v40 = vld [vmem:[#allocation39_spill] sm:$0xff]  ;;  %s24019_s7 = smov 123  }
 0x565   : > { %v14575_v43 = vpack.i.bf16 %v8660_v19, %v8524_v62  ;;  %v13994_v61 = vunpack.i.h.bf16 %v21307_v8  ;;  %v23156_v4 = vunpack.i.h.bf16 %v23741_v27  ;;  %v23157_v55 = vunpack.i.l.bf16 %v23741_v27  ;;  %v23746_v62 = vld [vmem:[#allocation154_spill] sm:$0xff]  ;;  %v23747_v19 = vld [vmem:[#allocation141_spill] sm:$0xff] }
 0x566   : > { %v13993_v63 = vunpack.i.l.bf16 %v21307_v8  ;;  %v14289_v58 = vunpack.i.h.bf16 %v23742_v42  ;;  %v14288_v48 = vunpack.i.l.bf16 %v23742_v42  ;;  %v14585_v0 = vpack.i.bf16 %v10657_v35, %v10521_v10 }
 0x567   : > { %14576 = vrot.lane.b32.xlu0 %v14575_v43, %s15552_s8  ;;  %v14500_v47 = vpack.i.bf16 %v10928_v25, %v10792_v52  ;;  %v23744_v54 = vunpack.i.l.bf16 %v23743_v57  ;;  %v23745_v13 = vunpack.i.h.bf16 %v23743_v57  ;;  %v8661_v41 = vcombine.high %v8621_v6, %v8653_v14  ;;  %v23748_v43 = vld [vmem:[#allocation177_spill] sm:$0xff]  ;;  %v23749_v52 = vld [vmem:[#allocation176_spill] sm:$0xff] }
 0x568   : > { %v8743_v42 = vcombine.high %v23747_v19, %v23746_v62  ;;  %v8525_v10 = vcombine.high %v8485_v20, %v8517_v30  ;;  %v8775_v35 = vcombine.high %v21154_v5, %v21157_v7  ;;  %v8879_v25 = vcombine.high %v23749_v52, %v23748_v43  ;;  %v15263_v5 = vld [vmem:[#allocation2 + $0x1f0] ss:$48 sps:$4 sm:$0xff]   ;;  %v15265_v7 = vld [vmem:[#allocation2 + $0x208] ss:$48 sps:$4 sm:$0xff]  }
 0x569   : > { %v12666_v53 = vsel %vm3950_vm5, %v23744_v54, %v13993_v63  ;;  %v12667_v8 = vsel %vm3950_vm5, %v23745_v13, %v13994_v61  ;;  %14501 = vrot.lane.b32.xlu1 %v14500_v47, %s15556_s12  ;;  %v8911_v63 = vcombine.high %v21168_v2, %v21171_v22  ;;  %v15259_v54 = vld [vmem:[#allocation2 + $0x190] ss:$48 sps:$4 sm:$0xff]   ;;  %v14004_v6 = vunpack.i.h.bf16 %v21347_v15 }
 0x56a   : > { %v21500_v61 = vrot.slane %v8743_v42, %v16780_v34  ;;  %v14003_v14 = vunpack.i.l.bf16 %v21347_v15  ;;  %v23750_v47 = vld [vmem:[#allocation51_spill] sm:$0xff]  ;;  %v21509_v13 = vrot.slane %v8775_v35, %v16780_v34  ;;  %v21512_v2 = vrot.slane %v8879_v25, %v16780_v34 }
 0x56b   : > { %v23751_v30 = vunpack.i.l.bf16 %v23750_v47  ;;  %14586 = vrot.lane.b32.xlu0 %v14585_v0, %s23380_s11  ;;  %v21515_v22 = vrot.slane %v8911_v63, %v16780_v34  ;;  %v23752_v62 = vunpack.i.h.bf16 %v23750_v47  ;;  %v15267_v19 = vld [vmem:[#allocation2 + $0x250] ss:$48 sps:$4 sm:$0xff]   ;;  %v15269_v42 = vld [vmem:[#allocation2 + $0x268] ss:$48 sps:$4 sm:$0xff]   ;;  %v14595_v0 = vpack.i.bf16 %v8661_v41, %v8525_v10  ;;  %v21539_v41 = vpop.permute.xlu0 %14191  ;;  %v21541_v10 = vpop.permute.xlu1 %14346 }
 0x56c   : > { %v15271_v52 = vld [vmem:[#allocation2 + $0x2b0] ss:$48 sps:$4 sm:$0xff]   ;;  %v15273_v25 = vld [vmem:[#allocation2 + $0x2c8] ss:$48 sps:$4 sm:$0xff]   ;;  %v8796_v63 = vcombine.low %v21500_v61, %v21509_v13  ;;  %v21534_v47 = vrot.slane %v15259_v54, %v16502_v36  ;;  %v21560_v18 = vrot.slane %v15269_v42, %v16502_v36 }
 0x56d   : > { %v12670_v20 = vsel %vm3955_vm11, %v12666_v53, %v23751_v30  ;;  %v12671_v15 = vsel %vm3955_vm11, %v12667_v8, %v23752_v62  ;;  %v5409_v53 = vsel %vm3950_vm5, %v23156_v4, %v14289_v58  ;;  %v8932_v8 = vcombine.low %v21512_v2, %v21515_v22  ;;  %v23758_v42 = vld [vmem:[#allocation168_spill] sm:$0xff] }
 0x56e   : > { %v21524_v35 = vsel %vm3960_vm15, %v12670_v20, %v14003_v14  ;;  %v21527_v43 = vsel %vm3960_vm15, %v12671_v15, %v14004_v6  ;;  %v21537_v58 = vrot.slane %v15261_v33, %v16502_v36  ;;  %v5408_v6 = vsel %vm3950_vm5, %v23157_v55, %v14288_v48  ;;  %v23755_v14 = vld [vmem:[#allocation111_spill] sm:$0xff]  ;;  %v23759_v55 = vld [vmem:[#allocation148_spill] sm:$0xff] }
 0x56f   : > { %23753 = vst [vmem:[#allocation155_spill] sm:$0xff] %v21524_v35  ;;  %23754 = vst [vmem:[#allocation136_spill] sm:$0xff] %v21527_v43  ;;  %v14294_v30 = vunpack.i.h.bf16 %v23755_v14  ;;  %v21548_v20 = vrot.slane %v15263_v5, %v16502_v36  ;;  %v21551_v62 = vrot.slane %v15265_v7, %v16502_v36  ;;  %14596 = vrot.lane.b32.xlu0 %v14595_v0, %s23713_s14  ;;  %v23756_v0 = vld [vmem:[#allocation143_spill] sm:$0xff]  ;;  %v14293_v4 = vunpack.i.l.bf16 %v23755_v14  ;;  %v23762_v43 = vld [vmem:[#allocation173_spill] sm:$0xff] }
 0x570   : > { %v14510_v33 = vpack.i.bf16 %v8932_v8, %v8796_v63  ;;  %v9286_v54 = vcombine.low %v21534_v47, %v21537_v58  ;;  %v21557_v15 = vrot.slane %v15267_v19, %v16502_v36  ;;  %v21565_v5 = vrot.slane %v15271_v52, %v16502_v36  ;;  %v23757_v63 = vld [vmem:[#allocation113_spill] sm:$0xff]  ;;  %v23764_v14 = vld [vmem:[#allocation171_spill] sm:$0xff] }
 0x571   : > { %v9318_v48 = vcombine.low %v21548_v20, %v21551_v62  ;;  %v21568_v7 = vrot.slane %v15273_v25, %v16502_v36  ;;  %v10451_v8 = vcombine.high %v23757_v63, %v23756_v0  ;;  %v10483_v16 = vcombine.high %v23759_v55, %v23758_v42  ;;  %v23763_v63 = vld [vmem:[#allocation172_spill] sm:$0xff]  ;;  %v21590_v42 = vpop.permute.xlu0 %14196 }
 0x572   : > { %14511 = vrot.lane.b32.xlu1 %v14510_v33, %s15552_s8  ;;  %v9422_v19 = vcombine.low %v21557_v15, %v21560_v18  ;;  %v10587_v52 = vcombine.high %v23761_v59, %v23760_v1  ;;  %v14299_v35 = vunpack.i.h.bf16 %v23762_v43  ;;  %v10619_v31 = vcombine.high %v23764_v14, %v23763_v63  ;;  %v21592_v1 = vpop.permute.xlu1 %14351  ;;  %s22696_s8 = scalar_lea.hbm %s22813_s4, %s13234_s17 }
 0x573   : > { %v9326_v25 = vrot.slane %v9318_v48, %v16780_v34  ;;  %v9454_v0 = vcombine.low %v21565_v5, %v21568_v7  ;;  %v14298_v33 = vunpack.i.l.bf16 %v23762_v43  ;;  %v9294_v28 = vrot.slane %v9286_v54, %v16780_v34  ;;  %23765 = vst [vmem:[#allocation135_spill] sm:$0xff] %v21592_v1 }
 0x574   : > { %v10465_v57 = vrot.slane %v10451_v8, %v16780_v34  ;;  %v10497_v55 = vrot.slane %v10483_v16, %v16780_v34  ;;  %v9430_v59 = vrot.slane %v9422_v19, %v16780_v34  ;;  %v10601_v45 = vrot.slane %v10587_v52, %v16780_v34 }
 0x575   : > { %v9462_v48 = vrot.slane %v9454_v0, %v16780_v34  ;;  %v10633_v63 = vrot.slane %v10619_v31, %v16780_v34  ;;  %v5412_v43 = vsel %vm3955_vm11, %v5408_v6, %v14293_v4  ;;  %v5413_v54 = vsel %vm3955_vm11, %v5409_v53, %v14294_v30  ;;  %v23770_v53 = vld [vmem:[#allocation84_spill] sm:$0xff] }
 0x576   : > { %v13978_v8 = vunpack.i.l.bf16 %v21254_v3  ;;  %v10516_v14 = vcombine.low %v10465_v57, %v10497_v55  ;;  %v5417_v16 = vsel %vm3960_vm15, %v5413_v54, %v14299_v35  ;;  %v9338_v56 = vcombine.low %v9294_v28, %v9326_v25 }
 0x577   : > { %v9474_v27 = vcombine.low %v9430_v59, %v9462_v48  ;;  %v10652_v39 = vcombine.low %v10601_v45, %v10633_v63  ;;  %v5416_v19 = vsel %vm3960_vm15, %v5412_v43, %v14298_v33  ;;  %v13979_v0 = vunpack.i.h.bf16 %v21254_v3  ;;  %v23772_v3 = vld [vmem:[#allocation175_spill] sm:$0xff] }
 0x578   : > { %v23767_v52 = vunpack.i.l.bf16 %v23766_v40  ;;  %v23769_v4 = vunpack.i.h.bf16 %v23766_v40  ;;  %v9475_v35 = vcombine.high %v9430_v59, %v9462_v48  ;;  %v8933_v54 = vcombine.high %v21512_v2, %v21515_v22  ;;  %v21621_v40 = vpop.permute.xlu1 %14356 }
 0x579   : > { %v14605_v30 = vpack.i.bf16 %v9474_v27, %v9338_v56  ;;  %v14520_v11 = vpack.i.bf16 %v10652_v39, %v10516_v14  ;;  %v14304_v43 = vunpack.i.h.bf16 %v23772_v3  ;;  %v14303_v46 = vunpack.i.l.bf16 %v23772_v3  ;;  %v23777_v14 = vld [vmem:[#allocation31_spill] sm:$0xff] }
 0x57a   : > { %v12650_v31 = vsel %vm3930_vm3, %v23768_v9, %v23767_v52  ;;  %v12651_v6 = vsel %vm3930_vm3, %v23770_v53, %v23769_v4  ;;  %v9339_v1 = vcombine.high %v9294_v28, %v9326_v25  ;;  %v21619_v9 = vpop.permute.xlu0 %14216  ;;  %v14309_v52 = vunpack.i.h.bf16 %v21208_v29 }
 0x57b   : > { %v21615_v33 = vsel %vm3935_vm1, %v12650_v31, %v13978_v8  ;;  %14606 = vrot.lane.b32.xlu0 %v14605_v30, %s15555_s29  ;;  %14521 = vrot.lane.b32.xlu1 %v14520_v11, %s15511_s6  ;;  %v8797_v56 = vcombine.high %v21500_v61, %v21509_v13  ;;  %v9287_v39 = vcombine.high %v21534_v47, %v21537_v58  ;;  %v14308_v28 = vunpack.i.l.bf16 %v21208_v29  ;;  %v15275_v13 = vld [vmem:[#allocation2 + $0x18c] ss:$48 sps:$4 sm:$0xff]   ;;  %v15276_v8 = vld [vmem:[#allocation2 + $0x1a4] ss:$48 sps:$4 sm:$0xff]  }
 0x57c   : > { %23771 = vst [vmem:[#allocation59_spill] sm:$0xff] %v21615_v33  ;;  %v9319_v27 = vcombine.high %v21548_v20, %v21551_v62  ;;  %v9423_v2 = vcombine.high %v21557_v15, %v21560_v18  ;;  %v9455_v22 = vcombine.high %v21565_v5, %v21568_v7  ;;  %v10517_v25 = vcombine.high %v10465_v57, %v10497_v55  ;;  %v15277_v20 = vld [vmem:[#allocation2 + $0x1ec] ss:$48 sps:$4 sm:$0xff]   ;;  %v15278_v62 = vld [vmem:[#allocation2 + $0x204] ss:$48 sps:$4 sm:$0xff]  }
 0x57d   : > { %v14615_v59 = vpack.i.bf16 %v9475_v35, %v9339_v1  ;;  %v14530_v11 = vpack.i.bf16 %v8933_v54, %v8797_v56  ;;  %v10653_v61 = vcombine.high %v10601_v45, %v10633_v63  ;;  %v21639_v47 = vsel %vm3935_vm1, %v12651_v6, %v13979_v0  ;;  %v15279_v7 = vld [vmem:[#allocation2 + $0x24c] ss:$48 sps:$4 sm:$0xff]   ;;  %v15280_v55 = vld [vmem:[#allocation2 + $0x264] ss:$48 sps:$4 sm:$0xff]  }
 0x57e   : > { %v9333_v48 = vrot.slane %v9319_v27, %v16780_v34  ;;  %23773 = vst [vmem:[#allocation27_spill] sm:$0xff] %v21639_v47  ;;  %v9301_v58 = vrot.slane %v9287_v39, %v16780_v34  ;;  %v9437_v29 = vrot.slane %v9423_v2, %v16780_v34  ;;  %v9469_v18 = vrot.slane %v9455_v22, %v16780_v34  ;;  %v23776_v1 = vld [vmem:[#allocation50_spill] sm:$0xff]  ;;  %v21657_v53 = vpop.permute.xlu0 %14401 }
 0x57f   : > { %v21646_v15 = vsel %vm3965_vm12, %v5416_v19, %v14303_v46  ;;  %v21649_v45 = vsel %vm3965_vm12, %v5417_v16, %v14304_v43  ;;  %14616 = vrot.lane.b32.xlu0 %v14615_v59, %s15537_s9  ;;  %14531 = vrot.lane.b32.xlu1 %v14530_v11, %s23713_s14  ;;  %v14540_v5 = vpack.i.bf16 %v10653_v61, %v10517_v25  ;;  %v15281_v46 = vld [vmem:[#allocation2 + $0x2ac] ss:$48 sps:$4 sm:$0xff]   ;;  %v15282_v19 = vld [vmem:[#allocation2 + $0x2c4] ss:$48 sps:$4 sm:$0xff]   ;;  %v21659_v16 = vpop.permute.xlu1 %14361  ;;  %v14314_v6 = vunpack.i.h.bf16 %v21256_v51  ;;  %v15283_v11 = vld [vmem:[#allocation2 + $0x10] ss:$48 sps:$4 sm:$0xff]  }
 0x580   : > { %23774 = vst [vmem:[#allocation63_spill] sm:$0xff] %v21646_v15  ;;  %23775 = vst [vmem:[#allocation65_spill] sm:$0xff] %v21649_v45  ;;  %v6844_v63 = vsel %vm3930_vm3, %v23776_v1, %v14308_v28  ;;  %v6845_v0 = vsel %vm3930_vm3, %v23777_v14, %v14309_v52  ;;  %v9340_v31 = vcombine.low %v9301_v58, %v9333_v48  ;;  %v14313_v30 = vunpack.i.l.bf16 %v21256_v51  ;;  %v15285_v61 = vld [vmem:[#allocation2 + $0x28] ss:$48 sps:$4 sm:$0xff]   ;;  %v15295_v14 = vld [vmem:[#allocation2 + $0x130] ss:$48 sps:$4 sm:$0xff]  }
 0x581   : > { %v9476_v4 = vcombine.low %v9437_v29, %v9469_v18  ;;  %v21664_v35 = vrot.slane %v15275_v13, %v16502_v36  ;;  %v21667_v54 = vrot.slane %v15276_v8, %v16502_v36  ;;  %v9477_v43 = vcombine.high %v9437_v29, %v9469_v18  ;;  %v15287_v13 = vld [vmem:[#allocation2 + $0x70] ss:$48 sps:$4 sm:$0xff]   ;;  %v15289_v18 = vld [vmem:[#allocation2 + $0x88] ss:$48 sps:$4 sm:$0xff]  }
 0x582   : > { %v21670_v52 = vrot.slane %v15277_v20, %v16502_v36  ;;  %v21673_v56 = vrot.slane %v15278_v62, %v16502_v36  ;;  %v14169_v39 = vunpack.i.h.bf16 %v21375_v38  ;;  %v21680_v27 = vrot.slane %v15279_v7, %v16502_v36  ;;  %v15291_v20 = vld [vmem:[#allocation2 + $0xd0] ss:$48 sps:$4 sm:$0xff]   ;;  %v15293_v62 = vld [vmem:[#allocation2 + $0xe8] ss:$48 sps:$4 sm:$0xff]  }
 0x583   : > { %v14625_v3 = vpack.i.bf16 %v9476_v4, %v9340_v31  ;;  %14541 = vrot.lane.b32.xlu1 %v14540_v5, %s15553_s26  ;;  %v9270_v51 = vcombine.low %v21664_v35, %v21667_v54  ;;  %v21683_v28 = vrot.slane %v15280_v55, %v16502_v36  ;;  %v9341_v2 = vcombine.high %v9301_v58, %v9333_v48  ;;  %v21708_v31 = vpop.permute.xlu0 %14411  ;;  %v23785_v33 = vld [vmem:[#allocation62_spill] sm:$0xff] }
 0x584   : > { %v9302_v22 = vcombine.low %v21670_v52, %v21673_v56  ;;  %v21689_v25 = vrot.slane %v15281_v46, %v16502_v36  ;;  %v21692_v59 = vrot.slane %v15282_v19, %v16502_v36  ;;  %v21697_v29 = vsel %vm3935_vm1, %v6844_v63, %v14313_v30  ;;  %v15297_v63 = vld [vmem:[#allocation2 + $0x148] ss:$48 sps:$4 sm:$0xff]   ;;  %23778 = vst [vmem:[#allocation174_spill] sm:$0xff] %v21708_v31 }
 0x585   : > { %14626 = vrot.lane.b32.xlu0 %v14625_v3, %s15556_s12  ;;  %v21700_v48 = vsel %vm3935_vm1, %v6845_v0, %v14314_v6  ;;  %v9406_v58 = vcombine.low %v21680_v27, %v21683_v28  ;;  %v14635_v5 = vpack.i.bf16 %v9477_v43, %v9341_v2  ;;  %v9278_v7 = vrot.slane %v9270_v51, %v16780_v34  ;;  %v21710_v0 = vpop.permute.xlu1 %14366  ;;  %v23779_v46 = vld [vmem:[#allocation45_spill] sm:$0xff]  ;;  %v23788_v31 = vld [vmem:[#allocation106_spill] sm:$0xff] }
 0x586   : > { %v9310_v55 = vrot.slane %v9302_v22, %v16780_v34  ;;  %v9438_v1 = vcombine.low %v21689_v25, %v21692_v59  ;;  %v14168_v4 = vunpack.i.l.bf16 %v21375_v38  ;;  %v23780_v19 = vunpack.i.h.bf16 %v23779_v46 }
 0x587   : > { %v9414_v3 = vrot.slane %v9406_v58, %v16780_v34  ;;  %v8949_v2 = vrot.slane %v15283_v11, %v16502_v36  ;;  %v8965_v22 = vrot.slane %v15285_v61, %v16502_v36  ;;  %v8981_v38 = vrot.slane %v15287_v13, %v16502_v36 }
 0x588   : > { %v21716_v6 = vsel %vm23174_vm10, %v23780_v19, %v14169_v39  ;;  %v9334_v43 = vcombine.low %v9278_v7, %v9310_v55  ;;  %v9446_v51 = vrot.slane %v9438_v1, %v16780_v34  ;;  %v8997_v8 = vrot.slane %v15289_v18, %v16502_v36  ;;  %v23784_v18 = vld [vmem:[#allocation107_spill] sm:$0xff] }
 0x589   : > { %23781 = vst [vmem:[#allocation110_spill] sm:$0xff] %v21716_v6  ;;  %14636 = vrot.lane.b32.xlu0 %v14635_v5, %s23380_s11  ;;  %v9085_v39 = vrot.slane %v15291_v20, %v16502_v36  ;;  %v9101_v19 = vrot.slane %v15293_v62, %v16502_v36  ;;  %v9014_v30 = vcombine.low %v8949_v2, %v8965_v22  ;;  %v23782_v1 = vunpack.i.l.bf16 %v23779_v46  ;;  %v21738_v6 = vpop.permute.xlu0 %14421 }
 0x58a   : > { %v9470_v57 = vcombine.low %v9414_v3, %v9446_v51  ;;  %v9117_v58 = vrot.slane %v15295_v14, %v16502_v36  ;;  %v9133_v5 = vrot.slane %v15297_v63, %v16502_v36  ;;  %v9046_v13 = vcombine.low %v8981_v38, %v8997_v8  ;;  %23786 = vst [vmem:[#allocation160_spill] sm:$0xff] %v21738_v6  ;;  %v21740_v14 = vpop.permute.xlu1 %14371  ;;  %v23787_v63 = vld [vmem:[#allocation105_spill] sm:$0xff]  ;;  %v23792_v6 = vld [vmem:[#allocation86_spill] sm:$0xff] }
 0x58b   : > { %v21733_v11 = vsel %vm23174_vm10, %v23782_v1, %v14168_v4  ;;  %v9150_v47 = vcombine.low %v9085_v39, %v9101_v19  ;;  %v11694_v20 = vcombine.low %v23785_v33, %v23784_v18  ;;  %v9471_v45 = vcombine.high %v9414_v3, %v9446_v51 }
 0x58c   : > { %23783 = vst [vmem:[#allocation112_spill] sm:$0xff] %v21733_v11  ;;  %v14550_v15 = vpack.i.bf16 %v9470_v57, %v9334_v43  ;;  %v9182_v62 = vcombine.low %v9117_v58, %v9133_v5  ;;  %v11830_v46 = vcombine.low %v23788_v31, %v23787_v63  ;;  %v14179_v4 = vunpack.i.h.bf16 %v21403_v24  ;;  %v23791_v11 = vld [vmem:[#allocation87_spill] sm:$0xff] }
 0x58d   : > { %v14178_v1 = vunpack.i.l.bf16 %v21403_v24  ;;  %v21747_v61 = vrot.slane %v9046_v13, %v16780_v34  ;;  %v21751_v33 = vrot.slane %v9014_v30, %v16780_v34  ;;  %v21754_v57 = vrot.slane %v9150_v47, %v16780_v34 }
 0x58e   : > { %14551 = vrot.lane.b32.xlu1 %v14550_v15, %s15530_s10  ;;  %v21757_v3 = vrot.slane %v9182_v62, %v16780_v34  ;;  %v9335_v43 = vcombine.high %v9278_v7, %v9310_v55  ;;  %v14184_v51 = vunpack.i.h.bf16 %v21442_v17  ;;  %v9015_v24 = vcombine.high %v8949_v2, %v8965_v22  ;;  %v23790_v22 = vld [vmem:[#allocation85_spill] sm:$0xff] }
 0x58f   : > { %v9047_v18 = vcombine.high %v8981_v38, %v8997_v8  ;;  %v9066_v13 = vcombine.low %v21751_v33, %v21747_v61  ;;  %v9151_v63 = vcombine.high %v9085_v39, %v9101_v19  ;;  %v12625_v47 = vsel %vm23175_vm9, %v11830_v46, %v14179_v4  ;;  %v23789_v8 = vld [vmem:[#allocation83_spill] sm:$0xff]  ;;  %v21776_v39 = vpop.permute.xlu0 %14426  ;;  %v21778_v46 = vpop.permute.xlu1 %14376 }
 0x590   : > { %v9202_v15 = vcombine.low %v21754_v57, %v21757_v3  ;;  %v14560_v30 = vpack.i.bf16 %v9471_v45, %v9335_v43  ;;  %v23171_v62 = vunpack.i.l.bf16 %v21349_v49  ;;  %v9183_v55 = vcombine.high %v9117_v58, %v9133_v5 }
 0x591   : > { %v21768_v7 = vrot.slane %v9047_v18, %v16780_v34  ;;  %v12624_v31 = vsel %vm23175_vm9, %v11694_v20, %v14178_v1  ;;  %v8523_v38 = vcombine.high %v23790_v22, %v23789_v8  ;;  %v8659_v45 = vcombine.high %v23792_v6, %v23791_v11  ;;  %v15299_v8 = vld [vmem:[#allocation2 + $0xc] ss:$48 sps:$4 sm:$0xff]  }
 0x592   : > { %v14645_v2 = vpack.i.bf16 %v9202_v15, %v9066_v13  ;;  %14561 = vrot.lane.b32.xlu1 %v14560_v30, %s15554_s24  ;;  %v14183_v19 = vunpack.i.l.bf16 %v21442_v17  ;;  %v21782_v4 = vrot.slane %v9015_v24, %v16780_v34  ;;  %v21785_v58 = vrot.slane %v9151_v63, %v16780_v34 }
 0x593   : > { %v21788_v5 = vrot.slane %v9183_v55, %v16780_v34  ;;  %v12629_v20 = vsel %vm3900_vm8, %v12625_v47, %v14184_v51  ;;  %v14329_v1 = vunpack.i.h.bf16 %v21377_v23  ;;  %v14570_v6 = vpack.i.bf16 %v8659_v45, %v8523_v38 }
 0x594   : > { %14646 = vrot.lane.b32.xlu0 %v14645_v2, %s15555_s29  ;;  %v9271_v11 = vcombine.high %v21664_v35, %v21667_v54  ;;  %v14328_v17 = vunpack.i.l.bf16 %v21377_v23  ;;  %v9068_v43 = vcombine.low %v21782_v4, %v21768_v7  ;;  %v9303_v18 = vcombine.high %v21670_v52, %v21673_v56  ;;  %s15557_s29 = smov [#allocation9]  }
 0x595   : > { %v9204_v24 = vcombine.low %v21785_v58, %v21788_v5  ;;  %v14189_v51 = vunpack.i.h.bf16 %v21480_v12  ;;  %v14188_v13 = vunpack.i.l.bf16 %v21480_v12  ;;  %v9407_v35 = vcombine.high %v21680_v27, %v21683_v28  ;;  %v21820_v28 = vpop.permute.xlu0 %14431  ;;  %s15394_s14 = sshll.u32 %s15557_s29, 4  ;;  %s15395_s14 = int_to_ptr.vmem [resolvable:$false] %s15394_s14 }
 0x596   : > { %14571 = vrot.lane.b32.xlu1 %v14570_v6, %s15504_s28  ;;  %v9439_v23 = vcombine.high %v21689_v25, %v21692_v59  ;;  %v14334_v54 = vunpack.i.h.bf16 %v21405_v50  ;;  %v14333_v15 = vunpack.i.l.bf16 %v21405_v50  ;;  %v21812_v63 = vrot.slane %v9303_v18, %v16780_v34  ;;  %23793 = vst [vmem:[#allocation29_spill] sm:$0xff] %v21820_v28  ;;  %v21822_v25 = vpop.permute.xlu1 %14381  ;;  %v15302_v6 = vld [vmem:[#allocation2 + $0x84] ss:$48 sps:$4 sm:$0xff]   ;;  %s24016_s28 = smov 127  }
 0x597   : > { %v14655_v30 = vpack.i.bf16 %v9204_v24, %v9068_v43  ;;  %v14194_v52 = vunpack.i.h.bf16 %v21539_v41  ;;  %v21816_v12 = vrot.slane %v9271_v11, %v16780_v34  ;;  %v9421_v56 = vrot.slane %v9407_v35, %v16780_v34  ;;  %v15303_v24 = vld [vmem:[#allocation2 + $0xcc] ss:$48 sps:$4 sm:$0xff]   ;;  %v15304_v18 = vld [vmem:[#allocation2 + $0xe4] ss:$48 sps:$4 sm:$0xff]  }
 0x598   : > { %v9453_v27 = vrot.slane %v9439_v23, %v16780_v34  ;;  %v12628_v59 = vsel %vm3900_vm8, %v12624_v31, %v14183_v19  ;;  %v23794_v50 = vunpack.i.h.bf16 %v21349_v49  ;;  %v14193_v55 = vunpack.i.l.bf16 %v21539_v41  ;;  %v15300_v19 = vld [vmem:[#allocation2 + $0x24] ss:$48 sps:$4 sm:$0xff]  }
 0x599   : > { %v14338_v2 = vunpack.i.l.bf16 %v21444_v32  ;;  %14656 = vrot.lane.b32.xlu0 %v14655_v30, %s15556_s12  ;;  %v6860_v22 = vsel %vm3950_vm5, %v23171_v62, %v14328_v17  ;;  %v9336_v38 = vcombine.low %v21816_v12, %v21812_v63  ;;  %v8930_v31 = vcombine.low %v21201_v26, %v21204_v37  ;;  %v23796_v30 = vld [vmem:[#allocation142_spill] sm:$0xff]  ;;  %v23797_v26 = vld [vmem:[#allocation145_spill] sm:$0xff]  ;;  %s13026_s12 = sshll.u32 %s16385_s30, 4  ;;  %s22688_s12 = int_to_ptr.vmem [resolvable:$true] %s13026_s12 }
 0x59a   : > { %v6861_v47 = vsel %vm3950_vm5, %v23794_v50, %v14329_v1  ;;  %v9472_v45 = vcombine.low %v9421_v56, %v9453_v27  ;;  %v15301_v1 = vld [vmem:[#allocation2 + $0x6c] ss:$48 sps:$4 sm:$0xff]   ;;  %v12632_v41 = vsel %vm3905_vm7, %v12628_v59, %v14188_v13  ;;  %v12633_v11 = vsel %vm3905_vm7, %v12629_v20, %v14189_v51  ;;  %v15306_v62 = vld [vmem:[#allocation2 + $0x144] ss:$48 sps:$4 sm:$0xff]   ;;  %p15397_p6 = scmp.lt.s32.totalorder %s22688_s12, %s15395_s14 }
 0x59b   : > { %v6864_v43 = vsel %vm3955_vm11, %v6860_v22, %v14333_v15  ;;  %v6865_v17 = vsel %vm3955_vm11, %v6861_v47, %v14334_v54  ;;  %v21843_v35 = vsel %vm3910_vm6, %v12633_v11, %v14194_v52  ;;  %v8794_v37 = vcombine.low %v23797_v26, %v23796_v30  ;;  %v15305_v50 = vld [vmem:[#allocation2 + $0x12c] ss:$48 sps:$4 sm:$0xff]   ;;  %v21859_v22 = vpop.permute.xlu0 %14446 }
 0x59c   : > { %23795 = vst [vmem:[#allocation38_spill] sm:$0xff] %v21843_v35  ;;  %v14580_v23 = vpack.i.bf16 %v9472_v45, %v9336_v38  ;;  %v21848_v13 = vsel %vm3910_vm6, %v12632_v41, %v14193_v55  ;;  %v14339_v20 = vunpack.i.h.bf16 %v21444_v32  ;;  %v21852_v51 = vsel %vm3960_vm15, %v6864_v43, %v14338_v2  ;;  %v21861_v55 = vpop.permute.xlu1 %14386 }
 0x59d   : > { %23798 = vst [vmem:[#allocation116_spill] sm:$0xff] %v21848_v13  ;;  %v14349_v15 = vunpack.i.h.bf16 %v21541_v10  ;;  %v14348_v54 = vunpack.i.l.bf16 %v21541_v10  ;;  %v14590_v52 = vpack.i.bf16 %v8930_v31, %v8794_v37  ;;  %v8942_v59 = vrot.slane %v15299_v8, %v16502_v36 }
 0x59e   : > { %14581 = vrot.lane.b32.xlu1 %v14580_v23, %s15511_s6  ;;  %v8958_v47 = vrot.slane %v15300_v19, %v16502_v36  ;;  %v8974_v32 = vrot.slane %v15301_v1, %v16502_v36  ;;  %v8990_v2 = vrot.slane %v15302_v6, %v16502_v36  ;;  %v9078_v38 = vrot.slane %v15303_v24, %v16502_v36  ;;  %v23799_v24 = vld [vmem:[#allocation99_spill] sm:$0xff] }
 0x59f   : > { %v9094_v45 = vrot.slane %v15304_v18, %v16502_v36  ;;  %v9473_v41 = vcombine.high %v9421_v56, %v9453_v27  ;;  %v9110_v10 = vrot.slane %v15305_v50, %v16502_v36  ;;  %v9126_v8 = vrot.slane %v15306_v62, %v16502_v36  ;;  %v23800_v36 = vld [vmem:[#allocation98_spill] sm:$0xff] }
 0x5a0   : > { %v8998_v11 = vcombine.low %v8942_v59, %v8958_v47  ;;  %v6869_v31 = vsel %vm3960_vm15, %v6865_v17, %v14339_v20  ;;  %v9030_v43 = vcombine.low %v8974_v32, %v8990_v2  ;;  %v14344_v1 = vunpack.i.h.bf16 %v21482_v21  ;;  %v23801_v17 = vld [vmem:[#allocation135_spill] sm:$0xff] }
 0x5a1   : > { %v9134_v23 = vcombine.low %v9078_v38, %v9094_v45  ;;  %v14343_v6 = vunpack.i.l.bf16 %v21482_v21  ;;  %v9337_v56 = vcombine.high %v21816_v12, %v21812_v63  ;;  %v9166_v27 = vcombine.low %v9110_v10, %v9126_v8  ;;  %v21887_v63 = vpop.permute.xlu1 %14391 }
 0x5a2   : > { %14591 = vrot.lane.b32.xlu1 %v14590_v52, %s23566_s16  ;;  %v8296_v18 = vsel %vm3930_vm3, %v23799_v24, %v14348_v54  ;;  %v8297_v62 = vsel %vm3930_vm3, %v23800_v36, %v14349_v15  ;;  %v14354_v30 = vunpack.i.h.bf16 %v23801_v17  ;;  %v9038_v26 = vrot.slane %v9030_v43, %v16780_v34  ;;  %v21885_v52 = vpop.permute.xlu0 %14456  ;;  %s24018_s16 = smov 125  }
 0x5a3   : > { %v14600_v37 = vpack.i.bf16 %v9473_v41, %v9337_v56  ;;  %v9006_v50 = vrot.slane %v8998_v11, %v16780_v34  ;;  %v9142_v21 = vrot.slane %v9134_v23, %v16780_v34  ;;  %v9174_v20 = vrot.slane %v9166_v27, %v16780_v34 }
 0x5a4   : > { %v14353_v12 = vunpack.i.l.bf16 %v23801_v17  ;;  %v14359_v54 = vunpack.i.h.bf16 %v21621_v40  ;;  %v14358_v15 = vunpack.i.l.bf16 %v21621_v40  ;;  %v8999_v56 = vcombine.high %v8942_v59, %v8958_v47 }
 0x5a5   : > { %v9062_v41 = vcombine.low %v9006_v50, %v9038_v26  ;;  %v9198_v11 = vcombine.low %v9142_v21, %v9174_v20  ;;  %v9063_v43 = vcombine.high %v9006_v50, %v9038_v26  ;;  %v9199_v23 = vcombine.high %v9142_v21, %v9174_v20  ;;  %v23807_v50 = vld [vmem:[#allocation103_spill] sm:$0xff]  ;;  %v23808_v20 = vld [vmem:[#allocation137_spill] sm:$0xff] }
 0x5a6   : > { %14601 = vrot.lane.b32.xlu1 %v14600_v37, %s15553_s26  ;;  %v9031_v27 = vcombine.high %v8974_v32, %v8990_v2  ;;  %v9135_v36 = vcombine.high %v9078_v38, %v9094_v45  ;;  %v9167_v19 = vcombine.high %v9110_v10, %v9126_v8  ;;  %v14363_v35 = vunpack.i.l.bf16 %v21659_v16  ;;  %v21902_v32 = vpop.permute.xlu0 %14466  ;;  %v21904_v2 = vpop.permute.xlu1 %14396  ;;  %v23802_v8 = vld [vmem:[#allocation134_spill] sm:$0xff]  ;;  %v23804_v37 = vld [vmem:[#allocation61_spill] sm:$0xff] }
 0x5a7   : > { %v14610_v28 = vpack.i.bf16 %v9198_v11, %v9062_v41  ;;  %v14620_v17 = vpack.i.bf16 %v9199_v23, %v9063_v43  ;;  %v9013_v13 = vrot.slane %v8999_v56, %v16780_v34  ;;  %v8300_v59 = vsel %vm3935_vm1, %v8296_v18, %v14353_v12  ;;  %v23811_v23 = vld [vmem:[#allocation81_spill] sm:$0xff] }
 0x5a8   : > { %v9149_v40 = vrot.slane %v9135_v36, %v16780_v34  ;;  %v9181_v24 = vrot.slane %v9167_v19, %v16780_v34  ;;  %v9045_v26 = vrot.slane %v9031_v27, %v16780_v34  ;;  %v8301_v47 = vsel %vm3935_vm1, %v8297_v62, %v14354_v30  ;;  %v23813_v36 = vld [vmem:[#allocation52_spill] sm:$0xff] }
 0x5a9   : > { %v8304_v45 = vsel %vm3940_vm13, %v8300_v59, %v14358_v15  ;;  %v8305_v10 = vsel %vm3940_vm13, %v8301_v47, %v14359_v54  ;;  %v23803_v19 = vunpack.i.l.bf16 %v23802_v8  ;;  %v23805_v18 = vunpack.i.h.bf16 %v21659_v16 }
 0x5aa   : > { %14611 = vrot.lane.b32.xlu1 %v14610_v28, %s15530_s10  ;;  %v9200_v38 = vcombine.low %v9149_v40, %v9181_v24  ;;  %v8308_v34 = vsel %vm3945_vm4, %v8304_v45, %v14363_v35  ;;  %v23806_v30 = vunpack.i.h.bf16 %v23802_v8  ;;  %v23809_v12 = vunpack.i.l.bf16 %v23808_v20  ;;  %s24015_s10 = smov 126  }
 0x5ab   : > { %v8276_v28 = vsel %vm3905_vm7, %v23804_v37, %v23803_v19  ;;  %v8309_v62 = vsel %vm3945_vm4, %v8305_v10, %v23805_v18  ;;  %v14198_v15 = vunpack.i.l.bf16 %v21590_v42  ;;  %v23810_v11 = vunpack.i.h.bf16 %v23808_v20  ;;  %v23817_v18 = vld [vmem:[#allocation130_spill] sm:$0xff] }
 0x5ac   : > { %v8277_v21 = vsel %vm3905_vm7, %v23807_v50, %v23806_v30  ;;  %v8280_v54 = vsel %vm3910_vm6, %v8276_v28, %v23809_v12  ;;  %v12733_v41 = vpack.c.bf16 %v8309_v62, %v8308_v34  ;;  %v23812_v56 = vunpack.i.l.bf16 %v23811_v23  ;;  %v23819_v30 = vld [vmem:[#allocation152_spill] sm:$0xff]  ;;  %v23822_v12 = vld [vmem:[#allocation37_spill] sm:$0xff] }
 0x5ad   : > { %v8281_v43 = vsel %vm3910_vm6, %v8277_v21, %v23810_v11  ;;  %v23814_v59 = vunpack.i.h.bf16 %v23813_v36  ;;  %v23815_v47 = vunpack.i.h.bf16 %v21590_v42  ;;  %v21940_v10 = vsel %vm3965_vm12, %v6869_v31, %v14344_v1  ;;  %v23821_v1 = vld [vmem:[#allocation149_spill] sm:$0xff]  ;;  %v21965_v11 = vpop.permute.xlu0 %14476 }
 0x5ae   : > { %v8284_v27 = vsel %vm3915_vm14, %v8280_v54, %v23812_v56  ;;  %14621 = vrot.lane.b32.xlu1 %v14620_v17, %s15554_s24  ;;  %v9064_v8 = vcombine.low %v9013_v13, %v9045_v26  ;;  %v23816_v19 = vunpack.i.h.bf16 %v23811_v23  ;;  %v21948_v28 = vsel %vm3965_vm12, %v21852_v51, %v14343_v6  ;;  %12763 = vmatprep.subr.bf16.mxu1 %v12733_v41  ;;  %s15390_s24 = scalar_lea.vmem %s22688_s12, 1024 }
 0x5af   : > { %v21937_v45 = vsel %vm23174_vm10, %v23815_v47, %v23814_v59  ;;  %v23818_v62 = vunpack.i.l.bf16 %v23817_v18  ;;  %v23820_v31 = vunpack.i.h.bf16 %v23817_v18  ;;  %v14219_v21 = vunpack.i.h.bf16 %v21619_v9  ;;  %v23825_v59 = vld [vmem:[#allocation48_spill] sm:$0xff]  ;;  %p15391_p3 = scmp.ne.s32.totalorder %s22688_s12, %s15390_s24 }
 0x5b0   : > { %v8285_v37 = vsel %vm3915_vm14, %v8281_v43, %v23816_v19  ;;  %v14630_v20 = vpack.i.bf16 %v9200_v38, %v9064_v8  ;;  %v23823_v54 = vunpack.i.l.bf16 %v23822_v12  ;;  %v23824_v6 = vunpack.i.h.bf16 %v23822_v12  ;;  %v21967_v43 = vpop.permute.xlu1 %14406  ;;  %v23827_v38 = vld [vmem:[#allocation23_spill] sm:$0xff] }
 0x5b1   : > { %v12732_v34 = vpack.c.bf16 %v8285_v37, %v8284_v27  ;;  %v8302_v50 = vsel %vm3940_vm13, %v23819_v30, %v23818_v62  ;;  %v8303_v17 = vsel %vm3940_vm13, %v23821_v1, %v23820_v31  ;;  %v14218_v23 = vunpack.i.l.bf16 %v21619_v9  ;;  %v23829_v62 = vld [vmem:[#allocation30_spill] sm:$0xff]  ;;  %p15392_p1 = pnand %p15391_p3, %p24021_p11 }
 0x5b2   : > { %v8306_v51 = vsel %vm3945_vm4, %v8302_v50, %v23823_v54  ;;  %v8307_v41 = vsel %vm3945_vm4, %v8303_v17, %v23824_v6  ;;  %v9201_v27 = vcombine.high %v9149_v40, %v9181_v24  ;;  %v23826_v47 = vunpack.i.l.bf16 %v23825_v59  ;;  %14631 = vrot.lane.b32.xlu1 %v14630_v20, %s15511_s6  ;;  %v23830_v50 = vld [vmem:[#allocation118_spill] sm:$0xff]  ;;  %s24017_s6 = smov 124  }
 0x5b3   : > { %12764 = vmatpush1.bf16.msra.mxu1 %v12732_v34  ;;  %v12730_v56 = vpack.c.bf16 %v8307_v41, %v8306_v51  ;;  %v14369_v19 = vunpack.i.h.bf16 %v21710_v0  ;;  %v9065_v37 = vcombine.high %v9013_v13, %v9045_v26  ;;  %v23828_v18 = vunpack.i.h.bf16 %v23825_v59  ;;  %p15393_p2 = pneg %p15392_p1 }
 0x5b4   : > { %v8278_v8 = vsel %vm3910_vm6, %v23827_v38, %v23826_v47  ;;  %v23831_v31 = vunpack.i.l.bf16 %v23830_v50  ;;  %v14368_v24 = vunpack.i.l.bf16 %v21710_v0  ;;  %v14374_v40 = vunpack.i.h.bf16 %v21740_v14  ;;  %v23837_v47 = vld [vmem:[#allocation132_spill] sm:$0xff] }
 0x5b5   : > { %v8279_v30 = vsel %vm3910_vm6, %v23829_v62, %v23828_v18  ;;  %v14373_v1 = vunpack.i.l.bf16 %v21740_v14  ;;  %12765 = vmatprep.subr.bf16.mxu1 %v12730_v56  ;;  %v23832_v17 = vunpack.i.h.bf16 %v23830_v50  ;;  %v14640_v26 = vpack.i.bf16 %v9201_v27, %v9065_v37  ;;  %v22016_v18 = vpop.permute.xlu1 %14416 }
 0x5b6   : > { %v8282_v34 = vsel %vm3915_vm14, %v8278_v8, %v23831_v31  ;;  %v23833_v12 = vunpack.i.l.bf16 %v21309_v44  ;;  %v23834_v51 = vunpack.i.h.bf16 %v21309_v44  ;;  %v14379_v6 = vunpack.i.h.bf16 %v21778_v46  ;;  %v23839_v8 = vld [vmem:[#allocation88_spill] sm:$0xff] }
 0x5b7   : > { %v8283_v13 = vsel %vm3915_vm14, %v8279_v30, %v23832_v17  ;;  %v23835_v14 = vunpack.i.l.bf16 %v21349_v49  ;;  %v23836_v56 = vunpack.i.h.bf16 %v21349_v49  ;;  %v9067_v59 = vcombine.high %v21751_v33, %v21747_v61  ;;  %14641 = vrot.lane.b32.xlu1 %v14640_v26, %s15553_s26  ;;  %v22014_v49 = vpop.permute.xlu0 %14486  ;;  %v23843_v30 = vld [vmem:[#allocation43_spill] sm:$0xff]  ;;  %s13008_s26 = scalar_lea.sflag [#allocation5], %s15709_s13 }
 0x5b8   : > { %v12729_v20 = vpack.c.bf16 %v8283_v13, %v8282_v34  ;;  %v6852_v54 = vsel %vm3940_vm13, %v21697_v29, %v23833_v12  ;;  %v6853_v0 = vsel %vm3940_vm13, %v21700_v48, %v23834_v51  ;;  %v14378_v44 = vunpack.i.l.bf16 %v21778_v46 }
 0x5b9   : > { %v6856_v41 = vsel %vm3945_vm4, %v6852_v54, %v23835_v14  ;;  %v6857_v27 = vsel %vm3945_vm4, %v6853_v0, %v23836_v56  ;;  %v9203_v48 = vcombine.high %v21754_v57, %v21757_v3  ;;  %v23838_v38 = vunpack.i.l.bf16 %v23837_v47  ;;  %v23842_v57 = vld [vmem:[#allocation35_spill] sm:$0xff]  ;;  %v23848_v0 = vld [vmem:[#allocation56_spill] sm:$0xff] }
 0x5ba   : > { %12766 = vmatpush1.bf16.msra.mxu1 %v12729_v20  ;;  %v12727_v29 = vpack.c.bf16 %v6857_v27, %v6856_v41  ;;  %v8312_v61 = vsel %vm3950_vm5, %v14363_v35, %v14368_v24  ;;  %v23840_v33 = vunpack.i.h.bf16 %v21659_v16  ;;  %v23841_v62 = vunpack.i.h.bf16 %v23837_v47  ;;  %v23846_v54 = vld [vmem:[#allocation115_spill] sm:$0xff]  ;;  %v23850_v56 = vld [vmem:[#allocation100_spill] sm:$0xff] }
 0x5bb   : > { %v6828_v37 = vsel %vm3910_vm6, %v23839_v8, %v23838_v38  ;;  %v23844_v50 = vunpack.i.l.bf16 %v23843_v30  ;;  %v14650_v17 = vpack.i.bf16 %v9203_v48, %v9067_v59  ;;  %v23845_v13 = vunpack.i.h.bf16 %v23843_v30  ;;  %v23854_v8 = vld [vmem:[#allocation94_spill] sm:$0xff]  ;;  %v22071_v30 = vpop.permute.xlu1 %14436 }
 0x5bc   : > { %v8313_v46 = vsel %vm3950_vm5, %v23840_v33, %v14369_v19  ;;  %v6829_v3 = vsel %vm3910_vm6, %v23842_v57, %v23841_v62  ;;  %12767 = vmatprep.subr.bf16.mxu1 %v12727_v29  ;;  %v14384_v16 = vunpack.i.h.bf16 %v21822_v25  ;;  %v8316_v19 = vsel %vm3955_vm11, %v8312_v61, %v14373_v1  ;;  %v23856_v61 = vld [vmem:[#allocation120_spill] sm:$0xff]  ;;  %v23858_v62 = vld [vmem:[#allocation122_spill] sm:$0xff] }
 0x5bd   : > { %v6832_v31 = vsel %vm3915_vm14, %v6828_v37, %v23844_v50  ;;  %v8317_v34 = vsel %vm3955_vm11, %v8313_v46, %v14374_v40  ;;  %v6833_v35 = vsel %vm3915_vm14, %v6829_v3, %v23845_v13  ;;  %v14383_v20 = vunpack.i.l.bf16 %v21822_v25  ;;  %14651 = vrot.lane.b32.xlu1 %v14650_v17, %s15537_s9  ;;  %v22069_v3 = vpop.permute.xlu0 %14496  ;;  %s24020_s9 = smov 122  }
 0x5be   : > { %v8321_v24 = vsel %vm3960_vm15, %v8317_v34, %v14379_v6  ;;  %v12726_v26 = vpack.c.bf16 %v6833_v35, %v6832_v31  ;;  %v8320_v12 = vsel %vm3960_vm15, %v8316_v19, %v14378_v44  ;;  %v23847_v51 = vunpack.i.l.bf16 %v23846_v54  ;;  %v23851_v6 = vld [vmem:[#allocation140_spill] sm:$0xff] }
 0x5bf   : > { %v8325_v40 = vsel %vm3965_vm12, %v8321_v24, %v14384_v16  ;;  %v23849_v41 = vunpack.i.h.bf16 %v23846_v54  ;;  %v23852_v27 = vunpack.i.l.bf16 %v23851_v6  ;;  %v23853_v59 = vunpack.i.h.bf16 %v23851_v6  ;;  %v23863_v35 = vld [vmem:[#allocation40_spill] sm:$0xff]  ;;  %v23864_v16 = vld [vmem:[#allocation49_spill] sm:$0xff] }
 0x5c0   : > { %v6850_v14 = vsel %vm3940_vm13, %v23848_v0, %v23847_v51  ;;  %12768 = vmatpush1.bf16.msra.mxu1 %v12726_v26  ;;  %v9069_v29 = vcombine.high %v21782_v4, %v21768_v7  ;;  %v9205_v48 = vcombine.high %v21785_v58, %v21788_v5  ;;  %v8324_v47 = vsel %vm3965_vm12, %v8320_v12, %v14383_v20  ;;  %v23860_v5 = vld [vmem:[#allocation95_spill] sm:$0xff]  ;;  %v23866_v54 = vld [vmem:[#allocation156_spill] sm:$0xff]  ;;  %v23868_v0 = vld [vmem:[#allocation157_spill] sm:$0xff] }
 0x5c1   : > { %v6851_v1 = vsel %vm3940_vm13, %v23850_v56, %v23849_v41  ;;  %v6854_v25 = vsel %vm3945_vm4, %v6850_v14, %v23852_v27  ;;  %v23855_v37 = vunpack.i.l.bf16 %v23854_v8  ;;  %v23857_v46 = vunpack.i.h.bf16 %v23854_v8  ;;  %v23869_v14 = vld [vmem:[#allocation174_spill] sm:$0xff] }
 0x5c2   : > { %v6855_v44 = vsel %vm3945_vm4, %v6851_v1, %v23853_v59  ;;  %v23859_v7 = vunpack.i.l.bf16 %v23813_v36  ;;  %v14660_v58 = vpack.i.bf16 %v9205_v48, %v9069_v29  ;;  %v23861_v50 = vunpack.i.l.bf16 %v23860_v5  ;;  %v23870_v56 = vld [vmem:[#allocation26_spill] sm:$0xff]  ;;  %v23873_v59 = vld [vmem:[#allocation36_spill] sm:$0xff] }
 0x5c3   : > { %v12724_v38 = vpack.c.bf16 %v6855_v44, %v6854_v25  ;;  %v6826_v33 = vsel %vm3910_vm6, %v23856_v61, %v23855_v37  ;;  %v6827_v57 = vsel %vm3910_vm6, %v23858_v62, %v23857_v46  ;;  %v23862_v34 = vunpack.i.h.bf16 %v23860_v5  ;;  %v23875_v44 = vld [vmem:[#allocation133_spill] sm:$0xff]  ;;  %v23878_v37 = vld [vmem:[#allocation160_spill] sm:$0xff]  ;;  %v23881_v46 = vld [vmem:[#allocation119_spill] sm:$0xff]  ;;  %v22138_v5 = vpop.permute.xlu0 %14506 }
 0x5c4   : > { %v11192_v4 = vsel %vm23174_vm10, %v14198_v15, %v23859_v7  ;;  %v6830_v31 = vsel %vm3915_vm14, %v6826_v33, %v23861_v50  ;;  %v13191_v13 = vpack.c.bf16 %v21940_v10, %v21948_v28  ;;  %v22090_v36 = vsel %vm3900_vm8, %v23863_v35, %v14218_v23  ;;  %14661 = vrot.lane.b32.xlu1 %v14660_v58, %s23380_s11  ;;  %vm22128_vm10 = vmpackc.low %vm12682_vm0, %vm12682_vm0  ;;  %v22140_v50 = vpop.permute.xlu1 %14441 }
 0x5c5   : > { %v6831_v17 = vsel %vm3915_vm14, %v6827_v57, %v23862_v34  ;;  %v22096_v19 = vsel %vm3900_vm8, %v23864_v16, %v14219_v21  ;;  %12769 = vmatprep.subr.bf16.mxu1 %v12724_v38  ;;  %v14404_v26 = vunpack.i.h.bf16 %v21657_v53  ;;  %v13185_v20 = vpack.c.bf16 %v8325_v40, %v8324_v47  ;;  %v23877_v47 = vld [vmem:[#allocation66_spill] sm:$0xff] }
 0x5c6   : > { %v12723_v24 = vpack.c.bf16 %v6831_v17, %v6830_v31  ;;  %v23865_v12 = vunpack.i.l.bf16 %v23740_v60  ;;  %v23867_v23 = vunpack.i.h.bf16 %v23740_v60  ;;  %v14403_v21 = vunpack.i.l.bf16 %v21657_v53  ;;  %v23884_v16 = vld [vmem:[#allocation42_spill] sm:$0xff] }
 0x5c7   : > { %v14414_v41 = vunpack.i.h.bf16 %v23869_v14  ;;  %v23871_v1 = vunpack.i.l.bf16 %v23870_v56  ;;  %v23872_v6 = vunpack.i.h.bf16 %v23870_v56  ;;  %v23874_v60 = vunpack.i.l.bf16 %v23873_v59  ;;  %13186 = vmatpush1.bf16.msk.msra.mxu0 %vm22128_vm10, %v13185_v20  ;;  %v23889_v56 = vld [vmem:[#allocation117_spill] sm:$0xff] }
 0x5c8   : > { %v5400_v51 = vsel %vm3940_vm13, %v23866_v54, %v23865_v12  ;;  %v5401_v9 = vsel %vm3940_vm13, %v23868_v0, %v23867_v23  ;;  %12770 = vmatpush1.bf16.msra.mxu1 %v12723_v24  ;;  %v23876_v48 = vunpack.i.h.bf16 %v23873_v59  ;;  %v14413_v8 = vunpack.i.l.bf16 %v23869_v14  ;;  %v23887_v0 = vld [vmem:[#allocation21_spill] sm:$0xff]  ;;  %v23977_v14 = vld [vmem:[#allocation144_spill] sm:$0xff] }
 0x5c9   : > { %v5404_v40 = vsel %vm3945_vm4, %v5400_v51, %v23871_v1  ;;  %v5405_v27 = vsel %vm3945_vm4, %v5401_v9, %v23872_v6  ;;  %v5376_v29 = vsel %vm3910_vm6, %v23875_v44, %v23874_v60  ;;  %v14424_v61 = vunpack.i.h.bf16 %v23878_v37  ;;  %v23892_v6 = vld [vmem:[#allocation121_spill] sm:$0xff]  ;;  %v23895_v60 = vld [vmem:[#allocation90_spill] sm:$0xff] }
 0x5ca   : > { %v12721_v25 = vpack.c.bf16 %v5405_v27, %v5404_v40  ;;  %v5377_v38 = vsel %vm3910_vm6, %v23877_v47, %v23876_v48  ;;  %v23882_v62 = vunpack.i.l.bf16 %v23881_v46  ;;  %v23883_v7 = vunpack.i.h.bf16 %v23881_v46 }
 0x5cb   : > { %v14423_v31 = vunpack.i.l.bf16 %v23878_v37  ;;  %v14429_v34 = vunpack.i.h.bf16 %v21776_v39  ;;  %v14428_v17 = vunpack.i.l.bf16 %v21776_v39  ;;  %v23885_v24 = vunpack.i.l.bf16 %v23884_v16  ;;  %v23947_v39 = vld [vmem:[#allocation45_spill] sm:$0xff] }
 0x5cc   : > { %v5380_v57 = vsel %vm3915_vm14, %v5376_v29, %v23882_v62  ;;  %v5381_v58 = vsel %vm3915_vm14, %v5377_v38, %v23883_v7  ;;  %12771 = vmatprep.subr.bf16.mxu1 %v12721_v25  ;;  %v23886_v54 = vunpack.i.h.bf16 %v23884_v16  ;;  %v14458_v23 = vunpack.i.l.bf16 %v21885_v52  ;;  %v23893_v25 = vld [vmem:[#allocation58_spill] sm:$0xff]  ;;  %v23897_v29 = vld [vmem:[#allocation108_spill] sm:$0xff] }
 0x5cd   : > { %v12720_v35 = vpack.c.bf16 %v5381_v58, %v5380_v57  ;;  %v22150_v12 = vsel %vm3925_vm2, %v11192_v4, %v23885_v24  ;;  %v23888_v9 = vunpack.i.l.bf16 %v23887_v0  ;;  %v23890_v20 = vmov 0   ;;  %v23900_v57 = vld [vmem:[#allocation109_spill] sm:$0xff]  ;;  %v23901_v58 = vld [vmem:[#allocation24_spill] sm:$0xff]  ;;  %v22187_v24 = vpop.permute.xlu1 %14451 }
 0x5ce   : > { %v22156_v51 = vsel %vm3925_vm2, %v21937_v45, %v23886_v54  ;;  %12806 = vmatprep.subr.bf16.mxu0 %v23890_v20  ;;  %v14389_v40 = vunpack.i.h.bf16 %v21861_v55  ;;  %v23891_v4 = vunpack.i.h.bf16 %v23887_v0  ;;  %v23894_v45 = vunpack.i.l.bf16 %v23893_v25  ;;  %v23903_v54 = vld [vmem:[#allocation19_spill] sm:$0xff] }
 0x5cf   : > { %v5398_v1 = vsel %vm3940_vm13, %v23889_v56, %v23888_v9  ;;  %12772 = vmatpush1.bf16.msra.mxu1 %v12720_v35  ;;  %v23896_v44 = vunpack.i.l.bf16 %v23895_v60  ;;  %v14388_v47 = vunpack.i.l.bf16 %v21861_v55  ;;  %v23898_v38 = vunpack.i.h.bf16 %v23893_v25  ;;  %v23905_v9 = vld [vmem:[#allocation112_spill] sm:$0xff]  ;;  %v23909_v25 = vld [vmem:[#allocation150_spill] sm:$0xff] }
 0x5d0   : > { %v5399_v27 = vsel %vm3940_vm13, %v23892_v6, %v23891_v4  ;;  %v5402_v59 = vsel %vm3945_vm4, %v5398_v1, %v23894_v45  ;;  %v23899_v62 = vunpack.i.h.bf16 %v23895_v60  ;;  %v23902_v35 = vunpack.i.l.bf16 %v23901_v58  ;;  %v23907_v1 = vld [vmem:[#allocation110_spill] sm:$0xff] }
 0x5d1   : > { %v5374_v48 = vsel %vm3910_vm6, %v23897_v29, %v23896_v44  ;;  %v5403_v46 = vsel %vm3945_vm4, %v5399_v27, %v23898_v38  ;;  %v23904_v0 = vunpack.i.l.bf16 %v23903_v54  ;;  %v23906_v56 = vunpack.i.h.bf16 %v23903_v54  ;;  %v23908_v27 = vld [vmem:[#allocation153_spill] sm:$0xff] }
 0x5d2   : > { %v5375_v7 = vsel %vm3910_vm6, %v23900_v57, %v23899_v62  ;;  %v5378_v16 = vsel %vm3915_vm14, %v5374_v48, %v23902_v35  ;;  %v12718_v6 = vpack.c.bf16 %v5403_v46, %v5402_v59  ;;  %v23910_v45 = vpack.c.bf16 %v23908_v27, %v23909_v25  ;;  %v23912_v62 = vld [vmem:[#allocation101_spill] sm:$0xff]  ;;  %v23914_v35 = vld [vmem:[#allocation167_spill] sm:$0xff]  ;;  %v22212_v46 = vpop.permute.xlu0 %14516  ;;  %v23921_v27 = vld [vmem:[#allocation126_spill] sm:$0xff] }
 0x5d3   : > { %v12648_v55 = vsel %vm3925_vm2, %v23905_v9, %v23904_v0  ;;  %v12649_v4 = vsel %vm3925_vm2, %v23907_v1, %v23906_v56  ;;  %v23911_v60 = vunpack.i.h.bf16 %v23901_v58  ;;  %v14394_v29 = vunpack.i.h.bf16 %v21887_v63  ;;  %v23917_v9 = vld [vmem:[#allocation114_spill] sm:$0xff]  ;;  %v23919_v56 = vld [vmem:[#allocation96_spill] sm:$0xff] }
 0x5d4   : > { %13189 = vmatpush1.bf16.msk.msra.mxu0 %vm22128_vm10, %v23910_v45  ;;  %v14393_v48 = vunpack.i.l.bf16 %v21887_v63  ;;  %v23913_v57 = vunpack.i.l.bf16 %v23912_v62  ;;  %12773 = vmatprep.subr.bf16.mxu1 %v12718_v6  ;;  %v14398_v54 = vunpack.i.l.bf16 %v21904_v2  ;;  %v23915_v58 = vunpack.i.h.bf16 %v23912_v62  ;;  %v23924_v62 = vld [vmem:[#allocation127_spill] sm:$0xff] }
 0x5d5   : > { %v5379_v44 = vsel %vm3915_vm14, %v5375_v7, %v23911_v60  ;;  %12808 = vmatprep.subr.bf16.mxu0 %v23890_v20  ;;  %v23916_v7 = vld [vmem:[#allocation166_spill] sm:$0xff]  ;;  %v23918_v63 = vunpack.i.l.bf16 %v23917_v9  ;;  %v23920_v1 = vunpack.i.l.bf16 %v23919_v56  ;;  %v14399_v45 = vunpack.i.h.bf16 %v21904_v2 }
 0x5d6   : > { %v12717_v38 = vpack.c.bf16 %v5379_v44, %v5378_v16  ;;  %v3943_v59 = vsel %vm3940_vm13, %v23914_v35, %v23913_v57  ;;  %v3944_v0 = vsel %vm3940_vm13, %v23916_v7, %v23915_v58  ;;  %v23922_v6 = vunpack.i.h.bf16 %v23917_v9  ;;  %v23925_v35 = vld [vmem:[#allocation97_spill] sm:$0xff]  ;;  %v22237_v7 = vpop.permute.xlu1 %14461 }
 0x5d7   : > { %v3948_v16 = vsel %vm3945_vm4, %v3943_v59, %v23918_v63  ;;  %v3913_v25 = vsel %vm3910_vm6, %v23921_v27, %v23920_v1  ;;  %v23923_v44 = vunpack.i.h.bf16 %v23919_v56  ;;  %v23926_v58 = vunpack.i.l.bf16 %v23925_v35 }
 0x5d8   : > { %12774 = vmatpush1.bf16.msra.mxu1 %v12717_v38  ;;  %v3949_v60 = vsel %vm3945_vm4, %v3944_v0, %v23922_v6  ;;  %v12652_v63 = vsel %vm3930_vm3, %v12648_v55, %v14388_v47  ;;  %v12653_v38 = vsel %vm3930_vm3, %v12649_v4, %v14389_v40  ;;  %13192 = vmatpush1.bf16.msk.msra.mxu0 %vm22128_vm10, %v13191_v13  ;;  %v23927_v0 = vunpack.i.h.bf16 %v23925_v35  ;;  %v23930_v55 = vld [vmem:[#allocation33_spill] sm:$0xff] }
 0x5d9   : > { %v3914_v57 = vsel %vm3910_vm6, %v23924_v62, %v23923_v44  ;;  %v3918_v59 = vsel %vm3915_vm14, %v3913_v25, %v23926_v58  ;;  %v12715_v2 = vpack.c.bf16 %v3949_v60, %v3948_v16  ;;  %v12656_v56 = vsel %vm3935_vm1, %v12652_v63, %v14393_v48  ;;  %v23928_v25 = vld [vmem:[#allocation124_spill] sm:$0xff]  ;;  %12810 = vmatprep.subr.bf16.mxu0 %v23890_v20  ;;  %v23932_v13 = vld [vmem:[#allocation41_spill] sm:$0xff]  ;;  %v23933_v16 = vld [vmem:[#allocation79_spill] sm:$0xff] }
 0x5da   : > { %v3919_v9 = vsel %vm3915_vm14, %v3914_v57, %v23927_v0  ;;  %v12657_v1 = vsel %vm3935_vm1, %v12653_v38, %v14394_v29  ;;  %v23929_v47 = vunpack.i.l.bf16 %v23928_v25  ;;  %v12660_v10 = vsel %vm3940_vm13, %v12656_v56, %v14398_v54  ;;  %v23935_v6 = vld [vmem:[#allocation57_spill] sm:$0xff]  ;;  %v23937_v44 = vld [vmem:[#allocation32_spill] sm:$0xff]  ;;  %v22281_v56 = vpop.permute.xlu1 %14471 }
 0x5db   : > { %v12714_v27 = vpack.c.bf16 %v3919_v9, %v3918_v59  ;;  %12775 = vmatprep.subr.bf16.mxu1 %v12715_v2  ;;  %v23931_v28 = vunpack.i.h.bf16 %v23928_v25  ;;  %v23934_v48 = vunpack.i.l.bf16 %v23933_v16  ;;  %v23936_v60 = vunpack.i.l.bf16 %v23935_v6  ;;  %v23940_v59 = vld [vmem:[#allocation64_spill] sm:$0xff]  ;;  %v22279_v9 = vpop.permute.xlu0 %14526  ;;  %v23943_v25 = vld [vmem:[#allocation147_spill] sm:$0xff] }
 0x5dc   : > { %v3941_v40 = vsel %vm3940_vm13, %v23930_v55, %v23929_v47  ;;  %v12661_v57 = vsel %vm3940_vm13, %v12657_v1, %v14399_v45  ;;  %v23938_v54 = vunpack.i.h.bf16 %v23933_v16  ;;  %v23939_v58 = vunpack.i.h.bf16 %v23935_v6  ;;  %v23941_v38 = vld [vmem:[#allocation44_spill] sm:$0xff]  ;;  %v23944_v47 = vld [vmem:[#allocation146_spill] sm:$0xff] }
 0x5dd   : > { %v3942_v4 = vsel %vm3940_vm13, %v23932_v13, %v23931_v28  ;;  %v3946_v29 = vsel %vm3945_vm4, %v3941_v40, %v23934_v48  ;;  %v3911_v62 = vsel %vm3910_vm6, %v23937_v44, %v23936_v60  ;;  %12776 = vmatpush1.bf16.msra.mxu1 %v12714_v27  ;;  %v23942_v2 = vunpack.i.l.bf16 %v23941_v38  ;;  %v23949_v6 = vld [vmem:[#allocation116_spill] sm:$0xff]  ;;  %v23950_v60 = vld [vmem:[#allocation55_spill] sm:$0xff] }
 0x5de   : > { %v3947_v35 = vsel %vm3945_vm4, %v3942_v4, %v23938_v54  ;;  %v3912_v63 = vsel %vm3910_vm6, %v23940_v59, %v23939_v58  ;;  %v14409_v45 = vunpack.i.h.bf16 %v21967_v43  ;;  %v14408_v1 = vunpack.i.l.bf16 %v21967_v43  ;;  %v23953_v54 = vld [vmem:[#allocation38_spill] sm:$0xff]  ;;  %v22347_v53 = vpop.permute.xlu1 %14481 }
 0x5df   : > { %v3916_v0 = vsel %vm3915_vm14, %v3911_v62, %v23942_v2  ;;  %v12712_v27 = vpack.c.bf16 %v3947_v35, %v3946_v29  ;;  %v23945_v55 = vpack.c.bf16 %v23943_v25, %v23944_v47  ;;  %v23946_v40 = vunpack.i.h.bf16 %v23941_v38  ;;  %v23955_v38 = vld [vmem:[#allocation65_spill] sm:$0xff]  ;;  %v23956_v2 = vld [vmem:[#allocation63_spill] sm:$0xff] }
 0x5e0   : > { %v11200_v13 = vsel %vm3930_vm3, %v22150_v12, %v14428_v17  ;;  %v11201_v43 = vsel %vm3930_vm3, %v22156_v51, %v14429_v34  ;;  %v14449_v4 = vunpack.i.h.bf16 %v21859_v22  ;;  %v14448_v48 = vunpack.i.l.bf16 %v21859_v22 }
 0x5e1   : > { %13195 = vmatpush1.bf16.msk.msra.mxu0 %vm22128_vm10, %v23945_v55  ;;  %v3917_v28 = vsel %vm3915_vm14, %v3912_v63, %v23946_v40  ;;  %12777 = vmatprep.subr.bf16.mxu1 %v12712_v27  ;;  %v12664_v29 = vsel %vm3945_vm4, %v12660_v10, %v14403_v21  ;;  %v12665_v17 = vsel %vm3945_vm4, %v12661_v57, %v14404_v26  ;;  %v23948_v12 = vunpack.i.l.bf16 %v23947_v39  ;;  %v23962_v55 = vld [vmem:[#allocation27_spill] sm:$0xff] }
 0x5e2   : > { %v12711_v16 = vpack.c.bf16 %v3917_v28, %v3916_v0  ;;  %12812 = vmatprep.subr.bf16.mxu0 %v23890_v20  ;;  %v14459_v51 = vunpack.i.h.bf16 %v21885_v52  ;;  %v23951_v44 = vunpack.i.l.bf16 %v23950_v60  ;;  %v12751_v62 = vpack.c.bf16 %v12665_v17, %v12664_v29  ;;  %v23963_v28 = vld [vmem:[#allocation67_spill] sm:$0xff]  ;;  %v23965_v29 = vld [vmem:[#allocation34_spill] sm:$0xff] }
 0x5e3   : > { %v12640_v34 = vsel %vm3915_vm14, %v23949_v6, %v23948_v12  ;;  %v23952_v10 = vunpack.i.h.bf16 %v23947_v39  ;;  %v23954_v57 = vunpack.i.h.bf16 %v23950_v60  ;;  %v12668_v63 = vsel %vm3950_vm5, %v14403_v21, %v14408_v1  ;;  %v23958_v21 = vld [vmem:[#allocation54_spill] sm:$0xff]  ;;  %v23960_v1 = vld [vmem:[#allocation59_spill] sm:$0xff]  ;;  %v23968_v60 = vld [vmem:[#allocation53_spill] sm:$0xff] }
 0x5e4   : > { %v11180_v22 = vsel %vm3905_vm7, %v22090_v36, %v23951_v44  ;;  %12778 = vmatpush1.bf16.msra.mxu1 %v12711_v16  ;;  %v12669_v36 = vsel %vm3950_vm5, %v14404_v26, %v14409_v45  ;;  %v23957_v0 = vpack.c.bf16 %v23955_v38, %v23956_v2  ;;  %v14438_v27 = vunpack.i.l.bf16 %v22071_v30  ;;  %v22345_v26 = vpop.permute.xlu0 %14536  ;;  %v23967_v39 = vld [vmem:[#allocation18_spill] sm:$0xff] }
 0x5e5   : > { %v12641_v35 = vsel %vm3915_vm14, %v23953_v54, %v23952_v10  ;;  %v11181_v58 = vsel %vm3905_vm7, %v22096_v19, %v23954_v57  ;;  %v11184_v59 = vsel %vm3910_vm6, %v11180_v22, %v14458_v23  ;;  %v14419_v19 = vunpack.i.h.bf16 %v22016_v18  ;;  %12783 = vmatprep.subr.bf16.mxu1 %v12751_v62  ;;  %v23971_v57 = vld [vmem:[#allocation159_spill] sm:$0xff]  ;;  %v23972_v38 = vld [vmem:[#allocation46_spill] sm:$0xff] }
 0x5e6   : > { %13198 = vmatpush1.bf16.msk.msra.mxu0 %vm22128_vm10, %v23957_v0  ;;  %v12750_v52 = vpack.c.bf16 %v12641_v35, %v12640_v34  ;;  %v14439_v23 = vunpack.i.h.bf16 %v22071_v30  ;;  %v23959_v45 = vunpack.i.l.bf16 %v23958_v21  ;;  %v23961_v47 = vunpack.i.h.bf16 %v23958_v21 }
 0x5e7   : > { %12814 = vmatprep.subr.bf16.mxu0 %v23890_v20  ;;  %v23964_v16 = vunpack.i.l.bf16 %v23963_v28  ;;  %v23966_v17 = vunpack.i.h.bf16 %v23963_v28  ;;  %v14418_v6 = vunpack.i.l.bf16 %v22016_v18  ;;  %v11204_v34 = vsel %vm3935_vm1, %v11200_v13, %v14438_v27  ;;  %v23974_v18 = vld [vmem:[#allocation25_spill] sm:$0xff] }
 0x5e8   : > { %v12658_v25 = vsel %vm3940_vm13, %v23960_v1, %v23959_v45  ;;  %v12659_v40 = vsel %vm3940_vm13, %v23962_v55, %v23961_v47  ;;  %12784 = vmatpush2.bf16.msra.mxu1 %v12750_v52  ;;  %v23969_v44 = vunpack.i.l.bf16 %v23968_v60  ;;  %v23970_v62 = vunpack.i.h.bf16 %v23968_v60  ;;  %v22401_v28 = vpop.permute.xlu0 %14546 }
 0x5e9   : > { %v12634_v30 = vsel %vm3910_vm6, %v23965_v29, %v23964_v16  ;;  %v12635_v12 = vsel %vm3910_vm6, %v23967_v39, %v23966_v17  ;;  %v11205_v54 = vsel %vm3935_vm1, %v11201_v43, %v14439_v23  ;;  %v23973_v2 = vpack.c.bf16 %v23971_v57, %v23972_v38  ;;  %v23981_v16 = vld [vmem:[#allocation136_spill] sm:$0xff] }
 0x5ea   : > { %v12662_v22 = vsel %vm3945_vm4, %v12658_v25, %v23969_v44  ;;  %v12663_v10 = vsel %vm3945_vm4, %v12659_v40, %v23970_v62  ;;  %v23975_v0 = vunpack.i.l.bf16 %v23974_v18  ;;  %v23976_v52 = vunpack.i.h.bf16 %v23974_v18 }
 0x5eb   : > { %v12748_v35 = vpack.c.bf16 %v12663_v10, %v12662_v22  ;;  %13201 = vmatpush1.bf16.msk.msra.mxu0 %vm22128_vm10, %v23973_v2  ;;  %v11185_v21 = vsel %vm3910_vm6, %v11181_v58, %v14459_v51  ;;  %v14469_v45 = vunpack.i.h.bf16 %v21902_v32  ;;  %v14468_v43 = vunpack.i.l.bf16 %v21902_v32 }
 0x5ec   : > { %v12638_v13 = vsel %vm3915_vm14, %v12634_v30, %v23975_v0  ;;  %v12639_v27 = vsel %vm3915_vm14, %v12635_v12, %v23976_v52  ;;  %12816 = vmatprep.subr.bf16.mxu0 %v23890_v20  ;;  %v12672_v1 = vsel %vm3955_vm11, %v12668_v63, %v14413_v8  ;;  %v12673_v25 = vsel %vm3955_vm11, %v12669_v36, %v14414_v41  ;;  %v22403_v8 = vpop.permute.xlu1 %14491  ;;  %v23978_v41 = vld [vmem:[#allocation151_spill] sm:$0xff] }
 0x5ed   : > { %v12747_v23 = vpack.c.bf16 %v12639_v27, %v12638_v13  ;;  %12785 = vmatprep.subr.bf16.mxu1 %v12748_v35  ;;  %v14454_v47 = vunpack.i.h.bf16 %v22187_v24  ;;  %v14453_v51 = vunpack.i.l.bf16 %v22187_v24  ;;  %v12676_v58 = vsel %vm3960_vm15, %v12672_v1, %v14418_v6  ;;  %v23980_v24 = vld [vmem:[#allocation155_spill] sm:$0xff]  ;;  %v23983_v6 = vld [vmem:[#allocation102_spill] sm:$0xff] }
 0x5ee   : > { %v12677_v32 = vsel %vm3960_vm15, %v12673_v25, %v14419_v19  ;;  %v11208_v55 = vsel %vm3940_vm13, %v11204_v34, %v14448_v48  ;;  %v11209_v40 = vsel %vm3940_vm13, %v11205_v54, %v14449_v4  ;;  %v23979_v36 = vpack.c.bf16 %v23977_v14, %v23978_v41  ;;  %v23984_v34 = vld [vmem:[#allocation104_spill] sm:$0xff] }
 0x5ef   : > { %12786 = vmatpush2.bf16.msra.mxu1 %v12747_v23  ;;  %v12678_v63 = vsel %vm3965_vm12, %v23980_v24, %v14453_v51  ;;  %v12679_v19 = vsel %vm3965_vm12, %v23981_v16, %v14454_v47  ;;  %v11212_v48 = vsel %vm3945_vm4, %v11208_v55, %v14468_v43  ;;  %v11213_v4 = vsel %vm3945_vm4, %v11209_v40, %v14469_v45  ;;  %v23987_v40 = vld [vmem:[#allocation165_spill] sm:$0xff]  ;;  %v23988_v14 = vld [vmem:[#allocation164_spill] sm:$0xff] }
 0x5f0   : > { %13204 = vmatpush1.bf16.msk.msra.mxu0 %vm22128_vm10, %v23979_v36  ;;  %v13212_v29 = vpack.c.bf16 %v12679_v19, %v12678_v63  ;;  %v12745_v30 = vpack.c.bf16 %v11213_v4, %v11212_v48  ;;  %v11188_v17 = vsel %vm3915_vm14, %v11184_v59, %v14198_v15  ;;  %v23982_v39 = vunpack.i.h.bf16 %v21590_v42  ;;  %v22436_v59 = vpop.permute.xlu0 %14556  ;;  %v14502_v10 = vpop.permute.xlu1 %14501  ;;  %v23989_v36 = vld [vmem:[#allocation29_spill] sm:$0xff] }
 0x5f1   : > { %12818 = vmatprep.subr.bf16.mxu0 %v23890_v20  ;;  %v13206_v60 = vpack.c.bf16 %v23984_v34, %v23983_v6  ;;  %v12680_v22 = vsel %vm3965_vm12, %v12676_v58, %v14423_v31  ;;  %v12681_v62 = vsel %vm3965_vm12, %v12677_v32, %v14424_v61  ;;  %v14474_v15 = vunpack.i.h.bf16 %v22281_v56  ;;  %v23985_v58 = vld [vmem:[#allocation22_spill] sm:$0xff]  ;;  %v23986_v32 = vld [vmem:[#allocation163_spill] sm:$0xff] }
 0x5f2   : > { %v11189_v12 = vsel %vm3915_vm14, %v11185_v21, %v23982_v39  ;;  %12787 = vmatprep.subr.bf16.mxu1 %v12745_v30  ;;  %v14473_v42 = vunpack.i.l.bf16 %v22281_v56  ;;  %v13209_v54 = vpack.c.bf16 %v12681_v62, %v12680_v22  ;;  %v14489_v61 = vunpack.i.h.bf16 %v22014_v49 }
 0x5f3   : > { %v12744_v44 = vpack.c.bf16 %v11189_v12, %v11188_v17  ;;  %v11217_v31 = vsel %vm3950_vm5, %v14469_v45, %v14474_v15  ;;  %v14488_v35 = vunpack.i.l.bf16 %v22014_v49  ;;  %v14504_v57 = vunpack.i.h.bf16 %v14502_v10 }
 0x5f4   : > { %13207 = vmatpush1.bf16.msk.msra.mxu0 %vm22128_vm10, %v13206_v60  ;;  %v11216_v37 = vsel %vm3950_vm5, %v14468_v43, %v14473_v42  ;;  %v14503_v38 = vunpack.i.l.bf16 %v14502_v10  ;;  %v14529_v56 = vunpack.i.h.bf16 %v22279_v9  ;;  %v14528_v2 = vunpack.i.l.bf16 %v22279_v9  ;;  %v22451_v49 = vpop.permute.xlu0 %14566  ;;  %v22457_v45 = vpop.permute.xlu1 %14511  ;;  %v22459_v43 = vld [vmem:[#allocation8] sm:$0xff] }
 0x5f5   : > { %12788 = vmatpush2.bf16.msra.mxu1 %v12744_v44  ;;  %12824 = vmatprep.subr.bf16.mxu0 %v23890_v20  ;;  %v11220_v18 = vsel %vm3955_vm11, %v11216_v37, %v14488_v35  ;;  %v11221_v0 = vsel %vm3955_vm11, %v11217_v31, %v14489_v61  ;;  %v14479_v23 = vunpack.i.h.bf16 %v21965_v11  ;;  %v14478_v1 = vunpack.i.l.bf16 %v21965_v11 }
 0x5f6   : > { %v11224_v13 = vsel %vm3960_vm15, %v11220_v18, %v14503_v38  ;;  %v11225_v52 = vsel %vm3960_vm15, %v11221_v0, %v14504_v57  ;;  %v14494_v25 = vunpack.i.h.bf16 %v22403_v8  ;;  %v14493_v47 = vunpack.i.l.bf16 %v22403_v8 }
 0x5f7   : > { %v11228_v27 = vsel %vm3965_vm12, %v11224_v13, %v14528_v2  ;;  %v11229_v21 = vsel %vm3965_vm12, %v11225_v52, %v14529_v56  ;;  %v13182_v51 = vcombine.high %v22459_v43, %v22459_v43  ;;  %v9970_v55 = vcombine.low %v23986_v32, %v23985_v58 }
 0x5f8   : > { %13210 = vmatpush2.bf16.msk.msra.mxu0 %vm22128_vm10, %v13209_v54  ;;  %v13215_v9 = vpack.c.bf16 %v11229_v21, %v11228_v27  ;;  %v10106_v41 = vcombine.low %v23988_v14, %v23987_v40  ;;  %v14434_v24 = vunpack.i.h.bf16 %v23989_v36  ;;  %v14433_v11 = vunpack.i.l.bf16 %v23989_v36  ;;  %v22476_v63 = vpop.permute.xlu0 %14576  ;;  %v14522_v4 = vpop.permute.xlu1 %14521 }
 0x5f9   : > { %12826 = vmatprep.subr.bf16.mxu0 %v23890_v20  ;;  %13226 = vmatprep.mubr.msk.bf16.mxu0 %vm12682_vm0, %v13182_v51  ;;  %v11170_v16 = vsel %vm23175_vm9, %v9970_v55, %v14478_v1  ;;  %v14444_v19 = vunpack.i.h.bf16 %v22140_v50  ;;  %v14443_v48 = vunpack.i.l.bf16 %v22140_v50  ;;  %v14463_v30 = vunpack.i.l.bf16 %v22237_v7 }
 0x5fa   : > { %v11171_v8 = vsel %vm23175_vm9, %v10106_v41, %v14479_v23  ;;  %13183 = vmatprep.mubr.msk.bf16.mxu1 %vm12682_vm0, %v13182_v51  ;;  %v11174_v39 = vsel %vm3900_vm8, %v11170_v16, %v14493_v47  ;;  %v14519_v12 = vunpack.i.h.bf16 %v22212_v46  ;;  %v14518_v6 = vunpack.i.l.bf16 %v22212_v46 }
 0x5fb   : > { %v11175_v17 = vsel %vm3900_vm8, %v11171_v8, %v14494_v25  ;;  %v14484_v34 = vunpack.i.h.bf16 %v22347_v53  ;;  %v14483_v60 = vunpack.i.l.bf16 %v22347_v53  ;;  %v14499_v50 = vunpack.i.h.bf16 %v22069_v3 }
 0x5fc   : > { %13213 = vmatpush2.bf16.msk.msra.mxu0 %vm22128_vm10, %v13212_v29  ;;  %v14464_v29 = vunpack.i.h.bf16 %v22237_v7  ;;  %v14498_v44 = vunpack.i.l.bf16 %v22069_v3  ;;  %v14539_v22 = vunpack.i.h.bf16 %v22345_v26  ;;  %vm23990_vm0 = vcmask 31744   ;;  %v22500_v10 = vpop.permute.xlu1 %14531  ;;  %v14587_v31 = vpop.permute.xlu0 %14586 }
 0x5fd   : > { %12828 = vmatprep.subr.bf16.mxu0 %v23890_v20  ;;  %v11191_v7 = vsel %vm23990_vm0, %v14434_v24, %v14444_v19  ;;  %vm23991_vm9 = vmmov %vm23990_vm0  ;;  %v11179_v15 = vsel %vm3905_vm7, %v11175_v17, %v14519_v12  ;;  %v11178_v42 = vsel %vm3905_vm7, %v11174_v39, %v14518_v6  ;;  %v14538_v46 = vunpack.i.l.bf16 %v22345_v26  ;;  %v23992_v12 = vld [vmem:[#allocation20_spill] sm:$0xff] }
 0x5fe   : > { %v11190_v62 = vsel %vm23991_vm9, %v14433_v11, %v14443_v48  ;;  %v14549_v53 = vunpack.i.h.bf16 %v22401_v28  ;;  %v11195_v3 = vsel %vm3925_vm2, %v11191_v7, %v14464_v29  ;;  %v14524_v35 = vunpack.i.h.bf16 %v14522_v4  ;;  %v23995_v7 = vld [vmem:[#allocation91_spill] sm:$0xff] }
 0x5ff   : > { %v11194_v54 = vsel %vm3925_vm2, %v11190_v62, %v14463_v30  ;;  %v11199_v61 = vsel %vm3930_vm3, %v11195_v3, %v14484_v34  ;;  %v14523_v57 = vunpack.i.l.bf16 %v14522_v4  ;;  %v14548_v38 = vunpack.i.l.bf16 %v22401_v28 }
 0x600   : > { %13216 = vmatpush2.bf16.msk.msra.mxu0 %vm22128_vm10, %v13215_v9  ;;  %v11198_v37 = vsel %vm3930_vm3, %v11194_v54, %v14483_v60  ;;  %v14559_v56 = vunpack.i.h.bf16 %v22436_v59  ;;  %v11182_v2 = vsel %vm3910_vm6, %v11178_v42, %v14538_v46  ;;  %v11183_v26 = vsel %vm3910_vm6, %v11179_v15, %v14539_v22  ;;  %v14542_v27 = vpop.permute.xlu1 %14541  ;;  %v22531_v48 = vpop.permute.xlu0 %14596  ;;  %v23993_v60 = vld [vmem:[#allocation89_spill] sm:$0xff]  ;;  %v23994_v22 = vld [vmem:[#allocation28_spill] sm:$0xff] }
 0x601   : > { %12830 = vmatprep.subr.bf16.mxu0 %v23890_v20  ;;  %v14558_v18 = vunpack.i.l.bf16 %v22436_v59  ;;  %v14569_v0 = vunpack.i.h.bf16 %v22451_v49  ;;  %v14568_v13 = vunpack.i.l.bf16 %v22451_v49  ;;  %v14589_v52 = vunpack.i.h.bf16 %v14587_v31  ;;  %v23996_v15 = vld [vmem:[#allocation93_spill] sm:$0xff]  ;;  %v23997_v42 = vld [vmem:[#allocation92_spill] sm:$0xff] }
 0x602   : > { %v11202_v21 = vsel %vm3935_vm1, %v11198_v37, %v14498_v44  ;;  %v11203_v9 = vsel %vm3935_vm1, %v11199_v61, %v14499_v50  ;;  %v14544_v23 = vunpack.i.h.bf16 %v14542_v27  ;;  %v14543_v28 = vunpack.i.l.bf16 %v14542_v27 }
 0x603   : > { %v11206_v1 = vsel %vm3940_vm13, %v11202_v21, %v14523_v57  ;;  %v11207_v25 = vsel %vm3940_vm13, %v11203_v9, %v14524_v35  ;;  %v11186_v47 = vsel %vm3915_vm14, %v11182_v2, %v14433_v11  ;;  %v11187_v59 = vsel %vm3915_vm14, %v11183_v26, %v14434_v24 }
 0x604   : > { %v11215_v51 = vsel %vm3950_vm5, %v14544_v23, %v14549_v53  ;;  %v11214_v49 = vsel %vm3950_vm5, %v14543_v28, %v14548_v38  ;;  %v11210_v58 = vsel %vm3945_vm4, %v11206_v1, %v14543_v28  ;;  %v11211_v32 = vsel %vm3945_vm4, %v11207_v25, %v14544_v23  ;;  %v14552_v4 = vpop.permute.xlu1 %14551  ;;  %v22536_v29 = vpop.permute.xlu0 %14606  ;;  %v23998_v53 = vld [vmem:[#allocation60_spill] sm:$0xff] }
 0x605   : > { %v14588_v55 = vunpack.i.l.bf16 %v14587_v31  ;;  %v11219_v40 = vsel %vm3955_vm11, %v11215_v51, %v14559_v56  ;;  %v11218_v14 = vsel %vm3955_vm11, %v11214_v49, %v14558_v18  ;;  %v12742_v41 = vpack.c.bf16 %v11211_v32, %v11210_v58 }
 0x606   : > { %v11223_v36 = vsel %vm3960_vm15, %v11219_v40, %v14569_v0  ;;  %v11222_v11 = vsel %vm3960_vm15, %v11218_v14, %v14568_v13  ;;  %v12741_v8 = vpack.c.bf16 %v11187_v59, %v11186_v47  ;;  %v14149_v6 = vunpack.i.h.bf16 %v23992_v12  ;;  %v24001_v0 = vld [vmem:[#allocation125_spill] sm:$0xff] }
 0x607   : > { %12789 = vmatprep.subr.bf16.mxu1 %v12742_v41  ;;  %v11226_v24 = vsel %vm3965_vm12, %v11222_v11, %v14588_v55  ;;  %v11227_v16 = vsel %vm3965_vm12, %v11223_v36, %v14589_v52  ;;  %v14148_v34 = vunpack.i.l.bf16 %v23992_v12  ;;  %v14154_v50 = vunpack.i.h.bf16 %v23993_v60 }
 0x608   : > { %12790 = vmatpush2.bf16.msra.mxu1 %v12741_v8  ;;  %v13218_v19 = vpack.c.bf16 %v11227_v16, %v11226_v24  ;;  %v14562_v30 = vpop.permute.xlu1 %14561  ;;  %v22538_v17 = vpop.permute.xlu0 %14616  ;;  %v14153_v44 = vunpack.i.l.bf16 %v23993_v60  ;;  %v8790_v62 = vcombine.low %v23995_v7, %v23994_v22  ;;  %v8926_v46 = vcombine.low %v23997_v42, %v23996_v15 }
 0x609   : > { %v14159_v54 = vunpack.i.h.bf16 %v23998_v53  ;;  %v14158_v3 = vunpack.i.l.bf16 %v23998_v53  ;;  %v14514_v31 = vunpack.i.h.bf16 %v22457_v45  ;;  %v14513_v37 = vunpack.i.l.bf16 %v22457_v45 }
 0x60a   : > { %13219 = vmatpush2.bf16.msk.msra.mxu0 %vm22128_vm10, %v13218_v19  ;;  %vm23999_vm9 = vcmask 179200   ;;  %v14509_v26 = vunpack.i.h.bf16 %v22138_v5  ;;  %v14508_v18 = vunpack.i.l.bf16 %v22138_v5  ;;  %v13759_v13 = vunpack.i.h.bf16 %v24001_v0 }
 0x60b   : > { %12832 = vmatprep.subr.bf16.mxu0 %v23890_v20  ;;  %v9721_v35 = vsel %vm23999_vm9, %v8926_v46, %v14149_v6  ;;  %vm24000_vm0 = vmmov %vm23999_vm9  ;;  %v14533_v27 = vunpack.i.l.bf16 %v22500_v10  ;;  %vm24002_vm9 = vcmask 31744   ;;  %v14609_v23 = vunpack.i.h.bf16 %v22536_v29 }
 0x60c   : > { %v22540_v39 = vpop.permute.xlu1 %14571  ;;  %v14627_v61 = vpop.permute.xlu0 %14626  ;;  %v9720_v57 = vsel %vm24000_vm0, %v8790_v62, %v14148_v34  ;;  %v9725_v2 = vsel %vm3900_vm8, %v9721_v35, %v14154_v50  ;;  %v9741_v21 = vsel %vm24002_vm9, %v14509_v26, %v14514_v31  ;;  %vm24003_vm0 = vmmov %vm24002_vm9  ;;  %v14534_v28 = vunpack.i.h.bf16 %v22500_v10 }
 0x60d   : > { %v9724_v56 = vsel %vm3900_vm8, %v9720_v57, %v14153_v44  ;;  %v9729_v45 = vsel %vm3905_vm7, %v9725_v2, %v14159_v54  ;;  %v9740_v9 = vsel %vm24003_vm0, %v14508_v18, %v14513_v37  ;;  %v14608_v1 = vunpack.i.l.bf16 %v22536_v29  ;;  %v24004_v2 = vld [vmem:[#allocation69_spill] sm:$0xff] }
 0x60e   : > { %v9728_v52 = vsel %vm3905_vm7, %v9724_v56, %v14158_v3  ;;  %v14619_v5 = vunpack.i.h.bf16 %v22538_v17  ;;  %v14554_v25 = vunpack.i.h.bf16 %v14552_v4  ;;  %v14553_v47 = vunpack.i.l.bf16 %v14552_v4 }
 0x60f   : > { %v14564_v49 = vunpack.i.h.bf16 %v14562_v30  ;;  %v14563_v58 = vunpack.i.l.bf16 %v14562_v30  ;;  %v14618_v40 = vunpack.i.l.bf16 %v22538_v17  ;;  %v9744_v14 = vsel %vm3925_vm2, %v9740_v9, %v14533_v27 }
 0x610   : > { %v14582_v38 = vpop.permute.xlu1 %14581  ;;  %v14637_v51 = vpop.permute.xlu0 %14636  ;;  %v9745_v10 = vsel %vm3925_vm2, %v9741_v21, %v14534_v28  ;;  %v14629_v11 = vunpack.i.h.bf16 %v14627_v61  ;;  %v14628_v16 = vunpack.i.l.bf16 %v14627_v61  ;;  %v9748_v4 = vsel %vm3930_vm3, %v9744_v14, %v14553_v47 }
 0x611   : > { %v14584_v41 = vunpack.i.h.bf16 %v14582_v38  ;;  %v14583_v36 = vunpack.i.l.bf16 %v14582_v38  ;;  %v14639_v19 = vunpack.i.h.bf16 %v14637_v51  ;;  %v9749_v29 = vsel %vm3930_vm3, %v9745_v10, %v14554_v25  ;;  %v24010_v25 = vld [vmem:[#allocation128_spill] sm:$0xff] }
 0x612   : > { %v9752_v17 = vsel %vm3935_vm1, %v9748_v4, %v14563_v58  ;;  %v9753_v12 = vsel %vm3935_vm1, %v9749_v29, %v14564_v49  ;;  %v14638_v46 = vunpack.i.l.bf16 %v14637_v51  ;;  %v13758_v37 = vunpack.i.l.bf16 %v24001_v0 }
 0x613   : > { %v9756_v60 = vsel %vm3940_vm13, %v9752_v17, %v14583_v36  ;;  %v9757_v50 = vsel %vm3940_vm13, %v9753_v12, %v14584_v41  ;;  %v14574_v9 = vunpack.i.h.bf16 %v22540_v39  ;;  %vm24008_vm9 = vcmask 179200  }
 0x614   : > { %v14592_v59 = vpop.permute.xlu1 %14591  ;;  %vm24009_vm0 = vmmov %vm24008_vm9  ;;  %v13764_v47 = vunpack.i.h.bf16 %v24010_v25  ;;  %v14579_v51 = vunpack.i.h.bf16 %v22476_v63  ;;  %v14578_v49 = vunpack.i.l.bf16 %v22476_v63  ;;  %v14598_v63 = vunpack.i.l.bf16 %v22531_v48 }
 0x615   : > { %v14594_v32 = vunpack.i.h.bf16 %v14592_v59  ;;  %v14593_v55 = vunpack.i.l.bf16 %v14592_v59  ;;  %v13763_v59 = vunpack.i.l.bf16 %v24010_v25 }
 0x617   : > { %v9732_v8 = vsel %vm3910_vm6, %v9728_v52, %v14593_v55  ;;  %v9733_v24 = vsel %vm3910_vm6, %v9729_v45, %v14594_v32  ;;  %v24006_v52 = vld [vmem:[#allocation68_spill] sm:$0xff]  ;;  %v24007_v45 = vld [vmem:[#allocation70_spill] sm:$0xff] }
 0x618   : > { %v14602_v30 = vpop.permute.xlu1 %14601  ;;  %v9736_v44 = vsel %vm3915_vm14, %v9732_v8, %v14508_v18  ;;  %v9737_v22 = vsel %vm3915_vm14, %v9733_v24, %v14509_v26  ;;  %v24005_v26 = vld [vmem:[#allocation71_spill] sm:$0xff]  ;;  %v8654_v27 = vcombine.low %v24007_v45, %v24006_v52 }
 0x619   : > { %v14604_v6 = vunpack.i.h.bf16 %v14602_v30  ;;  %v14603_v34 = vunpack.i.l.bf16 %v14602_v30  ;;  %v12738_v57 = vpack.c.bf16 %v9737_v22, %v9736_v44  ;;  %v8518_v18 = vcombine.low %v24005_v26, %v24004_v2 }
 0x61b   : > { %v9765_v7 = vsel %vm3950_vm5, %v14604_v6, %v14609_v23  ;;  %v9764_v62 = vsel %vm3950_vm5, %v14603_v34, %v14608_v1  ;;  %v9760_v15 = vsel %vm3945_vm4, %v9756_v60, %v14603_v34  ;;  %v9761_v42 = vsel %vm3945_vm4, %v9757_v50, %v14604_v6  ;;  %v14647_v6 = vpop.permute.xlu0 %14646 }
 0x61c   : > { %v9769_v53 = vsel %vm3955_vm11, %v9765_v7, %v14619_v5  ;;  %v9768_v54 = vsel %vm3955_vm11, %v9764_v62, %v14618_v40  ;;  %v14612_v3 = vpop.permute.xlu1 %14611  ;;  %v12739_v31 = vpack.c.bf16 %v9761_v42, %v9760_v15  ;;  %v14573_v23 = vunpack.i.l.bf16 %v22540_v39  ;;  %v24011_v39 = vld [vmem:[#allocation129_spill] sm:$0xff] }
 0x61d   : > { %v9773_v61 = vsel %vm3960_vm15, %v9769_v53, %v14629_v11  ;;  %v9772_v35 = vsel %vm3960_vm15, %v9768_v54, %v14628_v16  ;;  %v9719_v1 = vsel %vm24008_vm9, %v8654_v27, %v13759_v13  ;;  %v9718_v5 = vsel %vm24009_vm0, %v8518_v18, %v13758_v37  ;;  %v24012_v13 = vld [vmem:[#allocation131_spill] sm:$0xff] }
 0x61e   : > { %12791 = vmatprep.subr.bf16.mxu1 %v12739_v31  ;;  %v9776_v38 = vsel %vm3965_vm12, %v9772_v35, %v14638_v46  ;;  %v9777_v56 = vsel %vm3965_vm12, %v9773_v61, %v14639_v19  ;;  %v13769_v58 = vunpack.i.h.bf16 %v24011_v39  ;;  %v13768_v0 = vunpack.i.l.bf16 %v24011_v39 }
 0x61f   : > { %12792 = vmatpush2.bf16.msra.mxu1 %v12738_v57  ;;  %v13221_v21 = vpack.c.bf16 %v9777_v56, %v9776_v38  ;;  %v13774_v32 = vunpack.i.h.bf16 %v24012_v13  ;;  %v13773_v55 = vunpack.i.l.bf16 %v24012_v13  ;;  %vm24013_vm9 = vcmask 31744   ;;  %v14657_v26 = vpop.permute.xlu0 %14656 }
 0x620   : > { %v14622_v28 = vpop.permute.xlu1 %14621  ;;  %v9739_v40 = vsel %vm24013_vm9, %v14574_v9, %v14579_v51  ;;  %vm24014_vm0 = vmmov %vm24013_vm9  ;;  %v14614_v41 = vunpack.i.h.bf16 %v14612_v3  ;;  %v14613_v36 = vunpack.i.l.bf16 %v14612_v3  ;;  %v14599_v11 = vunpack.i.h.bf16 %v22531_v48 }
 0x621   : > { %13222 = vmatpush2.bf16.msk.msra.mxu0 %vm22128_vm10, %v13221_v21  ;;  %v9738_v14 = vsel %vm24014_vm0, %v14573_v23, %v14578_v49  ;;  %v14623_v8 = vunpack.i.l.bf16 %v14622_v28  ;;  %v9722_v24 = vsel %vm3900_vm8, %v9718_v5, %v13763_v59  ;;  %v9723_v16 = vsel %vm3900_vm8, %v9719_v1, %v13764_v47 }
 0x622   : > { %12834 = vmatprep.subr.bf16.mxu0 %v23890_v20  ;;  %v14624_v20 = vunpack.i.h.bf16 %v14622_v28  ;;  %v9726_v29 = vsel %vm3905_vm7, %v9722_v24, %v13768_v0  ;;  %v9727_v30 = vsel %vm3905_vm7, %v9723_v16, %v13769_v58  ;;  %v9742_v17 = vsel %vm3925_vm2, %v9738_v14, %v14598_v63 }
 0x623   : > { %v9743_v12 = vsel %vm3925_vm2, %v9739_v40, %v14599_v11  ;;  %v9746_v34 = vsel %vm3930_vm3, %v9742_v17, %v14613_v36  ;;  %v9730_v50 = vsel %vm3910_vm6, %v9726_v29, %v13773_v55  ;;  %v9731_v44 = vsel %vm3910_vm6, %v9727_v30, %v13774_v32 }
 0x624   : > { %v14632_v10 = vpop.permute.xlu1 %14631  ;;  %v9747_v48 = vsel %vm3930_vm3, %v9743_v12, %v14614_v41  ;;  %v9750_v22 = vsel %vm3935_vm1, %v9746_v34, %v14623_v8  ;;  %v9734_v53 = vsel %vm3915_vm14, %v9730_v50, %v14573_v23  ;;  %v9735_v54 = vsel %vm3915_vm14, %v9731_v44, %v14574_v9 }
 0x625   : > { %v14634_v19 = vunpack.i.h.bf16 %v14632_v10  ;;  %v14633_v4 = vunpack.i.l.bf16 %v14632_v10  ;;  %v9751_v7 = vsel %vm3935_vm1, %v9747_v48, %v14624_v20  ;;  %v14649_v37 = vunpack.i.h.bf16 %v14647_v6 }
 0x626   : > { %v14648_v57 = vunpack.i.l.bf16 %v14647_v6  ;;  %v12735_v2 = vpack.c.bf16 %v9735_v54, %v9734_v53  ;;  %v13181_v21 = vcombine.low %v22459_v43, %v22459_v43  ;;  %v14659_v9 = vunpack.i.h.bf16 %v14657_v26 }
 0x627   : > { %v9754_v42 = vsel %vm3940_vm13, %v9750_v22, %v14633_v4  ;;  %v9755_v46 = vsel %vm3940_vm13, %v9751_v7, %v14634_v19  ;;  %v14658_v23 = vunpack.i.l.bf16 %v14657_v26 }
 0x629   : > { %v14642_v60 = vpop.permute.xlu1 %14641 }
 0x62a   : > { %v14644_v62 = vunpack.i.h.bf16 %v14642_v60  ;;  %v14643_v15 = vunpack.i.l.bf16 %v14642_v60 }
 0x62c   : > { %v9758_v3 = vsel %vm3945_vm4, %v9754_v42, %v14643_v15  ;;  %v9759_v31 = vsel %vm3945_vm4, %v9755_v46, %v14644_v62  ;;  %v9763_v18 = vsel %vm3950_vm5, %v14644_v62, %v14649_v37  ;;  %v9762_v52 = vsel %vm3950_vm5, %v14643_v15, %v14648_v57 }
 0x62d   : > { %v12736_v35 = vpack.c.bf16 %v9759_v31, %v9758_v3 }
 0x62f   : > { %v14652_v61 = vpop.permute.xlu1 %14651  ;;  %12793 = vmatprep.subr.bf16.mxu1 %v12736_v35 }
 0x630   : > { %v14654_v38 = vunpack.i.h.bf16 %v14652_v61  ;;  %v14653_v56 = vunpack.i.l.bf16 %v14652_v61  ;;  %12794 = vmatpush2.bf16.msra.mxu1 %v12735_v2 }
 0x632   : > { %v9766_v45 = vsel %vm3955_vm11, %v9762_v52, %v14653_v56  ;;  %v9767_v27 = vsel %vm3955_vm11, %v9763_v18, %v14654_v38 }
 0x633   : > { %12796 = vmatmul.mubr.bf16.vlgmr.msra.gmra.mxu1 %v13181_v21  ;;  %v9770_v25 = vsel %vm3960_vm15, %v9766_v45, %v14658_v23  ;;  %v9771_v47 = vsel %vm3960_vm15, %v9767_v27, %v14659_v9 }
 0x636   : > { %v14662_v28 = vpop.permute.xlu1 %14661 }
 0x637   : > { %v14664_v1 = vunpack.i.h.bf16 %v14662_v28  ;;  %v14663_v5 = vunpack.i.l.bf16 %v14662_v28 }
 0x639   : > { %v9774_v59 = vsel %vm3965_vm12, %v9770_v25, %v14663_v5  ;;  %v9775_v51 = vsel %vm3965_vm12, %v9771_v47, %v14664_v1 }
 0x63a   : > { %v13224_v49 = vpack.c.bf16 %v9775_v51, %v9774_v59 }
 0x63c   : > { %13225 = vmatpush2.bf16.msk.msra.mxu0 %vm22128_vm10, %v13224_v49 }
 0x63f   : > { %12837 = vmatmul.mubr.bf16.vlgmr.msra.gmra.mxu0 %v13181_v21 }
 0x6f3   : > { %v22649_v43 = vpop.f32.mrf.mxu1 }
 0x6f4   : > { %v12865_v10 = vrot.slane %v22649_v43, 2  ;;  %v12901_v63 = vrot.slane %v22649_v43, 4  ;;  %v12847_v20 = vrot.slane %v22649_v43, 1  ;;  %v12937_v8 = vrot.slane %v22649_v43, 6 }
 0x6f5   : > { %v22651_v39 = vpop.f32.mrf.mxu1  ;;  %v12883_v24 = vrot.slane %v22649_v43, 3  ;;  %v12919_v16 = vrot.slane %v22649_v43, 5 }
 0x6f6   : > { %v12848_v19 = vrot.slane %v22651_v39, 1  ;;  %v12866_v4 = vrot.slane %v22651_v39, 2  ;;  %v12884_v29 = vrot.slane %v22651_v39, 3  ;;  %v12902_v30 = vrot.slane %v22651_v39, 4 }
 0x6f7   : > { %v12801_v58 = vpop.f32.mrf.mxu1  ;;  %v12920_v17 = vrot.slane %v22651_v39, 5  ;;  %v12938_v12 = vrot.slane %v22651_v39, 6 }
 0x6f9   : > { %v12802_v0 = vpop.f32.mrf.mxu1 }
 0x6ff   : > { %v22653_v13 = vpop.f32.mrf.mxu0 }
 0x700   : > { %v12867_v32 = vrot.slane %v22653_v13, 2  ;;  %v12849_v55 = vrot.slane %v22653_v13, 1  ;;  %v12903_v14 = vrot.slane %v22653_v13, 4  ;;  %v12885_v41 = vrot.slane %v22653_v13, 3 }
 0x701   : > { %v12840_v40 = vpop.f32.mrf.mxu0  ;;  %v12921_v11 = vrot.slane %v22653_v13, 5  ;;  %v12939_v6 = vrot.slane %v22653_v13, 6 }
 0x702   : > { %12875 = vrot.lane.b32.xlu1 %v12867_v32, %s24015_s10  ;;  %12857 = vrot.lane.b32.xlu0 %v12849_v55, %s24016_s28 }
 0x703   : > { %v12841_v33 = vpop.f32.mrf.mxu0 }
 0x705   : > { %v12842_v36 = vpop.f32.mrf.mxu0 }
 0x706   : > { %12911 = vrot.lane.b32.xlu1 %v12903_v14, %s24017_s6  ;;  %12893 = vrot.lane.b32.xlu0 %v12885_v41, %s24018_s16 }
 0x70a   : > { %12929 = vrot.lane.b32.xlu0 %v12921_v11, %s24019_s7  ;;  %12871 = vrot.lane.b32.xlu1 %v12865_v10, %s24015_s10 }
 0x70e   : > { %12907 = vrot.lane.b32.xlu1 %v12901_v63, %s24017_s6  ;;  %12853 = vrot.lane.b32.xlu0 %v12847_v20, %s24016_s28 }
 0x712   : > { %12943 = vrot.lane.b32.xlu1 %v12937_v8, %s24020_s9  ;;  %12889 = vrot.lane.b32.xlu0 %v12883_v24, %s24018_s16 }
 0x716   : > { %12925 = vrot.lane.b32.xlu0 %v12919_v16, %s24019_s7  ;;  %12855 = vrot.lane.b32.xlu1 %v12848_v19, %s24016_s28 }
 0x71a   : > { %12873 = vrot.lane.b32.xlu0 %v12866_v4, %s24015_s10  ;;  %12891 = vrot.lane.b32.xlu1 %v12884_v29, %s24018_s16  ;;  %s15396_s10 = scalar_lea.vmem %s15395_s14, 2048 }
 0x71b   : > { %p15398_p12 = scmp.lt.s32.totalorder %s15396_s10, %s15390_s24 }
 0x71d   : > { %p15399_p7 = por %p15398_p12, %p15397_p6 }
 0x71e   : > { %12909 = vrot.lane.b32.xlu0 %v12902_v30, %s24017_s6  ;;  %12927 = vrot.lane.b32.xlu1 %v12920_v17, %s24019_s7 }
 0x71f   : > { %p15400_p9 = pnand %p15399_p7, %p15393_p2 }
 0x722   : > { %12945 = vrot.lane.b32.xlu0 %v12938_v12, %s24020_s9  ;;  %12947 = vrot.lane.b32.xlu1 %v12939_v6, %s24020_s9 }
 0x723   : > { %15403 = shalt.err (!%p15400_p9)
}
 0x724   : > { %s15404_s28 = scalar_lea.hbm %s22696_s8, 1024  ;;  %s15408_s7 = scalar_lea.hbm %s22813_s4, 2048 }
 0x725   : > { %p15405_p13 = scmp.ne.s32.totalorder %s22696_s8, %s15404_s28  ;;  %p15409_p0 = scmp.lt.s32.totalorder %s22696_s8, %s22813_s4 }
 0x726   : > { %p15410_p4 = scmp.lt.s32.totalorder %s15408_s7, %s15404_s28 }
 0x727   : > { %p15406_p5 = pnand %p15405_p13, %p24021_p11 }
 0x728   : > { %p15411_p8 = por %p15410_p4, %p15409_p0 }
 0x729   : > { %p15407_p10 = pneg %p15406_p5 }
 0x72b   : > { %p15412_p3 = pnand %p15411_p8, %p15407_p10 }
 0x72d   : > { %15415 = shalt.err (!%p15412_p3)
}
 0x72e   : > { %s15558_s11 = smov 256   ;;  %s24022_s30 = smov 16   ;;  %v24023_v15 = vld [vmem:[#allocation17_spill] sm:$0xff]  ;;  %v12955_v5 = vld [vmem:[%s22812_s3] sm:$0x7] }
 0x72f   : > { %13247 = dma.vmem_to_hbm [thread:$0]  (%p24021_p11), %s22688_s12, 1024, %s22696_s8, %s13008_s26, %s15558_s11, %s15558_s11, %s24022_s30   ;;  %vm24024_vm8 = vcmp.lt.s32.totalorder %v24023_v15, 127  ;;  %vm24025_vm7 = vcmp.lt.s32.totalorder %v24023_v15, 126  ;;  %vm24026_vm10 = vcmp.lt.s32.totalorder %v24023_v15, 125  ;;  %vm24031_vm11 = vcmp.lt.s32.totalorder %v24023_v15, 124  ;;  %v24034_v25 = vld [vmem:[#allocation16_spill] sm:$0xff] }
 0x730   : > { %vm24027_vm2 = vmmov %vm24024_vm8  ;;  %v12967_v47 = vsub.s32 2, %v24034_v25  ;;  %v15559_v58 = vmov 1966171168   ;;  %vm24035_vm6 = vcmp.lt.s32.totalorder %v24023_v15, 123  ;;  %v24038_v14 = vsub.s32 0, %v24034_v25  ;;  %s13235_s26 = smul.u32 3, %s15709_s13 }
 0x731   : > { %vm24028_vm3 = vmmov %vm24027_vm2  ;;  %v12980_v0 = vunpack.c.l.s4 %v15559_v58  ;;  %v24041_v11 = vsub.s32 1, %v24034_v25  ;;  %vm24042_vm0 = vcmp.lt.s32.totalorder %v24023_v15, 122  ;;  %s13236_s24 = smul.u32 48, %s15612_s22  ;;  %v24045_v15 = vlaneseq  ;;  %s13013_s16 = scalar_lea.sflag [#allocation11], %s15709_s13 }
 0x732   : > { %vm24029_vm1 = vmmov %vm24025_vm7  ;;  %v12960_v41 = vrot.slane %v12955_v5, %v24038_v14  ;;  %v12968_v20 = vrot.slane %v12955_v5, %v12967_v47  ;;  %s278_s29 = scalar_lea.vmem [#allocation10], %s13235_s26  ;;  %s15560_s9 = smov [#allocation10]  }
 0x733   : > { %vm24030_vm5 = vmmov %vm24029_vm1  ;;  %v12964_v63 = vrot.slane %v12955_v5, %v24041_v11  ;;  %v12981_v4 = vunpack.c.0.s8 %v12980_v0  ;;  %s13043_s14 = sshll.u32 %s278_s29, 4  ;;  %s13041_s6 = scalar_lea.hbm %s22814_s5, %s13236_s24  ;;  %s13044_s14 = int_to_ptr.vmem [resolvable:$true] %s13043_s14 }
 0x734   : > { %vm24032_vm15 = vmmov %vm24026_vm10  ;;  %s15416_s7 = scalar_lea.vmem %s13044_s14, 48  ;;  %s15420_s22 = sshll.u32 %s15560_s9, 4  ;;  %s15421_s22 = int_to_ptr.vmem [resolvable:$false] %s15420_s22 }
 0x735   : > { %vm24033_vm12 = vmmov %vm24026_vm10  ;;  %p15417_p1 = scmp.ne.s32.totalorder %s13044_s14, %s15416_s7  ;;  %s15422_s17 = scalar_lea.vmem %s15421_s22, 96 }
 0x736   : > { %vm24036_vm13 = vmmov %vm24031_vm11  ;;  %p15423_p12 = scmp.lt.s32.totalorder %s13044_s14, %s15421_s22  ;;  %p15424_p7 = scmp.lt.s32.totalorder %s15422_s17, %s15416_s7 }
 0x737   : > { %vm24037_vm4 = vmmov %vm24031_vm11  ;;  %p15418_p2 = pnand %p15417_p1, %p24021_p11 }
 0x738   : > { %vm24039_vm14 = vmmov %vm24035_vm6  ;;  %p15425_p9 = por %p15424_p7, %p15423_p12 }
 0x739   : > { %vm24040_vm9 = vmmov %vm24035_vm6  ;;  %p15419_p6 = pneg %p15418_p2 }
 0x73b   : > { %p15426_p13 = pnand %p15425_p9, %p15419_p6 }
 0x774   : > { %v12876_v34 = vpop.permute.xlu1 %12875  ;;  %v12858_v48 = vpop.permute.xlu0 %12857 }
 0x778   : > { %v12912_v60 = vpop.permute.xlu1 %12911  ;;  %v12894_v50 = vpop.permute.xlu0 %12893 }
 0x77c   : > { %v12930_v44 = vpop.permute.xlu0 %12929  ;;  %v12872_v22 = vpop.permute.xlu1 %12871 }
 0x77d   : > { %v12879_v3 = vsel %vm24025_vm7, %v12876_v34, %v12872_v22  ;;  %vm24044_vm7 = vmmov %vm24042_vm0 }
 0x780   : > { %v12908_v7 = vpop.permute.xlu1 %12907  ;;  %v12854_v62 = vpop.permute.xlu0 %12853 }
 0x781   : > { %v12861_v42 = vsel %vm24024_vm8, %v12858_v48, %v12854_v62  ;;  %v12915_v23 = vsel %vm24031_vm11, %v12912_v60, %v12908_v7  ;;  %vm24043_vm8 = vmmov %vm24042_vm0 }
 0x782   : > { %v12864_v46 = vadd.f32 %v12861_v42, %v22653_v13 }
 0x784   : > { %v12944_v53 = vpop.permute.xlu1 %12943  ;;  %v12890_v54 = vpop.permute.xlu0 %12889  ;;  %v12882_v31 = vadd.f32 %v12879_v3, %v12864_v46 }
 0x785   : > { %v12897_v35 = vsel %vm24026_vm10, %v12894_v50, %v12890_v54  ;;  %vm13004_vm10 = vcmp.lt.s32.totalorder %v24045_v15, 384 }
 0x786   : > { %v12900_v56 = vadd.f32 %v12897_v35, %v12882_v31 }
 0x788   : > { %v12926_v37 = vpop.permute.xlu0 %12925  ;;  %v12856_v61 = vpop.permute.xlu1 %12855  ;;  %v12918_v59 = vadd.f32 %v12915_v23, %v12900_v56 }
 0x789   : > { %v12859_v57 = vsel %vm24027_vm2, %v12856_v61, %v12858_v48  ;;  %v12860_v38 = vsel %vm24028_vm3, %v12854_v62, %v12856_v61  ;;  %v12933_v13 = vsel %vm24035_vm6, %v12930_v44, %v12926_v37 }
 0x78a   : > { %v12862_v2 = vadd.f32 %v12860_v38, %v22649_v43  ;;  %v12863_v26 = vadd.f32 %v12859_v57, %v22651_v39  ;;  %v12936_v8 = vadd.f32 %v12933_v13, %v12918_v59 }
 0x78c   : > { %v12874_v18 = vpop.permute.xlu0 %12873  ;;  %v12892_v52 = vpop.permute.xlu1 %12891 }
 0x78d   : > { %v12877_v45 = vsel %vm24029_vm1, %v12874_v18, %v12876_v34  ;;  %v12878_v27 = vsel %vm24030_vm5, %v12872_v22, %v12874_v18  ;;  %v12895_v28 = vsel %vm24032_vm15, %v12892_v52, %v12894_v50  ;;  %v12896_v1 = vsel %vm24033_vm12, %v12890_v54, %v12892_v52 }
 0x78e   : > { %v12880_v21 = vadd.f32 %v12878_v27, %v12862_v2  ;;  %v12881_v9 = vadd.f32 %v12877_v45, %v12863_v26  ;;  %v12984_v50 = vsub.s32 %v12981_v4, %v24034_v25 }
 0x790   : > { %v12898_v51 = vadd.f32 %v12896_v1, %v12880_v21  ;;  %v12899_v49 = vadd.f32 %v12895_v28, %v12881_v9  ;;  %v12910_v43 = vpop.permute.xlu0 %12909  ;;  %v12928_v39 = vpop.permute.xlu1 %12927 }
 0x791   : > { %v12913_v32 = vsel %vm24036_vm13, %v12910_v43, %v12912_v60  ;;  %v12914_v55 = vsel %vm24037_vm4, %v12908_v7, %v12910_v43  ;;  %v12931_v36 = vsel %vm24039_vm14, %v12928_v39, %v12930_v44  ;;  %v12932_v10 = vsel %vm24040_vm9, %v12926_v37, %v12928_v39 }
 0x792   : > { %v12916_v40 = vadd.f32 %v12914_v55, %v12898_v51  ;;  %v12917_v33 = vadd.f32 %v12913_v32, %v12899_v49 }
 0x794   : > { %v12934_v24 = vadd.f32 %v12932_v10, %v12916_v40  ;;  %v12935_v16 = vadd.f32 %v12931_v36, %v12917_v33  ;;  %v12946_v19 = vpop.permute.xlu0 %12945  ;;  %v12948_v29 = vpop.permute.xlu1 %12947 }
 0x795   : > { %v12950_v30 = vsel %vm24042_vm0, %v12944_v53, %v12946_v19  ;;  %v12949_v17 = vsel %vm24043_vm8, %v12946_v19, %v12948_v29  ;;  %v12951_v12 = vsel %vm24044_vm7, %v12948_v29, %v12944_v53 }
 0x796   : > { %v12952_v6 = vadd.f32 %v12950_v30, %v12934_v24  ;;  %v12953_v34 = vadd.f32 %v12949_v17, %v12935_v16  ;;  %v12954_v48 = vadd.f32 %v12951_v12, %v12936_v8 }
 0x798   : > { %v12972_v60 = vmul.f32 %v12960_v41, %v12952_v6  ;;  %v12973_v44 = vmul.f32 %v12964_v63, %v12953_v34  ;;  %v12974_v22 = vmul.f32 %v12968_v20, %v12954_v48 }
 0x79a   : > { %v12978_v7 = vcombine.low %v12972_v60, %v12973_v44  ;;  %v12992_v42 = vrot.slane %v12974_v22, %v12984_v50 }
 0x79c   : > { %v12985_v62 = vrot.slane %v12978_v7, %v12984_v50 }
 0x79e   : > { %v12993_v46 = vcombine.low %v12985_v62, %v12992_v42 }
 0x7a0   : > { %v13000_v53 = vrot.slane %v12993_v46, %v12984_v50 }
 0x7a2   : > { %13006 = vst.msk [vmem:[%s278_s29] sm:$0x7] %vm13004_vm10, %v13000_v53 }
 0x7a3   : > { %15429 = shalt.err (!%p15426_p13)
}
 0x7a4   : > { %s15430_s11 = scalar_lea.hbm %s13041_s6, 48  ;;  %s15434_s12 = scalar_lea.hbm %s22814_s5, 96 }
 0x7a5   : > { %p15431_p5 = scmp.ne.s32.totalorder %s13041_s6, %s15430_s11  ;;  %p15435_p4 = scmp.lt.s32.totalorder %s13041_s6, %s22814_s5 }
 0x7a6   : > { %p15436_p8 = scmp.lt.s32.totalorder %s15434_s12, %s15430_s11 }
 0x7a7   : > { %p15432_p10 = pnand %p15431_p5, %p24021_p11 }
 0x7a8   : > { %p15437_p3 = por %p15436_p8, %p15435_p4 }
 0x7a9   : > { %p15433_p0 = pneg %p15432_p10 }
 0x7ab   : > { %p15438_p1 = pnand %p15437_p3, %p15433_p0 }
 0x7ad   : > { %15441 = shalt.err (!%p15438_p1)
}
 0x7ae   : > { %13248 = dma.vmem_to_hbm [thread:$0]  (%p24021_p11), %s13044_s14, 48, %s13041_s6, %s13013_s16  }
 0x7af PF: > { %s13055_s24 = sand.u32 1, %s15476_s18   ;;  %p24046_p2 = scmp.ne.s32.totalorder %s23177_s25, 0 }
 0x7b0   : > { %p24047_p6 = scmp.ge.s32.totalorder %s15488_s21, 2  ;;  %s13056_s29 = scalar_lea.sflag [#allocation5], %s13055_s24 }
 0x7b2   : > { %p13263_p12 = pnand %p24047_p6, %p24046_p2 }
 0x7b4   : > { %p13264_p7 = pneg %p13263_p12 }
 0x7b6   : > { %15467 = dma.done.wait (%p13264_p7), %s13056_s29, 1024  }
 0x7b7   : > { %15469 = vsyncadd (%p13264_p7), %s13056_s29, 4294966272  ;;  %s13065_s10 = scalar_lea.sflag [#allocation11], %s13055_s24 }
 0x7b8   : > { %15471 = dma.done.wait (%p13264_p7), %s13065_s10, 48  }
 0x7b9   : > { %15473 = vsyncadd (%p13264_p7), %s13065_s10, 4294967248  ;;  %p23_p11 = scmp.ge.s32.totalorder %s15663_s15, 4   ;;  %s24048_s18 = smov %s15480_s19 }
 0x7ba   : > { %s24049_s19 = smov %s15484_s20  ;;  %s24050_s20 = smov %s15679_s27 }
 0x7bb   : > { %s24051_s21 = smov %s15663_s15  ;;  %25 = sbr.rel (!%p23_p11) target bundleno = 8 (0x8), region = 106 }
 0x7c0   :  { %13070 = vsyncpa [#allocation4], 1 }
 0x7c1   :  { %13072 = vsyncpa [#allocation4 + $0x1], 1 }
 0x7c2   :  { %13073 = vsyncpa [#allocation7], 1 }
 0x7c3   :  { %13074 = vsyncpa [#allocation5], 1 }
 0x7c4   :  { %13076 = vsyncpa [#allocation5 + $0x1], 1 }
 0x7c5   :  { %13077 = vsyncpa [#allocation11], 1 }
 0x7c6   :  { %13079 = vsyncpa [#allocation11 + $0x1], 1 }

</bundles_post_ra>
